<compile_context>
chip_gen: v7x
topology: tpu7x:2x2x1
jax: 0.10.0
libtpu: 0.0.40
codegen_flags: <defaults>
</compile_context>

<pallas_src>
import functools

import jax
import jax.numpy as jnp
from jax.experimental import pallas as pl
from jax.experimental.pallas import tpu as pltpu


# ----------------------------- helpers -----------------------------

def _round_up(x, m):
    return ((x + m - 1) // m) * m


def _pick_tile(dim, candidates):
    """Pick the tile (from descending `candidates`) minimizing padded size,
    preferring the largest tile on ties."""
    best_t, best_p = None, None
    for c in candidates:
        p = _round_up(dim, c)
        if best_p is None or p < best_p:
            best_t, best_p = c, p
    return best_t, best_p


def _hw_chunk(hw, c, max_elems=512 * 1024):
    """Largest HW chunk that divides HW, is a multiple of 8 (or full), and
    keeps one (1, t, C) f32 block around ~2 MiB."""
    t = hw
    while t % 2 == 0 and (t // 2) % 8 == 0 and t * c > max_elems:
        t //= 2
    return t


# ----------------------------- tiled GEMM (+bias, +tanh) kernel -----------------------------

def _matmul_bias_kernel(a_ref, w_ref, b_ref, o_ref, acc_ref, *, activation):
    k = pl.program_id(2)

    @pl.when(k == 0)
    def _():
        acc_ref[...] = jnp.zeros_like(acc_ref)

    acc_ref[...] += jnp.dot(a_ref[...], w_ref[...],
                            preferred_element_type=jnp.float32)

    @pl.when(k == pl.num_programs(2) - 1)
    def _():
        out = acc_ref[...] + b_ref[...]
        if activation == "tanh":
            out = jnp.tanh(out)
        o_ref[...] = out.astype(o_ref.dtype)


def matmul_bias(a, w, b, activation="none"):
    """(M,K) @ (K,N) + b[N], optional fused tanh.

    bf16 MXU inputs, f32 accumulation, tiled over (M,N,K) with a VMEM
    accumulator and M/N parallel grid axes.  Operands are zero-padded to
    8/128-aligned tile multiples; the padded output is sliced back.
    """
    M, K = a.shape
    K2, N = w.shape
    assert K == K2

    tm = min(256, _round_up(M, 8))
    tn, Np = _pick_tile(N, (256, 128))
    tk, Kp = _pick_tile(K, (512, 256, 128))
    Mp = _round_up(M, tm)

    a_p = a if (Mp, Kp) == (M, K) else jnp.pad(a, ((0, Mp - M), (0, Kp - K)))
    w_p = w if (Kp, Np) == (K, N) else jnp.pad(w, ((0, Kp - K), (0, Np - N)))
    b_p = b if Np == N else jnp.pad(b, (0, Np - N))

    a_p = a_p.astype(jnp.bfloat16)
    w_p = w_p.astype(jnp.bfloat16)
    b_p = b_p.astype(jnp.float32).reshape(1, Np)

    grid = (Mp // tm, Np // tn, Kp // tk)
    cost = pl.CostEstimate(
        flops=2 * Mp * Np * Kp,
        transcendentals=Mp * Np if activation == "tanh" else 0,
        bytes_accessed=a_p.size * 2 + w_p.size * 2 + b_p.size * 4 + Mp * Np * 4,
    )

    out = pl.pallas_call(
        functools.partial(_matmul_bias_kernel, activation=activation),
        grid=grid,
        in_specs=[
            pl.BlockSpec((tm, tk), lambda i, j, k: (i, k)),
            pl.BlockSpec((tk, tn), lambda i, j, k: (k, j)),
            pl.BlockSpec((1, tn), lambda i, j, k: (0, j)),
        ],
        out_specs=pl.BlockSpec((tm, tn), lambda i, j, k: (i, j)),
        out_shape=jax.ShapeDtypeStruct((Mp, Np), jnp.float32),
        scratch_shapes=[pltpu.VMEM((tm, tn), jnp.float32)],
        compiler_params=pltpu.CompilerParams(
            dimension_semantics=("parallel", "parallel", "arbitrary"),
            vmem_limit_bytes=32 * 1024 * 1024,
        ),
        cost_estimate=cost,
    )(a_p, w_p, b_p)

    if (Mp, Np) != (M, N):
        out = out[:M, :N]
    return out


# ----------------------------- InstanceNorm2d (two-pass, HW-chunked) -----------------------------

def _in_stats_kernel(x_ref, s_ref, *, inv_hw, eps):
    h = pl.program_id(1)

    @pl.when(h == 0)
    def _():
        s_ref[...] = jnp.zeros_like(s_ref)

    x = x_ref[...]                                    # (1, t, C) f32
    s = s_ref[...]                                    # (1, 8, C) resident accumulator
    psum = s[:, 0:1, :] + jnp.sum(x, axis=1, keepdims=True)
    psq = s[:, 1:2, :] + jnp.sum(x * x, axis=1, keepdims=True)
    s_ref[:, 0:1, :] = psum
    s_ref[:, 1:2, :] = psq

    @pl.when(h == pl.num_programs(1) - 1)
    def _():
        mean = psum * inv_hw
        var = jnp.maximum(psq * inv_hw - mean * mean, 0.0)   # biased var (PyTorch IN)
        s_ref[:, 0:1, :] = mean
        s_ref[:, 1:2, :] = jax.lax.rsqrt(var + eps)


def _in_apply_kernel(x_ref, s_ref, o_ref, *, relu):
    x = x_ref[...]
    y = (x - s_ref[:, 0:1, :]) * s_ref[:, 1:2, :]
    if relu:
        y = jnp.maximum(y, 0.0)
    o_ref[...] = y


def _in_apply_res_kernel(x_ref, s_ref, r_ref, o_ref):
    x = x_ref[...]
    o_ref[...] = r_ref[...] + (x - s_ref[:, 0:1, :]) * s_ref[:, 1:2, :]


def instance_norm(x, relu=False, residual=None, eps=1e-5):
    """InstanceNorm2d(affine=False, eps=1e-5) per (n,c) over H*W, NHWC input.

    Pass 1: chunked sum / sumsq reduction into a resident (1,8,C) stats block.
    Pass 2: chunked normalize with fused ReLU or residual add.
    """
    N, H, W, C = x.shape
    HW = H * W
    xf = x.reshape(N, HW, C)
    t = _hw_chunk(HW, C)
    nh = HW // t

    chunk_spec = pl.BlockSpec((1, t, C), lambda n, h: (n, h, 0))
    stats_spec = pl.BlockSpec((1, 8, C), lambda n, h: (n, 0, 0))
    cp_red = pltpu.CompilerParams(dimension_semantics=("parallel", "arbitrary"))
    cp_par = pltpu.CompilerParams(dimension_semantics=("parallel", "parallel"))

    stats = pl.pallas_call(
        functools.partial(_in_stats_kernel, inv_hw=1.0 / HW, eps=eps),
        grid=(N, nh),
        in_specs=[chunk_spec],
        out_specs=stats_spec,
        out_shape=jax.ShapeDtypeStruct((N, 8, C), jnp.float32),
        compiler_params=cp_red,
    )(xf)

    if residual is None:
        out = pl.pallas_call(
            functools.partial(_in_apply_kernel, relu=relu),
            grid=(N, nh),
            in_specs=[chunk_spec, stats_spec],
            out_specs=chunk_spec,
            out_shape=jax.ShapeDtypeStruct((N, HW, C), jnp.float32),
            compiler_params=cp_par,
        )(xf, stats)
    else:
        rf = residual.reshape(N, HW, C)
        out = pl.pallas_call(
            _in_apply_res_kernel,
            grid=(N, nh),
            in_specs=[chunk_spec, stats_spec, chunk_spec],
            out_specs=chunk_spec,
            out_shape=jax.ShapeDtypeStruct((N, HW, C), jnp.float32),
            compiler_params=cp_par,
        )(xf, stats, rf)
    return out.reshape(N, H, W, C)


# ----------------------------- conv glue (im2col in plain JAX) -----------------------------

def _extract_patches(x, k, stride):
    # x: pre-padded NHWC -> (N*Ho*Wo, k*k*C) in ((i*k + j)*C + c) order
    N, H, W, C = x.shape
    Ho = (H - k) // stride + 1
    Wo = (W - k) // stride + 1
    cols = []
    for i in range(k):
        for j in range(k):
            cols.append(x[:, i:i + stride * (Ho - 1) + 1:stride,
                             j:j + stride * (Wo - 1) + 1:stride, :])
    patches = jnp.stack(cols, axis=3)                 # (N, Ho, Wo, k*k, C)
    return patches.reshape(N * Ho * Wo, k * k * C), Ho, Wo


def conv2d(x, w, b, stride=1, padding=0, pad_mode="constant", activation="none"):
    # x: NHWC, w: (Cout, Cin, kH, kW) (PyTorch Conv2d layout), b: (Cout,)
    N, H, W, C = x.shape
    Cout, Cin, k, _ = w.shape
    assert C == Cin
    xb = x.astype(jnp.bfloat16)                       # bf16 im2col: halves HBM bytes
    if padding > 0:
        pads = ((0, 0), (padding, padding), (padding, padding), (0, 0))
        xb = jnp.pad(xb, pads, mode="reflect" if pad_mode == "reflect" else "constant")
    # TODO(synk): build the k*k shifted patches inside the GEMM kernel from a
    # haloed input tile (implicit GEMM) to avoid the k*k-fold im2col expansion
    # materialized in HBM.
    patches, Ho, Wo = _extract_patches(xb, k, stride)
    wmat = jnp.transpose(w, (2, 3, 1, 0)).reshape(k * k * Cin, Cout)
    out = matmul_bias(patches, wmat, b, activation=activation)
    return out.reshape(N, Ho, Wo, Cout)


def conv_transpose2d(x, w_t, b, stride=2, padding=1, output_padding=1):
    """ConvTranspose2d(Cin,Cout,k=3,s=2,p=1,op=1) via sub-pixel decomposition.

    out[2i  ,2j  ] = x[i,j]   @T(1,1)
    out[2i  ,2j+1] = x[i,j]   @T(1,2) + x[i,j+1]  @T(1,0)
    out[2i+1,2j  ] = x[i,j]   @T(2,1) + x[i+1,j]  @T(0,1)
    out[2i+1,2j+1] = x[i,j]   @T(2,2) + x[i,j+1]  @T(2,0)
                   + x[i+1,j] @T(0,2) + x[i+1,j+1]@T(0,0)
    with T(a,b) = w_t[:, :, a, b]  (shape (Cin, Cout)); out-of-range taps = 0.
    """
    assert stride == 2 and padding == 1 and output_padding == 1
    N, H, W, Cin = x.shape
    _, Cout, k, _ = w_t.shape
    assert k == 3
    xb = x.astype(jnp.bfloat16)
    sr = jnp.pad(xb[:, :, 1:, :], ((0, 0), (0, 0), (0, 1), (0, 0)))
    sd = jnp.pad(xb[:, 1:, :, :], ((0, 0), (0, 1), (0, 0), (0, 0)))
    sdr = jnp.pad(xb[:, 1:, 1:, :], ((0, 0), (0, 1), (0, 1), (0, 0)))
    M = N * H * W
    x2, sr2, sd2, sdr2 = (t.reshape(M, Cin) for t in (xb, sr, sd, sdr))
    T = lambda a, bb: w_t[:, :, a, bb]                # (Cin, Cout)

    s00 = matmul_bias(x2, T(1, 1), b)
    s01 = matmul_bias(jnp.concatenate([x2, sr2], axis=1),
                      jnp.concatenate([T(1, 2), T(1, 0)], axis=0), b)
    s10 = matmul_bias(jnp.concatenate([x2, sd2], axis=1),
                      jnp.concatenate([T(2, 1), T(0, 1)], axis=0), b)
    s11 = matmul_bias(jnp.concatenate([x2, sr2, sd2, sdr2], axis=1),
                      jnp.concatenate([T(2, 2), T(2, 0), T(0, 2), T(0, 0)], axis=0), b)

    subs = jnp.stack([s00, s01, s10, s11], axis=1)    # (M, 4, Cout)
    subs = subs.reshape(N, H, W, 2, 2, Cout)
    out = jnp.transpose(subs, (0, 1, 3, 2, 4, 5)).reshape(N, 2 * H, 2 * W, Cout)
    return out


# ----------------------------- Generator -----------------------------

def init_params(key):
    params = {}
    keys = iter(jax.random.split(key, 64))
    nk = lambda: next(keys)
    conv = lambda cout, cin, k: 0.02 * jax.random.normal(nk(), (cout, cin, k, k), jnp.float32)
    bias = lambda c: 0.02 * jax.random.normal(nk(), (c,), jnp.float32)

    params["conv1_w"], params["conv1_b"] = conv(64, 3, 7), bias(64)
    params["down1_w"], params["down1_b"] = conv(128, 64, 3), bias(128)
    params["down2_w"], params["down2_b"] = conv(256, 128, 3), bias(256)
    for i in range(9):
        params[f"res{i}_w1"], params[f"res{i}_b1"] = conv(256, 256, 3), bias(256)
        params[f"res{i}_w2"], params[f"res{i}_b2"] = conv(256, 256, 3), bias(256)
    # ConvTranspose2d weight layout is (Cin, Cout, kH, kW)
    params["up1_w"] = 0.02 * jax.random.normal(nk(), (256, 128, 3, 3), jnp.float32)
    params["up1_b"] = bias(128)
    params["up2_w"] = 0.02 * jax.random.normal(nk(), (128, 64, 3, 3), jnp.float32)
    params["up2_b"] = bias(64)
    params["conv2_w"], params["conv2_b"] = conv(3, 64, 7), bias(3)
    return params


def generator_forward(params, x_nchw):
    x = jnp.transpose(x_nchw, (0, 2, 3, 1)).astype(jnp.float32)      # NCHW -> NHWC

    # conv1: Conv2d(3,64,k7,p3,reflect) + IN + ReLU
    h = conv2d(x, params["conv1_w"], params["conv1_b"], stride=1, padding=3, pad_mode="reflect")
    h = instance_norm(h, relu=True)
    # down1: Conv2d(64,128,k3,s2,p1) + IN + ReLU
    h = conv2d(h, params["down1_w"], params["down1_b"], stride=2, padding=1)
    h = instance_norm(h, relu=True)
    # down2: Conv2d(128,256,k3,s2,p1) + IN + ReLU
    h = conv2d(h, params["down2_w"], params["down2_b"], stride=2, padding=1)
    h = instance_norm(h, relu=True)
    # 9 residual blocks: x + IN(conv(ReLU(IN(conv(x)))))
    for i in range(9):
        r = h
        t = conv2d(h, params[f"res{i}_w1"], params[f"res{i}_b1"], padding=1, pad_mode="reflect")
        t = instance_norm(t, relu=True)
        t = conv2d(t, params[f"res{i}_w2"], params[f"res{i}_b2"], padding=1, pad_mode="reflect")
        h = instance_norm(t, relu=False, residual=r)                 # residual add fused
    # up1: ConvTranspose2d(256,128,k3,s2,p1,op1) + IN + ReLU
    h = conv_transpose2d(h, params["up1_w"], params["up1_b"])
    h = instance_norm(h, relu=True)
    # up2: ConvTranspose2d(128,64,k3,s2,p1,op1) + IN + ReLU
    h = conv_transpose2d(h, params["up2_w"], params["up2_b"])
    h = instance_norm(h, relu=True)
    # conv2: Conv2d(64,3,k7,p3,reflect) + Tanh (tanh fused into the GEMM epilogue)
    h = conv2d(h, params["conv2_w"], params["conv2_b"], padding=3, pad_mode="reflect",
               activation="tanh")

    return jnp.transpose(h, (0, 3, 1, 2))                            # NHWC -> NCHW


if __name__ == "__main__":
    key = jax.random.PRNGKey(0)
    pkey, xkey = jax.random.split(key)
    params = init_params(pkey)
    x = jax.random.normal(xkey, (2, 3, 16, 16), jnp.float32)         # small NCHW input

    out = jax.jit(generator_forward)(params, x)
    out = jax.block_until_ready(out)

    assert out.shape == (2, 3, 16, 16), out.shape
    assert bool(jnp.all(jnp.isfinite(out)))
    assert bool(jnp.all(jnp.abs(out) <= 1.0))                        # tanh output range
    print("KERNEL_OK")
</pallas_src>

<mosaic_0001>
module attributes {stable_mosaic.version = 11 : i64} {
  func.func @_in_stats_kernel(%arg0: i32, %arg1: i32, %arg2: memref<1x256x64xf32, #tpu.memory_space<vmem>>, %arg3: memref<1x8x64xf32, #tpu.memory_space<vmem>>) attributes {dimension_semantics = [#tpu.dimension_semantics<parallel>, #tpu.dimension_semantics<arbitrary>], iteration_bounds = array<i64: 2, 1>, scalar_prefetch = 0 : i64, scratch_operands = 0 : i64, tpu.core_type = #tpu.core_type<tc>, window_params = [{transform_indices = @transform_0, window_bounds = array<i64: 1, 256, 64>}, {transform_indices = @transform_1, window_bounds = array<i64: 1, 8, 64>}]} {
    %c0_i32 = arith.constant 0 : i32
    %0 = arith.cmpi eq, %arg1, %c0_i32 : i32
    %1 = arith.extui %0 : i1 to i32
    %c0_i32_0 = arith.constant 0 : i32
    %2 = arith.cmpi ne, %1, %c0_i32_0 : i32
    scf.if %2 {
      %cst_14 = arith.constant 0.000000e+00 : f32
      %19 = vector.broadcast %cst_14 : f32 to vector<1x8x64xf32>
      %c0_15 = arith.constant 0 : index
      %c0_16 = arith.constant 0 : index
      %c0_17 = arith.constant 0 : index
      %20 = vector.load %arg3[%c0_15, %c0_16, %c0_17] : memref<1x8x64xf32, #tpu.memory_space<vmem>>, vector<1x8x64xf32>
      tpu.vector_store %arg3[%c0_15, %c0_16, %c0_17], %19 {strides = array<i32>} : memref<1x8x64xf32, #tpu.memory_space<vmem>>, vector<1x8x64xf32>,
    } else {
    }
    %c0 = arith.constant 0 : index
    %c0_1 = arith.constant 0 : index
    %c0_2 = arith.constant 0 : index
    %3 = vector.load %arg2[%c0, %c0_1, %c0_2] : memref<1x256x64xf32, #tpu.memory_space<vmem>>, vector<1x256x64xf32>
    %c0_3 = arith.constant 0 : index
    %c0_4 = arith.constant 0 : index
    %c0_5 = arith.constant 0 : index
    %4 = vector.load %arg3[%c0_3, %c0_4, %c0_5] : memref<1x8x64xf32, #tpu.memory_space<vmem>>, vector<1x8x64xf32>
    %5 = vector.extract_strided_slice %4 {offsets = [0, 0, 0], sizes = [1, 1, 64], strides = [1, 1, 1]} : vector<1x8x64xf32> to vector<1x1x64xf32>
    %cst = arith.constant dense<0.000000e+00> : vector<1x64xf32>
    %6 = vector.multi_reduction <add>, %3, %cst [1] : vector<1x256x64xf32> to vector<1x64xf32>
    %7 = vector.shape_cast %6 : vector<1x64xf32> to vector<1x1x64xf32>
    %8 = arith.addf %5, %7 : vector<1x1x64xf32>
    %9 = vector.extract_strided_slice %4 {offsets = [0, 1, 0], sizes = [1, 1, 64], strides = [1, 1, 1]} : vector<1x8x64xf32> to vector<1x1x64xf32>
    %10 = arith.mulf %3, %3 : vector<1x256x64xf32>
    %cst_6 = arith.constant dense<0.000000e+00> : vector<1x64xf32>
    %11 = vector.multi_reduction <add>, %10, %cst_6 [1] : vector<1x256x64xf32> to vector<1x64xf32>
    %12 = vector.shape_cast %11 : vector<1x64xf32> to vector<1x1x64xf32>
    %13 = arith.addf %9, %12 : vector<1x1x64xf32>
    %c0_7 = arith.constant 0 : index
    %c0_8 = arith.constant 0 : index
    %c0_9 = arith.constant 0 : index
    %14 = vector.load %arg3[%c0_7, %c0_8, %c0_9] : memref<1x8x64xf32, #tpu.memory_space<vmem>>, vector<1x1x64xf32>
    tpu.vector_store %arg3[%c0_7, %c0_8, %c0_9], %8 {strides = array<i32>} : memref<1x8x64xf32, #tpu.memory_space<vmem>>, vector<1x1x64xf32>,
    %c0_10 = arith.constant 0 : index
    %c1 = arith.constant 1 : index
    %c0_11 = arith.constant 0 : index
    %15 = vector.load %arg3[%c0_10, %c1, %c0_11] : memref<1x8x64xf32, #tpu.memory_space<vmem>>, vector<1x1x64xf32>
    tpu.vector_store %arg3[%c0_10, %c1, %c0_11], %13 {strides = array<i32>} : memref<1x8x64xf32, #tpu.memory_space<vmem>>, vector<1x1x64xf32>,
    %c0_i32_12 = arith.constant 0 : i32
    %16 = arith.cmpi eq, %arg1, %c0_i32_12 : i32
    %17 = arith.extui %16 : i1 to i32
    %c0_i32_13 = arith.constant 0 : i32
    %18 = arith.cmpi ne, %17, %c0_i32_13 : i32
    scf.if %18 {
      %cst_14 = arith.constant 3.906250e-03 : f32
      %19 = vector.broadcast %cst_14 : f32 to vector<1x1x64xf32>
      %20 = arith.mulf %8, %19 : vector<1x1x64xf32>
      %cst_15 = arith.constant 3.906250e-03 : f32
      %21 = vector.broadcast %cst_15 : f32 to vector<1x1x64xf32>
      %22 = arith.mulf %13, %21 : vector<1x1x64xf32>
      %23 = arith.mulf %20, %20 : vector<1x1x64xf32>
      %24 = arith.subf %22, %23 : vector<1x1x64xf32>
      %cst_16 = arith.constant 0.000000e+00 : f32
      %25 = vector.broadcast %cst_16 : f32 to vector<1x1x64xf32>
      %26 = arith.maximumf %24, %25 : vector<1x1x64xf32>
      %c0_17 = arith.constant 0 : index
      %c0_18 = arith.constant 0 : index
      %c0_19 = arith.constant 0 : index
      %27 = vector.load %arg3[%c0_17, %c0_18, %c0_19] : memref<1x8x64xf32, #tpu.memory_space<vmem>>, vector<1x1x64xf32>
      tpu.vector_store %arg3[%c0_17, %c0_18, %c0_19], %20 {strides = array<i32>} : memref<1x8x64xf32, #tpu.memory_space<vmem>>, vector<1x1x64xf32>,
      %cst_20 = arith.constant 9.99999974E-6 : f32
      %28 = vector.broadcast %cst_20 : f32 to vector<1x1x64xf32>
      %29 = arith.addf %26, %28 : vector<1x1x64xf32>
      %30 = math.rsqrt %29 : vector<1x1x64xf32>
      %c0_21 = arith.constant 0 : index
      %c1_22 = arith.constant 1 : index
      %c0_23 = arith.constant 0 : index
      %31 = vector.load %arg3[%c0_21, %c1_22, %c0_23] : memref<1x8x64xf32, #tpu.memory_space<vmem>>, vector<1x1x64xf32>
      tpu.vector_store %arg3[%c0_21, %c1_22, %c0_23], %30 {strides = array<i32>} : memref<1x8x64xf32, #tpu.memory_space<vmem>>, vector<1x1x64xf32>,
    } else {
    }
    return
  }
  func.func @transform_0(%arg0: i32, %arg1: i32) -> (i32, i32, i32) {
    %c0_i32 = arith.constant 0 : i32
    %c0_i32_0 = arith.constant 0 : i32
    return %arg0, %arg1, %c0_i32 : i32, i32, i32
  }
  func.func @transform_1(%arg0: i32, %arg1: i32) -> (i32, i32, i32) {
    %c0_i32 = arith.constant 0 : i32
    %c0_i32_0 = arith.constant 0 : i32
    %c0_i32_1 = arith.constant 0 : i32
    return %arg0, %c0_i32, %c0_i32_0 : i32, i32, i32
  }
}

module attributes {stable_mosaic.version = 11 : i64} {
  func.func @_matmul_bias_kernel(%arg0: i32, %arg1: i32, %arg2: i32, %arg3: memref<256x256xbf16, #tpu.memory_space<vmem>>, %arg4: memref<256x128xbf16, #tpu.memory_space<vmem>>, %arg5: memref<1x128xf32, #tpu.memory_space<vmem>>, %arg6: memref<256x128xf32, #tpu.memory_space<vmem>>, %arg7: memref<256x128xf32, #tpu.memory_space<vmem>>) attributes {dimension_semantics = [#tpu.dimension_semantics<parallel>, #tpu.dimension_semantics<parallel>, #tpu.dimension_semantics<arbitrary>], iteration_bounds = array<i64: 2, 1, 1>, scalar_prefetch = 0 : i64, scratch_operands = 1 : i64, tpu.core_type = #tpu.core_type<tc>, window_params = [{transform_indices = @transform_0, window_bounds = array<i64: 256, 256>}, {transform_indices = @transform_1, window_bounds = array<i64: 256, 128>}, {transform_indices = @transform_2, window_bounds = array<i64: 1, 128>}, {transform_indices = @transform_3, window_bounds = array<i64: 256, 128>}]} {
    %c0_i32 = arith.constant 0 : i32
    %0 = arith.cmpi eq, %arg2, %c0_i32 : i32
    %1 = arith.extui %0 : i1 to i32
    %c0_i32_0 = arith.constant 0 : i32
    %2 = arith.cmpi ne, %1, %c0_i32_0 : i32
    scf.if %2 {
      %cst_10 = arith.constant 0.000000e+00 : f32
      %12 = vector.broadcast %cst_10 : f32 to vector<256x128xf32>
      %c0_11 = arith.constant 0 : index
      %c0_12 = arith.constant 0 : index
      %13 = vector.load %arg7[%c0_11, %c0_12] : memref<256x128xf32, #tpu.memory_space<vmem>>, vector<256x128xf32>
      tpu.vector_store %arg7[%c0_11, %c0_12], %12 {strides = array<i32>} : memref<256x128xf32, #tpu.memory_space<vmem>>, vector<256x128xf32>,
    } else {
    }
    %c0 = arith.constant 0 : index
    %c0_1 = arith.constant 0 : index
    %3 = vector.load %arg7[%c0, %c0_1] : memref<256x128xf32, #tpu.memory_space<vmem>>, vector<256x128xf32>
    %c0_2 = arith.constant 0 : index
    %c0_3 = arith.constant 0 : index
    %4 = vector.load %arg3[%c0_2, %c0_3] : memref<256x256xbf16, #tpu.memory_space<vmem>>, vector<256x256xbf16>
    %c0_4 = arith.constant 0 : index
    %c0_5 = arith.constant 0 : index
    %5 = vector.load %arg4[%c0_4, %c0_5] : memref<256x128xbf16, #tpu.memory_space<vmem>>, vector<256x128xbf16>
    %cst = arith.constant dense<0.000000e+00> : vector<256x128xf32>
    %6 = tpu.matmul %4, %5, %cst {dimension_numbers = #tpu.dot_dimension_numbers<[1], [0], [0], [1], [0, 0, 1, 1], [], []>} : vector<256x256xbf16>, vector<256x128xbf16>, vector<256x128xf32> -> vector<256x128xf32>
    %7 = arith.addf %3, %6 : vector<256x128xf32>
    %c0_6 = arith.constant 0 : index
    %c0_7 = arith.constant 0 : index
    %8 = vector.load %arg7[%c0_6, %c0_7] : memref<256x128xf32, #tpu.memory_space<vmem>>, vector<256x128xf32>
    tpu.vector_store %arg7[%c0_6, %c0_7], %7 {strides = array<i32>} : memref<256x128xf32, #tpu.memory_space<vmem>>, vector<256x128xf32>,
    %c0_i32_8 = arith.constant 0 : i32
    %9 = arith.cmpi eq, %arg2, %c0_i32_8 : i32
    %10 = arith.extui %9 : i1 to i32
    %c0_i32_9 = arith.constant 0 : i32
    %11 = arith.cmpi ne, %10, %c0_i32_9 : i32
    scf.if %11 {
      %c0_10 = arith.constant 0 : index
      %c0_11 = arith.constant 0 : index
      %12 = vector.load %arg7[%c0_10, %c0_11] : memref<256x128xf32, #tpu.memory_space<vmem>>, vector<256x128xf32>
      %c0_12 = arith.constant 0 : index
      %c0_13 = arith.constant 0 : index
      %13 = vector.load %arg5[%c0_12, %c0_13] : memref<1x128xf32, #tpu.memory_space<vmem>>, vector<1x128xf32>
      %14 = vector.broadcast %13 : vector<1x128xf32> to vector<256x128xf32>
      %15 = arith.addf %12, %14 : vector<256x128xf32>
      %c0_14 = arith.constant 0 : index
      %c0_15 = arith.constant 0 : index
      %16 = vector.load %arg6[%c0_14, %c0_15] : memref<256x128xf32, #tpu.memory_space<vmem>>, vector<256x128xf32>
      tpu.vector_store %arg6[%c0_14, %c0_15], %15 {strides = array<i32>} : memref<256x128xf32, #tpu.memory_space<vmem>>, vector<256x128xf32>,
    } else {
    }
    return
  }
  func.func @transform_0(%arg0: i32, %arg1: i32, %arg2: i32) -> (i32, i32) {
    %c0_i32 = arith.constant 0 : i32
    return %arg0, %arg2 : i32, i32
  }
  func.func @transform_1(%arg0: i32, %arg1: i32, %arg2: i32) -> (i32, i32) {
    %c0_i32 = arith.constant 0 : i32
    return %arg2, %arg1 : i32, i32
  }
  func.func @transform_2(%arg0: i32, %arg1: i32, %arg2: i32) -> (i32, i32) {
    %c0_i32 = arith.constant 0 : i32
    %c0_i32_0 = arith.constant 0 : i32
    return %c0_i32, %arg1 : i32, i32
  }
  func.func @transform_3(%arg0: i32, %arg1: i32, %arg2: i32) -> (i32, i32) {
    %c0_i32 = arith.constant 0 : i32
    return %arg0, %arg1 : i32, i32
  }
}

module attributes {stable_mosaic.version = 11 : i64} {
  func.func @_in_apply_kernel(%arg0: i32, %arg1: i32, %arg2: memref<1x256x64xf32, #tpu.memory_space<vmem>>, %arg3: memref<1x8x64xf32, #tpu.memory_space<vmem>>, %arg4: memref<1x256x64xf32, #tpu.memory_space<vmem>>) attributes {dimension_semantics = [#tpu.dimension_semantics<parallel>, #tpu.dimension_semantics<parallel>], iteration_bounds = array<i64: 2, 1>, scalar_prefetch = 0 : i64, scratch_operands = 0 : i64, tpu.core_type = #tpu.core_type<tc>, window_params = [{transform_indices = @transform_0, window_bounds = array<i64: 1, 256, 64>}, {transform_indices = @transform_1, window_bounds = array<i64: 1, 8, 64>}, {transform_indices = @transform_2, window_bounds = array<i64: 1, 256, 64>}]} {
    %c0 = arith.constant 0 : index
    %c0_0 = arith.constant 0 : index
    %c0_1 = arith.constant 0 : index
    %0 = vector.load %arg2[%c0, %c0_0, %c0_1] : memref<1x256x64xf32, #tpu.memory_space<vmem>>, vector<1x256x64xf32>
    %c0_2 = arith.constant 0 : index
    %c0_3 = arith.constant 0 : index
    %c0_4 = arith.constant 0 : index
    %1 = vector.load %arg3[%c0_2, %c0_3, %c0_4] : memref<1x8x64xf32, #tpu.memory_space<vmem>>, vector<1x1x64xf32>
    %2 = vector.broadcast %1 : vector<1x1x64xf32> to vector<1x256x64xf32>
    %3 = arith.subf %0, %2 : vector<1x256x64xf32>
    %c0_5 = arith.constant 0 : index
    %c1 = arith.constant 1 : index
    %c0_6 = arith.constant 0 : index
    %4 = vector.load %arg3[%c0_5, %c1, %c0_6] : memref<1x8x64xf32, #tpu.memory_space<vmem>>, vector<1x1x64xf32>
    %5 = vector.broadcast %4 : vector<1x1x64xf32> to vector<1x256x64xf32>
    %6 = arith.mulf %3, %5 : vector<1x256x64xf32>
    %cst = arith.constant 0.000000e+00 : f32
    %7 = vector.broadcast %cst : f32 to vector<1x256x64xf32>
    %8 = arith.maximumf %6, %7 : vector<1x256x64xf32>
    %c0_7 = arith.constant 0 : index
    %c0_8 = arith.constant 0 : index
    %c0_9 = arith.constant 0 : index
    %9 = vector.load %arg4[%c0_7, %c0_8, %c0_9] : memref<1x256x64xf32, #tpu.memory_space<vmem>>, vector<1x256x64xf32>
    tpu.vector_store %arg4[%c0_7, %c0_8, %c0_9], %8 {strides = array<i32>} : memref<1x256x64xf32, #tpu.memory_space<vmem>>, vector<1x256x64xf32>,
    return
  }
  func.func @transform_0(%arg0: i32, %arg1: i32) -> (i32, i32, i32) {
    %c0_i32 = arith.constant 0 : i32
    %c0_i32_0 = arith.constant 0 : i32
    return %arg0, %arg1, %c0_i32 : i32, i32, i32
  }
  func.func @transform_1(%arg0: i32, %arg1: i32) -> (i32, i32, i32) {
    %c0_i32 = arith.constant 0 : i32
    %c0_i32_0 = arith.constant 0 : i32
    %c0_i32_1 = arith.constant 0 : i32
    return %arg0, %c0_i32, %c0_i32_0 : i32, i32, i32
  }
  func.func @transform_2(%arg0: i32, %arg1: i32) -> (i32, i32, i32) {
    %c0_i32 = arith.constant 0 : i32
    %c0_i32_0 = arith.constant 0 : i32
    return %arg0, %arg1, %c0_i32 : i32, i32, i32
  }
}

module attributes {stable_mosaic.version = 11 : i64} {
  func.func @_matmul_bias_kernel(%arg0: i32, %arg1: i32, %arg2: i32, %arg3: memref<128x128xbf16, #tpu.memory_space<vmem>>, %arg4: memref<128x128xbf16, #tpu.memory_space<vmem>>, %arg5: memref<1x128xf32, #tpu.memory_space<vmem>>, %arg6: memref<128x128xf32, #tpu.memory_space<vmem>>, %arg7: memref<128x128xf32, #tpu.memory_space<vmem>>) attributes {dimension_semantics = [#tpu.dimension_semantics<parallel>, #tpu.dimension_semantics<parallel>, #tpu.dimension_semantics<arbitrary>], iteration_bounds = array<i64: 1, 1, 5>, scalar_prefetch = 0 : i64, scratch_operands = 1 : i64, tpu.core_type = #tpu.core_type<tc>, window_params = [{transform_indices = @transform_0, window_bounds = array<i64: 128, 128>}, {transform_indices = @transform_1, window_bounds = array<i64: 128, 128>}, {transform_indices = @transform_2, window_bounds = array<i64: 1, 128>}, {transform_indices = @transform_3, window_bounds = array<i64: 128, 128>}]} {
    %c0_i32 = arith.constant 0 : i32
    %0 = arith.cmpi eq, %arg2, %c0_i32 : i32
    %1 = arith.extui %0 : i1 to i32
    %c0_i32_0 = arith.constant 0 : i32
    %2 = arith.cmpi ne, %1, %c0_i32_0 : i32
    scf.if %2 {
      %cst_9 = arith.constant 0.000000e+00 : f32
      %12 = vector.broadcast %cst_9 : f32 to vector<128x128xf32>
      %c0_10 = arith.constant 0 : index
      %c0_11 = arith.constant 0 : index
      %13 = vector.load %arg7[%c0_10, %c0_11] : memref<128x128xf32, #tpu.memory_space<vmem>>, vector<128x128xf32>
      tpu.vector_store %arg7[%c0_10, %c0_11], %12 {strides = array<i32>} : memref<128x128xf32, #tpu.memory_space<vmem>>, vector<128x128xf32>,
    } else {
    }
    %c0 = arith.constant 0 : index
    %c0_1 = arith.constant 0 : index
    %3 = vector.load %arg7[%c0, %c0_1] : memref<128x128xf32, #tpu.memory_space<vmem>>, vector<128x128xf32>
    %c0_2 = arith.constant 0 : index
    %c0_3 = arith.constant 0 : index
    %4 = vector.load %arg3[%c0_2, %c0_3] : memref<128x128xbf16, #tpu.memory_space<vmem>>, vector<128x128xbf16>
    %c0_4 = arith.constant 0 : index
    %c0_5 = arith.constant 0 : index
    %5 = vector.load %arg4[%c0_4, %c0_5] : memref<128x128xbf16, #tpu.memory_space<vmem>>, vector<128x128xbf16>
    %cst = arith.constant dense<0.000000e+00> : vector<128x128xf32>
    %6 = tpu.matmul %4, %5, %cst {dimension_numbers = #tpu.dot_dimension_numbers<[1], [0], [0], [1], [0, 0, 1, 1], [], []>} : vector<128x128xbf16>, vector<128x128xbf16>, vector<128x128xf32> -> vector<128x128xf32>
    %7 = arith.addf %3, %6 : vector<128x128xf32>
    %c0_6 = arith.constant 0 : index
    %c0_7 = arith.constant 0 : index
    %8 = vector.load %arg7[%c0_6, %c0_7] : memref<128x128xf32, #tpu.memory_space<vmem>>, vector<128x128xf32>
    tpu.vector_store %arg7[%c0_6, %c0_7], %7 {strides = array<i32>} : memref<128x128xf32, #tpu.memory_space<vmem>>, vector<128x128xf32>,
    %c4_i32 = arith.constant 4 : i32
    %9 = arith.cmpi eq, %arg2, %c4_i32 : i32
    %10 = arith.extui %9 : i1 to i32
    %c0_i32_8 = arith.constant 0 : i32
    %11 = arith.cmpi ne, %10, %c0_i32_8 : i32
    scf.if %11 {
      %c0_9 = arith.constant 0 : index
      %c0_10 = arith.constant 0 : index
      %12 = vector.load %arg7[%c0_9, %c0_10] : memref<128x128xf32, #tpu.memory_space<vmem>>, vector<128x128xf32>
      %c0_11 = arith.constant 0 : index
      %c0_12 = arith.constant 0 : index
      %13 = vector.load %arg5[%c0_11, %c0_12] : memref<1x128xf32, #tpu.memory_space<vmem>>, vector<1x128xf32>
      %14 = vector.broadcast %13 : vector<1x128xf32> to vector<128x128xf32>
      %15 = arith.addf %12, %14 : vector<128x128xf32>
      %c0_13 = arith.constant 0 : index
      %c0_14 = arith.constant 0 : index
      %16 = vector.load %arg6[%c0_13, %c0_14] : memref<128x128xf32, #tpu.memory_space<vmem>>, vector<128x128xf32>
      tpu.vector_store %arg6[%c0_13, %c0_14], %15 {strides = array<i32>} : memref<128x128xf32, #tpu.memory_space<vmem>>, vector<128x128xf32>,
    } else {
    }
    return
  }
  func.func @transform_0(%arg0: i32, %arg1: i32, %arg2: i32) -> (i32, i32) {
    %c0_i32 = arith.constant 0 : i32
    return %arg0, %arg2 : i32, i32
  }
  func.func @transform_1(%arg0: i32, %arg1: i32, %arg2: i32) -> (i32, i32) {
    %c0_i32 = arith.constant 0 : i32
    return %arg2, %arg1 : i32, i32
  }
  func.func @transform_2(%arg0: i32, %arg1: i32, %arg2: i32) -> (i32, i32) {
    %c0_i32 = arith.constant 0 : i32
    %c0_i32_0 = arith.constant 0 : i32
    return %c0_i32, %arg1 : i32, i32
  }
  func.func @transform_3(%arg0: i32, %arg1: i32, %arg2: i32) -> (i32, i32) {
    %c0_i32 = arith.constant 0 : i32
    return %arg0, %arg1 : i32, i32
  }
}

module attributes {stable_mosaic.version = 11 : i64} {
  func.func @_in_stats_kernel(%arg0: i32, %arg1: i32, %arg2: memref<1x64x128xf32, #tpu.memory_space<vmem>>, %arg3: memref<1x8x128xf32, #tpu.memory_space<vmem>>) attributes {dimension_semantics = [#tpu.dimension_semantics<parallel>, #tpu.dimension_semantics<arbitrary>], iteration_bounds = array<i64: 2, 1>, scalar_prefetch = 0 : i64, scratch_operands = 0 : i64, tpu.core_type = #tpu.core_type<tc>, window_params = [{transform_indices = @transform_0, window_bounds = array<i64: 1, 64, 128>}, {transform_indices = @transform_1, window_bounds = array<i64: 1, 8, 128>}]} {
    %c0_i32 = arith.constant 0 : i32
    %0 = arith.cmpi eq, %arg1, %c0_i32 : i32
    %1 = arith.extui %0 : i1 to i32
    %c0_i32_0 = arith.constant 0 : i32
    %2 = arith.cmpi ne, %1, %c0_i32_0 : i32
    scf.if %2 {
      %cst_14 = arith.constant 0.000000e+00 : f32
      %19 = vector.broadcast %cst_14 : f32 to vector<1x8x128xf32>
      %c0_15 = arith.constant 0 : index
      %c0_16 = arith.constant 0 : index
      %c0_17 = arith.constant 0 : index
      %20 = vector.load %arg3[%c0_15, %c0_16, %c0_17] : memref<1x8x128xf32, #tpu.memory_space<vmem>>, vector<1x8x128xf32>
      tpu.vector_store %arg3[%c0_15, %c0_16, %c0_17], %19 {strides = array<i32>} : memref<1x8x128xf32, #tpu.memory_space<vmem>>, vector<1x8x128xf32>,
    } else {
    }
    %c0 = arith.constant 0 : index
    %c0_1 = arith.constant 0 : index
    %c0_2 = arith.constant 0 : index
    %3 = vector.load %arg2[%c0, %c0_1, %c0_2] : memref<1x64x128xf32, #tpu.memory_space<vmem>>, vector<1x64x128xf32>
    %c0_3 = arith.constant 0 : index
    %c0_4 = arith.constant 0 : index
    %c0_5 = arith.constant 0 : index
    %4 = vector.load %arg3[%c0_3, %c0_4, %c0_5] : memref<1x8x128xf32, #tpu.memory_space<vmem>>, vector<1x8x128xf32>
    %5 = vector.extract_strided_slice %4 {offsets = [0, 0, 0], sizes = [1, 1, 128], strides = [1, 1, 1]} : vector<1x8x128xf32> to vector<1x1x128xf32>
    %cst = arith.constant dense<0.000000e+00> : vector<1x128xf32>
    %6 = vector.multi_reduction <add>, %3, %cst [1] : vector<1x64x128xf32> to vector<1x128xf32>
    %7 = vector.shape_cast %6 : vector<1x128xf32> to vector<1x1x128xf32>
    %8 = arith.addf %5, %7 : vector<1x1x128xf32>
    %9 = vector.extract_strided_slice %4 {offsets = [0, 1, 0], sizes = [1, 1, 128], strides = [1, 1, 1]} : vector<1x8x128xf32> to vector<1x1x128xf32>
    %10 = arith.mulf %3, %3 : vector<1x64x128xf32>
    %cst_6 = arith.constant dense<0.000000e+00> : vector<1x128xf32>
    %11 = vector.multi_reduction <add>, %10, %cst_6 [1] : vector<1x64x128xf32> to vector<1x128xf32>
    %12 = vector.shape_cast %11 : vector<1x128xf32> to vector<1x1x128xf32>
    %13 = arith.addf %9, %12 : vector<1x1x128xf32>
    %c0_7 = arith.constant 0 : index
    %c0_8 = arith.constant 0 : index
    %c0_9 = arith.constant 0 : index
    %14 = vector.load %arg3[%c0_7, %c0_8, %c0_9] : memref<1x8x128xf32, #tpu.memory_space<vmem>>, vector<1x1x128xf32>
    tpu.vector_store %arg3[%c0_7, %c0_8, %c0_9], %8 {strides = array<i32>} : memref<1x8x128xf32, #tpu.memory_space<vmem>>, vector<1x1x128xf32>,
    %c0_10 = arith.constant 0 : index
    %c1 = arith.constant 1 : index
    %c0_11 = arith.constant 0 : index
    %15 = vector.load %arg3[%c0_10, %c1, %c0_11] : memref<1x8x128xf32, #tpu.memory_space<vmem>>, vector<1x1x128xf32>
    tpu.vector_store %arg3[%c0_10, %c1, %c0_11], %13 {strides = array<i32>} : memref<1x8x128xf32, #tpu.memory_space<vmem>>, vector<1x1x128xf32>,
    %c0_i32_12 = arith.constant 0 : i32
    %16 = arith.cmpi eq, %arg1, %c0_i32_12 : i32
    %17 = arith.extui %16 : i1 to i32
    %c0_i32_13 = arith.constant 0 : i32
    %18 = arith.cmpi ne, %17, %c0_i32_13 : i32
    scf.if %18 {
      %cst_14 = arith.constant 1.562500e-02 : f32
      %19 = vector.broadcast %cst_14 : f32 to vector<1x1x128xf32>
      %20 = arith.mulf %8, %19 : vector<1x1x128xf32>
      %cst_15 = arith.constant 1.562500e-02 : f32
      %21 = vector.broadcast %cst_15 : f32 to vector<1x1x128xf32>
      %22 = arith.mulf %13, %21 : vector<1x1x128xf32>
      %23 = arith.mulf %20, %20 : vector<1x1x128xf32>
      %24 = arith.subf %22, %23 : vector<1x1x128xf32>
      %cst_16 = arith.constant 0.000000e+00 : f32
      %25 = vector.broadcast %cst_16 : f32 to vector<1x1x128xf32>
      %26 = arith.maximumf %24, %25 : vector<1x1x128xf32>
      %c0_17 = arith.constant 0 : index
      %c0_18 = arith.constant 0 : index
      %c0_19 = arith.constant 0 : index
      %27 = vector.load %arg3[%c0_17, %c0_18, %c0_19] : memref<1x8x128xf32, #tpu.memory_space<vmem>>, vector<1x1x128xf32>
      tpu.vector_store %arg3[%c0_17, %c0_18, %c0_19], %20 {strides = array<i32>} : memref<1x8x128xf32, #tpu.memory_space<vmem>>, vector<1x1x128xf32>,
      %cst_20 = arith.constant 9.99999974E-6 : f32
      %28 = vector.broadcast %cst_20 : f32 to vector<1x1x128xf32>
      %29 = arith.addf %26, %28 : vector<1x1x128xf32>
      %30 = math.rsqrt %29 : vector<1x1x128xf32>
      %c0_21 = arith.constant 0 : index
      %c1_22 = arith.constant 1 : index
      %c0_23 = arith.constant 0 : index
      %31 = vector.load %arg3[%c0_21, %c1_22, %c0_23] : memref<1x8x128xf32, #tpu.memory_space<vmem>>, vector<1x1x128xf32>
      tpu.vector_store %arg3[%c0_21, %c1_22, %c0_23], %30 {strides = array<i32>} : memref<1x8x128xf32, #tpu.memory_space<vmem>>, vector<1x1x128xf32>,
    } else {
    }
    return
  }
  func.func @transform_0(%arg0: i32, %arg1: i32) -> (i32, i32, i32) {
    %c0_i32 = arith.constant 0 : i32
    %c0_i32_0 = arith.constant 0 : i32
    return %arg0, %arg1, %c0_i32 : i32, i32, i32
  }
  func.func @transform_1(%arg0: i32, %arg1: i32) -> (i32, i32, i32) {
    %c0_i32 = arith.constant 0 : i32
    %c0_i32_0 = arith.constant 0 : i32
    %c0_i32_1 = arith.constant 0 : i32
    return %arg0, %c0_i32, %c0_i32_0 : i32, i32, i32
  }
}

module attributes {stable_mosaic.version = 11 : i64} {
  func.func @_in_apply_kernel(%arg0: i32, %arg1: i32, %arg2: memref<1x64x128xf32, #tpu.memory_space<vmem>>, %arg3: memref<1x8x128xf32, #tpu.memory_space<vmem>>, %arg4: memref<1x64x128xf32, #tpu.memory_space<vmem>>) attributes {dimension_semantics = [#tpu.dimension_semantics<parallel>, #tpu.dimension_semantics<parallel>], iteration_bounds = array<i64: 2, 1>, scalar_prefetch = 0 : i64, scratch_operands = 0 : i64, tpu.core_type = #tpu.core_type<tc>, window_params = [{transform_indices = @transform_0, window_bounds = array<i64: 1, 64, 128>}, {transform_indices = @transform_1, window_bounds = array<i64: 1, 8, 128>}, {transform_indices = @transform_2, window_bounds = array<i64: 1, 64, 128>}]} {
    %c0 = arith.constant 0 : index
    %c0_0 = arith.constant 0 : index
    %c0_1 = arith.constant 0 : index
    %0 = vector.load %arg2[%c0, %c0_0, %c0_1] : memref<1x64x128xf32, #tpu.memory_space<vmem>>, vector<1x64x128xf32>
    %c0_2 = arith.constant 0 : index
    %c0_3 = arith.constant 0 : index
    %c0_4 = arith.constant 0 : index
    %1 = vector.load %arg3[%c0_2, %c0_3, %c0_4] : memref<1x8x128xf32, #tpu.memory_space<vmem>>, vector<1x1x128xf32>
    %2 = vector.broadcast %1 : vector<1x1x128xf32> to vector<1x64x128xf32>
    %3 = arith.subf %0, %2 : vector<1x64x128xf32>
    %c0_5 = arith.constant 0 : index
    %c1 = arith.constant 1 : index
    %c0_6 = arith.constant 0 : index
    %4 = vector.load %arg3[%c0_5, %c1, %c0_6] : memref<1x8x128xf32, #tpu.memory_space<vmem>>, vector<1x1x128xf32>
    %5 = vector.broadcast %4 : vector<1x1x128xf32> to vector<1x64x128xf32>
    %6 = arith.mulf %3, %5 : vector<1x64x128xf32>
    %cst = arith.constant 0.000000e+00 : f32
    %7 = vector.broadcast %cst : f32 to vector<1x64x128xf32>
    %8 = arith.maximumf %6, %7 : vector<1x64x128xf32>
    %c0_7 = arith.constant 0 : index
    %c0_8 = arith.constant 0 : index
    %c0_9 = arith.constant 0 : index
    %9 = vector.load %arg4[%c0_7, %c0_8, %c0_9] : memref<1x64x128xf32, #tpu.memory_space<vmem>>, vector<1x64x128xf32>
    tpu.vector_store %arg4[%c0_7, %c0_8, %c0_9], %8 {strides = array<i32>} : memref<1x64x128xf32, #tpu.memory_space<vmem>>, vector<1x64x128xf32>,
    return
  }
  func.func @transform_0(%arg0: i32, %arg1: i32) -> (i32, i32, i32) {
    %c0_i32 = arith.constant 0 : i32
    %c0_i32_0 = arith.constant 0 : i32
    return %arg0, %arg1, %c0_i32 : i32, i32, i32
  }
  func.func @transform_1(%arg0: i32, %arg1: i32) -> (i32, i32, i32) {
    %c0_i32 = arith.constant 0 : i32
    %c0_i32_0 = arith.constant 0 : i32
    %c0_i32_1 = arith.constant 0 : i32
    return %arg0, %c0_i32, %c0_i32_0 : i32, i32, i32
  }
  func.func @transform_2(%arg0: i32, %arg1: i32) -> (i32, i32, i32) {
    %c0_i32 = arith.constant 0 : i32
    %c0_i32_0 = arith.constant 0 : i32
    return %arg0, %arg1, %c0_i32 : i32, i32, i32
  }
}

module attributes {stable_mosaic.version = 11 : i64} {
  func.func @_matmul_bias_kernel(%arg0: i32, %arg1: i32, %arg2: i32, %arg3: memref<32x128xbf16, #tpu.memory_space<vmem>>, %arg4: memref<128x256xbf16, #tpu.memory_space<vmem>>, %arg5: memref<1x256xf32, #tpu.memory_space<vmem>>, %arg6: memref<32x256xf32, #tpu.memory_space<vmem>>, %arg7: memref<32x256xf32, #tpu.memory_space<vmem>>) attributes {dimension_semantics = [#tpu.dimension_semantics<parallel>, #tpu.dimension_semantics<parallel>, #tpu.dimension_semantics<arbitrary>], iteration_bounds = array<i64: 1, 1, 9>, scalar_prefetch = 0 : i64, scratch_operands = 1 : i64, tpu.core_type = #tpu.core_type<tc>, window_params = [{transform_indices = @transform_0, window_bounds = array<i64: 32, 128>}, {transform_indices = @transform_1, window_bounds = array<i64: 128, 256>}, {transform_indices = @transform_2, window_bounds = array<i64: 1, 256>}, {transform_indices = @transform_3, window_bounds = array<i64: 32, 256>}]} {
    %c0_i32 = arith.constant 0 : i32
    %0 = arith.cmpi eq, %arg2, %c0_i32 : i32
    %1 = arith.extui %0 : i1 to i32
    %c0_i32_0 = arith.constant 0 : i32
    %2 = arith.cmpi ne, %1, %c0_i32_0 : i32
    scf.if %2 {
      %cst_9 = arith.constant 0.000000e+00 : f32
      %12 = vector.broadcast %cst_9 : f32 to vector<32x256xf32>
      %c0_10 = arith.constant 0 : index
      %c0_11 = arith.constant 0 : index
      %13 = vector.load %arg7[%c0_10, %c0_11] : memref<32x256xf32, #tpu.memory_space<vmem>>, vector<32x256xf32>
      tpu.vector_store %arg7[%c0_10, %c0_11], %12 {strides = array<i32>} : memref<32x256xf32, #tpu.memory_space<vmem>>, vector<32x256xf32>,
    } else {
    }
    %c0 = arith.constant 0 : index
    %c0_1 = arith.constant 0 : index
    %3 = vector.load %arg7[%c0, %c0_1] : memref<32x256xf32, #tpu.memory_space<vmem>>, vector<32x256xf32>
    %c0_2 = arith.constant 0 : index
    %c0_3 = arith.constant 0 : index
    %4 = vector.load %arg3[%c0_2, %c0_3] : memref<32x128xbf16, #tpu.memory_space<vmem>>, vector<32x128xbf16>
    %c0_4 = arith.constant 0 : index
    %c0_5 = arith.constant 0 : index
    %5 = vector.load %arg4[%c0_4, %c0_5] : memref<128x256xbf16, #tpu.memory_space<vmem>>, vector<128x256xbf16>
    %cst = arith.constant dense<0.000000e+00> : vector<32x256xf32>
    %6 = tpu.matmul %4, %5, %cst {dimension_numbers = #tpu.dot_dimension_numbers<[1], [0], [0], [1], [0, 0, 1, 1], [], []>} : vector<32x128xbf16>, vector<128x256xbf16>, vector<32x256xf32> -> vector<32x256xf32>
    %7 = arith.addf %3, %6 : vector<32x256xf32>
    %c0_6 = arith.constant 0 : index
    %c0_7 = arith.constant 0 : index
    %8 = vector.load %arg7[%c0_6, %c0_7] : memref<32x256xf32, #tpu.memory_space<vmem>>, vector<32x256xf32>
    tpu.vector_store %arg7[%c0_6, %c0_7], %7 {strides = array<i32>} : memref<32x256xf32, #tpu.memory_space<vmem>>, vector<32x256xf32>,
    %c8_i32 = arith.constant 8 : i32
    %9 = arith.cmpi eq, %arg2, %c8_i32 : i32
    %10 = arith.extui %9 : i1 to i32
    %c0_i32_8 = arith.constant 0 : i32
    %11 = arith.cmpi ne, %10, %c0_i32_8 : i32
    scf.if %11 {
      %c0_9 = arith.constant 0 : index
      %c0_10 = arith.constant 0 : index
      %12 = vector.load %arg7[%c0_9, %c0_10] : memref<32x256xf32, #tpu.memory_space<vmem>>, vector<32x256xf32>
      %c0_11 = arith.constant 0 : index
      %c0_12 = arith.constant 0 : index
      %13 = vector.load %arg5[%c0_11, %c0_12] : memref<1x256xf32, #tpu.memory_space<vmem>>, vector<1x256xf32>
      %14 = vector.broadcast %13 : vector<1x256xf32> to vector<32x256xf32>
      %15 = arith.addf %12, %14 : vector<32x256xf32>
      %c0_13 = arith.constant 0 : index
      %c0_14 = arith.constant 0 : index
      %16 = vector.load %arg6[%c0_13, %c0_14] : memref<32x256xf32, #tpu.memory_space<vmem>>, vector<32x256xf32>
      tpu.vector_store %arg6[%c0_13, %c0_14], %15 {strides = array<i32>} : memref<32x256xf32, #tpu.memory_space<vmem>>, vector<32x256xf32>,
    } else {
    }
    return
  }
  func.func @transform_0(%arg0: i32, %arg1: i32, %arg2: i32) -> (i32, i32) {
    %c0_i32 = arith.constant 0 : i32
    return %arg0, %arg2 : i32, i32
  }
  func.func @transform_1(%arg0: i32, %arg1: i32, %arg2: i32) -> (i32, i32) {
    %c0_i32 = arith.constant 0 : i32
    return %arg2, %arg1 : i32, i32
  }
  func.func @transform_2(%arg0: i32, %arg1: i32, %arg2: i32) -> (i32, i32) {
    %c0_i32 = arith.constant 0 : i32
    %c0_i32_0 = arith.constant 0 : i32
    return %c0_i32, %arg1 : i32, i32
  }
  func.func @transform_3(%arg0: i32, %arg1: i32, %arg2: i32) -> (i32, i32) {
    %c0_i32 = arith.constant 0 : i32
    return %arg0, %arg1 : i32, i32
  }
}

module attributes {stable_mosaic.version = 11 : i64} {
  func.func @_in_stats_kernel(%arg0: i32, %arg1: i32, %arg2: memref<1x16x256xf32, #tpu.memory_space<vmem>>, %arg3: memref<1x8x256xf32, #tpu.memory_space<vmem>>) attributes {dimension_semantics = [#tpu.dimension_semantics<parallel>, #tpu.dimension_semantics<arbitrary>], iteration_bounds = array<i64: 2, 1>, scalar_prefetch = 0 : i64, scratch_operands = 0 : i64, tpu.core_type = #tpu.core_type<tc>, window_params = [{transform_indices = @transform_0, window_bounds = array<i64: 1, 16, 256>}, {transform_indices = @transform_1, window_bounds = array<i64: 1, 8, 256>}]} {
    %c0_i32 = arith.constant 0 : i32
    %0 = arith.cmpi eq, %arg1, %c0_i32 : i32
    %1 = arith.extui %0 : i1 to i32
    %c0_i32_0 = arith.constant 0 : i32
    %2 = arith.cmpi ne, %1, %c0_i32_0 : i32
    scf.if %2 {
      %cst_14 = arith.constant 0.000000e+00 : f32
      %19 = vector.broadcast %cst_14 : f32 to vector<1x8x256xf32>
      %c0_15 = arith.constant 0 : index
      %c0_16 = arith.constant 0 : index
      %c0_17 = arith.constant 0 : index
      %20 = vector.load %arg3[%c0_15, %c0_16, %c0_17] : memref<1x8x256xf32, #tpu.memory_space<vmem>>, vector<1x8x256xf32>
      tpu.vector_store %arg3[%c0_15, %c0_16, %c0_17], %19 {strides = array<i32>} : memref<1x8x256xf32, #tpu.memory_space<vmem>>, vector<1x8x256xf32>,
    } else {
    }
    %c0 = arith.constant 0 : index
    %c0_1 = arith.constant 0 : index
    %c0_2 = arith.constant 0 : index
    %3 = vector.load %arg2[%c0, %c0_1, %c0_2] : memref<1x16x256xf32, #tpu.memory_space<vmem>>, vector<1x16x256xf32>
    %c0_3 = arith.constant 0 : index
    %c0_4 = arith.constant 0 : index
    %c0_5 = arith.constant 0 : index
    %4 = vector.load %arg3[%c0_3, %c0_4, %c0_5] : memref<1x8x256xf32, #tpu.memory_space<vmem>>, vector<1x8x256xf32>
    %5 = vector.extract_strided_slice %4 {offsets = [0, 0, 0], sizes = [1, 1, 256], strides = [1, 1, 1]} : vector<1x8x256xf32> to vector<1x1x256xf32>
    %cst = arith.constant dense<0.000000e+00> : vector<1x256xf32>
    %6 = vector.multi_reduction <add>, %3, %cst [1] : vector<1x16x256xf32> to vector<1x256xf32>
    %7 = vector.shape_cast %6 : vector<1x256xf32> to vector<1x1x256xf32>
    %8 = arith.addf %5, %7 : vector<1x1x256xf32>
    %9 = vector.extract_strided_slice %4 {offsets = [0, 1, 0], sizes = [1, 1, 256], strides = [1, 1, 1]} : vector<1x8x256xf32> to vector<1x1x256xf32>
    %10 = arith.mulf %3, %3 : vector<1x16x256xf32>
    %cst_6 = arith.constant dense<0.000000e+00> : vector<1x256xf32>
    %11 = vector.multi_reduction <add>, %10, %cst_6 [1] : vector<1x16x256xf32> to vector<1x256xf32>
    %12 = vector.shape_cast %11 : vector<1x256xf32> to vector<1x1x256xf32>
    %13 = arith.addf %9, %12 : vector<1x1x256xf32>
    %c0_7 = arith.constant 0 : index
    %c0_8 = arith.constant 0 : index
    %c0_9 = arith.constant 0 : index
    %14 = vector.load %arg3[%c0_7, %c0_8, %c0_9] : memref<1x8x256xf32, #tpu.memory_space<vmem>>, vector<1x1x256xf32>
    tpu.vector_store %arg3[%c0_7, %c0_8, %c0_9], %8 {strides = array<i32>} : memref<1x8x256xf32, #tpu.memory_space<vmem>>, vector<1x1x256xf32>,
    %c0_10 = arith.constant 0 : index
    %c1 = arith.constant 1 : index
    %c0_11 = arith.constant 0 : index
    %15 = vector.load %arg3[%c0_10, %c1, %c0_11] : memref<1x8x256xf32, #tpu.memory_space<vmem>>, vector<1x1x256xf32>
    tpu.vector_store %arg3[%c0_10, %c1, %c0_11], %13 {strides = array<i32>} : memref<1x8x256xf32, #tpu.memory_space<vmem>>, vector<1x1x256xf32>,
    %c0_i32_12 = arith.constant 0 : i32
    %16 = arith.cmpi eq, %arg1, %c0_i32_12 : i32
    %17 = arith.extui %16 : i1 to i32
    %c0_i32_13 = arith.constant 0 : i32
    %18 = arith.cmpi ne, %17, %c0_i32_13 : i32
    scf.if %18 {
      %cst_14 = arith.constant 6.250000e-02 : f32
      %19 = vector.broadcast %cst_14 : f32 to vector<1x1x256xf32>
      %20 = arith.mulf %8, %19 : vector<1x1x256xf32>
      %cst_15 = arith.constant 6.250000e-02 : f32
      %21 = vector.broadcast %cst_15 : f32 to vector<1x1x256xf32>
      %22 = arith.mulf %13, %21 : vector<1x1x256xf32>
      %23 = arith.mulf %20, %20 : vector<1x1x256xf32>
      %24 = arith.subf %22, %23 : vector<1x1x256xf32>
      %cst_16 = arith.constant 0.000000e+00 : f32
      %25 = vector.broadcast %cst_16 : f32 to vector<1x1x256xf32>
      %26 = arith.maximumf %24, %25 : vector<1x1x256xf32>
      %c0_17 = arith.constant 0 : index
      %c0_18 = arith.constant 0 : index
      %c0_19 = arith.constant 0 : index
      %27 = vector.load %arg3[%c0_17, %c0_18, %c0_19] : memref<1x8x256xf32, #tpu.memory_space<vmem>>, vector<1x1x256xf32>
      tpu.vector_store %arg3[%c0_17, %c0_18, %c0_19], %20 {strides = array<i32>} : memref<1x8x256xf32, #tpu.memory_space<vmem>>, vector<1x1x256xf32>,
      %cst_20 = arith.constant 9.99999974E-6 : f32
      %28 = vector.broadcast %cst_20 : f32 to vector<1x1x256xf32>
      %29 = arith.addf %26, %28 : vector<1x1x256xf32>
      %30 = math.rsqrt %29 : vector<1x1x256xf32>
      %c0_21 = arith.constant 0 : index
      %c1_22 = arith.constant 1 : index
      %c0_23 = arith.constant 0 : index
      %31 = vector.load %arg3[%c0_21, %c1_22, %c0_23] : memref<1x8x256xf32, #tpu.memory_space<vmem>>, vector<1x1x256xf32>
      tpu.vector_store %arg3[%c0_21, %c1_22, %c0_23], %30 {strides = array<i32>} : memref<1x8x256xf32, #tpu.memory_space<vmem>>, vector<1x1x256xf32>,
    } else {
    }
    return
  }
  func.func @transform_0(%arg0: i32, %arg1: i32) -> (i32, i32, i32) {
    %c0_i32 = arith.constant 0 : i32
    %c0_i32_0 = arith.constant 0 : i32
    return %arg0, %arg1, %c0_i32 : i32, i32, i32
  }
  func.func @transform_1(%arg0: i32, %arg1: i32) -> (i32, i32, i32) {
    %c0_i32 = arith.constant 0 : i32
    %c0_i32_0 = arith.constant 0 : i32
    %c0_i32_1 = arith.constant 0 : i32
    return %arg0, %c0_i32, %c0_i32_0 : i32, i32, i32
  }
}

module attributes {stable_mosaic.version = 11 : i64} {
  func.func @_in_apply_kernel(%arg0: i32, %arg1: i32, %arg2: memref<1x16x256xf32, #tpu.memory_space<vmem>>, %arg3: memref<1x8x256xf32, #tpu.memory_space<vmem>>, %arg4: memref<1x16x256xf32, #tpu.memory_space<vmem>>) attributes {dimension_semantics = [#tpu.dimension_semantics<parallel>, #tpu.dimension_semantics<parallel>], iteration_bounds = array<i64: 2, 1>, scalar_prefetch = 0 : i64, scratch_operands = 0 : i64, tpu.core_type = #tpu.core_type<tc>, window_params = [{transform_indices = @transform_0, window_bounds = array<i64: 1, 16, 256>}, {transform_indices = @transform_1, window_bounds = array<i64: 1, 8, 256>}, {transform_indices = @transform_2, window_bounds = array<i64: 1, 16, 256>}]} {
    %c0 = arith.constant 0 : index
    %c0_0 = arith.constant 0 : index
    %c0_1 = arith.constant 0 : index
    %0 = vector.load %arg2[%c0, %c0_0, %c0_1] : memref<1x16x256xf32, #tpu.memory_space<vmem>>, vector<1x16x256xf32>
    %c0_2 = arith.constant 0 : index
    %c0_3 = arith.constant 0 : index
    %c0_4 = arith.constant 0 : index
    %1 = vector.load %arg3[%c0_2, %c0_3, %c0_4] : memref<1x8x256xf32, #tpu.memory_space<vmem>>, vector<1x1x256xf32>
    %2 = vector.broadcast %1 : vector<1x1x256xf32> to vector<1x16x256xf32>
    %3 = arith.subf %0, %2 : vector<1x16x256xf32>
    %c0_5 = arith.constant 0 : index
    %c1 = arith.constant 1 : index
    %c0_6 = arith.constant 0 : index
    %4 = vector.load %arg3[%c0_5, %c1, %c0_6] : memref<1x8x256xf32, #tpu.memory_space<vmem>>, vector<1x1x256xf32>
    %5 = vector.broadcast %4 : vector<1x1x256xf32> to vector<1x16x256xf32>
    %6 = arith.mulf %3, %5 : vector<1x16x256xf32>
    %cst = arith.constant 0.000000e+00 : f32
    %7 = vector.broadcast %cst : f32 to vector<1x16x256xf32>
    %8 = arith.maximumf %6, %7 : vector<1x16x256xf32>
    %c0_7 = arith.constant 0 : index
    %c0_8 = arith.constant 0 : index
    %c0_9 = arith.constant 0 : index
    %9 = vector.load %arg4[%c0_7, %c0_8, %c0_9] : memref<1x16x256xf32, #tpu.memory_space<vmem>>, vector<1x16x256xf32>
    tpu.vector_store %arg4[%c0_7, %c0_8, %c0_9], %8 {strides = array<i32>} : memref<1x16x256xf32, #tpu.memory_space<vmem>>, vector<1x16x256xf32>,
    return
  }
  func.func @transform_0(%arg0: i32, %arg1: i32) -> (i32, i32, i32) {
    %c0_i32 = arith.constant 0 : i32
    %c0_i32_0 = arith.constant 0 : i32
    return %arg0, %arg1, %c0_i32 : i32, i32, i32
  }
  func.func @transform_1(%arg0: i32, %arg1: i32) -> (i32, i32, i32) {
    %c0_i32 = arith.constant 0 : i32
    %c0_i32_0 = arith.constant 0 : i32
    %c0_i32_1 = arith.constant 0 : i32
    return %arg0, %c0_i32, %c0_i32_0 : i32, i32, i32
  }
  func.func @transform_2(%arg0: i32, %arg1: i32) -> (i32, i32, i32) {
    %c0_i32 = arith.constant 0 : i32
    %c0_i32_0 = arith.constant 0 : i32
    return %arg0, %arg1, %c0_i32 : i32, i32, i32
  }
}

module attributes {stable_mosaic.version = 11 : i64} {
  func.func @_matmul_bias_kernel(%arg0: i32, %arg1: i32, %arg2: i32, %arg3: memref<32x256xbf16, #tpu.memory_space<vmem>>, %arg4: memref<256x256xbf16, #tpu.memory_space<vmem>>, %arg5: memref<1x256xf32, #tpu.memory_space<vmem>>, %arg6: memref<32x256xf32, #tpu.memory_space<vmem>>, %arg7: memref<32x256xf32, #tpu.memory_space<vmem>>) attributes {dimension_semantics = [#tpu.dimension_semantics<parallel>, #tpu.dimension_semantics<parallel>, #tpu.dimension_semantics<arbitrary>], iteration_bounds = array<i64: 1, 1, 9>, scalar_prefetch = 0 : i64, scratch_operands = 1 : i64, tpu.core_type = #tpu.core_type<tc>, window_params = [{transform_indices = @transform_0, window_bounds = array<i64: 32, 256>}, {transform_indices = @transform_1, window_bounds = array<i64: 256, 256>}, {transform_indices = @transform_2, window_bounds = array<i64: 1, 256>}, {transform_indices = @transform_3, window_bounds = array<i64: 32, 256>}]} {
    %c0_i32 = arith.constant 0 : i32
    %0 = arith.cmpi eq, %arg2, %c0_i32 : i32
    %1 = arith.extui %0 : i1 to i32
    %c0_i32_0 = arith.constant 0 : i32
    %2 = arith.cmpi ne, %1, %c0_i32_0 : i32
    scf.if %2 {
      %cst_9 = arith.constant 0.000000e+00 : f32
      %12 = vector.broadcast %cst_9 : f32 to vector<32x256xf32>
      %c0_10 = arith.constant 0 : index
      %c0_11 = arith.constant 0 : index
      %13 = vector.load %arg7[%c0_10, %c0_11] : memref<32x256xf32, #tpu.memory_space<vmem>>, vector<32x256xf32>
      tpu.vector_store %arg7[%c0_10, %c0_11], %12 {strides = array<i32>} : memref<32x256xf32, #tpu.memory_space<vmem>>, vector<32x256xf32>,
    } else {
    }
    %c0 = arith.constant 0 : index
    %c0_1 = arith.constant 0 : index
    %3 = vector.load %arg7[%c0, %c0_1] : memref<32x256xf32, #tpu.memory_space<vmem>>, vector<32x256xf32>
    %c0_2 = arith.constant 0 : index
    %c0_3 = arith.constant 0 : index
    %4 = vector.load %arg3[%c0_2, %c0_3] : memref<32x256xbf16, #tpu.memory_space<vmem>>, vector<32x256xbf16>
    %c0_4 = arith.constant 0 : index
    %c0_5 = arith.constant 0 : index
    %5 = vector.load %arg4[%c0_4, %c0_5] : memref<256x256xbf16, #tpu.memory_space<vmem>>, vector<256x256xbf16>
    %cst = arith.constant dense<0.000000e+00> : vector<32x256xf32>
    %6 = tpu.matmul %4, %5, %cst {dimension_numbers = #tpu.dot_dimension_numbers<[1], [0], [0], [1], [0, 0, 1, 1], [], []>} : vector<32x256xbf16>, vector<256x256xbf16>, vector<32x256xf32> -> vector<32x256xf32>
    %7 = arith.addf %3, %6 : vector<32x256xf32>
    %c0_6 = arith.constant 0 : index
    %c0_7 = arith.constant 0 : index
    %8 = vector.load %arg7[%c0_6, %c0_7] : memref<32x256xf32, #tpu.memory_space<vmem>>, vector<32x256xf32>
    tpu.vector_store %arg7[%c0_6, %c0_7], %7 {strides = array<i32>} : memref<32x256xf32, #tpu.memory_space<vmem>>, vector<32x256xf32>,
    %c8_i32 = arith.constant 8 : i32
    %9 = arith.cmpi eq, %arg2, %c8_i32 : i32
    %10 = arith.extui %9 : i1 to i32
    %c0_i32_8 = arith.constant 0 : i32
    %11 = arith.cmpi ne, %10, %c0_i32_8 : i32
    scf.if %11 {
      %c0_9 = arith.constant 0 : index
      %c0_10 = arith.constant 0 : index
      %12 = vector.load %arg7[%c0_9, %c0_10] : memref<32x256xf32, #tpu.memory_space<vmem>>, vector<32x256xf32>
      %c0_11 = arith.constant 0 : index
      %c0_12 = arith.constant 0 : index
      %13 = vector.load %arg5[%c0_11, %c0_12] : memref<1x256xf32, #tpu.memory_space<vmem>>, vector<1x256xf32>
      %14 = vector.broadcast %13 : vector<1x256xf32> to vector<32x256xf32>
      %15 = arith.addf %12, %14 : vector<32x256xf32>
      %c0_13 = arith.constant 0 : index
      %c0_14 = arith.constant 0 : index
      %16 = vector.load %arg6[%c0_13, %c0_14] : memref<32x256xf32, #tpu.memory_space<vmem>>, vector<32x256xf32>
      tpu.vector_store %arg6[%c0_13, %c0_14], %15 {strides = array<i32>} : memref<32x256xf32, #tpu.memory_space<vmem>>, vector<32x256xf32>,
    } else {
    }
    return
  }
  func.func @transform_0(%arg0: i32, %arg1: i32, %arg2: i32) -> (i32, i32) {
    %c0_i32 = arith.constant 0 : i32
    return %arg0, %arg2 : i32, i32
  }
  func.func @transform_1(%arg0: i32, %arg1: i32, %arg2: i32) -> (i32, i32) {
    %c0_i32 = arith.constant 0 : i32
    return %arg2, %arg1 : i32, i32
  }
  func.func @transform_2(%arg0: i32, %arg1: i32, %arg2: i32) -> (i32, i32) {
    %c0_i32 = arith.constant 0 : i32
    %c0_i32_0 = arith.constant 0 : i32
    return %c0_i32, %arg1 : i32, i32
  }
  func.func @transform_3(%arg0: i32, %arg1: i32, %arg2: i32) -> (i32, i32) {
    %c0_i32 = arith.constant 0 : i32
    return %arg0, %arg1 : i32, i32
  }
}

module attributes {stable_mosaic.version = 11 : i64} {
  func.func @_in_apply_res_kernel(%arg0: i32, %arg1: i32, %arg2: memref<1x16x256xf32, #tpu.memory_space<vmem>>, %arg3: memref<1x8x256xf32, #tpu.memory_space<vmem>>, %arg4: memref<1x16x256xf32, #tpu.memory_space<vmem>>, %arg5: memref<1x16x256xf32, #tpu.memory_space<vmem>>) attributes {dimension_semantics = [#tpu.dimension_semantics<parallel>, #tpu.dimension_semantics<parallel>], iteration_bounds = array<i64: 2, 1>, scalar_prefetch = 0 : i64, scratch_operands = 0 : i64, tpu.core_type = #tpu.core_type<tc>, window_params = [{transform_indices = @transform_0, window_bounds = array<i64: 1, 16, 256>}, {transform_indices = @transform_1, window_bounds = array<i64: 1, 8, 256>}, {transform_indices = @transform_2, window_bounds = array<i64: 1, 16, 256>}, {transform_indices = @transform_3, window_bounds = array<i64: 1, 16, 256>}]} {
    %c0 = arith.constant 0 : index
    %c0_0 = arith.constant 0 : index
    %c0_1 = arith.constant 0 : index
    %0 = vector.load %arg2[%c0, %c0_0, %c0_1] : memref<1x16x256xf32, #tpu.memory_space<vmem>>, vector<1x16x256xf32>
    %c0_2 = arith.constant 0 : index
    %c0_3 = arith.constant 0 : index
    %c0_4 = arith.constant 0 : index
    %1 = vector.load %arg4[%c0_2, %c0_3, %c0_4] : memref<1x16x256xf32, #tpu.memory_space<vmem>>, vector<1x16x256xf32>
    %c0_5 = arith.constant 0 : index
    %c0_6 = arith.constant 0 : index
    %c0_7 = arith.constant 0 : index
    %2 = vector.load %arg3[%c0_5, %c0_6, %c0_7] : memref<1x8x256xf32, #tpu.memory_space<vmem>>, vector<1x1x256xf32>
    %3 = vector.broadcast %2 : vector<1x1x256xf32> to vector<1x16x256xf32>
    %4 = arith.subf %0, %3 : vector<1x16x256xf32>
    %c0_8 = arith.constant 0 : index
    %c1 = arith.constant 1 : index
    %c0_9 = arith.constant 0 : index
    %5 = vector.load %arg3[%c0_8, %c1, %c0_9] : memref<1x8x256xf32, #tpu.memory_space<vmem>>, vector<1x1x256xf32>
    %6 = vector.broadcast %5 : vector<1x1x256xf32> to vector<1x16x256xf32>
    %7 = arith.mulf %4, %6 : vector<1x16x256xf32>
    %8 = arith.addf %1, %7 : vector<1x16x256xf32>
    %c0_10 = arith.constant 0 : index
    %c0_11 = arith.constant 0 : index
    %c0_12 = arith.constant 0 : index
    %9 = vector.load %arg5[%c0_10, %c0_11, %c0_12] : memref<1x16x256xf32, #tpu.memory_space<vmem>>, vector<1x16x256xf32>
    tpu.vector_store %arg5[%c0_10, %c0_11, %c0_12], %8 {strides = array<i32>} : memref<1x16x256xf32, #tpu.memory_space<vmem>>, vector<1x16x256xf32>,
    return
  }
  func.func @transform_0(%arg0: i32, %arg1: i32) -> (i32, i32, i32) {
    %c0_i32 = arith.constant 0 : i32
    %c0_i32_0 = arith.constant 0 : i32
    return %arg0, %arg1, %c0_i32 : i32, i32, i32
  }
  func.func @transform_1(%arg0: i32, %arg1: i32) -> (i32, i32, i32) {
    %c0_i32 = arith.constant 0 : i32
    %c0_i32_0 = arith.constant 0 : i32
    %c0_i32_1 = arith.constant 0 : i32
    return %arg0, %c0_i32, %c0_i32_0 : i32, i32, i32
  }
  func.func @transform_2(%arg0: i32, %arg1: i32) -> (i32, i32, i32) {
    %c0_i32 = arith.constant 0 : i32
    %c0_i32_0 = arith.constant 0 : i32
    return %arg0, %arg1, %c0_i32 : i32, i32, i32
  }
  func.func @transform_3(%arg0: i32, %arg1: i32) -> (i32, i32, i32) {
    %c0_i32 = arith.constant 0 : i32
    %c0_i32_0 = arith.constant 0 : i32
    return %arg0, %arg1, %c0_i32 : i32, i32, i32
  }
}

module attributes {stable_mosaic.version = 11 : i64} {
  func.func @_matmul_bias_kernel(%arg0: i32, %arg1: i32, %arg2: i32, %arg3: memref<32x512xbf16, #tpu.memory_space<vmem>>, %arg4: memref<512x128xbf16, #tpu.memory_space<vmem>>, %arg5: memref<1x128xf32, #tpu.memory_space<vmem>>, %arg6: memref<32x128xf32, #tpu.memory_space<vmem>>, %arg7: memref<32x128xf32, #tpu.memory_space<vmem>>) attributes {dimension_semantics = [#tpu.dimension_semantics<parallel>, #tpu.dimension_semantics<parallel>, #tpu.dimension_semantics<arbitrary>], iteration_bounds = array<i64: 1, 1, 1>, scalar_prefetch = 0 : i64, scratch_operands = 1 : i64, tpu.core_type = #tpu.core_type<tc>, window_params = [{transform_indices = @transform_0, window_bounds = array<i64: 32, 512>}, {transform_indices = @transform_1, window_bounds = array<i64: 512, 128>}, {transform_indices = @transform_2, window_bounds = array<i64: 1, 128>}, {transform_indices = @transform_3, window_bounds = array<i64: 32, 128>}]} {
    %c0_i32 = arith.constant 0 : i32
    %0 = arith.cmpi eq, %arg2, %c0_i32 : i32
    %1 = arith.extui %0 : i1 to i32
    %c0_i32_0 = arith.constant 0 : i32
    %2 = arith.cmpi ne, %1, %c0_i32_0 : i32
    scf.if %2 {
      %cst_10 = arith.constant 0.000000e+00 : f32
      %12 = vector.broadcast %cst_10 : f32 to vector<32x128xf32>
      %c0_11 = arith.constant 0 : index
      %c0_12 = arith.constant 0 : index
      %13 = vector.load %arg7[%c0_11, %c0_12] : memref<32x128xf32, #tpu.memory_space<vmem>>, vector<32x128xf32>
      tpu.vector_store %arg7[%c0_11, %c0_12], %12 {strides = array<i32>} : memref<32x128xf32, #tpu.memory_space<vmem>>, vector<32x128xf32>,
    } else {
    }
    %c0 = arith.constant 0 : index
    %c0_1 = arith.constant 0 : index
    %3 = vector.load %arg7[%c0, %c0_1] : memref<32x128xf32, #tpu.memory_space<vmem>>, vector<32x128xf32>
    %c0_2 = arith.constant 0 : index
    %c0_3 = arith.constant 0 : index
    %4 = vector.load %arg3[%c0_2, %c0_3] : memref<32x512xbf16, #tpu.memory_space<vmem>>, vector<32x512xbf16>
    %c0_4 = arith.constant 0 : index
    %c0_5 = arith.constant 0 : index
    %5 = vector.load %arg4[%c0_4, %c0_5] : memref<512x128xbf16, #tpu.memory_space<vmem>>, vector<512x128xbf16>
    %cst = arith.constant dense<0.000000e+00> : vector<32x128xf32>
    %6 = tpu.matmul %4, %5, %cst {dimension_numbers = #tpu.dot_dimension_numbers<[1], [0], [0], [1], [0, 0, 1, 1], [], []>} : vector<32x512xbf16>, vector<512x128xbf16>, vector<32x128xf32> -> vector<32x128xf32>
    %7 = arith.addf %3, %6 : vector<32x128xf32>
    %c0_6 = arith.constant 0 : index
    %c0_7 = arith.constant 0 : index
    %8 = vector.load %arg7[%c0_6, %c0_7] : memref<32x128xf32, #tpu.memory_space<vmem>>, vector<32x128xf32>
    tpu.vector_store %arg7[%c0_6, %c0_7], %7 {strides = array<i32>} : memref<32x128xf32, #tpu.memory_space<vmem>>, vector<32x128xf32>,
    %c0_i32_8 = arith.constant 0 : i32
    %9 = arith.cmpi eq, %arg2, %c0_i32_8 : i32
    %10 = arith.extui %9 : i1 to i32
    %c0_i32_9 = arith.constant 0 : i32
    %11 = arith.cmpi ne, %10, %c0_i32_9 : i32
    scf.if %11 {
      %c0_10 = arith.constant 0 : index
      %c0_11 = arith.constant 0 : index
      %12 = vector.load %arg7[%c0_10, %c0_11] : memref<32x128xf32, #tpu.memory_space<vmem>>, vector<32x128xf32>
      %c0_12 = arith.constant 0 : index
      %c0_13 = arith.constant 0 : index
      %13 = vector.load %arg5[%c0_12, %c0_13] : memref<1x128xf32, #tpu.memory_space<vmem>>, vector<1x128xf32>
      %14 = vector.broadcast %13 : vector<1x128xf32> to vector<32x128xf32>
      %15 = arith.addf %12, %14 : vector<32x128xf32>
      %c0_14 = arith.constant 0 : index
      %c0_15 = arith.constant 0 : index
      %16 = vector.load %arg6[%c0_14, %c0_15] : memref<32x128xf32, #tpu.memory_space<vmem>>, vector<32x128xf32>
      tpu.vector_store %arg6[%c0_14, %c0_15], %15 {strides = array<i32>} : memref<32x128xf32, #tpu.memory_space<vmem>>, vector<32x128xf32>,
    } else {
    }
    return
  }
  func.func @transform_0(%arg0: i32, %arg1: i32, %arg2: i32) -> (i32, i32) {
    %c0_i32 = arith.constant 0 : i32
    return %arg0, %arg2 : i32, i32
  }
  func.func @transform_1(%arg0: i32, %arg1: i32, %arg2: i32) -> (i32, i32) {
    %c0_i32 = arith.constant 0 : i32
    return %arg2, %arg1 : i32, i32
  }
  func.func @transform_2(%arg0: i32, %arg1: i32, %arg2: i32) -> (i32, i32) {
    %c0_i32 = arith.constant 0 : i32
    %c0_i32_0 = arith.constant 0 : i32
    return %c0_i32, %arg1 : i32, i32
  }
  func.func @transform_3(%arg0: i32, %arg1: i32, %arg2: i32) -> (i32, i32) {
    %c0_i32 = arith.constant 0 : i32
    return %arg0, %arg1 : i32, i32
  }
}

module attributes {stable_mosaic.version = 11 : i64} {
  func.func @_matmul_bias_kernel(%arg0: i32, %arg1: i32, %arg2: i32, %arg3: memref<32x256xbf16, #tpu.memory_space<vmem>>, %arg4: memref<256x128xbf16, #tpu.memory_space<vmem>>, %arg5: memref<1x128xf32, #tpu.memory_space<vmem>>, %arg6: memref<32x128xf32, #tpu.memory_space<vmem>>, %arg7: memref<32x128xf32, #tpu.memory_space<vmem>>) attributes {dimension_semantics = [#tpu.dimension_semantics<parallel>, #tpu.dimension_semantics<parallel>, #tpu.dimension_semantics<arbitrary>], iteration_bounds = array<i64: 1, 1, 1>, scalar_prefetch = 0 : i64, scratch_operands = 1 : i64, tpu.core_type = #tpu.core_type<tc>, window_params = [{transform_indices = @transform_0, window_bounds = array<i64: 32, 256>}, {transform_indices = @transform_1, window_bounds = array<i64: 256, 128>}, {transform_indices = @transform_2, window_bounds = array<i64: 1, 128>}, {transform_indices = @transform_3, window_bounds = array<i64: 32, 128>}]} {
    %c0_i32 = arith.constant 0 : i32
    %0 = arith.cmpi eq, %arg2, %c0_i32 : i32
    %1 = arith.extui %0 : i1 to i32
    %c0_i32_0 = arith.constant 0 : i32
    %2 = arith.cmpi ne, %1, %c0_i32_0 : i32
    scf.if %2 {
      %cst_10 = arith.constant 0.000000e+00 : f32
      %12 = vector.broadcast %cst_10 : f32 to vector<32x128xf32>
      %c0_11 = arith.constant 0 : index
      %c0_12 = arith.constant 0 : index
      %13 = vector.load %arg7[%c0_11, %c0_12] : memref<32x128xf32, #tpu.memory_space<vmem>>, vector<32x128xf32>
      tpu.vector_store %arg7[%c0_11, %c0_12], %12 {strides = array<i32>} : memref<32x128xf32, #tpu.memory_space<vmem>>, vector<32x128xf32>,
    } else {
    }
    %c0 = arith.constant 0 : index
    %c0_1 = arith.constant 0 : index
    %3 = vector.load %arg7[%c0, %c0_1] : memref<32x128xf32, #tpu.memory_space<vmem>>, vector<32x128xf32>
    %c0_2 = arith.constant 0 : index
    %c0_3 = arith.constant 0 : index
    %4 = vector.load %arg3[%c0_2, %c0_3] : memref<32x256xbf16, #tpu.memory_space<vmem>>, vector<32x256xbf16>
    %c0_4 = arith.constant 0 : index
    %c0_5 = arith.constant 0 : index
    %5 = vector.load %arg4[%c0_4, %c0_5] : memref<256x128xbf16, #tpu.memory_space<vmem>>, vector<256x128xbf16>
    %cst = arith.constant dense<0.000000e+00> : vector<32x128xf32>
    %6 = tpu.matmul %4, %5, %cst {dimension_numbers = #tpu.dot_dimension_numbers<[1], [0], [0], [1], [0, 0, 1, 1], [], []>} : vector<32x256xbf16>, vector<256x128xbf16>, vector<32x128xf32> -> vector<32x128xf32>
    %7 = arith.addf %3, %6 : vector<32x128xf32>
    %c0_6 = arith.constant 0 : index
    %c0_7 = arith.constant 0 : index
    %8 = vector.load %arg7[%c0_6, %c0_7] : memref<32x128xf32, #tpu.memory_space<vmem>>, vector<32x128xf32>
    tpu.vector_store %arg7[%c0_6, %c0_7], %7 {strides = array<i32>} : memref<32x128xf32, #tpu.memory_space<vmem>>, vector<32x128xf32>,
    %c0_i32_8 = arith.constant 0 : i32
    %9 = arith.cmpi eq, %arg2, %c0_i32_8 : i32
    %10 = arith.extui %9 : i1 to i32
    %c0_i32_9 = arith.constant 0 : i32
    %11 = arith.cmpi ne, %10, %c0_i32_9 : i32
    scf.if %11 {
      %c0_10 = arith.constant 0 : index
      %c0_11 = arith.constant 0 : index
      %12 = vector.load %arg7[%c0_10, %c0_11] : memref<32x128xf32, #tpu.memory_space<vmem>>, vector<32x128xf32>
      %c0_12 = arith.constant 0 : index
      %c0_13 = arith.constant 0 : index
      %13 = vector.load %arg5[%c0_12, %c0_13] : memref<1x128xf32, #tpu.memory_space<vmem>>, vector<1x128xf32>
      %14 = vector.broadcast %13 : vector<1x128xf32> to vector<32x128xf32>
      %15 = arith.addf %12, %14 : vector<32x128xf32>
      %c0_14 = arith.constant 0 : index
      %c0_15 = arith.constant 0 : index
      %16 = vector.load %arg6[%c0_14, %c0_15] : memref<32x128xf32, #tpu.memory_space<vmem>>, vector<32x128xf32>
      tpu.vector_store %arg6[%c0_14, %c0_15], %15 {strides = array<i32>} : memref<32x128xf32, #tpu.memory_space<vmem>>, vector<32x128xf32>,
    } else {
    }
    return
  }
  func.func @transform_0(%arg0: i32, %arg1: i32, %arg2: i32) -> (i32, i32) {
    %c0_i32 = arith.constant 0 : i32
    return %arg0, %arg2 : i32, i32
  }
  func.func @transform_1(%arg0: i32, %arg1: i32, %arg2: i32) -> (i32, i32) {
    %c0_i32 = arith.constant 0 : i32
    return %arg2, %arg1 : i32, i32
  }
  func.func @transform_2(%arg0: i32, %arg1: i32, %arg2: i32) -> (i32, i32) {
    %c0_i32 = arith.constant 0 : i32
    %c0_i32_0 = arith.constant 0 : i32
    return %c0_i32, %arg1 : i32, i32
  }
  func.func @transform_3(%arg0: i32, %arg1: i32, %arg2: i32) -> (i32, i32) {
    %c0_i32 = arith.constant 0 : i32
    return %arg0, %arg1 : i32, i32
  }
}

module attributes {stable_mosaic.version = 11 : i64} {
  func.func @_matmul_bias_kernel(%arg0: i32, %arg1: i32, %arg2: i32, %arg3: memref<32x512xbf16, #tpu.memory_space<vmem>>, %arg4: memref<512x128xbf16, #tpu.memory_space<vmem>>, %arg5: memref<1x128xf32, #tpu.memory_space<vmem>>, %arg6: memref<32x128xf32, #tpu.memory_space<vmem>>, %arg7: memref<32x128xf32, #tpu.memory_space<vmem>>) attributes {dimension_semantics = [#tpu.dimension_semantics<parallel>, #tpu.dimension_semantics<parallel>, #tpu.dimension_semantics<arbitrary>], iteration_bounds = array<i64: 1, 1, 2>, scalar_prefetch = 0 : i64, scratch_operands = 1 : i64, tpu.core_type = #tpu.core_type<tc>, window_params = [{transform_indices = @transform_0, window_bounds = array<i64: 32, 512>}, {transform_indices = @transform_1, window_bounds = array<i64: 512, 128>}, {transform_indices = @transform_2, window_bounds = array<i64: 1, 128>}, {transform_indices = @transform_3, window_bounds = array<i64: 32, 128>}]} {
    %c0_i32 = arith.constant 0 : i32
    %0 = arith.cmpi eq, %arg2, %c0_i32 : i32
    %1 = arith.extui %0 : i1 to i32
    %c0_i32_0 = arith.constant 0 : i32
    %2 = arith.cmpi ne, %1, %c0_i32_0 : i32
    scf.if %2 {
      %cst_9 = arith.constant 0.000000e+00 : f32
      %12 = vector.broadcast %cst_9 : f32 to vector<32x128xf32>
      %c0_10 = arith.constant 0 : index
      %c0_11 = arith.constant 0 : index
      %13 = vector.load %arg7[%c0_10, %c0_11] : memref<32x128xf32, #tpu.memory_space<vmem>>, vector<32x128xf32>
      tpu.vector_store %arg7[%c0_10, %c0_11], %12 {strides = array<i32>} : memref<32x128xf32, #tpu.memory_space<vmem>>, vector<32x128xf32>,
    } else {
    }
    %c0 = arith.constant 0 : index
    %c0_1 = arith.constant 0 : index
    %3 = vector.load %arg7[%c0, %c0_1] : memref<32x128xf32, #tpu.memory_space<vmem>>, vector<32x128xf32>
    %c0_2 = arith.constant 0 : index
    %c0_3 = arith.constant 0 : index
    %4 = vector.load %arg3[%c0_2, %c0_3] : memref<32x512xbf16, #tpu.memory_space<vmem>>, vector<32x512xbf16>
    %c0_4 = arith.constant 0 : index
    %c0_5 = arith.constant 0 : index
    %5 = vector.load %arg4[%c0_4, %c0_5] : memref<512x128xbf16, #tpu.memory_space<vmem>>, vector<512x128xbf16>
    %cst = arith.constant dense<0.000000e+00> : vector<32x128xf32>
    %6 = tpu.matmul %4, %5, %cst {dimension_numbers = #tpu.dot_dimension_numbers<[1], [0], [0], [1], [0, 0, 1, 1], [], []>} : vector<32x512xbf16>, vector<512x128xbf16>, vector<32x128xf32> -> vector<32x128xf32>
    %7 = arith.addf %3, %6 : vector<32x128xf32>
    %c0_6 = arith.constant 0 : index
    %c0_7 = arith.constant 0 : index
    %8 = vector.load %arg7[%c0_6, %c0_7] : memref<32x128xf32, #tpu.memory_space<vmem>>, vector<32x128xf32>
    tpu.vector_store %arg7[%c0_6, %c0_7], %7 {strides = array<i32>} : memref<32x128xf32, #tpu.memory_space<vmem>>, vector<32x128xf32>,
    %c1_i32 = arith.constant 1 : i32
    %9 = arith.cmpi eq, %arg2, %c1_i32 : i32
    %10 = arith.extui %9 : i1 to i32
    %c0_i32_8 = arith.constant 0 : i32
    %11 = arith.cmpi ne, %10, %c0_i32_8 : i32
    scf.if %11 {
      %c0_9 = arith.constant 0 : index
      %c0_10 = arith.constant 0 : index
      %12 = vector.load %arg7[%c0_9, %c0_10] : memref<32x128xf32, #tpu.memory_space<vmem>>, vector<32x128xf32>
      %c0_11 = arith.constant 0 : index
      %c0_12 = arith.constant 0 : index
      %13 = vector.load %arg5[%c0_11, %c0_12] : memref<1x128xf32, #tpu.memory_space<vmem>>, vector<1x128xf32>
      %14 = vector.broadcast %13 : vector<1x128xf32> to vector<32x128xf32>
      %15 = arith.addf %12, %14 : vector<32x128xf32>
      %c0_13 = arith.constant 0 : index
      %c0_14 = arith.constant 0 : index
      %16 = vector.load %arg6[%c0_13, %c0_14] : memref<32x128xf32, #tpu.memory_space<vmem>>, vector<32x128xf32>
      tpu.vector_store %arg6[%c0_13, %c0_14], %15 {strides = array<i32>} : memref<32x128xf32, #tpu.memory_space<vmem>>, vector<32x128xf32>,
    } else {
    }
    return
  }
  func.func @transform_0(%arg0: i32, %arg1: i32, %arg2: i32) -> (i32, i32) {
    %c0_i32 = arith.constant 0 : i32
    return %arg0, %arg2 : i32, i32
  }
  func.func @transform_1(%arg0: i32, %arg1: i32, %arg2: i32) -> (i32, i32) {
    %c0_i32 = arith.constant 0 : i32
    return %arg2, %arg1 : i32, i32
  }
  func.func @transform_2(%arg0: i32, %arg1: i32, %arg2: i32) -> (i32, i32) {
    %c0_i32 = arith.constant 0 : i32
    %c0_i32_0 = arith.constant 0 : i32
    return %c0_i32, %arg1 : i32, i32
  }
  func.func @transform_3(%arg0: i32, %arg1: i32, %arg2: i32) -> (i32, i32) {
    %c0_i32 = arith.constant 0 : i32
    return %arg0, %arg1 : i32, i32
  }
}

module attributes {stable_mosaic.version = 11 : i64} {
  func.func @_matmul_bias_kernel(%arg0: i32, %arg1: i32, %arg2: i32, %arg3: memref<128x256xbf16, #tpu.memory_space<vmem>>, %arg4: memref<256x128xbf16, #tpu.memory_space<vmem>>, %arg5: memref<1x128xf32, #tpu.memory_space<vmem>>, %arg6: memref<128x128xf32, #tpu.memory_space<vmem>>, %arg7: memref<128x128xf32, #tpu.memory_space<vmem>>) attributes {dimension_semantics = [#tpu.dimension_semantics<parallel>, #tpu.dimension_semantics<parallel>, #tpu.dimension_semantics<arbitrary>], iteration_bounds = array<i64: 1, 1, 1>, scalar_prefetch = 0 : i64, scratch_operands = 1 : i64, tpu.core_type = #tpu.core_type<tc>, window_params = [{transform_indices = @transform_0, window_bounds = array<i64: 128, 256>}, {transform_indices = @transform_1, window_bounds = array<i64: 256, 128>}, {transform_indices = @transform_2, window_bounds = array<i64: 1, 128>}, {transform_indices = @transform_3, window_bounds = array<i64: 128, 128>}]} {
    %c0_i32 = arith.constant 0 : i32
    %0 = arith.cmpi eq, %arg2, %c0_i32 : i32
    %1 = arith.extui %0 : i1 to i32
    %c0_i32_0 = arith.constant 0 : i32
    %2 = arith.cmpi ne, %1, %c0_i32_0 : i32
    scf.if %2 {
      %cst_10 = arith.constant 0.000000e+00 : f32
      %12 = vector.broadcast %cst_10 : f32 to vector<128x128xf32>
      %c0_11 = arith.constant 0 : index
      %c0_12 = arith.constant 0 : index
      %13 = vector.load %arg7[%c0_11, %c0_12] : memref<128x128xf32, #tpu.memory_space<vmem>>, vector<128x128xf32>
      tpu.vector_store %arg7[%c0_11, %c0_12], %12 {strides = array<i32>} : memref<128x128xf32, #tpu.memory_space<vmem>>, vector<128x128xf32>,
    } else {
    }
    %c0 = arith.constant 0 : index
    %c0_1 = arith.constant 0 : index
    %3 = vector.load %arg7[%c0, %c0_1] : memref<128x128xf32, #tpu.memory_space<vmem>>, vector<128x128xf32>
    %c0_2 = arith.constant 0 : index
    %c0_3 = arith.constant 0 : index
    %4 = vector.load %arg3[%c0_2, %c0_3] : memref<128x256xbf16, #tpu.memory_space<vmem>>, vector<128x256xbf16>
    %c0_4 = arith.constant 0 : index
    %c0_5 = arith.constant 0 : index
    %5 = vector.load %arg4[%c0_4, %c0_5] : memref<256x128xbf16, #tpu.memory_space<vmem>>, vector<256x128xbf16>
    %cst = arith.constant dense<0.000000e+00> : vector<128x128xf32>
    %6 = tpu.matmul %4, %5, %cst {dimension_numbers = #tpu.dot_dimension_numbers<[1], [0], [0], [1], [0, 0, 1, 1], [], []>} : vector<128x256xbf16>, vector<256x128xbf16>, vector<128x128xf32> -> vector<128x128xf32>
    %7 = arith.addf %3, %6 : vector<128x128xf32>
    %c0_6 = arith.constant 0 : index
    %c0_7 = arith.constant 0 : index
    %8 = vector.load %arg7[%c0_6, %c0_7] : memref<128x128xf32, #tpu.memory_space<vmem>>, vector<128x128xf32>
    tpu.vector_store %arg7[%c0_6, %c0_7], %7 {strides = array<i32>} : memref<128x128xf32, #tpu.memory_space<vmem>>, vector<128x128xf32>,
    %c0_i32_8 = arith.constant 0 : i32
    %9 = arith.cmpi eq, %arg2, %c0_i32_8 : i32
    %10 = arith.extui %9 : i1 to i32
    %c0_i32_9 = arith.constant 0 : i32
    %11 = arith.cmpi ne, %10, %c0_i32_9 : i32
    scf.if %11 {
      %c0_10 = arith.constant 0 : index
      %c0_11 = arith.constant 0 : index
      %12 = vector.load %arg7[%c0_10, %c0_11] : memref<128x128xf32, #tpu.memory_space<vmem>>, vector<128x128xf32>
      %c0_12 = arith.constant 0 : index
      %c0_13 = arith.constant 0 : index
      %13 = vector.load %arg5[%c0_12, %c0_13] : memref<1x128xf32, #tpu.memory_space<vmem>>, vector<1x128xf32>
      %14 = vector.broadcast %13 : vector<1x128xf32> to vector<128x128xf32>
      %15 = arith.addf %12, %14 : vector<128x128xf32>
      %c0_14 = arith.constant 0 : index
      %c0_15 = arith.constant 0 : index
      %16 = vector.load %arg6[%c0_14, %c0_15] : memref<128x128xf32, #tpu.memory_space<vmem>>, vector<128x128xf32>
      tpu.vector_store %arg6[%c0_14, %c0_15], %15 {strides = array<i32>} : memref<128x128xf32, #tpu.memory_space<vmem>>, vector<128x128xf32>,
    } else {
    }
    return
  }
  func.func @transform_0(%arg0: i32, %arg1: i32, %arg2: i32) -> (i32, i32) {
    %c0_i32 = arith.constant 0 : i32
    return %arg0, %arg2 : i32, i32
  }
  func.func @transform_1(%arg0: i32, %arg1: i32, %arg2: i32) -> (i32, i32) {
    %c0_i32 = arith.constant 0 : i32
    return %arg2, %arg1 : i32, i32
  }
  func.func @transform_2(%arg0: i32, %arg1: i32, %arg2: i32) -> (i32, i32) {
    %c0_i32 = arith.constant 0 : i32
    %c0_i32_0 = arith.constant 0 : i32
    return %c0_i32, %arg1 : i32, i32
  }
  func.func @transform_3(%arg0: i32, %arg1: i32, %arg2: i32) -> (i32, i32) {
    %c0_i32 = arith.constant 0 : i32
    return %arg0, %arg1 : i32, i32
  }
}

module attributes {stable_mosaic.version = 11 : i64} {
  func.func @_matmul_bias_kernel(%arg0: i32, %arg1: i32, %arg2: i32, %arg3: memref<128x512xbf16, #tpu.memory_space<vmem>>, %arg4: memref<512x128xbf16, #tpu.memory_space<vmem>>, %arg5: memref<1x128xf32, #tpu.memory_space<vmem>>, %arg6: memref<128x128xf32, #tpu.memory_space<vmem>>, %arg7: memref<128x128xf32, #tpu.memory_space<vmem>>) attributes {dimension_semantics = [#tpu.dimension_semantics<parallel>, #tpu.dimension_semantics<parallel>, #tpu.dimension_semantics<arbitrary>], iteration_bounds = array<i64: 1, 1, 1>, scalar_prefetch = 0 : i64, scratch_operands = 1 : i64, tpu.core_type = #tpu.core_type<tc>, window_params = [{transform_indices = @transform_0, window_bounds = array<i64: 128, 512>}, {transform_indices = @transform_1, window_bounds = array<i64: 512, 128>}, {transform_indices = @transform_2, window_bounds = array<i64: 1, 128>}, {transform_indices = @transform_3, window_bounds = array<i64: 128, 128>}]} {
    %c0_i32 = arith.constant 0 : i32
    %0 = arith.cmpi eq, %arg2, %c0_i32 : i32
    %1 = arith.extui %0 : i1 to i32
    %c0_i32_0 = arith.constant 0 : i32
    %2 = arith.cmpi ne, %1, %c0_i32_0 : i32
    scf.if %2 {
      %cst_10 = arith.constant 0.000000e+00 : f32
      %12 = vector.broadcast %cst_10 : f32 to vector<128x128xf32>
      %c0_11 = arith.constant 0 : index
      %c0_12 = arith.constant 0 : index
      %13 = vector.load %arg7[%c0_11, %c0_12] : memref<128x128xf32, #tpu.memory_space<vmem>>, vector<128x128xf32>
      tpu.vector_store %arg7[%c0_11, %c0_12], %12 {strides = array<i32>} : memref<128x128xf32, #tpu.memory_space<vmem>>, vector<128x128xf32>,
    } else {
    }
    %c0 = arith.constant 0 : index
    %c0_1 = arith.constant 0 : index
    %3 = vector.load %arg7[%c0, %c0_1] : memref<128x128xf32, #tpu.memory_space<vmem>>, vector<128x128xf32>
    %c0_2 = arith.constant 0 : index
    %c0_3 = arith.constant 0 : index
    %4 = vector.load %arg3[%c0_2, %c0_3] : memref<128x512xbf16, #tpu.memory_space<vmem>>, vector<128x512xbf16>
    %c0_4 = arith.constant 0 : index
    %c0_5 = arith.constant 0 : index
    %5 = vector.load %arg4[%c0_4, %c0_5] : memref<512x128xbf16, #tpu.memory_space<vmem>>, vector<512x128xbf16>
    %cst = arith.constant dense<0.000000e+00> : vector<128x128xf32>
    %6 = tpu.matmul %4, %5, %cst {dimension_numbers = #tpu.dot_dimension_numbers<[1], [0], [0], [1], [0, 0, 1, 1], [], []>} : vector<128x512xbf16>, vector<512x128xbf16>, vector<128x128xf32> -> vector<128x128xf32>
    %7 = arith.addf %3, %6 : vector<128x128xf32>
    %c0_6 = arith.constant 0 : index
    %c0_7 = arith.constant 0 : index
    %8 = vector.load %arg7[%c0_6, %c0_7] : memref<128x128xf32, #tpu.memory_space<vmem>>, vector<128x128xf32>
    tpu.vector_store %arg7[%c0_6, %c0_7], %7 {strides = array<i32>} : memref<128x128xf32, #tpu.memory_space<vmem>>, vector<128x128xf32>,
    %c0_i32_8 = arith.constant 0 : i32
    %9 = arith.cmpi eq, %arg2, %c0_i32_8 : i32
    %10 = arith.extui %9 : i1 to i32
    %c0_i32_9 = arith.constant 0 : i32
    %11 = arith.cmpi ne, %10, %c0_i32_9 : i32
    scf.if %11 {
      %c0_10 = arith.constant 0 : index
      %c0_11 = arith.constant 0 : index
      %12 = vector.load %arg7[%c0_10, %c0_11] : memref<128x128xf32, #tpu.memory_space<vmem>>, vector<128x128xf32>
      %c0_12 = arith.constant 0 : index
      %c0_13 = arith.constant 0 : index
      %13 = vector.load %arg5[%c0_12, %c0_13] : memref<1x128xf32, #tpu.memory_space<vmem>>, vector<1x128xf32>
      %14 = vector.broadcast %13 : vector<1x128xf32> to vector<128x128xf32>
      %15 = arith.addf %12, %14 : vector<128x128xf32>
      %c0_14 = arith.constant 0 : index
      %c0_15 = arith.constant 0 : index
      %16 = vector.load %arg6[%c0_14, %c0_15] : memref<128x128xf32, #tpu.memory_space<vmem>>, vector<128x128xf32>
      tpu.vector_store %arg6[%c0_14, %c0_15], %15 {strides = array<i32>} : memref<128x128xf32, #tpu.memory_space<vmem>>, vector<128x128xf32>,
    } else {
    }
    return
  }
  func.func @transform_0(%arg0: i32, %arg1: i32, %arg2: i32) -> (i32, i32) {
    %c0_i32 = arith.constant 0 : i32
    return %arg0, %arg2 : i32, i32
  }
  func.func @transform_1(%arg0: i32, %arg1: i32, %arg2: i32) -> (i32, i32) {
    %c0_i32 = arith.constant 0 : i32
    return %arg2, %arg1 : i32, i32
  }
  func.func @transform_2(%arg0: i32, %arg1: i32, %arg2: i32) -> (i32, i32) {
    %c0_i32 = arith.constant 0 : i32
    %c0_i32_0 = arith.constant 0 : i32
    return %c0_i32, %arg1 : i32, i32
  }
  func.func @transform_3(%arg0: i32, %arg1: i32, %arg2: i32) -> (i32, i32) {
    %c0_i32 = arith.constant 0 : i32
    return %arg0, %arg1 : i32, i32
  }
}

module attributes {stable_mosaic.version = 11 : i64} {
  func.func @_matmul_bias_kernel(%arg0: i32, %arg1: i32, %arg2: i32, %arg3: memref<128x128xbf16, #tpu.memory_space<vmem>>, %arg4: memref<128x128xbf16, #tpu.memory_space<vmem>>, %arg5: memref<1x128xf32, #tpu.memory_space<vmem>>, %arg6: memref<128x128xf32, #tpu.memory_space<vmem>>, %arg7: memref<128x128xf32, #tpu.memory_space<vmem>>) attributes {dimension_semantics = [#tpu.dimension_semantics<parallel>, #tpu.dimension_semantics<parallel>, #tpu.dimension_semantics<arbitrary>], iteration_bounds = array<i64: 1, 1, 1>, scalar_prefetch = 0 : i64, scratch_operands = 1 : i64, tpu.core_type = #tpu.core_type<tc>, window_params = [{transform_indices = @transform_0, window_bounds = array<i64: 128, 128>}, {transform_indices = @transform_1, window_bounds = array<i64: 128, 128>}, {transform_indices = @transform_2, window_bounds = array<i64: 1, 128>}, {transform_indices = @transform_3, window_bounds = array<i64: 128, 128>}]} {
    %c0_i32 = arith.constant 0 : i32
    %0 = arith.cmpi eq, %arg2, %c0_i32 : i32
    %1 = arith.extui %0 : i1 to i32
    %c0_i32_0 = arith.constant 0 : i32
    %2 = arith.cmpi ne, %1, %c0_i32_0 : i32
    scf.if %2 {
      %cst_10 = arith.constant 0.000000e+00 : f32
      %12 = vector.broadcast %cst_10 : f32 to vector<128x128xf32>
      %c0_11 = arith.constant 0 : index
      %c0_12 = arith.constant 0 : index
      %13 = vector.load %arg7[%c0_11, %c0_12] : memref<128x128xf32, #tpu.memory_space<vmem>>, vector<128x128xf32>
      tpu.vector_store %arg7[%c0_11, %c0_12], %12 {strides = array<i32>} : memref<128x128xf32, #tpu.memory_space<vmem>>, vector<128x128xf32>,
    } else {
    }
    %c0 = arith.constant 0 : index
    %c0_1 = arith.constant 0 : index
    %3 = vector.load %arg7[%c0, %c0_1] : memref<128x128xf32, #tpu.memory_space<vmem>>, vector<128x128xf32>
    %c0_2 = arith.constant 0 : index
    %c0_3 = arith.constant 0 : index
    %4 = vector.load %arg3[%c0_2, %c0_3] : memref<128x128xbf16, #tpu.memory_space<vmem>>, vector<128x128xbf16>
    %c0_4 = arith.constant 0 : index
    %c0_5 = arith.constant 0 : index
    %5 = vector.load %arg4[%c0_4, %c0_5] : memref<128x128xbf16, #tpu.memory_space<vmem>>, vector<128x128xbf16>
    %cst = arith.constant dense<0.000000e+00> : vector<128x128xf32>
    %6 = tpu.matmul %4, %5, %cst {dimension_numbers = #tpu.dot_dimension_numbers<[1], [0], [0], [1], [0, 0, 1, 1], [], []>} : vector<128x128xbf16>, vector<128x128xbf16>, vector<128x128xf32> -> vector<128x128xf32>
    %7 = arith.addf %3, %6 : vector<128x128xf32>
    %c0_6 = arith.constant 0 : index
    %c0_7 = arith.constant 0 : index
    %8 = vector.load %arg7[%c0_6, %c0_7] : memref<128x128xf32, #tpu.memory_space<vmem>>, vector<128x128xf32>
    tpu.vector_store %arg7[%c0_6, %c0_7], %7 {strides = array<i32>} : memref<128x128xf32, #tpu.memory_space<vmem>>, vector<128x128xf32>,
    %c0_i32_8 = arith.constant 0 : i32
    %9 = arith.cmpi eq, %arg2, %c0_i32_8 : i32
    %10 = arith.extui %9 : i1 to i32
    %c0_i32_9 = arith.constant 0 : i32
    %11 = arith.cmpi ne, %10, %c0_i32_9 : i32
    scf.if %11 {
      %c0_10 = arith.constant 0 : index
      %c0_11 = arith.constant 0 : index
      %12 = vector.load %arg7[%c0_10, %c0_11] : memref<128x128xf32, #tpu.memory_space<vmem>>, vector<128x128xf32>
      %c0_12 = arith.constant 0 : index
      %c0_13 = arith.constant 0 : index
      %13 = vector.load %arg5[%c0_12, %c0_13] : memref<1x128xf32, #tpu.memory_space<vmem>>, vector<1x128xf32>
      %14 = vector.broadcast %13 : vector<1x128xf32> to vector<128x128xf32>
      %15 = arith.addf %12, %14 : vector<128x128xf32>
      %c0_14 = arith.constant 0 : index
      %c0_15 = arith.constant 0 : index
      %16 = vector.load %arg6[%c0_14, %c0_15] : memref<128x128xf32, #tpu.memory_space<vmem>>, vector<128x128xf32>
      tpu.vector_store %arg6[%c0_14, %c0_15], %15 {strides = array<i32>} : memref<128x128xf32, #tpu.memory_space<vmem>>, vector<128x128xf32>,
    } else {
    }
    return
  }
  func.func @transform_0(%arg0: i32, %arg1: i32, %arg2: i32) -> (i32, i32) {
    %c0_i32 = arith.constant 0 : i32
    return %arg0, %arg2 : i32, i32
  }
  func.func @transform_1(%arg0: i32, %arg1: i32, %arg2: i32) -> (i32, i32) {
    %c0_i32 = arith.constant 0 : i32
    return %arg2, %arg1 : i32, i32
  }
  func.func @transform_2(%arg0: i32, %arg1: i32, %arg2: i32) -> (i32, i32) {
    %c0_i32 = arith.constant 0 : i32
    %c0_i32_0 = arith.constant 0 : i32
    return %c0_i32, %arg1 : i32, i32
  }
  func.func @transform_3(%arg0: i32, %arg1: i32, %arg2: i32) -> (i32, i32) {
    %c0_i32 = arith.constant 0 : i32
    return %arg0, %arg1 : i32, i32
  }
}

module attributes {stable_mosaic.version = 11 : i64} {
  func.func @_matmul_bias_kernel(%arg0: i32, %arg1: i32, %arg2: i32, %arg3: memref<256x128xbf16, #tpu.memory_space<vmem>>, %arg4: memref<128x128xbf16, #tpu.memory_space<vmem>>, %arg5: memref<1x128xf32, #tpu.memory_space<vmem>>, %arg6: memref<256x128xf32, #tpu.memory_space<vmem>>, %arg7: memref<256x128xf32, #tpu.memory_space<vmem>>) attributes {dimension_semantics = [#tpu.dimension_semantics<parallel>, #tpu.dimension_semantics<parallel>, #tpu.dimension_semantics<arbitrary>], iteration_bounds = array<i64: 2, 1, 25>, scalar_prefetch = 0 : i64, scratch_operands = 1 : i64, tpu.core_type = #tpu.core_type<tc>, window_params = [{transform_indices = @transform_0, window_bounds = array<i64: 256, 128>}, {transform_indices = @transform_1, window_bounds = array<i64: 128, 128>}, {transform_indices = @transform_2, window_bounds = array<i64: 1, 128>}, {transform_indices = @transform_3, window_bounds = array<i64: 256, 128>}]} {
    %c0_i32 = arith.constant 0 : i32
    %0 = arith.cmpi eq, %arg2, %c0_i32 : i32
    %1 = arith.extui %0 : i1 to i32
    %c0_i32_0 = arith.constant 0 : i32
    %2 = arith.cmpi ne, %1, %c0_i32_0 : i32
    scf.if %2 {
      %cst_9 = arith.constant 0.000000e+00 : f32
      %12 = vector.broadcast %cst_9 : f32 to vector<256x128xf32>
      %c0_10 = arith.constant 0 : index
      %c0_11 = arith.constant 0 : index
      %13 = vector.load %arg7[%c0_10, %c0_11] : memref<256x128xf32, #tpu.memory_space<vmem>>, vector<256x128xf32>
      tpu.vector_store %arg7[%c0_10, %c0_11], %12 {strides = array<i32>} : memref<256x128xf32, #tpu.memory_space<vmem>>, vector<256x128xf32>,
    } else {
    }
    %c0 = arith.constant 0 : index
    %c0_1 = arith.constant 0 : index
    %3 = vector.load %arg7[%c0, %c0_1] : memref<256x128xf32, #tpu.memory_space<vmem>>, vector<256x128xf32>
    %c0_2 = arith.constant 0 : index
    %c0_3 = arith.constant 0 : index
    %4 = vector.load %arg3[%c0_2, %c0_3] : memref<256x128xbf16, #tpu.memory_space<vmem>>, vector<256x128xbf16>
    %c0_4 = arith.constant 0 : index
    %c0_5 = arith.constant 0 : index
    %5 = vector.load %arg4[%c0_4, %c0_5] : memref<128x128xbf16, #tpu.memory_space<vmem>>, vector<128x128xbf16>
    %cst = arith.constant dense<0.000000e+00> : vector<256x128xf32>
    %6 = tpu.matmul %4, %5, %cst {dimension_numbers = #tpu.dot_dimension_numbers<[1], [0], [0], [1], [0, 0, 1, 1], [], []>} : vector<256x128xbf16>, vector<128x128xbf16>, vector<256x128xf32> -> vector<256x128xf32>
    %7 = arith.addf %3, %6 : vector<256x128xf32>
    %c0_6 = arith.constant 0 : index
    %c0_7 = arith.constant 0 : index
    %8 = vector.load %arg7[%c0_6, %c0_7] : memref<256x128xf32, #tpu.memory_space<vmem>>, vector<256x128xf32>
    tpu.vector_store %arg7[%c0_6, %c0_7], %7 {strides = array<i32>} : memref<256x128xf32, #tpu.memory_space<vmem>>, vector<256x128xf32>,
    %c24_i32 = arith.constant 24 : i32
    %9 = arith.cmpi eq, %arg2, %c24_i32 : i32
    %10 = arith.extui %9 : i1 to i32
    %c0_i32_8 = arith.constant 0 : i32
    %11 = arith.cmpi ne, %10, %c0_i32_8 : i32
    scf.if %11 {
      %c0_9 = arith.constant 0 : index
      %c0_10 = arith.constant 0 : index
      %12 = vector.load %arg7[%c0_9, %c0_10] : memref<256x128xf32, #tpu.memory_space<vmem>>, vector<256x128xf32>
      %c0_11 = arith.constant 0 : index
      %c0_12 = arith.constant 0 : index
      %13 = vector.load %arg5[%c0_11, %c0_12] : memref<1x128xf32, #tpu.memory_space<vmem>>, vector<1x128xf32>
      %14 = vector.broadcast %13 : vector<1x128xf32> to vector<256x128xf32>
      %15 = arith.addf %12, %14 : vector<256x128xf32>
      %16 = math.tanh %15 : vector<256x128xf32>
      %c0_13 = arith.constant 0 : index
      %c0_14 = arith.constant 0 : index
      %17 = vector.load %arg6[%c0_13, %c0_14] : memref<256x128xf32, #tpu.memory_space<vmem>>, vector<256x128xf32>
      tpu.vector_store %arg6[%c0_13, %c0_14], %16 {strides = array<i32>} : memref<256x128xf32, #tpu.memory_space<vmem>>, vector<256x128xf32>,
    } else {
    }
    return
  }
  func.func @transform_0(%arg0: i32, %arg1: i32, %arg2: i32) -> (i32, i32) {
    %c0_i32 = arith.constant 0 : i32
    return %arg0, %arg2 : i32, i32
  }
  func.func @transform_1(%arg0: i32, %arg1: i32, %arg2: i32) -> (i32, i32) {
    %c0_i32 = arith.constant 0 : i32
    return %arg2, %arg1 : i32, i32
  }
  func.func @transform_2(%arg0: i32, %arg1: i32, %arg2: i32) -> (i32, i32) {
    %c0_i32 = arith.constant 0 : i32
    %c0_i32_0 = arith.constant 0 : i32
    return %c0_i32, %arg1 : i32, i32
  }
  func.func @transform_3(%arg0: i32, %arg1: i32, %arg2: i32) -> (i32, i32) {
    %c0_i32 = arith.constant 0 : i32
    return %arg0, %arg1 : i32, i32
  }
}

</mosaic_0001>

<bundles_post_ra>
// kernel: generator_forward.77
= control target key start
LH: loop header
LB: loop body
LE: loop exit
PB: predicated region body
PF: predicated region fallthrough
CT: control target
= control target key end

     0   :  { %s514_s6 = smov 0   ;;  %s516_s7 = smov 0   ;;  %s654_s0 = inlined_call_operand.vmem [shape: f32[2,256,64], index: 0, kind: input, shape index: {}]   ;;  %s655_s1 = inlined_call_operand.vmem [shape: f32[2,8,64], index: 1, kind: output, shape index: {}]  }
   0x1   :  { %s518_s8 = smov 0  }
   0x2 LB: > { %s23_s9 = sadd.s32 1, %s497_s7  ;;  %p445_p0 = scmp.ge.s32.totalorder %s501_s8, 1  ;;  %s501_s8 = sphi %s518_s8, %s11_s8   ;;  %s497_s7 = sphi %s516_s7, %s657_s7   ;;  %s493_s6 = sphi %s514_s6, %s656_s6  }
   0x3   : > { %p25_p1 = scmp.ge.s32.totalorder %s23_s9, 2  ;;  %p106_p2 = scmp.lt.s32.totalorder %s501_s8, 3 }
   0x5   : > { %s659_s9 = smov (%p25_p1, %s23_s9), 0  ;;  %p107_p3 = pnand %p445_p0, %p106_p2 }
   0x6   : > { %p130_p4 = scmp.lt.s32.totalorder (!%p107_p3), %s493_s6, 1  ;;  %vm147_vm0 = vcmask (!%p107_p3), 523264   ;;  %v503_v0 = vmov (!%p107_p3), 0.0   ;;  %vm355_vm1 = vcmask (!%p107_p3), 516096   ;;  %vm357_vm2 = vcmask (!%p107_p3), 517121  }
   0x7   : > { %110 = sbr.rel (%p107_p3) target bundleno = 120 (0x78), region = 24 }
   0xe   : > { %s661_s6 = smov (!%p130_p4, %s493_s6), 1 }
   0xf   : > { %s451_s10 = sshll.u32 %s661_s6, 8  ;;  %s448_s11 = sshll.u32 %s661_s6, 3 }
  0x10   : > { %s535_s14 = scalar_lea.vmem %s654_s0, %s451_s10  ;;  %s540_s17 = scalar_lea.vmem %s655_s1, %s448_s11 }
  0x11   : > { %148 = vst.msk [vmem:[%s540_s17] sm:$0xff] %vm147_vm0, %v503_v0  ;;  %v149_v1 = vld [vmem:[%s535_s14] sm:$0xff]  ;;  %v150_v2 = vld [vmem:[%s535_s14 + $0x8] sm:$0xff]  ;;  %v151_v3 = vld [vmem:[%s535_s14 + $0x10] sm:$0xff] }
  0x12   : > { %v152_v4 = vld [vmem:[%s535_s14 + $0x18] sm:$0xff]  ;;  %v183_v5 = vsel %vm147_vm0, %v149_v1, 0.0  ;;  %v184_v6 = vsel %vm147_vm0, %v150_v2, 0.0  ;;  %v186_v7 = vsel %vm147_vm0, %v151_v3, 0.0  ;;  %v153_v8 = vld [vmem:[%s535_s14 + $0x20] sm:$0xff]  ;;  %v154_v11 = vld [vmem:[%s535_s14 + $0x28] sm:$0xff]  ;;  %v253_v30 = vmul.f32 %v149_v1, %v149_v1 }
  0x13   : > { %v185_v9 = vadd.f32 %v184_v6, %v183_v5  ;;  %v188_v10 = vsel %vm147_vm0, %v152_v4, 0.0  ;;  %v190_v13 = vsel %vm147_vm0, %v153_v8, 0.0  ;;  %v155_v14 = vld [vmem:[%s535_s14 + $0x30] sm:$0xff]  ;;  %v192_v16 = vsel %vm147_vm0, %v154_v11, 0.0  ;;  %v156_v17 = vld [vmem:[%s535_s14 + $0x38] sm:$0xff]  ;;  %v157_v20 = vld [vmem:[%s535_s14 + $0x40] sm:$0xff] }
  0x14   : > { %v194_v19 = vsel %vm147_vm0, %v155_v14, 0.0  ;;  %v196_v22 = vsel %vm147_vm0, %v156_v17, 0.0  ;;  %v158_v23 = vld [vmem:[%s535_s14 + $0x48] sm:$0xff]  ;;  %v198_v25 = vsel %vm147_vm0, %v157_v20, 0.0  ;;  %v159_v26 = vld [vmem:[%s535_s14 + $0x50] sm:$0xff]  ;;  %v160_v28 = vld [vmem:[%s535_s14 + $0x58] sm:$0xff]  ;;  %v254_v31 = vmul.f32 %v150_v2, %v150_v2 }
  0x15   : > { %v187_v12 = vadd.f32 %v186_v7, %v185_v9  ;;  %v200_v29 = vsel %vm147_vm0, %v158_v23, 0.0  ;;  %v255_v32 = vmul.f32 %v151_v3, %v151_v3  ;;  %v202_v34 = vsel %vm147_vm0, %v159_v26, 0.0  ;;  %v161_v36 = vld [vmem:[%s535_s14 + $0x60] sm:$0xff]  ;;  %v162_v43 = vld [vmem:[%s535_s14 + $0x68] sm:$0xff]  ;;  %v163_v49 = vld [vmem:[%s535_s14 + $0x70] sm:$0xff] }
  0x16   : > { %v256_v35 = vmul.f32 %v152_v4, %v152_v4  ;;  %v204_v38 = vsel %vm147_vm0, %v160_v28, 0.0  ;;  %v257_v39 = vmul.f32 %v153_v8, %v153_v8  ;;  %v285_v40 = vsel %vm147_vm0, %v253_v30, 0.0  ;;  %v164_v55 = vld [vmem:[%s535_s14 + $0x78] sm:$0xff]  ;;  %v165_v61 = vld [vmem:[%s535_s14 + $0x80] sm:$0xff]  ;;  %v166_v3 = vld [vmem:[%s535_s14 + $0x88] sm:$0xff] }
  0x17   : > { %v189_v15 = vadd.f32 %v188_v10, %v187_v12  ;;  %v286_v41 = vsel %vm147_vm0, %v254_v31, 0.0  ;;  %v288_v42 = vsel %vm147_vm0, %v255_v32, 0.0  ;;  %v206_v46 = vsel %vm147_vm0, %v161_v36, 0.0  ;;  %v167_v9 = vld [vmem:[%s535_s14 + $0x90] sm:$0xff] }
  0x18   : > { %v287_v45 = vadd.f32 %v286_v41, %v285_v40  ;;  %v258_v47 = vmul.f32 %v154_v11, %v154_v11  ;;  %v290_v48 = vsel %vm147_vm0, %v256_v35, 0.0  ;;  %v208_v52 = vsel %vm147_vm0, %v162_v43, 0.0 }
  0x19   : > { %v191_v18 = vadd.f32 %v190_v13, %v189_v15  ;;  %v259_v53 = vmul.f32 %v155_v14, %v155_v14  ;;  %v292_v54 = vsel %vm147_vm0, %v257_v39, 0.0  ;;  %v210_v58 = vsel %vm147_vm0, %v163_v49, 0.0  ;;  %v168_v15 = vld [vmem:[%s535_s14 + $0x98] sm:$0xff] }
  0x1a   : > { %v289_v51 = vadd.f32 %v288_v42, %v287_v45  ;;  %v260_v59 = vmul.f32 %v156_v17, %v156_v17  ;;  %v294_v60 = vsel %vm147_vm0, %v258_v47, 0.0  ;;  %v212_v0 = vsel %vm147_vm0, %v164_v55, 0.0  ;;  %v172_v39 = vld [vmem:[%s535_s14 + $0xb8] sm:$0xff]  ;;  %v173_v45 = vld [vmem:[%s535_s14 + $0xc0] sm:$0xff] }
  0x1b   : > { %v193_v21 = vadd.f32 %v192_v16, %v191_v18  ;;  %v261_v1 = vmul.f32 %v157_v20, %v157_v20  ;;  %v296_v2 = vsel %vm147_vm0, %v259_v53, 0.0  ;;  %v214_v6 = vsel %vm147_vm0, %v165_v61, 0.0 }
  0x1c   : > { %v291_v57 = vadd.f32 %v290_v48, %v289_v51  ;;  %v262_v7 = vmul.f32 %v158_v23, %v158_v23  ;;  %v298_v8 = vsel %vm147_vm0, %v260_v59, 0.0  ;;  %v216_v12 = vsel %vm147_vm0, %v166_v3, 0.0  ;;  %v174_v51 = vld [vmem:[%s535_s14 + $0xc8] sm:$0xff] }
  0x1d   : > { %v195_v24 = vadd.f32 %v194_v19, %v193_v21  ;;  %v263_v13 = vmul.f32 %v159_v26, %v159_v26  ;;  %v300_v14 = vsel %vm147_vm0, %v261_v1, 0.0  ;;  %v218_v18 = vsel %vm147_vm0, %v167_v9, 0.0  ;;  %v169_v21 = vld [vmem:[%s535_s14 + $0xa0] sm:$0xff] }
  0x1e   : > { %v293_v63 = vadd.f32 %v292_v54, %v291_v57  ;;  %v264_v19 = vmul.f32 %v160_v28, %v160_v28  ;;  %v302_v20 = vsel %vm147_vm0, %v262_v7, 0.0  ;;  %v222_v31 = vsel %vm147_vm0, %v169_v21, 0.0  ;;  %v175_v57 = vld [vmem:[%s535_s14 + $0xd0] sm:$0xff] }
  0x1f   : > { %v197_v27 = vadd.f32 %v196_v22, %v195_v24  ;;  %v220_v24 = vsel %vm147_vm0, %v168_v15, 0.0  ;;  %v304_v26 = vsel %vm147_vm0, %v263_v13, 0.0  ;;  %v266_v32 = vmul.f32 %v162_v43, %v162_v43 }
  0x20   : > { %v295_v5 = vadd.f32 %v294_v60, %v293_v63  ;;  %v306_v28 = vsel %vm147_vm0, %v264_v19, 0.0  ;;  %v228_v48 = vsel %vm147_vm0, %v172_v39, 0.0  ;;  %v230_v54 = vsel %vm147_vm0, %v173_v45, 0.0  ;;  %v176_v63 = vld [vmem:[%s535_s14 + $0xd8] sm:$0xff] }
  0x21   : > { %v199_v33 = vadd.f32 %v198_v25, %v197_v27  ;;  %v265_v25 = vmul.f32 %v161_v36, %v161_v36  ;;  %v170_v27 = vld [vmem:[%s535_s14 + $0xa8] sm:$0xff]  ;;  %v310_v43 = vsel %vm147_vm0, %v266_v32, 0.0  ;;  %v232_v60 = vsel %vm147_vm0, %v174_v51, 0.0 }
  0x22   : > { %v297_v11 = vadd.f32 %v296_v2, %v295_v5  ;;  %v234_v2 = vsel %vm147_vm0, %v175_v57, 0.0  ;;  %v177_v5 = vld [vmem:[%s535_s14 + $0xe0] sm:$0xff] }
  0x23   : > { %v201_v37 = vadd.f32 %v200_v29, %v199_v33  ;;  %v171_v33 = vld [vmem:[%s535_s14 + $0xb0] sm:$0xff]  ;;  %v308_v36 = vsel %vm147_vm0, %v265_v25, 0.0 }
  0x24   : > { %v299_v17 = vadd.f32 %v298_v8, %v297_v11  ;;  %v226_v42 = vsel %vm147_vm0, %v171_v33, 0.0  ;;  %v236_v8 = vsel %vm147_vm0, %v176_v63, 0.0  ;;  %v178_v11 = vld [vmem:[%s535_s14 + $0xe8] sm:$0xff] }
  0x25   : > { %v203_v44 = vadd.f32 %v202_v34, %v201_v37  ;;  %v224_v37 = vsel %vm147_vm0, %v170_v27, 0.0 }
  0x26   : > { %v301_v23 = vadd.f32 %v300_v14, %v299_v17  ;;  %v238_v14 = vsel %vm147_vm0, %v177_v5, 0.0 }
  0x27   : > { %v205_v50 = vadd.f32 %v204_v38, %v203_v44  ;;  %v267_v38 = vmul.f32 %v163_v49, %v163_v49  ;;  %v268_v44 = vmul.f32 %v164_v55, %v164_v55 }
  0x28   : > { %v303_v30 = vadd.f32 %v302_v20, %v301_v23  ;;  %v240_v20 = vsel %vm147_vm0, %v178_v11, 0.0 }
  0x29   : > { %v207_v56 = vadd.f32 %v206_v46, %v205_v50  ;;  %v269_v50 = vmul.f32 %v165_v61, %v165_v61  ;;  %v312_v49 = vsel %vm147_vm0, %v267_v38, 0.0  ;;  %v314_v55 = vsel %vm147_vm0, %v268_v44, 0.0 }
  0x2a   : > { %v305_v35 = vadd.f32 %v304_v26, %v303_v30 }
  0x2b   : > { %v209_v62 = vadd.f32 %v208_v52, %v207_v56  ;;  %v270_v56 = vmul.f32 %v166_v3, %v166_v3  ;;  %v316_v61 = vsel %vm147_vm0, %v269_v50, 0.0 }
  0x2c   : > { %v307_v41 = vadd.f32 %v306_v28, %v305_v35  ;;  %v277_v28 = vmul.f32 %v173_v45, %v173_v45 }
  0x2d   : > { %v211_v4 = vadd.f32 %v210_v58, %v209_v62  ;;  %v271_v62 = vmul.f32 %v167_v9, %v167_v9  ;;  %v318_v3 = vsel %vm147_vm0, %v270_v56, 0.0 }
  0x2e   : > { %v309_v47 = vadd.f32 %v308_v36, %v307_v41  ;;  %v279_v41 = vmul.f32 %v175_v57, %v175_v57 }
  0x2f   : > { %v213_v10 = vadd.f32 %v212_v0, %v211_v4  ;;  %v272_v4 = vmul.f32 %v168_v15, %v168_v15  ;;  %v320_v9 = vsel %vm147_vm0, %v271_v62, 0.0  ;;  %v179_v15 = vld [vmem:[%s535_s14 + $0xf0] sm:$0xff] }
  0x30   : > { %v311_v53 = vadd.f32 %v310_v43, %v309_v47  ;;  %v242_v26 = vsel %vm147_vm0, %v179_v15, 0.0  ;;  %v280_v43 = vmul.f32 %v176_v63, %v176_v63  ;;  %v336_v50 = vsel %vm147_vm0, %v279_v41, 0.0 }
  0x31   : > { %v215_v16 = vadd.f32 %v214_v6, %v213_v10  ;;  %v273_v10 = vmul.f32 %v169_v21, %v169_v21  ;;  %v322_v17 = vsel %vm147_vm0, %v272_v4, 0.0 }
  0x32   : > { %v313_v59 = vadd.f32 %v312_v49, %v311_v53  ;;  %v338_v53 = vsel %vm147_vm0, %v280_v43, 0.0 }
  0x33   : > { %v217_v22 = vadd.f32 %v216_v12, %v215_v16  ;;  %v274_v16 = vmul.f32 %v170_v27, %v170_v27  ;;  %v324_v23 = vsel %vm147_vm0, %v273_v10, 0.0 }
  0x34   : > { %v315_v1 = vadd.f32 %v314_v55, %v313_v59  ;;  %v283_v55 = vmul.f32 %v179_v15, %v179_v15 }
  0x35   : > { %v219_v29 = vadd.f32 %v218_v18, %v217_v22  ;;  %v275_v22 = vmul.f32 %v171_v33, %v171_v33  ;;  %v326_v30 = vsel %vm147_vm0, %v274_v16, 0.0  ;;  %v278_v33 = vmul.f32 %v174_v51, %v174_v51 }
  0x36   : > { %v317_v7 = vadd.f32 %v316_v61, %v315_v1  ;;  %v344_v1 = vsel %vm147_vm0, %v283_v55, 0.0 }
  0x37   : > { %v221_v34 = vadd.f32 %v220_v24, %v219_v29  ;;  %v180_v24 = vld [vmem:[%s535_s14 + $0xf8] sm:$0xff]  ;;  %v276_v29 = vmul.f32 %v172_v39, %v172_v39 }
  0x38   : > { %v319_v13 = vadd.f32 %v318_v3, %v317_v7  ;;  %v244_v32 = vsel %vm147_vm0, %v180_v24, 0.0  ;;  %v284_v62 = vmul.f32 %v180_v24, %v180_v24 }
  0x39   : > { %v223_v40 = vadd.f32 %v222_v31, %v221_v34  ;;  %v328_v34 = vsel %vm147_vm0, %v275_v22, 0.0  ;;  %v330_v38 = vsel %vm147_vm0, %v276_v29, 0.0 }
  0x3a   : > { %v321_v19 = vadd.f32 %v320_v9, %v319_v13  ;;  %v346_v3 = vsel %vm147_vm0, %v284_v62, 0.0 }
  0x3b   : > { %v225_v46 = vadd.f32 %v224_v37, %v223_v40 }
  0x3c   : > { %v323_v25 = vadd.f32 %v322_v17, %v321_v19 }
  0x3d   : > { %v227_v52 = vadd.f32 %v226_v42, %v225_v46  ;;  %v332_v42 = vsel %vm147_vm0, %v277_v28, 0.0  ;;  %v334_v46 = vsel %vm147_vm0, %v278_v33, 0.0 }
  0x3e   : > { %v325_v27 = vadd.f32 %v324_v23, %v323_v25 }
  0x3f   : > { %v229_v58 = vadd.f32 %v228_v48, %v227_v52  ;;  %v281_v48 = vmul.f32 %v177_v5, %v177_v5  ;;  %v282_v52 = vmul.f32 %v178_v11, %v178_v11 }
  0x40   : > { %v327_v37 = vadd.f32 %v326_v30, %v325_v27 }
  0x41   : > { %v231_v0 = vadd.f32 %v230_v54, %v229_v58  ;;  %v340_v57 = vsel %vm147_vm0, %v281_v48, 0.0  ;;  %v342_v61 = vsel %vm147_vm0, %v282_v52, 0.0 }
  0x42   : > { %v329_v40 = vadd.f32 %v328_v34, %v327_v37 }
  0x43   : > { %v233_v6 = vadd.f32 %v232_v60, %v231_v0  ;;  %v181_v60 = vld [vmem:[%s540_s17] sm:$0xff] }
  0x44   : > { %v331_v44 = vadd.f32 %v330_v38, %v329_v40 }
  0x45   : > { %v235_v12 = vadd.f32 %v234_v2, %v233_v6 }
  0x46   : > { %v333_v45 = vadd.f32 %v332_v42, %v331_v44 }
  0x47   : > { %v237_v18 = vadd.f32 %v236_v8, %v235_v12 }
  0x48   : > { %v335_v51 = vadd.f32 %v334_v46, %v333_v45 }
  0x49   : > { %v239_v21 = vadd.f32 %v238_v14, %v237_v18 }
  0x4a   : > { %v337_v56 = vadd.f32 %v336_v50, %v335_v51 }
  0x4b   : > { %v241_v31 = vadd.f32 %v240_v20, %v239_v21 }
  0x4c   : > { %v339_v59 = vadd.f32 %v338_v53, %v337_v56 }
  0x4d   : > { %v243_v35 = vadd.f32 %v242_v26, %v241_v31 }
  0x4e   : > { %v341_v0 = vadd.f32 %v340_v57, %v339_v59 }
  0x4f   : > { %v245_v36 = vadd.f32 %v244_v32, %v243_v35 }
  0x50   : > { %v343_v4 = vadd.f32 %v342_v61, %v341_v0 }
  0x51   : > { %v246_v39 = vrot.slane %v245_v36, 4 }
  0x52   : > { %v345_v5 = vadd.f32 %v344_v1, %v343_v4 }
  0x53   : > { %v247_v47 = vadd.f32 %v246_v39, %v245_v36 }
  0x54   : > { %v347_v7 = vadd.f32 %v346_v3, %v345_v5 }
  0x55   : > { %v248_v49 = vrot.slane %v247_v47, 2 }
  0x56   : > { %v348_v8 = vrot.slane %v347_v7, 4 }
  0x57   : > { %v249_v54 = vadd.f32 %v248_v49, %v247_v47 }
  0x58   : > { %v349_v10 = vadd.f32 %v348_v8, %v347_v7 }
  0x59   : > { %v250_v58 = vrot.slane %v249_v54, 1 }
  0x5a   : > { %v350_v9 = vrot.slane %v349_v10, 2 }
  0x5b   : > { %v251_v63 = vadd.f32 %v250_v58, %v249_v54 }
  0x5c   : > { %v351_v11 = vadd.f32 %v350_v9, %v349_v10 }
  0x5d   : > { %v252_v2 = vadd.f32 %v251_v63, %v181_v60 }
  0x5e   : > { %v352_v12 = vrot.slane %v351_v11, 1 }
  0x5f   : > { %356 = vst.msk [vmem:[%s540_s17] sm:$0x1] %vm355_vm1, %v252_v2  ;;  %v362_v6 = vmul.f32 0.00390625, %v252_v2 }
  0x60   : > { %v353_v14 = vadd.f32 %v352_v12, %v351_v11 }
  0x61   : > { %370 = vst.msk [vmem:[%s540_s17] sm:$0x1] %vm355_vm1, %v362_v6  ;;  %v364_v13 = vmul.f32 %v362_v6, %v362_v6 }
  0x62   : > { %v354_v16 = vadd.f32 %v353_v14, %v181_v60 }
  0x63   : > { %v366_v17 = vrot.slane %v364_v13, 7 }
  0x64   : > { %358 = vst.msk [vmem:[%s540_s17] sm:$0x2] %vm357_vm2, %v354_v16  ;;  %v363_v15 = vmul.f32 0.00390625, %v354_v16 }
  0x66   : > { %v368_v18 = vsub.f32 %v363_v15, %v366_v17 }
  0x68   : > { %v369_v19 = vmax.f32 %v368_v18, 0.0 }
  0x6a   : > { %v371_v20 = vadd.f32 1e-05, %v369_v19 }
  0x6c   : > { %477 = vrsqrt.f32 %v371_v20 }
  0x76   : > { %v478_v22 = vpop.eup %477 }
  0x77   : > { %373 = vst.msk [vmem:[%s540_s17] sm:$0x2] %vm357_vm2, %v478_v22 }
  0x78 PF: > { %s11_s8 = sadd.s32 1, %s501_s8   ;;  %s656_s6 = smov %s497_s7 }
  0x79   : > { %p8_p5 = scmp.ge.s32.totalorder %s11_s8, 4   ;;  %s657_s7 = smov %s659_s9 }
  0x7b   :  { %10 = sbr.rel (!%p8_p5) target bundleno = 2 (0x2), region = 62 }

// kernel: generator_forward.78
= control target key start
LH: loop header
LB: loop body
LE: loop exit
PB: predicated region body
PF: predicated region fallthrough
CT: control target
= control target key end

     0   :  { %s549_s9 = smov 0   ;;  %s551_s10 = smov 0   ;;  %s753_s0 = inlined_call_operand.vmem [shape: f32[2,256,64], index: 0, kind: input, shape index: {}]   ;;  %s754_s1 = inlined_call_operand.vmem [shape: f32[2,8,64], index: 1, kind: input, shape index: {}]   ;;  %s755_s2 = inlined_call_operand.vmem [shape: f32[2,256,64], index: 2, kind: output, shape index: {}]  }
   0x1   :  { %s553_s11 = smov 0  }
   0x2 LB: > { %s24_s12 = sadd.s32 1, %s528_s10  ;;  %p474_p0 = scmp.ge.s32.totalorder %s532_s11, 1  ;;  %s532_s11 = sphi %s553_s11, %s12_s11   ;;  %s528_s10 = sphi %s551_s10, %s757_s10   ;;  %s524_s9 = sphi %s549_s9, %s756_s9  }
   0x3   : > { %p26_p1 = scmp.ge.s32.totalorder %s24_s12, 2  ;;  %p142_p2 = scmp.lt.s32.totalorder %s532_s11, 3 }
   0x5   : > { %s759_s12 = smov (%p26_p1, %s24_s12), 0  ;;  %p143_p3 = pnand %p474_p0, %p142_p2 }
   0x6   : > { %p177_p4 = scmp.lt.s32.totalorder (!%p143_p3), %s524_s9, 1  ;;  %vm338_vm0 = vcmask (!%p143_p3), 523264  }
   0x7   : > { %146 = sbr.rel (%p143_p3) target bundleno = 48 (0x30), region = 28 }
   0xe   : > { %s761_s9 = smov (!%p177_p4, %s524_s9), 1 }
   0xf   : > { %s484_s13 = sshll.u32 %s761_s9, 8  ;;  %s477_s14 = sshll.u32 %s761_s9, 3 }
  0x10   : > { %s570_s17 = scalar_lea.vmem %s753_s0, %s484_s13  ;;  %s189_s20 = scalar_lea.vmem %s754_s1, %s477_s14 }
  0x11   : > { %v200_v0 = vld [vmem:[%s570_s17] sm:$0xff]  ;;  %v201_v4 = vld [vmem:[%s570_s17 + $0x8] sm:$0xff]  ;;  %v202_v5 = vld [vmem:[%s570_s17 + $0x10] sm:$0xff]  ;;  %s598_s23 = scalar_lea.vmem %s755_s2, %s484_s13 }
  0x12   : > { %v576_v1 = vld [vmem:[%s189_s20] ss:$0 sm:$0xff]  ;;  %v578_v2 = vld [vmem:[%s189_s20 + $0x1] ss:$0 sm:$0xff]  ;;  %v203_v6 = vld [vmem:[%s570_s17 + $0x18] sm:$0xff] }
  0x13   : > { %v237_v3 = vsub.f32 %v200_v0, %v576_v1  ;;  %v238_v7 = vsub.f32 %v201_v4, %v576_v1  ;;  %v239_v8 = vsub.f32 %v202_v5, %v576_v1  ;;  %v240_v9 = vsub.f32 %v203_v6, %v576_v1  ;;  %v204_v10 = vld [vmem:[%s570_s17 + $0x20] sm:$0xff]  ;;  %v205_v11 = vld [vmem:[%s570_s17 + $0x28] sm:$0xff]  ;;  %v206_v12 = vld [vmem:[%s570_s17 + $0x30] sm:$0xff] }
  0x14   : > { %v241_v14 = vsub.f32 %v204_v10, %v576_v1  ;;  %v242_v15 = vsub.f32 %v205_v11, %v576_v1  ;;  %v243_v16 = vsub.f32 %v206_v12, %v576_v1  ;;  %v207_v17 = vld [vmem:[%s570_s17 + $0x38] sm:$0xff]  ;;  %v208_v22 = vld [vmem:[%s570_s17 + $0x40] sm:$0xff]  ;;  %v209_v27 = vld [vmem:[%s570_s17 + $0x48] sm:$0xff] }
  0x15   : > { %v274_v13 = vmul.f32 %v578_v2, %v237_v3  ;;  %v275_v18 = vmul.f32 %v578_v2, %v238_v7  ;;  %v276_v19 = vmul.f32 %v578_v2, %v239_v8  ;;  %v277_v20 = vmul.f32 %v578_v2, %v240_v9  ;;  %v210_v28 = vld [vmem:[%s570_s17 + $0x50] sm:$0xff]  ;;  %v211_v29 = vld [vmem:[%s570_s17 + $0x58] sm:$0xff]  ;;  %v212_v34 = vld [vmem:[%s570_s17 + $0x60] sm:$0xff] }
  0x16   : > { %v244_v21 = vsub.f32 %v207_v17, %v576_v1  ;;  %v278_v24 = vmul.f32 %v578_v2, %v241_v14  ;;  %v279_v25 = vmul.f32 %v578_v2, %v242_v15  ;;  %v280_v26 = vmul.f32 %v578_v2, %v243_v16  ;;  %v213_v35 = vld [vmem:[%s570_s17 + $0x68] sm:$0xff]  ;;  %v214_v36 = vld [vmem:[%s570_s17 + $0x70] sm:$0xff]  ;;  %v215_v41 = vld [vmem:[%s570_s17 + $0x78] sm:$0xff] }
  0x17   : > { %v306_v23 = vmax.f32 %v274_v13, 0.0  ;;  %v307_v30 = vmax.f32 %v275_v18, 0.0  ;;  %v308_v31 = vmax.f32 %v276_v19, 0.0  ;;  %v309_v32 = vmax.f32 %v277_v20, 0.0  ;;  %v216_v54 = vld [vmem:[%s570_s17 + $0x80] sm:$0xff]  ;;  %v217_v59 = vld [vmem:[%s570_s17 + $0x88] sm:$0xff] }
  0x18   : > { %v281_v33 = vmul.f32 %v578_v2, %v244_v21  ;;  %v310_v37 = vmax.f32 %v278_v24, 0.0  ;;  %v311_v38 = vmax.f32 %v279_v25, 0.0  ;;  %v312_v39 = vmax.f32 %v280_v26, 0.0  ;;  %v218_v60 = vld [vmem:[%s570_s17 + $0x90] sm:$0xff]  ;;  %v219_v61 = vld [vmem:[%s570_s17 + $0x98] sm:$0xff]  ;;  %v220_v4 = vld [vmem:[%s570_s17 + $0xa0] sm:$0xff] }
  0x19   : > { %339 = vst.msk [vmem:[%s598_s23] sm:$0xff] %vm338_vm0, %v306_v23  ;;  %v245_v40 = vsub.f32 %v208_v22, %v576_v1  ;;  %340 = vst.msk [vmem:[%s598_s23 + $0x8] sm:$0xff] %vm338_vm0, %v307_v30  ;;  %v246_v43 = vsub.f32 %v209_v27, %v576_v1  ;;  %v247_v44 = vsub.f32 %v210_v28, %v576_v1  ;;  %v221_v5 = vld [vmem:[%s570_s17 + $0xa8] sm:$0xff]  ;;  %v222_v6 = vld [vmem:[%s570_s17 + $0xb0] sm:$0xff] }
  0x1a   : > { %341 = vst.msk [vmem:[%s598_s23 + $0x10] sm:$0xff] %vm338_vm0, %v308_v31  ;;  %342 = vst.msk [vmem:[%s598_s23 + $0x18] sm:$0xff] %vm338_vm0, %v309_v32  ;;  %v313_v42 = vmax.f32 %v281_v33, 0.0  ;;  %v248_v45 = vsub.f32 %v211_v29, %v576_v1  ;;  %v249_v47 = vsub.f32 %v212_v34, %v576_v1  ;;  %v250_v48 = vsub.f32 %v213_v35, %v576_v1  ;;  %v223_v11 = vld [vmem:[%s570_s17 + $0xb8] sm:$0xff]  ;;  %v224_v24 = vld [vmem:[%s570_s17 + $0xc0] sm:$0xff] }
  0x1b   : > { %343 = vst.msk [vmem:[%s598_s23 + $0x20] sm:$0xff] %vm338_vm0, %v310_v37  ;;  %344 = vst.msk [vmem:[%s598_s23 + $0x28] sm:$0xff] %vm338_vm0, %v311_v38  ;;  %v282_v46 = vmul.f32 %v578_v2, %v245_v40  ;;  %v251_v49 = vsub.f32 %v214_v36, %v576_v1  ;;  %v283_v50 = vmul.f32 %v578_v2, %v246_v43  ;;  %v225_v29 = vld [vmem:[%s570_s17 + $0xc8] sm:$0xff]  ;;  %v226_v30 = vld [vmem:[%s570_s17 + $0xd0] sm:$0xff] }
  0x1c   : > { %345 = vst.msk [vmem:[%s598_s23 + $0x30] sm:$0xff] %vm338_vm0, %v312_v39  ;;  %346 = vst.msk [vmem:[%s598_s23 + $0x38] sm:$0xff] %vm338_vm0, %v313_v42  ;;  %v284_v51 = vmul.f32 %v578_v2, %v247_v44  ;;  %v285_v52 = vmul.f32 %v578_v2, %v248_v45  ;;  %v252_v53 = vsub.f32 %v215_v41, %v576_v1  ;;  %v227_v31 = vld [vmem:[%s570_s17 + $0xd8] sm:$0xff]  ;;  %v228_v36 = vld [vmem:[%s570_s17 + $0xe0] sm:$0xff] }
  0x1d   : > { %v314_v55 = vmax.f32 %v282_v46, 0.0  ;;  %v286_v56 = vmul.f32 %v578_v2, %v249_v47  ;;  %v287_v57 = vmul.f32 %v578_v2, %v250_v48  ;;  %v288_v58 = vmul.f32 %v578_v2, %v251_v49  ;;  %v229_v37 = vld [vmem:[%s570_s17 + $0xe8] sm:$0xff]  ;;  %v230_v38 = vld [vmem:[%s570_s17 + $0xf0] sm:$0xff]  ;;  %v231_v43 = vld [vmem:[%s570_s17 + $0xf8] sm:$0xff] }
  0x1e   : > { %v315_v62 = vmax.f32 %v283_v50, 0.0  ;;  %v316_v63 = vmax.f32 %v284_v51, 0.0  ;;  %v317_v0 = vmax.f32 %v285_v52, 0.0  ;;  %v289_v3 = vmul.f32 %v578_v2, %v252_v53 }
  0x1f   : > { %347 = vst.msk [vmem:[%s598_s23 + $0x40] sm:$0xff] %vm338_vm0, %v314_v55  ;;  %v318_v7 = vmax.f32 %v286_v56, 0.0  ;;  %v319_v8 = vmax.f32 %v287_v57, 0.0  ;;  %v320_v9 = vmax.f32 %v288_v58, 0.0  ;;  %v253_v10 = vsub.f32 %v216_v54, %v576_v1 }
  0x20   : > { %348 = vst.msk [vmem:[%s598_s23 + $0x48] sm:$0xff] %vm338_vm0, %v315_v62  ;;  %349 = vst.msk [vmem:[%s598_s23 + $0x50] sm:$0xff] %vm338_vm0, %v316_v63  ;;  %v321_v12 = vmax.f32 %v289_v3, 0.0  ;;  %v254_v13 = vsub.f32 %v217_v59, %v576_v1  ;;  %v255_v14 = vsub.f32 %v218_v60, %v576_v1  ;;  %v256_v15 = vsub.f32 %v219_v61, %v576_v1 }
  0x21   : > { %350 = vst.msk [vmem:[%s598_s23 + $0x58] sm:$0xff] %vm338_vm0, %v317_v0  ;;  %351 = vst.msk [vmem:[%s598_s23 + $0x60] sm:$0xff] %vm338_vm0, %v318_v7  ;;  %v290_v16 = vmul.f32 %v578_v2, %v253_v10  ;;  %v257_v17 = vsub.f32 %v220_v4, %v576_v1  ;;  %v258_v18 = vsub.f32 %v221_v5, %v576_v1 }
  0x22   : > { %352 = vst.msk [vmem:[%s598_s23 + $0x68] sm:$0xff] %vm338_vm0, %v319_v8  ;;  %353 = vst.msk [vmem:[%s598_s23 + $0x70] sm:$0xff] %vm338_vm0, %v320_v9  ;;  %v259_v19 = vsub.f32 %v222_v6, %v576_v1  ;;  %v291_v20 = vmul.f32 %v578_v2, %v254_v13  ;;  %v292_v21 = vmul.f32 %v578_v2, %v255_v14 }
  0x23   : > { %354 = vst.msk [vmem:[%s598_s23 + $0x78] sm:$0xff] %vm338_vm0, %v321_v12  ;;  %v293_v22 = vmul.f32 %v578_v2, %v256_v15  ;;  %v260_v23 = vsub.f32 %v223_v11, %v576_v1  ;;  %v322_v25 = vmax.f32 %v290_v16, 0.0  ;;  %v294_v26 = vmul.f32 %v578_v2, %v257_v17 }
  0x24   : > { %v295_v27 = vmul.f32 %v578_v2, %v258_v18  ;;  %v296_v28 = vmul.f32 %v578_v2, %v259_v19  ;;  %v323_v32 = vmax.f32 %v291_v20, 0.0  ;;  %v324_v33 = vmax.f32 %v292_v21, 0.0 }
  0x25   : > { %v325_v34 = vmax.f32 %v293_v22, 0.0  ;;  %v297_v35 = vmul.f32 %v578_v2, %v260_v23  ;;  %355 = vst.msk [vmem:[%s598_s23 + $0x80] sm:$0xff] %vm338_vm0, %v322_v25  ;;  %v326_v39 = vmax.f32 %v294_v26, 0.0  ;;  %v261_v42 = vsub.f32 %v224_v24, %v576_v1 }
  0x26   : > { %v327_v40 = vmax.f32 %v295_v27, 0.0  ;;  %v328_v41 = vmax.f32 %v296_v28, 0.0  ;;  %356 = vst.msk [vmem:[%s598_s23 + $0x88] sm:$0xff] %vm338_vm0, %v323_v32  ;;  %357 = vst.msk [vmem:[%s598_s23 + $0x90] sm:$0xff] %vm338_vm0, %v324_v33  ;;  %v262_v45 = vsub.f32 %v225_v29, %v576_v1  ;;  %v263_v46 = vsub.f32 %v226_v30, %v576_v1 }
  0x27   : > { %358 = vst.msk [vmem:[%s598_s23 + $0x98] sm:$0xff] %vm338_vm0, %v325_v34  ;;  %v329_v44 = vmax.f32 %v297_v35, 0.0  ;;  %v264_v47 = vsub.f32 %v227_v31, %v576_v1  ;;  %359 = vst.msk [vmem:[%s598_s23 + $0xa0] sm:$0xff] %vm338_vm0, %v326_v39  ;;  %v298_v48 = vmul.f32 %v578_v2, %v261_v42  ;;  %v265_v49 = vsub.f32 %v228_v36, %v576_v1 }
  0x28   : > { %360 = vst.msk [vmem:[%s598_s23 + $0xa8] sm:$0xff] %vm338_vm0, %v327_v40  ;;  %361 = vst.msk [vmem:[%s598_s23 + $0xb0] sm:$0xff] %vm338_vm0, %v328_v41  ;;  %v266_v50 = vsub.f32 %v229_v37, %v576_v1  ;;  %v267_v51 = vsub.f32 %v230_v38, %v576_v1  ;;  %v299_v52 = vmul.f32 %v578_v2, %v262_v45 }
  0x29   : > { %362 = vst.msk [vmem:[%s598_s23 + $0xb8] sm:$0xff] %vm338_vm0, %v329_v44  ;;  %v300_v53 = vmul.f32 %v578_v2, %v263_v46  ;;  %v301_v54 = vmul.f32 %v578_v2, %v264_v47  ;;  %v268_v55 = vsub.f32 %v231_v43, %v576_v1  ;;  %v330_v56 = vmax.f32 %v298_v48, 0.0 }
  0x2a   : > { %v302_v57 = vmul.f32 %v578_v2, %v265_v49  ;;  %v303_v58 = vmul.f32 %v578_v2, %v266_v50  ;;  %v304_v59 = vmul.f32 %v578_v2, %v267_v51  ;;  %v331_v60 = vmax.f32 %v299_v52, 0.0 }
  0x2b   : > { %v332_v61 = vmax.f32 %v300_v53, 0.0  ;;  %v333_v62 = vmax.f32 %v301_v54, 0.0  ;;  %v305_v63 = vmul.f32 %v578_v2, %v268_v55  ;;  %363 = vst.msk [vmem:[%s598_s23 + $0xc0] sm:$0xff] %vm338_vm0, %v330_v56 }
  0x2c   : > { %v334_v0 = vmax.f32 %v302_v57, 0.0  ;;  %v335_v1 = vmax.f32 %v303_v58, 0.0  ;;  %v336_v3 = vmax.f32 %v304_v59, 0.0  ;;  %364 = vst.msk [vmem:[%s598_s23 + $0xc8] sm:$0xff] %vm338_vm0, %v331_v60 }
  0x2d   : > { %365 = vst.msk [vmem:[%s598_s23 + $0xd0] sm:$0xff] %vm338_vm0, %v332_v61  ;;  %366 = vst.msk [vmem:[%s598_s23 + $0xd8] sm:$0xff] %vm338_vm0, %v333_v62  ;;  %v337_v4 = vmax.f32 %v305_v63, 0.0 }
  0x2e   : > { %367 = vst.msk [vmem:[%s598_s23 + $0xe0] sm:$0xff] %vm338_vm0, %v334_v0  ;;  %368 = vst.msk [vmem:[%s598_s23 + $0xe8] sm:$0xff] %vm338_vm0, %v335_v1 }
  0x2f   : > { %369 = vst.msk [vmem:[%s598_s23 + $0xf0] sm:$0xff] %vm338_vm0, %v336_v3  ;;  %370 = vst.msk [vmem:[%s598_s23 + $0xf8] sm:$0xff] %vm338_vm0, %v337_v4 }
  0x30 PF: > { %s12_s11 = sadd.s32 1, %s532_s11   ;;  %s756_s9 = smov %s528_s10 }
  0x31   : > { %p9_p5 = scmp.ge.s32.totalorder %s12_s11, 4   ;;  %s757_s10 = smov %s759_s12 }
  0x33   :  { %11 = sbr.rel (!%p9_p5) target bundleno = 2 (0x2), region = 61 }

// kernel: generator_forward.76
= control target key start
LH: loop header
LB: loop body
LE: loop exit
PB: predicated region body
PF: predicated region fallthrough
CT: control target
= control target key end

     0   :  { %s1425_s12 = smov 0   ;;  %s1427_s13 = smov 0   ;;  %s1618_s0 = inlined_call_operand.vmem [shape: bf16[512,256], index: 0, kind: input, shape index: {}]   ;;  %s1619_s1 = inlined_call_operand.vmem [shape: bf16[256,128], index: 1, kind: input, shape index: {}]   ;;  %s1620_s2 = inlined_call_operand.vmem [shape: f32[1,128], index: 2, kind: input, shape index: {}]   ;;  %s1621_s3 = inlined_call_operand.vmem [shape: f32[512,128], index: 3, kind: output, shape index: {}]  }
   0x1   :  { %s1429_s14 = smov 0  }
   0x2 LB: > { %s32_s15 = sadd.s32 1, %s1399_s13  ;;  %p1107_p0 = scmp.ge.s32.totalorder %s1403_s14, 1  ;;  %s1403_s14 = sphi %s1429_s14, %s13_s14   ;;  %s1399_s13 = sphi %s1427_s13, %s1623_s13   ;;  %s1395_s12 = sphi %s1425_s12, %s1622_s12  }
   0x3   : > { %p34_p1 = scmp.ge.s32.totalorder %s32_s15, 2  ;;  %p191_p2 = scmp.lt.s32.totalorder %s1403_s14, 3 }
   0x5   : > { %s1625_s15 = smov (%p34_p1, %s32_s15), 0  ;;  %p192_p3 = pnand %p1107_p0, %p191_p2 }
   0x6   : > { %v1317_v0 = vld [vmem:[%s1619_s1 + $0x40] sm:$0xff] (!%p192_p3)   ;;  %s1108_s18 = sshll.u32 (!%p192_p3), %s1395_s12, 5  ;;  %v1319_v2 = vld [vmem:[%s1619_s1 + $0x48] sm:$0xff] (!%p192_p3)   ;;  %v1321_v4 = vld [vmem:[%s1619_s1 + $0x50] sm:$0xff] (!%p192_p3)  }
   0x7   : > { %195 = sbr.rel (%p192_p3) target bundleno = 315 (0x13b), region = 32  ;;  %v1318_v1 = vld [vmem:[%s1619_s1] sm:$0xff] (!%p192_p3)   ;;  %1165 = vmatprep.subr.bf16.mxu0 (!%p192_p3), %v1317_v0  ;;  %1277 = vmatprep.subr.bf16.mxu1 (!%p192_p3), %v1317_v0  ;;  %v1320_v3 = vld [vmem:[%s1619_s1 + $0x8] sm:$0xff] (!%p192_p3)   ;;  %p236_p4 = scmp.lt.s32.totalorder (!%p192_p3), %s1108_s18, 63  ;;  %v1322_v5 = vld [vmem:[%s1619_s1 + $0x10] sm:$0xff] (!%p192_p3)  }
   0x8   : > { %1166 = vmatpush3.bf16.msra.mxu0 (!%p192_p3), %v1318_v1  ;;  %1285 = vmatpush3.bf16.msra.mxu1 (!%p192_p3), %v1318_v1  ;;  %v1323_v6 = vld [vmem:[%s1619_s1 + $0x58] sm:$0xff] (!%p192_p3)   ;;  %v1325_v8 = vld [vmem:[%s1619_s1 + $0x60] sm:$0xff] (!%p192_p3)   ;;  %v1327_v10 = vld [vmem:[%s1619_s1 + $0x68] sm:$0xff] (!%p192_p3)  }
   0x9   : > { %1167 = vmatprep.subr.bf16.mxu0 (!%p192_p3), %v1319_v2  ;;  %1278 = vmatprep.subr.bf16.mxu1 (!%p192_p3), %v1319_v2  ;;  %v1324_v7 = vld [vmem:[%s1619_s1 + $0x18] sm:$0xff] (!%p192_p3)   ;;  %v1326_v9 = vld [vmem:[%s1619_s1 + $0x20] sm:$0xff] (!%p192_p3)   ;;  %v1328_v13 = vld [vmem:[%s1619_s1 + $0x28] sm:$0xff] (!%p192_p3)  }
   0xa   : > { %v1329_v14 = vld [vmem:[%s1619_s1 + $0x70] sm:$0xff] (!%p192_p3)   ;;  %v1331_v16 = vld [vmem:[%s1619_s1 + $0x78] sm:$0xff] (!%p192_p3)   ;;  %v1536_v51 = vld [vmem:[%s1620_s2] ss:$0 sm:$0xff] (!%p192_p3) }
   0xb   : > { %v1330_v15 = vld [vmem:[%s1619_s1 + $0x30] sm:$0xff] (!%p192_p3)   ;;  %v1332_v17 = vld [vmem:[%s1619_s1 + $0x38] sm:$0xff] (!%p192_p3)  }
   0xc   : > { %1168 = vmatpush3.bf16.msra.mxu0 (!%p192_p3), %v1320_v3  ;;  %1286 = vmatpush3.bf16.msra.mxu1 (!%p192_p3), %v1320_v3 }
   0xd   : > { %1169 = vmatprep.subr.bf16.mxu0 (!%p192_p3), %v1321_v4  ;;  %1279 = vmatprep.subr.bf16.mxu1 (!%p192_p3), %v1321_v4 }
   0xe   : > { %s1627_s18 = smov (!%p236_p4, %s1108_s18), 63 }
   0xf   : > { %s1164_s6 = sshll.u32 %s1627_s18, 3 }
  0x10   : > { %1170 = vmatpush3.bf16.msra.mxu0 %v1322_v5  ;;  %1287 = vmatpush3.bf16.msra.mxu1 %v1322_v5  ;;  %s1478_s11 = scalar_lea.vmem %s1618_s0, %s1164_s6  ;;  %s1543_s8 = scalar_lea.vmem %s1621_s3, %s1164_s6 }
  0x11   : > { %1171 = vmatprep.subr.bf16.mxu0 %v1323_v6  ;;  %1280 = vmatprep.subr.bf16.mxu1 %v1323_v6  ;;  %v1335_v11 = vld [vmem:[%s1478_s11 + $0x4] ss:$8 sps:$4 sm:$0xff]   ;;  %v1333_v18 = vld [vmem:[%s1478_s11] ss:$8 sps:$4 sm:$0xff]   ;;  %v1339_v20 = vld [vmem:[%s1478_s11 + $0x14] ss:$8 sps:$4 sm:$0xff]  }
  0x12   : > { %v1338_v12 = vld [vmem:[%s1478_s11 + $0x84] ss:$8 sps:$4 sm:$0xff]   ;;  %688 = vmatprep.mubr.bf16.mxu0 %v1335_v11  ;;  %v1336_v19 = vld [vmem:[%s1478_s11 + $0x80] ss:$8 sps:$4 sm:$0xff]   ;;  %v1341_v21 = vld [vmem:[%s1478_s11 + $0x94] ss:$8 sps:$4 sm:$0xff]  }
  0x13   : > { %752 = vmatprep.mubr.bf16.mxu1 %v1338_v12  ;;  %v1343_v22 = vld [vmem:[%s1478_s11 + $0x10] ss:$8 sps:$4 sm:$0xff]   ;;  %v1345_v24 = vld [vmem:[%s1478_s11 + $0x24] ss:$8 sps:$4 sm:$0xff]   ;;  %v1349_v26 = vld [vmem:[%s1478_s11 + $0x20] ss:$8 sps:$4 sm:$0xff]  }
  0x14   : > { %1172 = vmatpush3.bf16.msra.mxu0 %v1324_v7  ;;  %1288 = vmatpush3.bf16.msra.mxu1 %v1324_v7  ;;  %v1344_v23 = vld [vmem:[%s1478_s11 + $0x90] ss:$8 sps:$4 sm:$0xff]   ;;  %v1347_v25 = vld [vmem:[%s1478_s11 + $0xa4] ss:$8 sps:$4 sm:$0xff]   ;;  %v1350_v27 = vld [vmem:[%s1478_s11 + $0xa0] ss:$8 sps:$4 sm:$0xff]  }
  0x15   : > { %1173 = vmatprep.subr.bf16.mxu0 %v1325_v8  ;;  %1281 = vmatprep.subr.bf16.mxu1 %v1325_v8  ;;  %v1351_v28 = vld [vmem:[%s1478_s11 + $0x34] ss:$8 sps:$4 sm:$0xff]   ;;  %v1355_v30 = vld [vmem:[%s1478_s11 + $0x30] ss:$8 sps:$4 sm:$0xff]   ;;  %v1357_v32 = vld [vmem:[%s1478_s11 + $0x44] ss:$8 sps:$4 sm:$0xff]  }
  0x16   : > { %v1353_v29 = vld [vmem:[%s1478_s11 + $0xb4] ss:$8 sps:$4 sm:$0xff]   ;;  %v1356_v31 = vld [vmem:[%s1478_s11 + $0xb0] ss:$8 sps:$4 sm:$0xff]   ;;  %v1359_v33 = vld [vmem:[%s1478_s11 + $0xc4] ss:$8 sps:$4 sm:$0xff]  }
  0x17   : > { %v1361_v34 = vld [vmem:[%s1478_s11 + $0x40] ss:$8 sps:$4 sm:$0xff]   ;;  %v1363_v36 = vld [vmem:[%s1478_s11 + $0x54] ss:$8 sps:$4 sm:$0xff]   ;;  %v1367_v38 = vld [vmem:[%s1478_s11 + $0x50] ss:$8 sps:$4 sm:$0xff]  }
  0x18   : > { %1174 = vmatpush3.bf16.msra.mxu0 %v1326_v9  ;;  %1289 = vmatpush3.bf16.msra.mxu1 %v1326_v9  ;;  %v1362_v35 = vld [vmem:[%s1478_s11 + $0xc0] ss:$8 sps:$4 sm:$0xff]   ;;  %v1365_v37 = vld [vmem:[%s1478_s11 + $0xd4] ss:$8 sps:$4 sm:$0xff]   ;;  %v1368_v39 = vld [vmem:[%s1478_s11 + $0xd0] ss:$8 sps:$4 sm:$0xff]  }
  0x19   : > { %1175 = vmatprep.subr.bf16.mxu0 %v1327_v10  ;;  %1282 = vmatprep.subr.bf16.mxu1 %v1327_v10  ;;  %v1369_v40 = vld [vmem:[%s1478_s11 + $0x64] ss:$8 sps:$4 sm:$0xff]   ;;  %v1373_v42 = vld [vmem:[%s1478_s11 + $0x60] ss:$8 sps:$4 sm:$0xff]   ;;  %v1375_v44 = vld [vmem:[%s1478_s11 + $0x74] ss:$8 sps:$4 sm:$0xff]  }
  0x1a   : > { %v1371_v41 = vld [vmem:[%s1478_s11 + $0xe4] ss:$8 sps:$4 sm:$0xff]   ;;  %v1374_v43 = vld [vmem:[%s1478_s11 + $0xe0] ss:$8 sps:$4 sm:$0xff]   ;;  %v1377_v45 = vld [vmem:[%s1478_s11 + $0xf4] ss:$8 sps:$4 sm:$0xff]  }
  0x1b   : > { %v1379_v46 = vld [vmem:[%s1478_s11 + $0x70] ss:$8 sps:$4 sm:$0xff]  }
  0x1c   : > { %1176 = vmatpush3.bf16.msra.mxu0 %v1328_v13  ;;  %1290 = vmatpush3.bf16.msra.mxu1 %v1328_v13  ;;  %v1380_v47 = vld [vmem:[%s1478_s11 + $0xf0] ss:$8 sps:$4 sm:$0xff]  }
  0x1d   : > { %1177 = vmatprep.subr.bf16.mxu0 %v1329_v14  ;;  %1283 = vmatprep.subr.bf16.mxu1 %v1329_v14 }
  0x20   : > { %1178 = vmatpush3.bf16.msra.mxu0 %v1330_v15  ;;  %1291 = vmatpush3.bf16.msra.mxu1 %v1330_v15 }
  0x21   : > { %1179 = vmatprep.subr.bf16.mxu0 %v1331_v16  ;;  %1284 = vmatprep.subr.bf16.mxu1 %v1331_v16 }
  0x24   : > { %1180 = vmatpush3.bf16.msra.mxu0 %v1332_v17  ;;  %1292 = vmatpush3.bf16.msra.mxu1 %v1332_v17 }
  0x27   : > { %689 = vmatmul.mubr.bf16.vlgmr.msra.gmra.mrb[0].mxu0 %v1333_v18  ;;  %753 = vmatmul.mubr.bf16.vlgmr.msra.gmra.mrb[0].mxu1 %v1336_v19 }
  0x28   : > { %696 = vmatprep.mubr.bf16.mxu0 %v1339_v20  ;;  %760 = vmatprep.mubr.bf16.mxu1 %v1341_v21 }
  0x2f   : > { %697 = vmatmul.mubr.bf16.gmra.mrb[4].mxu0 %v1343_v22  ;;  %761 = vmatmul.mubr.bf16.gmra.mrb[4].mxu1 %v1344_v23 }
  0x30   : > { %704 = vmatprep.mubr.bf16.mxu0 %v1345_v24  ;;  %768 = vmatprep.mubr.bf16.mxu1 %v1347_v25 }
  0x37   : > { %705 = vmatmul.mubr.bf16.gmra.mrb[8].mxu0 %v1349_v26  ;;  %769 = vmatmul.mubr.bf16.gmra.mrb[8].mxu1 %v1350_v27 }
  0x38   : > { %712 = vmatprep.mubr.bf16.mxu0 %v1351_v28  ;;  %776 = vmatprep.mubr.bf16.mxu1 %v1353_v29 }
  0x3f   : > { %713 = vmatmul.mubr.bf16.gmra.mrb[12].mxu0 %v1355_v30  ;;  %777 = vmatmul.mubr.bf16.gmra.mrb[12].mxu1 %v1356_v31 }
  0x40   : > { %720 = vmatprep.mubr.bf16.mxu0 %v1357_v32  ;;  %784 = vmatprep.mubr.bf16.mxu1 %v1359_v33 }
  0x47   : > { %721 = vmatmul.mubr.bf16.gmra.mrb[16].mxu0 %v1361_v34  ;;  %785 = vmatmul.mubr.bf16.gmra.mrb[16].mxu1 %v1362_v35 }
  0x48   : > { %728 = vmatprep.mubr.bf16.mxu0 %v1363_v36  ;;  %792 = vmatprep.mubr.bf16.mxu1 %v1365_v37 }
  0x4f   : > { %729 = vmatmul.mubr.bf16.gmra.mrb[20].mxu0 %v1367_v38  ;;  %793 = vmatmul.mubr.bf16.gmra.mrb[20].mxu1 %v1368_v39 }
  0x50   : > { %736 = vmatprep.mubr.bf16.mxu0 %v1369_v40  ;;  %800 = vmatprep.mubr.bf16.mxu1 %v1371_v41 }
  0x57   : > { %737 = vmatmul.mubr.bf16.gmra.mrb[24].mxu0 %v1373_v42  ;;  %801 = vmatmul.mubr.bf16.gmra.mrb[24].mxu1 %v1374_v43 }
  0x58   : > { %744 = vmatprep.mubr.bf16.mxu0 %v1375_v44  ;;  %808 = vmatprep.mubr.bf16.mxu1 %v1377_v45 }
  0x5f   : > { %745 = vmatmul.mubr.bf16.gmra.mrb[28].mxu0 %v1379_v46  ;;  %809 = vmatmul.mubr.bf16.gmra.mrb[28].mxu1 %v1380_v47 }
  0xfa   : > { %v1181_v48 = vpop.f32.mrb[0].mxu0  ;;  %v1229_v49 = vpop.f32.mrb[0].mxu1 }
  0xfb   : > { %v1182_v50 = vpop.f32.mrb[1].mxu0  ;;  %v1230_v52 = vpop.f32.mrb[1].mxu1 }
  0xfc   : > { %v1183_v53 = vadd.f32 %v1182_v50, %v1181_v48  ;;  %v1231_v54 = vadd.f32 %v1230_v52, %v1229_v49  ;;  %v1184_v55 = vpop.f32.mrb[2].mxu0  ;;  %v1232_v56 = vpop.f32.mrb[2].mxu1 }
  0xfd   : > { %v1185_v57 = vpop.f32.mrb[3].mxu0  ;;  %v1233_v58 = vpop.f32.mrb[3].mxu1 }
  0xfe   : > { %v923_v59 = vadd.f32 %v1183_v53, %v1536_v51  ;;  %v939_v60 = vadd.f32 %v1231_v54, %v1536_v51  ;;  %v1186_v61 = vadd.f32 %v1185_v57, %v1184_v55  ;;  %v1234_v62 = vadd.f32 %v1233_v58, %v1232_v56 }
 0x100   : > { %955 = vst [vmem:[%s1543_s8] sm:$0xff] %v923_v59  ;;  %971 = vst [vmem:[%s1543_s8 + $0x80] sm:$0xff] %v939_v60  ;;  %v924_v63 = vadd.f32 %v1186_v61, %v1536_v51  ;;  %v940_v0 = vadd.f32 %v1234_v62, %v1536_v51 }
 0x102   : > { %956 = vst [vmem:[%s1543_s8 + $0x8] sm:$0xff] %v924_v63  ;;  %972 = vst [vmem:[%s1543_s8 + $0x88] sm:$0xff] %v940_v0  ;;  %v1187_v1 = vpop.f32.mrb[4].mxu0  ;;  %v1235_v2 = vpop.f32.mrb[4].mxu1 }
 0x103   : > { %v1188_v3 = vpop.f32.mrb[5].mxu0  ;;  %v1236_v4 = vpop.f32.mrb[5].mxu1 }
 0x104   : > { %v1189_v5 = vadd.f32 %v1188_v3, %v1187_v1  ;;  %v1237_v6 = vadd.f32 %v1236_v4, %v1235_v2  ;;  %v1190_v7 = vpop.f32.mrb[6].mxu0  ;;  %v1238_v8 = vpop.f32.mrb[6].mxu1 }
 0x105   : > { %v1191_v9 = vpop.f32.mrb[7].mxu0  ;;  %v1239_v10 = vpop.f32.mrb[7].mxu1 }
 0x106   : > { %v925_v11 = vadd.f32 %v1189_v5, %v1536_v51  ;;  %v941_v12 = vadd.f32 %v1237_v6, %v1536_v51  ;;  %v1192_v13 = vadd.f32 %v1191_v9, %v1190_v7  ;;  %v1240_v14 = vadd.f32 %v1239_v10, %v1238_v8 }
 0x108   : > { %957 = vst [vmem:[%s1543_s8 + $0x10] sm:$0xff] %v925_v11  ;;  %973 = vst [vmem:[%s1543_s8 + $0x90] sm:$0xff] %v941_v12  ;;  %v926_v15 = vadd.f32 %v1192_v13, %v1536_v51  ;;  %v942_v16 = vadd.f32 %v1240_v14, %v1536_v51 }
 0x10a   : > { %958 = vst [vmem:[%s1543_s8 + $0x18] sm:$0xff] %v926_v15  ;;  %974 = vst [vmem:[%s1543_s8 + $0x98] sm:$0xff] %v942_v16  ;;  %v1193_v17 = vpop.f32.mrb[8].mxu0  ;;  %v1241_v18 = vpop.f32.mrb[8].mxu1 }
 0x10b   : > { %v1194_v19 = vpop.f32.mrb[9].mxu0  ;;  %v1242_v20 = vpop.f32.mrb[9].mxu1 }
 0x10c   : > { %v1195_v21 = vadd.f32 %v1194_v19, %v1193_v17  ;;  %v1243_v22 = vadd.f32 %v1242_v20, %v1241_v18  ;;  %v1196_v23 = vpop.f32.mrb[10].mxu0  ;;  %v1244_v24 = vpop.f32.mrb[10].mxu1 }
 0x10d   : > { %v1197_v25 = vpop.f32.mrb[11].mxu0  ;;  %v1245_v26 = vpop.f32.mrb[11].mxu1 }
 0x10e   : > { %v927_v27 = vadd.f32 %v1195_v21, %v1536_v51  ;;  %v943_v28 = vadd.f32 %v1243_v22, %v1536_v51  ;;  %v1198_v29 = vadd.f32 %v1197_v25, %v1196_v23  ;;  %v1246_v30 = vadd.f32 %v1245_v26, %v1244_v24 }
 0x110   : > { %959 = vst [vmem:[%s1543_s8 + $0x20] sm:$0xff] %v927_v27  ;;  %975 = vst [vmem:[%s1543_s8 + $0xa0] sm:$0xff] %v943_v28  ;;  %v928_v31 = vadd.f32 %v1198_v29, %v1536_v51  ;;  %v944_v32 = vadd.f32 %v1246_v30, %v1536_v51 }
 0x112   : > { %960 = vst [vmem:[%s1543_s8 + $0x28] sm:$0xff] %v928_v31  ;;  %976 = vst [vmem:[%s1543_s8 + $0xa8] sm:$0xff] %v944_v32  ;;  %v1199_v33 = vpop.f32.mrb[12].mxu0  ;;  %v1247_v34 = vpop.f32.mrb[12].mxu1 }
 0x113   : > { %v1200_v35 = vpop.f32.mrb[13].mxu0  ;;  %v1248_v36 = vpop.f32.mrb[13].mxu1 }
 0x114   : > { %v1201_v37 = vadd.f32 %v1200_v35, %v1199_v33  ;;  %v1249_v38 = vadd.f32 %v1248_v36, %v1247_v34  ;;  %v1202_v39 = vpop.f32.mrb[14].mxu0  ;;  %v1250_v40 = vpop.f32.mrb[14].mxu1 }
 0x115   : > { %v1203_v41 = vpop.f32.mrb[15].mxu0  ;;  %v1251_v42 = vpop.f32.mrb[15].mxu1 }
 0x116   : > { %v929_v43 = vadd.f32 %v1201_v37, %v1536_v51  ;;  %v945_v44 = vadd.f32 %v1249_v38, %v1536_v51  ;;  %v1204_v45 = vadd.f32 %v1203_v41, %v1202_v39  ;;  %v1252_v46 = vadd.f32 %v1251_v42, %v1250_v40 }
 0x118   : > { %961 = vst [vmem:[%s1543_s8 + $0x30] sm:$0xff] %v929_v43  ;;  %977 = vst [vmem:[%s1543_s8 + $0xb0] sm:$0xff] %v945_v44  ;;  %v930_v47 = vadd.f32 %v1204_v45, %v1536_v51  ;;  %v946_v48 = vadd.f32 %v1252_v46, %v1536_v51 }
 0x11a   : > { %962 = vst [vmem:[%s1543_s8 + $0x38] sm:$0xff] %v930_v47  ;;  %978 = vst [vmem:[%s1543_s8 + $0xb8] sm:$0xff] %v946_v48  ;;  %v1205_v49 = vpop.f32.mrb[16].mxu0  ;;  %v1253_v50 = vpop.f32.mrb[16].mxu1 }
 0x11b   : > { %v1206_v52 = vpop.f32.mrb[17].mxu0  ;;  %v1254_v53 = vpop.f32.mrb[17].mxu1 }
 0x11c   : > { %v1207_v54 = vadd.f32 %v1206_v52, %v1205_v49  ;;  %v1255_v55 = vadd.f32 %v1254_v53, %v1253_v50  ;;  %v1208_v56 = vpop.f32.mrb[18].mxu0  ;;  %v1256_v57 = vpop.f32.mrb[18].mxu1 }
 0x11d   : > { %v1209_v58 = vpop.f32.mrb[19].mxu0  ;;  %v1257_v59 = vpop.f32.mrb[19].mxu1 }
 0x11e   : > { %v931_v60 = vadd.f32 %v1207_v54, %v1536_v51  ;;  %v947_v61 = vadd.f32 %v1255_v55, %v1536_v51  ;;  %v1210_v62 = vadd.f32 %v1209_v58, %v1208_v56  ;;  %v1258_v63 = vadd.f32 %v1257_v59, %v1256_v57 }
 0x120   : > { %963 = vst [vmem:[%s1543_s8 + $0x40] sm:$0xff] %v931_v60  ;;  %979 = vst [vmem:[%s1543_s8 + $0xc0] sm:$0xff] %v947_v61  ;;  %v932_v0 = vadd.f32 %v1210_v62, %v1536_v51  ;;  %v948_v1 = vadd.f32 %v1258_v63, %v1536_v51 }
 0x122   : > { %964 = vst [vmem:[%s1543_s8 + $0x48] sm:$0xff] %v932_v0  ;;  %980 = vst [vmem:[%s1543_s8 + $0xc8] sm:$0xff] %v948_v1  ;;  %v1211_v2 = vpop.f32.mrb[20].mxu0  ;;  %v1259_v3 = vpop.f32.mrb[20].mxu1 }
 0x123   : > { %v1212_v4 = vpop.f32.mrb[21].mxu0  ;;  %v1260_v5 = vpop.f32.mrb[21].mxu1 }
 0x124   : > { %v1213_v6 = vadd.f32 %v1212_v4, %v1211_v2  ;;  %v1261_v7 = vadd.f32 %v1260_v5, %v1259_v3  ;;  %v1214_v8 = vpop.f32.mrb[22].mxu0  ;;  %v1262_v9 = vpop.f32.mrb[22].mxu1 }
 0x125   : > { %v1215_v10 = vpop.f32.mrb[23].mxu0  ;;  %v1263_v11 = vpop.f32.mrb[23].mxu1 }
 0x126   : > { %v933_v12 = vadd.f32 %v1213_v6, %v1536_v51  ;;  %v949_v13 = vadd.f32 %v1261_v7, %v1536_v51  ;;  %v1216_v14 = vadd.f32 %v1215_v10, %v1214_v8  ;;  %v1264_v15 = vadd.f32 %v1263_v11, %v1262_v9 }
 0x128   : > { %965 = vst [vmem:[%s1543_s8 + $0x50] sm:$0xff] %v933_v12  ;;  %981 = vst [vmem:[%s1543_s8 + $0xd0] sm:$0xff] %v949_v13  ;;  %v934_v16 = vadd.f32 %v1216_v14, %v1536_v51  ;;  %v950_v17 = vadd.f32 %v1264_v15, %v1536_v51 }
 0x12a   : > { %966 = vst [vmem:[%s1543_s8 + $0x58] sm:$0xff] %v934_v16  ;;  %982 = vst [vmem:[%s1543_s8 + $0xd8] sm:$0xff] %v950_v17  ;;  %v1217_v18 = vpop.f32.mrb[24].mxu0  ;;  %v1265_v19 = vpop.f32.mrb[24].mxu1 }
 0x12b   : > { %v1218_v20 = vpop.f32.mrb[25].mxu0  ;;  %v1266_v21 = vpop.f32.mrb[25].mxu1 }
 0x12c   : > { %v1219_v22 = vadd.f32 %v1218_v20, %v1217_v18  ;;  %v1267_v23 = vadd.f32 %v1266_v21, %v1265_v19  ;;  %v1220_v24 = vpop.f32.mrb[26].mxu0  ;;  %v1268_v25 = vpop.f32.mrb[26].mxu1 }
 0x12d   : > { %v1221_v26 = vpop.f32.mrb[27].mxu0  ;;  %v1269_v27 = vpop.f32.mrb[27].mxu1 }
 0x12e   : > { %v935_v28 = vadd.f32 %v1219_v22, %v1536_v51  ;;  %v951_v29 = vadd.f32 %v1267_v23, %v1536_v51  ;;  %v1222_v30 = vadd.f32 %v1221_v26, %v1220_v24  ;;  %v1270_v31 = vadd.f32 %v1269_v27, %v1268_v25 }
 0x130   : > { %967 = vst [vmem:[%s1543_s8 + $0x60] sm:$0xff] %v935_v28  ;;  %983 = vst [vmem:[%s1543_s8 + $0xe0] sm:$0xff] %v951_v29  ;;  %v936_v32 = vadd.f32 %v1222_v30, %v1536_v51  ;;  %v952_v33 = vadd.f32 %v1270_v31, %v1536_v51 }
 0x132   : > { %968 = vst [vmem:[%s1543_s8 + $0x68] sm:$0xff] %v936_v32  ;;  %984 = vst [vmem:[%s1543_s8 + $0xe8] sm:$0xff] %v952_v33  ;;  %v1223_v34 = vpop.f32.mrb[28].mxu0  ;;  %v1271_v35 = vpop.f32.mrb[28].mxu1 }
 0x133   : > { %v1224_v36 = vpop.f32.mrb[29].mxu0  ;;  %v1272_v37 = vpop.f32.mrb[29].mxu1 }
 0x134   : > { %v1225_v38 = vadd.f32 %v1224_v36, %v1223_v34  ;;  %v1273_v39 = vadd.f32 %v1272_v37, %v1271_v35  ;;  %v1226_v40 = vpop.f32.mrb[30].mxu0  ;;  %v1274_v41 = vpop.f32.mrb[30].mxu1 }
 0x135   : > { %v1227_v42 = vpop.f32.mrb[31].mxu0  ;;  %v1275_v43 = vpop.f32.mrb[31].mxu1 }
 0x136   : > { %v937_v44 = vadd.f32 %v1225_v38, %v1536_v51  ;;  %v953_v45 = vadd.f32 %v1273_v39, %v1536_v51  ;;  %v1228_v46 = vadd.f32 %v1227_v42, %v1226_v40  ;;  %v1276_v47 = vadd.f32 %v1275_v43, %v1274_v41 }
 0x138   : > { %969 = vst [vmem:[%s1543_s8 + $0x70] sm:$0xff] %v937_v44  ;;  %985 = vst [vmem:[%s1543_s8 + $0xf0] sm:$0xff] %v953_v45  ;;  %v938_v48 = vadd.f32 %v1228_v46, %v1536_v51  ;;  %v954_v49 = vadd.f32 %v1276_v47, %v1536_v51 }
 0x13a   : > { %970 = vst [vmem:[%s1543_s8 + $0x78] sm:$0xff] %v938_v48  ;;  %986 = vst [vmem:[%s1543_s8 + $0xf8] sm:$0xff] %v954_v49 }
 0x13b PF: > { %s13_s14 = sadd.s32 1, %s1403_s14   ;;  %s1622_s12 = smov %s1399_s13 }
 0x13c   : > { %p10_p5 = scmp.ge.s32.totalorder %s13_s14, 4   ;;  %s1623_s13 = smov %s1625_s15 }
 0x13e   :  { %12 = sbr.rel (!%p10_p5) target bundleno = 2 (0x2), region = 76 }

// kernel: generator_forward.79
= control target key start
LH: loop header
LB: loop body
LE: loop exit
PB: predicated region body
PF: predicated region fallthrough
CT: control target
= control target key end

     0   :  { %s1031_s12 = smov 0   ;;  %s1033_s13 = smov 0   ;;  %s1187_s0 = inlined_call_operand.vmem [shape: bf16[128,640], index: 0, kind: input, shape index: {}]   ;;  %s1188_s1 = inlined_call_operand.vmem [shape: bf16[640,128], index: 1, kind: input, shape index: {}]   ;;  %s1189_s2 = inlined_call_operand.vmem [shape: f32[1,128], index: 2, kind: input, shape index: {}]   ;;  %s1190_s3 = inlined_call_operand.vmem [shape: f32[128,128], index: 3, kind: output, shape index: {}]  }
   0x1   :  { %s1035_s14 = smov 0   ;;  %s1037_s15 = smov 0  }
   0x2   :  { %s1039_s16 = smov 0  }
   0x3 LB: > { %s25_s17 = sadd.s32 1, %s1004_s15  ;;  %p48_p1 = scmp.ne.s32.totalorder %s996_s13, %s992_s12  ;;  %s1008_s16 = sphi %s1039_s16, %s13_s16   ;;  %s1004_s15 = sphi %s1037_s15, %s1194_s15   ;;  %s1000_s14 = sphi %s1035_s14, %s1193_s14   ;;  %s996_s13 = sphi %s1033_s13, %s1192_s13   ;;  %s992_s12 = sphi %s1031_s12, %s1191_s12  }
   0x4   : > { %p26_p0 = scmp.ge.s32.totalorder %s25_s17, 5  ;;  %p49_p2 = scmp.eq.s32.totalorder %s1008_s16, 0 }
   0x5   : > { %s41_s19 = sadd.s32 1, %s996_s13  ;;  %p819_p5 = scmp.ge.s32.totalorder %s1008_s16, 5 }
   0x6   : > { %s1196_s17 = smov (%p26_p0, %s25_s17), 0  ;;  %p50_p3 = por %p49_p2, %p48_p1 }
   0x7   : > { %s37_s18 = ssub.s32 %s1004_s15, %s1196_s17  ;;  %162 = sbr.rel (%p819_p5) target bundleno = 28 (0x1c), region = 20 }
   0x8   : > { %p39_p4 = scmp.eq.s32.totalorder %s37_s18, 0 }
   0xa   : > { %s1066_s20 = scalar_select %p39_p4, %s996_s13, %s41_s19  }
   0xe   : > { %165 = sbr.rel (!%p50_p3) target bundleno = 28 (0x1c), region = 24  ;;  %s167_s21 = sand.u32 (%p50_p3), 1, %s996_s13  }
   0xf   : > { %s821_s22 = sshll.u32 (%p50_p3), %s1004_s15, 2  ;;  %s820_s23 = sshll.u32 (%p50_p3), %s167_s21, 6 }
  0x10   : > { %s1074_s26 = scalar_lea.vmem (%p50_p3), %s1187_s0, %s821_s22  ;;  %s169_s27 = scalar_lea.vmem (%p50_p3), [#allocation3], %s820_s23 }
  0x11   : > { %v190_v0 = vld [vmem:[%s1074_s26] sm:$0xf] (%p50_p3)  ;;  %v192_v1 = vld [vmem:[%s1074_s26 + $0x14] sm:$0xf] (%p50_p3)  ;;  %v194_v2 = vld [vmem:[%s1074_s26 + $0x28] sm:$0xf] (%p50_p3) }
  0x12   : > { %191 = vst [vmem:[%s169_s27] sm:$0xf] (%p50_p3), %v190_v0  ;;  %193 = vst [vmem:[%s169_s27 + $0x4] sm:$0xf] (%p50_p3), %v192_v1  ;;  %v196_v3 = vld [vmem:[%s1074_s26 + $0x3c] sm:$0xf] (%p50_p3) }
  0x13   : > { %v198_v4 = vld [vmem:[%s1074_s26 + $0x50] sm:$0xf] (%p50_p3)  ;;  %195 = vst [vmem:[%s169_s27 + $0x8] sm:$0xf] (%p50_p3), %v194_v2  ;;  %197 = vst [vmem:[%s169_s27 + $0xc] sm:$0xf] (%p50_p3), %v196_v3 }
  0x14   : > { %199 = vst [vmem:[%s169_s27 + $0x10] sm:$0xf] (%p50_p3), %v198_v4  ;;  %v200_v5 = vld [vmem:[%s1074_s26 + $0x64] sm:$0xf] (%p50_p3)  ;;  %v202_v6 = vld [vmem:[%s1074_s26 + $0x78] sm:$0xf] (%p50_p3) }
  0x15   : > { %v204_v7 = vld [vmem:[%s1074_s26 + $0x8c] sm:$0xf]  ;;  %201 = vst [vmem:[%s169_s27 + $0x14] sm:$0xf] %v200_v5  ;;  %203 = vst [vmem:[%s169_s27 + $0x18] sm:$0xf] %v202_v6 }
  0x16   : > { %205 = vst [vmem:[%s169_s27 + $0x1c] sm:$0xf] %v204_v7  ;;  %v206_v8 = vld [vmem:[%s1074_s26 + $0xa0] sm:$0xf]  ;;  %v208_v9 = vld [vmem:[%s1074_s26 + $0xb4] sm:$0xf] }
  0x17   : > { %v210_v10 = vld [vmem:[%s1074_s26 + $0xc8] sm:$0xf]  ;;  %207 = vst [vmem:[%s169_s27 + $0x20] sm:$0xf] %v206_v8  ;;  %209 = vst [vmem:[%s169_s27 + $0x24] sm:$0xf] %v208_v9 }
  0x18   : > { %211 = vst [vmem:[%s169_s27 + $0x28] sm:$0xf] %v210_v10  ;;  %v212_v11 = vld [vmem:[%s1074_s26 + $0xdc] sm:$0xf]  ;;  %v214_v12 = vld [vmem:[%s1074_s26 + $0xf0] sm:$0xf] }
  0x19   : > { %v216_v13 = vld [vmem:[%s1074_s26 + $0x104] sm:$0xf]  ;;  %213 = vst [vmem:[%s169_s27 + $0x2c] sm:$0xf] %v212_v11  ;;  %215 = vst [vmem:[%s169_s27 + $0x30] sm:$0xf] %v214_v12 }
  0x1a   : > { %217 = vst [vmem:[%s169_s27 + $0x34] sm:$0xf] %v216_v13  ;;  %v218_v14 = vld [vmem:[%s1074_s26 + $0x118] sm:$0xf]  ;;  %v220_v15 = vld [vmem:[%s1074_s26 + $0x12c] sm:$0xf] }
  0x1b   : > { %219 = vst [vmem:[%s169_s27 + $0x38] sm:$0xf] %v218_v14  ;;  %221 = vst [vmem:[%s169_s27 + $0x3c] sm:$0xf] %v220_v15 }
  0x1c PF: > { %p822_p6 = scmp.ge.s32.totalorder %s1008_s16, 1  ;;  %p287_p7 = scmp.lt.s32.totalorder %s1008_s16, 6 }
  0x1e   : > { %p288_p8 = pnand %p822_p6, %p287_p7 }
  0x1f   : > { %s294_s28 = sand.u32 (!%p288_p8), 1, %s992_s12   ;;  %s824_s29 = sshll.u32 (!%p288_p8), %s1000_s14, 4 }
  0x20   : > { %291 = sbr.rel (%p288_p8) target bundleno = 319 (0x13f), region = 69  ;;  %s823_s30 = sshll.u32 (!%p288_p8), %s294_s28, 6 }
  0x21   : > { %p333_p9 = scmp.lt.s32.totalorder (!%p288_p8), %s824_s29, 79  ;;  %s1101_s8 = scalar_lea.vmem (!%p288_p8), [#allocation3], %s823_s30 }
  0x22   : > { %p826_p10 = scmp.ne.s32.totalorder (!%p288_p8), %s1000_s14, 0 }
  0x27   : > { %s1198_s29 = smov (!%p333_p9, %s824_s29), 79  ;;  %357 = sbr.rel (%p826_p10) target bundleno = 49 (0x31), region = 77 }
  0x28   : > { %s825_s4 = sshll.u32 %s1198_s29, 2  ;;  %v1010_v16 = vmov (!%p826_p10), 0.0  }
  0x29   : > { %s1099_s7 = scalar_lea.vmem %s1188_s1, %s825_s4  ;;  %358 = vst [vmem:[#allocation2] sm:$0xff] (!%p826_p10), %v1010_v16  ;;  %359 = vst [vmem:[#allocation2 + $0x8] sm:$0xff] (!%p826_p10), %v1010_v16 }
  0x2a   : > { %360 = vst [vmem:[#allocation2 + $0x10] sm:$0xff] (!%p826_p10), %v1010_v16  ;;  %361 = vst [vmem:[#allocation2 + $0x18] sm:$0xff] (!%p826_p10), %v1010_v16 }
  0x2b   : > { %362 = vst [vmem:[#allocation2 + $0x20] sm:$0xff] (!%p826_p10), %v1010_v16  ;;  %363 = vst [vmem:[#allocation2 + $0x28] sm:$0xff] (!%p826_p10), %v1010_v16 }
  0x2c   : > { %364 = vst [vmem:[#allocation2 + $0x30] sm:$0xff] (!%p826_p10), %v1010_v16  ;;  %365 = vst [vmem:[#allocation2 + $0x38] sm:$0xff] (!%p826_p10), %v1010_v16 }
  0x2d   : > { %366 = vst [vmem:[#allocation2 + $0x40] sm:$0xff] (!%p826_p10), %v1010_v16  ;;  %367 = vst [vmem:[#allocation2 + $0x48] sm:$0xff] (!%p826_p10), %v1010_v16 }
  0x2e   : > { %368 = vst [vmem:[#allocation2 + $0x50] sm:$0xff] %v1010_v16  ;;  %369 = vst [vmem:[#allocation2 + $0x58] sm:$0xff] %v1010_v16 }
  0x2f   : > { %370 = vst [vmem:[#allocation2 + $0x60] sm:$0xff] %v1010_v16  ;;  %371 = vst [vmem:[#allocation2 + $0x68] sm:$0xff] %v1010_v16 }
  0x30   : > { %372 = vst [vmem:[#allocation2 + $0x70] sm:$0xff] %v1010_v16  ;;  %373 = vst [vmem:[#allocation2 + $0x78] sm:$0xff] %v1010_v16 }
  0x31 PF: > { %v954_v17 = vld [vmem:[%s1099_s7] sm:$0xff]   ;;  %v955_v18 = vld [vmem:[%s1099_s7 + $0x8] sm:$0xff]   ;;  %v956_v19 = vld [vmem:[%s1099_s7 + $0x10] sm:$0xff]   ;;  %p843_p11 = scmp.ne.s32.totalorder %s1000_s14, 4 }
  0x32   : > { %865 = vmatprep.subr.bf16.mxu0 %v954_v17  ;;  %897 = vmatprep.subr.bf16.mxu1 %v954_v17  ;;  %v957_v20 = vld [vmem:[%s1099_s7 + $0x18] sm:$0xff]   ;;  %v962_v21 = vld [vmem:[%s1101_s8] sm:$0xff]   ;;  %v959_v24 = vld [vmem:[%s1099_s7 + $0x28] sm:$0xff]  }
  0x33   : > { %866 = vmatpush3.bf16.msra.mxu0 %v954_v17  ;;  %905 = vmatpush3.bf16.msra.mxu1 %v954_v17  ;;  %v963_v22 = vld [vmem:[%s1101_s8 + $0x20] sm:$0xff]   ;;  %v960_v25 = vld [vmem:[%s1099_s7 + $0x30] sm:$0xff]   ;;  %v961_v26 = vld [vmem:[%s1099_s7 + $0x38] sm:$0xff]  }
  0x34   : > { %867 = vmatprep.subr.bf16.mxu0 %v955_v18  ;;  %898 = vmatprep.subr.bf16.mxu1 %v955_v18  ;;  %v958_v23 = vld [vmem:[%s1099_s7 + $0x20] sm:$0xff]   ;;  %v964_v27 = vld [vmem:[%s1101_s8 + $0x8] sm:$0xff]   ;;  %v966_v29 = vld [vmem:[%s1101_s8 + $0x10] sm:$0xff]  }
  0x35   : > { %881 = vmatprep.mubr.bf16.mxu0 %v962_v21  ;;  %889 = vmatprep.mubr.bf16.mxu1 %v963_v22  ;;  %v965_v28 = vld [vmem:[%s1101_s8 + $0x28] sm:$0xff]   ;;  %v967_v30 = vld [vmem:[%s1101_s8 + $0x30] sm:$0xff]   ;;  %v968_v31 = vld [vmem:[%s1101_s8 + $0x18] sm:$0xff]  }
  0x36   : > { %v969_v32 = vld [vmem:[%s1101_s8 + $0x38] sm:$0xff]   ;;  %v376_v33 = vld [vmem:[#allocation2 + $0x10] sm:$0xff]  ;;  %v374_v35 = vld [vmem:[#allocation2] sm:$0xff] }
  0x37   : > { %868 = vmatpush3.bf16.msra.mxu0 %v955_v18  ;;  %906 = vmatpush3.bf16.msra.mxu1 %v955_v18  ;;  %v384_v34 = vld [vmem:[#allocation2 + $0x50] sm:$0xff]  ;;  %v382_v36 = vld [vmem:[#allocation2 + $0x40] sm:$0xff]  ;;  %v377_v39 = vld [vmem:[#allocation2 + $0x18] sm:$0xff] }
  0x38   : > { %869 = vmatprep.subr.bf16.mxu0 %v956_v19  ;;  %899 = vmatprep.subr.bf16.mxu1 %v956_v19  ;;  %v385_v40 = vld [vmem:[#allocation2 + $0x58] sm:$0xff]  ;;  %v375_v45 = vld [vmem:[#allocation2 + $0x8] sm:$0xff]  ;;  %v380_v57 = vld [vmem:[#allocation2 + $0x30] sm:$0xff] }
  0x39   : > { %v383_v46 = vld [vmem:[#allocation2 + $0x48] sm:$0xff]  ;;  %v388_v58 = vld [vmem:[#allocation2 + $0x70] sm:$0xff]  ;;  %v378_v59 = vld [vmem:[#allocation2 + $0x20] sm:$0xff] }
  0x3a   : > { %v386_v60 = vld [vmem:[#allocation2 + $0x60] sm:$0xff]  ;;  %v381_v63 = vld [vmem:[#allocation2 + $0x38] sm:$0xff]  ;;  %v379_v5 = vld [vmem:[#allocation2 + $0x28] sm:$0xff] }
  0x3b   : > { %870 = vmatpush3.bf16.msra.mxu0 %v956_v19  ;;  %907 = vmatpush3.bf16.msra.mxu1 %v956_v19  ;;  %v389_v0 = vld [vmem:[#allocation2 + $0x78] sm:$0xff]  ;;  %v387_v6 = vld [vmem:[#allocation2 + $0x68] sm:$0xff]  ;;  %v844_v18 = vld [vmem:[%s1189_s2] ss:$0 sm:$0xff] (!%p843_p11) }
  0x3c   : > { %871 = vmatprep.subr.bf16.mxu0 %v957_v20  ;;  %900 = vmatprep.subr.bf16.mxu1 %v957_v20 }
  0x3f   : > { %872 = vmatpush3.bf16.msra.mxu0 %v957_v20  ;;  %908 = vmatpush3.bf16.msra.mxu1 %v957_v20 }
  0x40   : > { %873 = vmatprep.subr.bf16.mxu0 %v958_v23  ;;  %901 = vmatprep.subr.bf16.mxu1 %v958_v23 }
  0x43   : > { %874 = vmatpush3.bf16.msra.mxu0 %v958_v23  ;;  %909 = vmatpush3.bf16.msra.mxu1 %v958_v23 }
  0x44   : > { %875 = vmatprep.subr.bf16.mxu0 %v959_v24  ;;  %902 = vmatprep.subr.bf16.mxu1 %v959_v24 }
  0x47   : > { %876 = vmatpush3.bf16.msra.mxu0 %v959_v24  ;;  %910 = vmatpush3.bf16.msra.mxu1 %v959_v24 }
  0x48   : > { %877 = vmatprep.subr.bf16.mxu0 %v960_v25  ;;  %903 = vmatprep.subr.bf16.mxu1 %v960_v25 }
  0x4b   : > { %878 = vmatpush3.bf16.msra.mxu0 %v960_v25  ;;  %911 = vmatpush3.bf16.msra.mxu1 %v960_v25 }
  0x4c   : > { %879 = vmatprep.subr.bf16.mxu0 %v961_v26  ;;  %904 = vmatprep.subr.bf16.mxu1 %v961_v26 }
  0x4f   : > { %880 = vmatpush3.bf16.msra.mxu0 %v961_v26  ;;  %912 = vmatpush3.bf16.msra.mxu1 %v961_v26 }
  0x52   : > { %882 = vmatmul.mubr.bf16.vlgmr.msra.gmra.mrb[0].mxu0 %v964_v27  ;;  %890 = vmatmul.mubr.bf16.vlgmr.msra.gmra.mrb[0].mxu1 %v965_v28 }
  0x53   : > { %885 = vmatprep.mubr.bf16.mxu0 %v966_v29  ;;  %893 = vmatprep.mubr.bf16.mxu1 %v967_v30 }
  0x5a   : > { %886 = vmatmul.mubr.bf16.gmra.mrb[4].mxu0 %v968_v31  ;;  %894 = vmatmul.mubr.bf16.gmra.mrb[4].mxu1 %v969_v32 }
 0x125   : > { %v883_v37 = vpop.f32.mrb[0].mxu0  ;;  %v891_v38 = vpop.f32.mrb[0].mxu1 }
 0x126   : > { %v617_v41 = vadd.f32 %v883_v37, %v376_v33  ;;  %v625_v42 = vadd.f32 %v891_v38, %v384_v34  ;;  %v552_v43 = vpop.f32.mrb[1].mxu0  ;;  %v584_v44 = vpop.f32.mrb[1].mxu1 }
 0x127   : > { %v615_v47 = vadd.f32 %v552_v43, %v374_v35  ;;  %v623_v48 = vadd.f32 %v584_v44, %v382_v36  ;;  %v884_v49 = vpop.f32.mrb[2].mxu0  ;;  %v892_v50 = vpop.f32.mrb[2].mxu1 }
 0x128   : > { %633 = vst [vmem:[#allocation2 + $0x10] sm:$0xff] %v617_v41  ;;  %641 = vst [vmem:[#allocation2 + $0x50] sm:$0xff] %v625_v42  ;;  %v618_v51 = vadd.f32 %v884_v49, %v377_v39  ;;  %v626_v52 = vadd.f32 %v892_v50, %v385_v40  ;;  %v555_v53 = vpop.f32.mrb[3].mxu0  ;;  %v587_v54 = vpop.f32.mrb[3].mxu1 }
 0x129   : > { %631 = vst [vmem:[#allocation2] sm:$0xff] %v615_v47  ;;  %639 = vst [vmem:[#allocation2 + $0x40] sm:$0xff] %v623_v48  ;;  %v616_v55 = vadd.f32 %v555_v53, %v375_v45  ;;  %v624_v56 = vadd.f32 %v587_v54, %v383_v46 }
 0x12a   : > { %634 = vst [vmem:[#allocation2 + $0x18] sm:$0xff] %v618_v51  ;;  %642 = vst [vmem:[#allocation2 + $0x58] sm:$0xff] %v626_v52 }
 0x12b   : > { %632 = vst [vmem:[#allocation2 + $0x8] sm:$0xff] %v616_v55  ;;  %640 = vst [vmem:[#allocation2 + $0x48] sm:$0xff] %v624_v56 }
 0x12d   : > { %v887_v61 = vpop.f32.mrb[4].mxu0  ;;  %v895_v62 = vpop.f32.mrb[4].mxu1  ;;  %650 = sbr.rel (%p843_p11) target bundleno = 319 (0x13f), region = 81 }
 0x12e   : > { %v621_v1 = vadd.f32 %v887_v61, %v380_v57  ;;  %v629_v2 = vadd.f32 %v895_v62, %v388_v58  ;;  %v568_v3 = vpop.f32.mrb[5].mxu0  ;;  %v600_v4 = vpop.f32.mrb[5].mxu1 }
 0x12f   : > { %v619_v7 = vadd.f32 %v568_v3, %v378_v59  ;;  %v627_v8 = vadd.f32 %v600_v4, %v386_v60  ;;  %v888_v9 = vpop.f32.mrb[6].mxu0  ;;  %v896_v10 = vpop.f32.mrb[6].mxu1  ;;  %v653_v22 = vld [vmem:[#allocation2 + $0x10] sm:$0xff] (!%p843_p11) }
 0x130   : > { %637 = vst [vmem:[#allocation2 + $0x30] sm:$0xff] %v621_v1  ;;  %645 = vst [vmem:[#allocation2 + $0x70] sm:$0xff] %v629_v2  ;;  %v622_v11 = vadd.f32 %v888_v9, %v381_v63  ;;  %v630_v12 = vadd.f32 %v896_v10, %v389_v0  ;;  %v571_v13 = vpop.f32.mrb[7].mxu0  ;;  %v603_v14 = vpop.f32.mrb[7].mxu1  ;;  %v651_v17 = vld [vmem:[#allocation2] sm:$0xff] (!%p843_p11)  ;;  %v676_v25 = vadd.f32 (!%p843_p11), %v844_v18, %v653_v22  ;;  %v661_v36 = vld [vmem:[#allocation2 + $0x50] sm:$0xff] (!%p843_p11) }
 0x131   : > { %635 = vst [vmem:[#allocation2 + $0x20] sm:$0xff] %v619_v7  ;;  %643 = vst [vmem:[#allocation2 + $0x60] sm:$0xff] %v627_v8  ;;  %v620_v15 = vadd.f32 %v571_v13, %v379_v5  ;;  %v628_v16 = vadd.f32 %v603_v14, %v387_v6  ;;  %v674_v20 = vadd.f32 (!%p843_p11), %v844_v18, %v651_v17  ;;  %v654_v23 = vld [vmem:[#allocation2 + $0x18] sm:$0xff] (!%p843_p11)  ;;  %v659_v34 = vld [vmem:[#allocation2 + $0x40] sm:$0xff] (!%p843_p11) }
 0x132   : > { %638 = vst [vmem:[#allocation2 + $0x38] sm:$0xff] %v622_v11  ;;  %646 = vst [vmem:[#allocation2 + $0x78] sm:$0xff] %v630_v12  ;;  %v652_v19 = vld [vmem:[#allocation2 + $0x8] sm:$0xff] (!%p843_p11)  ;;  %v677_v26 = vadd.f32 (!%p843_p11), %v844_v18, %v654_v23  ;;  %v682_v37 = vadd.f32 (!%p843_p11), %v844_v18, %v659_v34  ;;  %v684_v39 = vadd.f32 (!%p843_p11), %v844_v18, %v661_v36  ;;  %v662_v40 = vld [vmem:[#allocation2 + $0x58] sm:$0xff] (!%p843_p11) }
 0x133   : > { %636 = vst [vmem:[#allocation2 + $0x28] sm:$0xff] %v620_v15  ;;  %644 = vst [vmem:[#allocation2 + $0x68] sm:$0xff] %v628_v16  ;;  %v675_v21 = vadd.f32 (!%p843_p11), %v844_v18, %v652_v19  ;;  %v660_v35 = vld [vmem:[#allocation2 + $0x48] sm:$0xff] (!%p843_p11)  ;;  %v685_v43 = vadd.f32 (!%p843_p11), %v844_v18, %v662_v40 }
 0x134   : > { %690 = vst [vmem:[%s1190_s3] sm:$0xff] %v674_v20  ;;  %692 = vst [vmem:[%s1190_s3 + $0x10] sm:$0xff] %v676_v25  ;;  %v683_v38 = vadd.f32 %v844_v18, %v660_v35 }
 0x135   : > { %691 = vst [vmem:[%s1190_s3 + $0x8] sm:$0xff] %v675_v21  ;;  %693 = vst [vmem:[%s1190_s3 + $0x18] sm:$0xff] %v677_v26 }
 0x136   : > { %698 = vst [vmem:[%s1190_s3 + $0x40] sm:$0xff] %v682_v37  ;;  %699 = vst [vmem:[%s1190_s3 + $0x48] sm:$0xff] %v683_v38 }
 0x137   : > { %v657_v29 = vld [vmem:[#allocation2 + $0x30] sm:$0xff]  ;;  %700 = vst [vmem:[%s1190_s3 + $0x50] sm:$0xff] %v684_v39  ;;  %701 = vst [vmem:[%s1190_s3 + $0x58] sm:$0xff] %v685_v43 }
 0x138   : > { %v655_v24 = vld [vmem:[#allocation2 + $0x20] sm:$0xff]  ;;  %v680_v32 = vadd.f32 %v844_v18, %v657_v29  ;;  %v665_v46 = vld [vmem:[#allocation2 + $0x70] sm:$0xff] }
 0x139   : > { %v678_v27 = vadd.f32 %v844_v18, %v655_v24  ;;  %v658_v30 = vld [vmem:[#allocation2 + $0x38] sm:$0xff]  ;;  %v663_v41 = vld [vmem:[#allocation2 + $0x60] sm:$0xff]  ;;  %v688_v48 = vadd.f32 %v844_v18, %v665_v46 }
 0x13a   : > { %v656_v28 = vld [vmem:[#allocation2 + $0x28] sm:$0xff]  ;;  %v681_v33 = vadd.f32 %v844_v18, %v658_v30  ;;  %696 = vst [vmem:[%s1190_s3 + $0x30] sm:$0xff] %v680_v32  ;;  %v686_v44 = vadd.f32 %v844_v18, %v663_v41  ;;  %v666_v47 = vld [vmem:[#allocation2 + $0x78] sm:$0xff] }
 0x13b   : > { %v679_v31 = vadd.f32 %v844_v18, %v656_v28  ;;  %694 = vst [vmem:[%s1190_s3 + $0x20] sm:$0xff] %v678_v27  ;;  %v664_v42 = vld [vmem:[#allocation2 + $0x68] sm:$0xff]  ;;  %v689_v49 = vadd.f32 %v844_v18, %v666_v47  ;;  %704 = vst [vmem:[%s1190_s3 + $0x70] sm:$0xff] %v688_v48 }
 0x13c   : > { %697 = vst [vmem:[%s1190_s3 + $0x38] sm:$0xff] %v681_v33  ;;  %v687_v45 = vadd.f32 %v844_v18, %v664_v42  ;;  %702 = vst [vmem:[%s1190_s3 + $0x60] sm:$0xff] %v686_v44 }
 0x13d   : > { %695 = vst [vmem:[%s1190_s3 + $0x28] sm:$0xff] %v679_v31  ;;  %705 = vst [vmem:[%s1190_s3 + $0x78] sm:$0xff] %v689_v49 }
 0x13e   : > { %703 = vst [vmem:[%s1190_s3 + $0x68] sm:$0xff] %v687_v45 }
 0x13f PF: > { %s13_s16 = sadd.s32 1, %s1008_s16   ;;  %s1191_s12 = smov %s996_s13 }
 0x140   : > { %p10_p12 = scmp.ge.s32.totalorder %s13_s16, 7   ;;  %s1192_s13 = smov %s1066_s20 }
 0x141   : > { %s1193_s14 = smov %s1004_s15  ;;  %s1194_s15 = smov %s1196_s17 }
 0x142   :  { %12 = sbr.rel (!%p10_p12) target bundleno = 3 (0x3), region = 122 }

// kernel: generator_forward.80
= control target key start
LH: loop header
LB: loop body
LE: loop exit
PB: predicated region body
PF: predicated region fallthrough
CT: control target
= control target key end

     0   :  { %s350_s6 = smov 0   ;;  %s352_s7 = smov 0   ;;  %s390_s0 = inlined_call_operand.vmem [shape: f32[2,64,128], index: 0, kind: input, shape index: {}]   ;;  %s391_s1 = inlined_call_operand.vmem [shape: f32[2,8,128], index: 1, kind: output, shape index: {}]  }
   0x1   :  { %s354_s8 = smov 0  }
   0x2 LB: > { %s23_s9 = sadd.s32 1, %s333_s7  ;;  %p281_p0 = scmp.ge.s32.totalorder %s337_s8, 1  ;;  %s337_s8 = sphi %s354_s8, %s11_s8   ;;  %s333_s7 = sphi %s352_s7, %s393_s7   ;;  %s329_s6 = sphi %s350_s6, %s392_s6  }
   0x3   : > { %p25_p1 = scmp.ge.s32.totalorder %s23_s9, 2  ;;  %p106_p2 = scmp.lt.s32.totalorder %s337_s8, 3 }
   0x5   : > { %s395_s9 = smov (%p25_p1, %s23_s9), 0  ;;  %p107_p3 = pnand %p281_p0, %p106_p2 }
   0x6   : > { %p130_p4 = scmp.lt.s32.totalorder (!%p107_p3), %s329_s6, 1  ;;  %v339_v0 = vmov (!%p107_p3), 0.0  }
   0x7   : > { %110 = sbr.rel (%p107_p3) target bundleno = 68 (0x44), region = 24 }
   0xe   : > { %s397_s6 = smov (!%p130_p4, %s329_s6), 1 }
   0xf   : > { %s287_s10 = sshll.u32 %s397_s6, 6  ;;  %s284_s11 = sshll.u32 %s397_s6, 3 }
  0x10   : > { %s137_s14 = scalar_lea.vmem %s390_s0, %s287_s10  ;;  %s374_s17 = scalar_lea.vmem %s391_s1, %s284_s11 }
  0x11   : > { %147 = vst [vmem:[%s374_s17] sm:$0xff] %v339_v0  ;;  %v148_v1 = vld [vmem:[%s137_s14] sm:$0xff]  ;;  %v149_v2 = vld [vmem:[%s137_s14 + $0x8] sm:$0xff]  ;;  %v150_v3 = vld [vmem:[%s137_s14 + $0x10] sm:$0xff] }
  0x12   : > { %v157_v4 = vadd.f32 %v149_v2, %v148_v1  ;;  %v171_v5 = vmul.f32 %v148_v1, %v148_v1  ;;  %v172_v6 = vmul.f32 %v149_v2, %v149_v2  ;;  %v173_v7 = vmul.f32 %v150_v3, %v150_v3  ;;  %v151_v8 = vld [vmem:[%s137_s14 + $0x18] sm:$0xff]  ;;  %v152_v12 = vld [vmem:[%s137_s14 + $0x20] sm:$0xff]  ;;  %v153_v16 = vld [vmem:[%s137_s14 + $0x28] sm:$0xff] }
  0x13   : > { %v174_v10 = vmul.f32 %v151_v8, %v151_v8  ;;  %v175_v14 = vmul.f32 %v152_v12, %v152_v12  ;;  %v176_v18 = vmul.f32 %v153_v16, %v153_v16  ;;  %v154_v20 = vld [vmem:[%s137_s14 + $0x30] sm:$0xff]  ;;  %v155_v24 = vld [vmem:[%s137_s14 + $0x38] sm:$0xff] }
  0x14   : > { %v158_v9 = vadd.f32 %v157_v4, %v150_v3  ;;  %v179_v11 = vadd.f32 %v172_v6, %v171_v5  ;;  %v177_v22 = vmul.f32 %v154_v20, %v154_v20  ;;  %v178_v26 = vmul.f32 %v155_v24, %v155_v24 }
  0x16   : > { %v159_v13 = vadd.f32 %v158_v9, %v151_v8  ;;  %v180_v15 = vadd.f32 %v179_v11, %v173_v7 }
  0x18   : > { %v160_v17 = vadd.f32 %v159_v13, %v152_v12  ;;  %v181_v19 = vadd.f32 %v180_v15, %v174_v10 }
  0x1a   : > { %v161_v21 = vadd.f32 %v160_v17, %v153_v16  ;;  %v182_v23 = vadd.f32 %v181_v19, %v175_v14 }
  0x1c   : > { %v162_v25 = vadd.f32 %v161_v21, %v154_v20  ;;  %v183_v27 = vadd.f32 %v182_v23, %v176_v18 }
  0x1e   : > { %v163_v28 = vadd.f32 %v162_v25, %v155_v24  ;;  %v184_v29 = vadd.f32 %v183_v27, %v177_v22 }
  0x20   : > { %v164_v30 = vrot.slane %v163_v28, 4  ;;  %v185_v31 = vadd.f32 %v184_v29, %v178_v26 }
  0x22   : > { %v165_v32 = vadd.f32 %v164_v30, %v163_v28  ;;  %v186_v33 = vrot.slane %v185_v31, 4 }
  0x24   : > { %v166_v34 = vrot.slane %v165_v32, 2  ;;  %v187_v35 = vadd.f32 %v186_v33, %v185_v31 }
  0x26   : > { %v167_v36 = vadd.f32 %v166_v34, %v165_v32  ;;  %v188_v37 = vrot.slane %v187_v35, 2 }
  0x28   : > { %v168_v38 = vrot.slane %v167_v36, 1  ;;  %v189_v39 = vadd.f32 %v188_v37, %v187_v35 }
  0x2a   : > { %v169_v40 = vadd.f32 %v168_v38, %v167_v36  ;;  %v190_v41 = vrot.slane %v189_v39, 1 }
  0x2c   : > { %v191_v42 = vadd.f32 %v190_v41, %v189_v39  ;;  %193 = vst [vmem:[%s374_s17] sm:$0x1] %v169_v40  ;;  %v198_v43 = vmul.f32 0.015625, %v169_v40 }
  0x2e   : > { %194 = vst [vmem:[%s374_s17] sm:$0x2] %v191_v42  ;;  %v199_v44 = vmul.f32 0.015625, %v191_v42  ;;  %v200_v45 = vmul.f32 %v198_v43, %v198_v43  ;;  %206 = vst [vmem:[%s374_s17] sm:$0x1] %v198_v43 }
  0x30   : > { %v202_v46 = vrot.slane %v200_v45, 7 }
  0x32   : > { %v204_v47 = vsub.f32 %v199_v44, %v202_v46 }
  0x34   : > { %v205_v48 = vmax.f32 %v204_v47, 0.0 }
  0x36   : > { %v207_v49 = vadd.f32 1e-05, %v205_v48 }
  0x38   : > { %313 = vrsqrt.f32 %v207_v49 }
  0x42   : > { %v314_v50 = vpop.eup %313 }
  0x43   : > { %209 = vst [vmem:[%s374_s17] sm:$0x2] %v314_v50 }
  0x44 PF: > { %s11_s8 = sadd.s32 1, %s337_s8   ;;  %s392_s6 = smov %s333_s7 }
  0x45   : > { %p8_p5 = scmp.ge.s32.totalorder %s11_s8, 4   ;;  %s393_s7 = smov %s395_s9 }
  0x47   :  { %10 = sbr.rel (!%p8_p5) target bundleno = 2 (0x2), region = 62 }

// kernel: generator_forward.81
= control target key start
LH: loop header
LB: loop body
LE: loop exit
PB: predicated region body
PF: predicated region fallthrough
CT: control target
= control target key end

     0   :  { %s428_s9 = smov 0   ;;  %s430_s10 = smov 0   ;;  %s464_s0 = inlined_call_operand.vmem [shape: f32[2,64,128], index: 0, kind: input, shape index: {}]   ;;  %s465_s1 = inlined_call_operand.vmem [shape: f32[2,8,128], index: 1, kind: input, shape index: {}]   ;;  %s466_s2 = inlined_call_operand.vmem [shape: f32[2,64,128], index: 2, kind: output, shape index: {}]  }
   0x1   :  { %s432_s11 = smov 0  }
   0x2 LB: > { %s24_s12 = sadd.s32 1, %s407_s10  ;;  %p353_p0 = scmp.ge.s32.totalorder %s411_s11, 1  ;;  %s411_s11 = sphi %s432_s11, %s12_s11   ;;  %s407_s10 = sphi %s430_s10, %s468_s10   ;;  %s403_s9 = sphi %s428_s9, %s467_s9  }
   0x3   : > { %p26_p1 = scmp.ge.s32.totalorder %s24_s12, 2  ;;  %p142_p2 = scmp.lt.s32.totalorder %s411_s11, 3 }
   0x5   : > { %s470_s12 = smov (%p26_p1, %s24_s12), 0  ;;  %p143_p3 = pnand %p353_p0, %p142_p2 }
   0x6   : > { %p177_p4 = scmp.lt.s32.totalorder (!%p143_p3), %s403_s9, 1 }
   0x7   : > { %146 = sbr.rel (%p143_p3) target bundleno = 29 (0x1d), region = 28 }
   0xe   : > { %s472_s9 = smov (!%p177_p4, %s403_s9), 1 }
   0xf   : > { %s363_s13 = sshll.u32 %s472_s9, 6  ;;  %s356_s14 = sshll.u32 %s472_s9, 3 }
  0x10   : > { %s184_s17 = scalar_lea.vmem %s464_s0, %s363_s13  ;;  %s189_s20 = scalar_lea.vmem %s465_s1, %s356_s14 }
  0x11   : > { %v200_v0 = vld [vmem:[%s184_s17] sm:$0xff]  ;;  %v201_v4 = vld [vmem:[%s184_s17 + $0x8] sm:$0xff]  ;;  %v202_v5 = vld [vmem:[%s184_s17 + $0x10] sm:$0xff]  ;;  %s198_s23 = scalar_lea.vmem %s466_s2, %s363_s13 }
  0x12   : > { %v359_v1 = vld [vmem:[%s189_s20] ss:$0 sm:$0xff]  ;;  %v360_v2 = vld [vmem:[%s189_s20 + $0x1] ss:$0 sm:$0xff]  ;;  %v203_v6 = vld [vmem:[%s184_s17 + $0x18] sm:$0xff] }
  0x13   : > { %v213_v3 = vsub.f32 %v200_v0, %v359_v1  ;;  %v214_v7 = vsub.f32 %v201_v4, %v359_v1  ;;  %v215_v8 = vsub.f32 %v202_v5, %v359_v1  ;;  %v216_v9 = vsub.f32 %v203_v6, %v359_v1  ;;  %v204_v10 = vld [vmem:[%s184_s17 + $0x20] sm:$0xff]  ;;  %v205_v11 = vld [vmem:[%s184_s17 + $0x28] sm:$0xff]  ;;  %v206_v12 = vld [vmem:[%s184_s17 + $0x30] sm:$0xff] }
  0x14   : > { %v217_v14 = vsub.f32 %v204_v10, %v359_v1  ;;  %v218_v15 = vsub.f32 %v205_v11, %v359_v1  ;;  %v219_v16 = vsub.f32 %v206_v12, %v359_v1  ;;  %v207_v17 = vld [vmem:[%s184_s17 + $0x38] sm:$0xff] }
  0x15   : > { %v226_v13 = vmul.f32 %v360_v2, %v213_v3  ;;  %v227_v18 = vmul.f32 %v360_v2, %v214_v7  ;;  %v228_v19 = vmul.f32 %v360_v2, %v215_v8  ;;  %v229_v20 = vmul.f32 %v360_v2, %v216_v9 }
  0x16   : > { %v220_v21 = vsub.f32 %v207_v17, %v359_v1  ;;  %v230_v23 = vmul.f32 %v360_v2, %v217_v14  ;;  %v231_v24 = vmul.f32 %v360_v2, %v218_v15  ;;  %v232_v25 = vmul.f32 %v360_v2, %v219_v16 }
  0x17   : > { %v234_v22 = vmax.f32 %v226_v13, 0.0  ;;  %v235_v26 = vmax.f32 %v227_v18, 0.0  ;;  %v236_v27 = vmax.f32 %v228_v19, 0.0  ;;  %v237_v28 = vmax.f32 %v229_v20, 0.0 }
  0x18   : > { %v233_v29 = vmul.f32 %v360_v2, %v220_v21  ;;  %v238_v30 = vmax.f32 %v230_v23, 0.0  ;;  %v239_v31 = vmax.f32 %v231_v24, 0.0  ;;  %v240_v32 = vmax.f32 %v232_v25, 0.0 }
  0x19   : > { %242 = vst [vmem:[%s198_s23] sm:$0xff] %v234_v22  ;;  %243 = vst [vmem:[%s198_s23 + $0x8] sm:$0xff] %v235_v26 }
  0x1a   : > { %244 = vst [vmem:[%s198_s23 + $0x10] sm:$0xff] %v236_v27  ;;  %245 = vst [vmem:[%s198_s23 + $0x18] sm:$0xff] %v237_v28  ;;  %v241_v33 = vmax.f32 %v233_v29, 0.0 }
  0x1b   : > { %246 = vst [vmem:[%s198_s23 + $0x20] sm:$0xff] %v238_v30  ;;  %247 = vst [vmem:[%s198_s23 + $0x28] sm:$0xff] %v239_v31 }
  0x1c   : > { %248 = vst [vmem:[%s198_s23 + $0x30] sm:$0xff] %v240_v32  ;;  %249 = vst [vmem:[%s198_s23 + $0x38] sm:$0xff] %v241_v33 }
  0x1d PF: > { %s12_s11 = sadd.s32 1, %s411_s11   ;;  %s467_s9 = smov %s407_s10 }
  0x1e   : > { %p9_p5 = scmp.ge.s32.totalorder %s12_s11, 4   ;;  %s468_s10 = smov %s470_s12 }
  0x20   :  { %11 = sbr.rel (!%p9_p5) target bundleno = 2 (0x2), region = 61 }

// kernel: generator_forward.82
= control target key start
LH: loop header
LB: loop body
LE: loop exit
PB: predicated region body
PF: predicated region fallthrough
CT: control target
= control target key end

     0   :  { %s869_s12 = smov 0   ;;  %s871_s13 = smov 0   ;;  %s988_s0 = inlined_call_operand.vmem [shape: bf16[32,1152], index: 0, kind: input, shape index: {}]   ;;  %s989_s1 = inlined_call_operand.vmem [shape: bf16[1152,256], index: 1, kind: input, shape index: {}]   ;;  %s990_s2 = inlined_call_operand.vmem [shape: f32[1,256], index: 2, kind: input, shape index: {}]   ;;  %s991_s3 = inlined_call_operand.vmem [shape: f32[32,256], index: 3, kind: output, shape index: {}]  }
   0x1   :  { %s873_s14 = smov 0   ;;  %s875_s15 = smov 0  }
   0x2   :  { %s877_s16 = smov 0  }
   0x3 LB: > { %s25_s17 = sadd.s32 1, %s841_s15  ;;  %p48_p1 = scmp.ne.s32.totalorder %s833_s13, %s829_s12  ;;  %s845_s16 = sphi %s877_s16, %s13_s16   ;;  %s841_s15 = sphi %s875_s15, %s995_s15   ;;  %s837_s14 = sphi %s873_s14, %s994_s14   ;;  %s833_s13 = sphi %s871_s13, %s993_s13   ;;  %s829_s12 = sphi %s869_s12, %s992_s12  }
   0x4   : > { %p26_p0 = scmp.ge.s32.totalorder %s25_s17, 9  ;;  %p49_p2 = scmp.eq.s32.totalorder %s845_s16, 0 }
   0x5   : > { %s41_s19 = sadd.s32 1, %s833_s13  ;;  %p690_p5 = scmp.ge.s32.totalorder %s845_s16, 9 }
   0x6   : > { %s997_s17 = smov (%p26_p0, %s25_s17), 0  ;;  %p50_p3 = por %p49_p2, %p48_p1 }
   0x7   : > { %s37_s18 = ssub.s32 %s841_s15, %s997_s17  ;;  %164 = sbr.rel (%p690_p5) target bundleno = 21 (0x15), region = 20 }
   0x8   : > { %p39_p4 = scmp.eq.s32.totalorder %s37_s18, 0 }
   0xa   : > { %s904_s20 = scalar_select %p39_p4, %s833_s13, %s41_s19  }
   0xe   : > { %167 = sbr.rel (!%p50_p3) target bundleno = 21 (0x15), region = 24  ;;  %s169_s21 = sand.u32 (%p50_p3), 1, %s833_s13  }
   0xf   : > { %s692_s22 = sshll.u32 (%p50_p3), %s841_s15, 2  ;;  %s691_s23 = sshll.u32 (%p50_p3), %s169_s21, 4 }
  0x10   : > { %s176_s26 = scalar_lea.vmem (%p50_p3), %s988_s0, %s692_s22  ;;  %s171_s27 = scalar_lea.vmem (%p50_p3), [#allocation3], %s691_s23 }
  0x11   : > { %v192_v0 = vld [vmem:[%s176_s26] sm:$0xf] (%p50_p3)  ;;  %v194_v1 = vld [vmem:[%s176_s26 + $0x24] sm:$0xf] (%p50_p3)  ;;  %v196_v2 = vld [vmem:[%s176_s26 + $0x48] sm:$0xf] (%p50_p3) }
  0x12   : > { %193 = vst [vmem:[%s171_s27] sm:$0xf] (%p50_p3), %v192_v0  ;;  %195 = vst [vmem:[%s171_s27 + $0x4] sm:$0xf] (%p50_p3), %v194_v1  ;;  %v198_v3 = vld [vmem:[%s176_s26 + $0x6c] sm:$0xf] (%p50_p3) }
  0x13   : > { %197 = vst [vmem:[%s171_s27 + $0x8] sm:$0xf] (%p50_p3), %v196_v2  ;;  %199 = vst [vmem:[%s171_s27 + $0xc] sm:$0xf] (%p50_p3), %v198_v3 }
  0x15 PF: > { %p693_p6 = scmp.ge.s32.totalorder %s845_s16, 1  ;;  %p244_p7 = scmp.lt.s32.totalorder %s845_s16, 10 }
  0x17   : > { %p245_p8 = pnand %p693_p6, %p244_p7 }
  0x18   : > { %s251_s28 = sand.u32 (!%p245_p8), 1, %s829_s12   ;;  %s695_s29 = sshll.u32 (!%p245_p8), %s837_s14, 4 }
  0x19   : > { %248 = sbr.rel (%p245_p8) target bundleno = 302 (0x12e), region = 69  ;;  %s916_s30 = sshll.u32 (!%p245_p8), %s251_s28, 4 }
  0x1a   : > { %p296_p9 = scmp.lt.s32.totalorder (!%p245_p8), %s695_s29, 143  ;;  %s253_s8 = scalar_lea.vmem (!%p245_p8), [#allocation3], %s916_s30 }
  0x1b   : > { %p698_p10 = scmp.ne.s32.totalorder (!%p245_p8), %s837_s14, 0 }
  0x20   : > { %s999_s29 = smov (!%p296_p9, %s695_s29), 143  ;;  %327 = sbr.rel (%p698_p10) target bundleno = 39 (0x27), region = 77 }
  0x21   : > { %s722_s4 = sshll.u32 %s999_s29, 3  ;;  %v847_v4 = vmov (!%p698_p10), 0.0  }
  0x22   : > { %s921_s7 = scalar_lea.vmem %s989_s1, %s722_s4  ;;  %328 = vst [vmem:[#allocation2] sm:$0xff] (!%p698_p10), %v847_v4  ;;  %329 = vst [vmem:[#allocation2 + $0x8] sm:$0xff] (!%p698_p10), %v847_v4 }
  0x23   : > { %330 = vst [vmem:[#allocation2 + $0x10] sm:$0xff] (!%p698_p10), %v847_v4  ;;  %331 = vst [vmem:[#allocation2 + $0x18] sm:$0xff] (!%p698_p10), %v847_v4 }
  0x24   : > { %332 = vst [vmem:[#allocation2 + $0x20] sm:$0xff] (!%p698_p10), %v847_v4  ;;  %333 = vst [vmem:[#allocation2 + $0x28] sm:$0xff] (!%p698_p10), %v847_v4 }
  0x25   : > { %334 = vst [vmem:[#allocation2 + $0x30] sm:$0xff] (!%p698_p10), %v847_v4  ;;  %335 = vst [vmem:[#allocation2 + $0x38] sm:$0xff] (!%p698_p10), %v847_v4 }
  0x27 PF: > { %v781_v5 = vld [vmem:[%s921_s7 + $0x4] ss:$8 sps:$4 sm:$0xff]   ;;  %v783_v6 = vld [vmem:[%s921_s7] ss:$8 sps:$4 sm:$0xff]   ;;  %v848_v7 = vmov 0   ;;  %p717_p11 = scmp.ne.s32.totalorder %s837_s14, 8 }
  0x28   : > { %488 = vmatprep.mubr.bf16.mxu0 %v848_v7  ;;  %498 = vmatprep.mubr.bf16.mxu1 %v848_v7  ;;  %v784_v8 = vld [vmem:[%s921_s7 + $0x14] ss:$8 sps:$4 sm:$0xff]   ;;  %v786_v9 = vld [vmem:[%s921_s7 + $0x10] ss:$8 sps:$4 sm:$0xff]   ;;  %v787_v10 = vld [vmem:[%s921_s7 + $0x24] ss:$8 sps:$4 sm:$0xff]   ;;  %v539_v48 = vlaneseq (!%p717_p11) }
  0x29   : > { %456 = vmatprep.subr.bf16.mxu0 %v781_v5  ;;  %723 = vmatprep.subr.bf16.mxu1 %v781_v5  ;;  %v789_v11 = vld [vmem:[%s921_s7 + $0x20] ss:$8 sps:$4 sm:$0xff]   ;;  %v790_v12 = vld [vmem:[%s921_s7 + $0x34] ss:$8 sps:$4 sm:$0xff]   ;;  %v792_v13 = vld [vmem:[%s921_s7 + $0x30] ss:$8 sps:$4 sm:$0xff]  }
  0x2a   : > { %457 = vmatpush1.bf16.msra.mxu0 %v783_v6  ;;  %731 = vmatpush1.bf16.msra.mxu1 %v783_v6  ;;  %v793_v14 = vld [vmem:[%s921_s7 + $0x44] ss:$8 sps:$4 sm:$0xff]   ;;  %v795_v15 = vld [vmem:[%s921_s7 + $0x40] ss:$8 sps:$4 sm:$0xff]   ;;  %v796_v16 = vld [vmem:[%s921_s7 + $0x54] ss:$8 sps:$4 sm:$0xff]  }
  0x2b   : > { %458 = vmatprep.subr.bf16.mxu0 %v784_v8  ;;  %724 = vmatprep.subr.bf16.mxu1 %v784_v8  ;;  %v798_v17 = vld [vmem:[%s921_s7 + $0x50] ss:$8 sps:$4 sm:$0xff]   ;;  %v799_v18 = vld [vmem:[%s921_s7 + $0x64] ss:$8 sps:$4 sm:$0xff]   ;;  %v801_v19 = vld [vmem:[%s921_s7 + $0x60] ss:$8 sps:$4 sm:$0xff]  }
  0x2c   : > { %v802_v20 = vld [vmem:[%s921_s7 + $0x74] ss:$8 sps:$4 sm:$0xff]   ;;  %v804_v21 = vld [vmem:[%s921_s7 + $0x70] ss:$8 sps:$4 sm:$0xff]   ;;  %v336_v24 = vld [vmem:[#allocation2] sm:$0xff]  ;;  %v540_v49 = vshrl.u32 (!%p717_p11), %v539_v48, 7 }
  0x2d   : > { %v805_v22 = vld [vmem:[%s253_s8] sm:$0xff]   ;;  %v806_v23 = vld [vmem:[%s253_s8 + $0x8] sm:$0xff]  }
  0x2e   : > { %459 = vmatpush1.bf16.msra.mxu0 %v786_v9  ;;  %732 = vmatpush1.bf16.msra.mxu1 %v786_v9  ;;  %v340_v25 = vld [vmem:[#allocation2 + $0x20] sm:$0xff]  ;;  %v337_v26 = vld [vmem:[#allocation2 + $0x8] sm:$0xff]  ;;  %v338_v30 = vld [vmem:[#allocation2 + $0x10] sm:$0xff]  ;;  %v541_v52 = vsub.s32 (!%p717_p11), 0, %v540_v49  ;;  %v545_v54 = vsub.s32 (!%p717_p11), 1, %v540_v49 }
  0x2f   : > { %460 = vmatprep.subr.bf16.mxu0 %v787_v10  ;;  %725 = vmatprep.subr.bf16.mxu1 %v787_v10  ;;  %v341_v27 = vld [vmem:[#allocation2 + $0x28] sm:$0xff]  ;;  %v342_v31 = vld [vmem:[#allocation2 + $0x30] sm:$0xff]  ;;  %v339_v36 = vld [vmem:[#allocation2 + $0x18] sm:$0xff] }
  0x30   : > { %v343_v37 = vld [vmem:[#allocation2 + $0x38] sm:$0xff]  ;;  %v537_v50 = vld [vmem:[%s990_s2] sm:$0x3] (!%p717_p11) }
  0x31   : > { %v542_v58 = vrot.slane (!%p717_p11), %v537_v50, %v541_v52  ;;  %v546_v59 = vrot.slane (!%p717_p11), %v537_v50, %v545_v54 }
  0x32   : > { %461 = vmatpush1.bf16.msra.mxu0 %v789_v11  ;;  %733 = vmatpush1.bf16.msra.mxu1 %v789_v11 }
  0x33   : > { %462 = vmatprep.subr.bf16.mxu0 %v790_v12  ;;  %726 = vmatprep.subr.bf16.mxu1 %v790_v12 }
  0x36   : > { %463 = vmatpush1.bf16.msra.mxu0 %v792_v13  ;;  %734 = vmatpush1.bf16.msra.mxu1 %v792_v13 }
  0x37   : > { %464 = vmatprep.subr.bf16.mxu0 %v793_v14  ;;  %727 = vmatprep.subr.bf16.mxu1 %v793_v14 }
  0x3a   : > { %465 = vmatpush1.bf16.msra.mxu0 %v795_v15  ;;  %735 = vmatpush1.bf16.msra.mxu1 %v795_v15 }
  0x3b   : > { %466 = vmatprep.subr.bf16.mxu0 %v796_v16  ;;  %728 = vmatprep.subr.bf16.mxu1 %v796_v16 }
  0x3e   : > { %467 = vmatpush1.bf16.msra.mxu0 %v798_v17  ;;  %736 = vmatpush1.bf16.msra.mxu1 %v798_v17 }
  0x3f   : > { %468 = vmatprep.subr.bf16.mxu0 %v799_v18  ;;  %729 = vmatprep.subr.bf16.mxu1 %v799_v18 }
  0x42   : > { %469 = vmatpush1.bf16.msra.mxu0 %v801_v19  ;;  %737 = vmatpush1.bf16.msra.mxu1 %v801_v19 }
  0x43   : > { %470 = vmatprep.subr.bf16.mxu0 %v802_v20  ;;  %730 = vmatprep.subr.bf16.mxu1 %v802_v20 }
  0x46   : > { %471 = vmatpush1.bf16.msra.mxu0 %v804_v21  ;;  %738 = vmatpush1.bf16.msra.mxu1 %v804_v21 }
  0x49   : > { %489 = vmatmul.mubr.bf16.vlgmr.msra.gmra.mrb[0].mxu0 %v805_v22  ;;  %499 = vmatmul.mubr.bf16.vlgmr.msra.gmra.mrb[0].mxu1 %v806_v23 }
 0x11c   : > { %v490_v28 = vpop.f32.mrb[0].mxu0  ;;  %v500_v29 = vpop.f32.mrb[0].mxu1  ;;  %528 = sbr.rel (%p717_p11) target bundleno = 302 (0x12e), region = 81 }
 0x11d   : > { %v509_v32 = vadd.f32 %v490_v28, %v336_v24  ;;  %v513_v33 = vadd.f32 %v500_v29, %v340_v25  ;;  %v492_v34 = vpop.f32.mrb[1].mxu0  ;;  %v502_v35 = vpop.f32.mrb[1].mxu1 }
 0x11e   : > { %v510_v38 = vadd.f32 %v492_v34, %v337_v26  ;;  %v514_v39 = vadd.f32 %v502_v35, %v341_v27  ;;  %v494_v40 = vpop.f32.mrb[2].mxu0  ;;  %v504_v41 = vpop.f32.mrb[2].mxu1 }
 0x11f   : > { %517 = vst [vmem:[#allocation2] sm:$0xff] %v509_v32  ;;  %521 = vst [vmem:[#allocation2 + $0x20] sm:$0xff] %v513_v33  ;;  %v511_v42 = vadd.f32 %v494_v40, %v338_v30  ;;  %v515_v43 = vadd.f32 %v504_v41, %v342_v31  ;;  %v496_v44 = vpop.f32.mrb[3].mxu0  ;;  %v506_v45 = vpop.f32.mrb[3].mxu1 }
 0x120   : > { %518 = vst [vmem:[#allocation2 + $0x8] sm:$0xff] %v510_v38  ;;  %522 = vst [vmem:[#allocation2 + $0x28] sm:$0xff] %v514_v39  ;;  %v512_v46 = vadd.f32 %v496_v44, %v339_v36  ;;  %v516_v47 = vadd.f32 %v506_v45, %v343_v37 }
 0x121   : > { %519 = vst [vmem:[#allocation2 + $0x10] sm:$0xff] %v511_v42  ;;  %523 = vst [vmem:[#allocation2 + $0x30] sm:$0xff] %v515_v43 }
 0x122   : > { %520 = vst [vmem:[#allocation2 + $0x18] sm:$0xff] %v512_v46  ;;  %524 = vst [vmem:[#allocation2 + $0x38] sm:$0xff] %v516_v47 }
 0x126   : > { %v529_v51 = vld [vmem:[#allocation2] sm:$0xff] }
 0x127   : > { %v530_v53 = vld [vmem:[#allocation2 + $0x8] sm:$0xff]  ;;  %v533_v57 = vld [vmem:[#allocation2 + $0x20] sm:$0xff]  ;;  %v549_v63 = vadd.f32 %v542_v58, %v529_v51 }
 0x128   : > { %v531_v55 = vld [vmem:[#allocation2 + $0x10] sm:$0xff]  ;;  %v534_v60 = vld [vmem:[#allocation2 + $0x28] sm:$0xff]  ;;  %v550_v0 = vadd.f32 %v546_v59, %v530_v53  ;;  %v553_v3 = vadd.f32 %v542_v58, %v533_v57 }
 0x129   : > { %v532_v56 = vld [vmem:[#allocation2 + $0x18] sm:$0xff]  ;;  %v535_v61 = vld [vmem:[#allocation2 + $0x30] sm:$0xff]  ;;  %v551_v1 = vadd.f32 %v542_v58, %v531_v55  ;;  %v554_v4 = vadd.f32 %v546_v59, %v534_v60  ;;  %557 = vst [vmem:[%s991_s3] sm:$0xff] %v549_v63 }
 0x12a   : > { %v536_v62 = vld [vmem:[#allocation2 + $0x38] sm:$0xff]  ;;  %v552_v2 = vadd.f32 %v546_v59, %v532_v56  ;;  %v555_v5 = vadd.f32 %v542_v58, %v535_v61  ;;  %558 = vst [vmem:[%s991_s3 + $0x8] sm:$0xff] %v550_v0  ;;  %561 = vst [vmem:[%s991_s3 + $0x20] sm:$0xff] %v553_v3 }
 0x12b   : > { %v556_v6 = vadd.f32 %v546_v59, %v536_v62  ;;  %559 = vst [vmem:[%s991_s3 + $0x10] sm:$0xff] %v551_v1  ;;  %562 = vst [vmem:[%s991_s3 + $0x28] sm:$0xff] %v554_v4 }
 0x12c   : > { %560 = vst [vmem:[%s991_s3 + $0x18] sm:$0xff] %v552_v2  ;;  %563 = vst [vmem:[%s991_s3 + $0x30] sm:$0xff] %v555_v5 }
 0x12d   : > { %564 = vst [vmem:[%s991_s3 + $0x38] sm:$0xff] %v556_v6 }
 0x12e PF: > { %s13_s16 = sadd.s32 1, %s845_s16   ;;  %s992_s12 = smov %s833_s13 }
 0x12f   : > { %p10_p12 = scmp.ge.s32.totalorder %s13_s16, 11   ;;  %s993_s13 = smov %s904_s20 }
 0x130   : > { %s994_s14 = smov %s841_s15  ;;  %s995_s15 = smov %s997_s17 }
 0x131   :  { %12 = sbr.rel (!%p10_p12) target bundleno = 3 (0x3), region = 122 }

// kernel: generator_forward.84
= control target key start
LH: loop header
LB: loop body
LE: loop exit
PB: predicated region body
PF: predicated region fallthrough
CT: control target
= control target key end

     0   :  { %s441_s9 = smov 0   ;;  %s443_s10 = smov 0   ;;  %s477_s0 = inlined_call_operand.vmem [shape: f32[2,16,256], index: 0, kind: input, shape index: {}]   ;;  %s478_s1 = inlined_call_operand.vmem [shape: f32[2,8,256], index: 1, kind: input, shape index: {}]   ;;  %s479_s2 = inlined_call_operand.vmem [shape: f32[2,16,256], index: 2, kind: output, shape index: {}]  }
   0x1   :  { %s445_s11 = smov 0  }
   0x2 LB: > { %s24_s12 = sadd.s32 1, %s420_s10  ;;  %p365_p0 = scmp.ge.s32.totalorder %s424_s11, 1  ;;  %s424_s11 = sphi %s445_s11, %s12_s11   ;;  %s420_s10 = sphi %s443_s10, %s481_s10   ;;  %s416_s9 = sphi %s441_s9, %s480_s9  }
   0x3   : > { %p26_p1 = scmp.ge.s32.totalorder %s24_s12, 2  ;;  %p144_p2 = scmp.lt.s32.totalorder %s424_s11, 3 }
   0x5   : > { %s483_s12 = smov (%p26_p1, %s24_s12), 0  ;;  %p145_p3 = pnand %p365_p0, %p144_p2 }
   0x6   : > { %p182_p4 = scmp.lt.s32.totalorder (!%p145_p3), %s416_s9, 1  ;;  %v214_v0 = vlaneseq (!%p145_p3) }
   0x7   : > { %148 = sbr.rel (%p145_p3) target bundleno = 29 (0x1d), region = 28 }
   0x8   : > { %v215_v1 = vshrl.u32 (!%p145_p3), %v214_v0, 7 }
   0xa   : > { %v216_v2 = vsub.s32 (!%p145_p3), 0, %v215_v1  ;;  %v220_v3 = vsub.s32 (!%p145_p3), 1, %v215_v1 }
   0xe   : > { %s485_s9 = smov (!%p182_p4, %s416_s9), 1 }
   0xf   : > { %s375_s13 = sshll.u32 %s485_s9, 5  ;;  %s376_s14 = sshll.u32 %s485_s9, 4 }
  0x10   : > { %s190_s17 = scalar_lea.vmem %s477_s0, %s375_s13  ;;  %s196_s20 = scalar_lea.vmem %s478_s1, %s376_s14 }
  0x11   : > { %v208_v4 = vld [vmem:[%s190_s17] sm:$0xff]  ;;  %v209_v6 = vld [vmem:[%s190_s17 + $0x8] sm:$0xff]  ;;  %v210_v10 = vld [vmem:[%s190_s17 + $0x10] sm:$0xff]  ;;  %s206_s23 = scalar_lea.vmem %s479_s2, %s375_s13 }
  0x12   : > { %v212_v5 = vld [vmem:[%s196_s20] ss:$8 sm:$0x3]  ;;  %v372_v8 = vld [vmem:[%s196_s20 + $0x1] ss:$8 sm:$0x3] }
  0x13   : > { %v217_v7 = vrot.slane %v212_v5, %v216_v2  ;;  %v221_v9 = vrot.slane %v212_v5, %v220_v3  ;;  %v211_v11 = vld [vmem:[%s190_s17 + $0x18] sm:$0xff]  ;;  %v234_v12 = vrot.slane %v372_v8, %v216_v2  ;;  %v238_v13 = vrot.slane %v372_v8, %v220_v3 }
  0x15   : > { %v224_v14 = vsub.f32 %v208_v4, %v217_v7  ;;  %v225_v15 = vsub.f32 %v209_v6, %v221_v9  ;;  %v226_v16 = vsub.f32 %v210_v10, %v217_v7  ;;  %v227_v17 = vsub.f32 %v211_v11, %v221_v9 }
  0x17   : > { %v241_v18 = vmul.f32 %v234_v12, %v224_v14  ;;  %v242_v19 = vmul.f32 %v238_v13, %v225_v15  ;;  %v243_v20 = vmul.f32 %v234_v12, %v226_v16  ;;  %v244_v21 = vmul.f32 %v238_v13, %v227_v17 }
  0x19   : > { %v245_v22 = vmax.f32 %v241_v18, 0.0  ;;  %v246_v23 = vmax.f32 %v242_v19, 0.0  ;;  %v247_v24 = vmax.f32 %v243_v20, 0.0  ;;  %v248_v25 = vmax.f32 %v244_v21, 0.0 }
  0x1b   : > { %249 = vst [vmem:[%s206_s23] sm:$0xff] %v245_v22  ;;  %250 = vst [vmem:[%s206_s23 + $0x8] sm:$0xff] %v246_v23 }
  0x1c   : > { %251 = vst [vmem:[%s206_s23 + $0x10] sm:$0xff] %v247_v24  ;;  %252 = vst [vmem:[%s206_s23 + $0x18] sm:$0xff] %v248_v25 }
  0x1d PF: > { %s12_s11 = sadd.s32 1, %s424_s11   ;;  %s480_s9 = smov %s420_s10 }
  0x1e   : > { %p9_p5 = scmp.ge.s32.totalorder %s12_s11, 4   ;;  %s481_s10 = smov %s483_s12 }
  0x20   :  { %11 = sbr.rel (!%p9_p5) target bundleno = 2 (0x2), region = 62 }

// kernel: generator_forward.83
= control target key start
LH: loop header
LB: loop body
LE: loop exit
PB: predicated region body
PF: predicated region fallthrough
CT: control target
= control target key end

     0   :  { %s459_s6 = smov 0   ;;  %s461_s7 = smov 0   ;;  %s512_s0 = inlined_call_operand.vmem [shape: f32[2,16,256], index: 0, kind: input, shape index: {}]   ;;  %s513_s1 = inlined_call_operand.vmem [shape: f32[2,8,256], index: 1, kind: output, shape index: {}]  }
   0x1   :  { %s463_s8 = smov 0  }
   0x2 LB: > { %s23_s9 = sadd.s32 1, %s441_s7  ;;  %p382_p0 = scmp.ge.s32.totalorder %s445_s8, 1  ;;  %s445_s8 = sphi %s463_s8, %s11_s8   ;;  %s441_s7 = sphi %s461_s7, %s517_s7   ;;  %s437_s6 = sphi %s459_s6, %s516_s6  }
   0x3   : > { %p25_p1 = scmp.ge.s32.totalorder %s23_s9, 2  ;;  %p107_p2 = scmp.lt.s32.totalorder %s445_s8, 3 }
   0x5   : > { %s519_s9 = smov (%p25_p1, %s23_s9), 0  ;;  %p108_p3 = pnand %p382_p0, %p107_p2 }
   0x6   : > { %p133_p4 = scmp.lt.s32.totalorder (!%p108_p3), %s437_s6, 1  ;;  %v447_v0 = vmov (!%p108_p3), 0.0   ;;  %v448_v27 = vmov (!%p108_p3), 1966171168   ;;  %v202_v29 = vlaneseq (!%p108_p3) }
   0x7   : > { %111 = sbr.rel (%p108_p3) target bundleno = 65 (0x41), region = 24  ;;  %v200_v28 = vunpack.c.l.s4 (!%p108_p3), %v448_v27 }
   0x8   : > { %v203_v39 = vshrl.u32 (!%p108_p3), %v202_v29, 7  ;;  %vm487_vm0 = vcmp.lt.s32.totalorder (!%p108_p3), %v202_v29, 256 }
   0x9   : > { %v201_v38 = vunpack.c.0.s8 (!%p108_p3), %v200_v28 }
   0xb   : > { %v204_v44 = vsub.s32 (!%p108_p3), %v201_v38, %v203_v39 }
   0xe   : > { %s521_s6 = smov (!%p133_p4, %s437_s6), 1 }
   0xf   : > { %s391_s10 = sshll.u32 %s521_s6, 5  ;;  %s392_s11 = sshll.u32 %s521_s6, 4 }
  0x10   : > { %s141_s14 = scalar_lea.vmem %s512_s0, %s391_s10  ;;  %s483_s17 = scalar_lea.vmem %s513_s1, %s392_s11 }
  0x11   : > { %152 = vst [vmem:[%s483_s17] sm:$0xff] %v447_v0  ;;  %v154_v1 = vld [vmem:[%s141_s14] sm:$0xff]  ;;  %v155_v2 = vld [vmem:[%s141_s14 + $0x8] sm:$0xff]  ;;  %v156_v3 = vld [vmem:[%s141_s14 + $0x10] sm:$0xff] }
  0x12   : > { %153 = vst [vmem:[%s483_s17 + $0x8] sm:$0xff] %v447_v0  ;;  %v157_v4 = vld [vmem:[%s141_s14 + $0x18] sm:$0xff]  ;;  %v160_v5 = vadd.f32 %v156_v3, %v154_v1  ;;  %v176_v6 = vmul.f32 %v154_v1, %v154_v1  ;;  %v177_v7 = vmul.f32 %v155_v2, %v155_v2  ;;  %v178_v8 = vmul.f32 %v156_v3, %v156_v3 }
  0x13   : > { %v167_v9 = vadd.f32 %v157_v4, %v155_v2  ;;  %v179_v10 = vmul.f32 %v157_v4, %v157_v4 }
  0x14   : > { %v161_v11 = vrot.slane %v160_v5, 4  ;;  %v180_v12 = vadd.f32 %v178_v8, %v176_v6 }
  0x15   : > { %v168_v13 = vrot.slane %v167_v9, 4  ;;  %v187_v14 = vadd.f32 %v179_v10, %v177_v7 }
  0x16   : > { %v162_v15 = vadd.f32 %v161_v11, %v160_v5  ;;  %v181_v16 = vrot.slane %v180_v12, 4 }
  0x17   : > { %v169_v17 = vadd.f32 %v168_v13, %v167_v9  ;;  %v188_v18 = vrot.slane %v187_v14, 4 }
  0x18   : > { %v163_v19 = vrot.slane %v162_v15, 2  ;;  %v182_v20 = vadd.f32 %v181_v16, %v180_v12 }
  0x19   : > { %v170_v21 = vrot.slane %v169_v17, 2  ;;  %v189_v22 = vadd.f32 %v188_v18, %v187_v14 }
  0x1a   : > { %v164_v23 = vadd.f32 %v163_v19, %v162_v15  ;;  %v183_v24 = vrot.slane %v182_v20, 2 }
  0x1b   : > { %v171_v25 = vadd.f32 %v170_v21, %v169_v17  ;;  %v190_v26 = vrot.slane %v189_v22, 2 }
  0x1c   : > { %v165_v30 = vrot.slane %v164_v23, 1  ;;  %v184_v31 = vadd.f32 %v183_v24, %v182_v20 }
  0x1d   : > { %v172_v32 = vrot.slane %v171_v25, 1  ;;  %v191_v33 = vadd.f32 %v190_v26, %v189_v22 }
  0x1e   : > { %v166_v34 = vadd.f32 %v165_v30, %v164_v23  ;;  %v185_v35 = vrot.slane %v184_v31, 1 }
  0x1f   : > { %v173_v36 = vadd.f32 %v172_v32, %v171_v25  ;;  %v192_v37 = vrot.slane %v191_v33, 1 }
  0x20   : > { %v186_v40 = vadd.f32 %v185_v35, %v184_v31  ;;  %v245_v42 = vmul.f32 0.0625, %v166_v34 }
  0x21   : > { %v193_v41 = vadd.f32 %v192_v37, %v191_v33  ;;  %v198_v43 = vcombine.low %v166_v34, %v173_v36  ;;  %v246_v45 = vmul.f32 0.0625, %v173_v36 }
  0x22   : > { %v247_v46 = vmul.f32 0.0625, %v186_v40  ;;  %v249_v47 = vmul.f32 %v245_v42, %v245_v42 }
  0x23   : > { %v205_v48 = vrot.slane %v198_v43, %v204_v44  ;;  %v222_v49 = vcombine.low %v186_v40, %v193_v41  ;;  %v248_v50 = vmul.f32 0.0625, %v193_v41  ;;  %v250_v51 = vmul.f32 %v246_v45, %v246_v45 }
  0x24   : > { %v253_v53 = vrot.slane %v249_v47, 7  ;;  %v263_v54 = vcombine.low %v245_v42, %v246_v45 }
  0x25   : > { %v212_v55 = vrot.slane %v205_v48, %v204_v44  ;;  %v229_v56 = vrot.slane %v222_v49, %v204_v44  ;;  %v254_v57 = vrot.slane %v250_v51, 7 }
  0x26   : > { %v257_v58 = vsub.f32 %v247_v46, %v253_v53  ;;  %v270_v59 = vrot.slane %v263_v54, %v204_v44 }
  0x27   : > { %218 = vst.msk [vmem:[%s483_s17] ss:$8 sm:$0x3] %vm487_vm0, %v212_v55  ;;  %v230_v60 = vcombine.high %v229_v56, %v229_v56  ;;  %v258_v61 = vsub.f32 %v248_v50, %v254_v57 }
  0x28   : > { %v259_v62 = vmax.f32 %v257_v58, 0.0  ;;  %v277_v63 = vrot.slane %v270_v59, %v204_v44 }
  0x29   : > { %v260_v0 = vmax.f32 %v258_v61, 0.0  ;;  %v237_v1 = vrot.slane %v230_v60, %v204_v44 }
  0x2a   : > { %v281_v2 = vadd.f32 1e-05, %v259_v62  ;;  %279 = vst.msk [vmem:[%s483_s17] ss:$8 sm:$0x3] %vm487_vm0, %v277_v63 }
  0x2b   : > { %v282_v3 = vadd.f32 1e-05, %v260_v0  ;;  %387 = vst.msk [vmem:[%s483_s17 + $0x1] ss:$8 sm:$0x3] %vm487_vm0, %v237_v1 }
  0x2c   : > { %419 = vrsqrt.f32 %v281_v2 }
  0x2d   : > { %421 = vrsqrt.f32 %v282_v3 }
  0x36   : > { %v420_v4 = vpop.eup %419 }
  0x37   : > { %v422_v5 = vpop.eup %421 }
  0x38   : > { %v287_v6 = vcombine.low %v420_v4, %v422_v5 }
  0x3a   : > { %v294_v7 = vrot.slane %v287_v6, %v204_v44 }
  0x3c   : > { %v295_v8 = vcombine.high %v294_v7, %v294_v7 }
  0x3e   : > { %v302_v9 = vrot.slane %v295_v8, %v204_v44 }
  0x40   : > { %388 = vst.msk [vmem:[%s483_s17 + $0x1] ss:$8 sm:$0x3] %vm487_vm0, %v302_v9 }
  0x41 PF: > { %s11_s8 = sadd.s32 1, %s445_s8   ;;  %s516_s6 = smov %s441_s7 }
  0x42   : > { %p8_p5 = scmp.ge.s32.totalorder %s11_s8, 4   ;;  %s517_s7 = smov %s519_s9 }
  0x44   :  { %10 = sbr.rel (!%p8_p5) target bundleno = 2 (0x2), region = 63 }

// kernel: generator_forward.90
= control target key start
LH: loop header
LB: loop body
LE: loop exit
PB: predicated region body
PF: predicated region fallthrough
CT: control target
= control target key end

     0   :  { %s540_s12 = smov 0   ;;  %s542_s13 = smov 0   ;;  %s584_s0 = inlined_call_operand.vmem [shape: f32[2,16,256], index: 0, kind: input, shape index: {}]   ;;  %s585_s1 = inlined_call_operand.vmem [shape: f32[2,8,256], index: 1, kind: input, shape index: {}]   ;;  %s586_s2 = inlined_call_operand.vmem [shape: f32[2,16,256], index: 2, kind: input, shape index: {}]   ;;  %s587_s3 = inlined_call_operand.vmem [shape: f32[2,16,256], index: 3, kind: output, shape index: {}]  }
   0x1   :  { %s544_s14 = smov 0  }
   0x2 LB: > { %s25_s15 = sadd.s32 1, %s514_s13  ;;  %p456_p0 = scmp.ge.s32.totalorder %s518_s14, 1  ;;  %s518_s14 = sphi %s544_s14, %s13_s14   ;;  %s514_s13 = sphi %s542_s13, %s589_s13   ;;  %s510_s12 = sphi %s540_s12, %s588_s12  }
   0x3   : > { %p27_p1 = scmp.ge.s32.totalorder %s25_s15, 2  ;;  %p187_p2 = scmp.lt.s32.totalorder %s518_s14, 3 }
   0x5   : > { %s591_s15 = smov (%p27_p1, %s25_s15), 0  ;;  %p188_p3 = pnand %p456_p0, %p187_p2 }
   0x6   : > { %p237_p4 = scmp.lt.s32.totalorder (!%p188_p3), %s510_s12, 1  ;;  %v284_v0 = vlaneseq (!%p188_p3) }
   0x7   : > { %191 = sbr.rel (%p188_p3) target bundleno = 29 (0x1d), region = 32 }
   0x8   : > { %v285_v1 = vshrl.u32 (!%p188_p3), %v284_v0, 7 }
   0xa   : > { %v286_v2 = vsub.s32 (!%p188_p3), 0, %v285_v1  ;;  %v290_v3 = vsub.s32 (!%p188_p3), 1, %v285_v1 }
   0xe   : > { %s593_s12 = smov (!%p237_p4, %s510_s12), 1 }
   0xf   : > { %s558_s16 = sshll.u32 %s593_s12, 5  ;;  %s469_s17 = sshll.u32 %s593_s12, 4 }
  0x10   : > { %s245_s20 = scalar_lea.vmem %s584_s0, %s558_s16  ;;  %s251_s23 = scalar_lea.vmem %s585_s1, %s469_s17 }
  0x11   : > { %s261_s26 = scalar_lea.vmem %s586_s2, %s558_s16  ;;  %v274_v4 = vld [vmem:[%s245_s20] sm:$0xff]  ;;  %v275_v6 = vld [vmem:[%s245_s20 + $0x8] sm:$0xff]  ;;  %v276_v12 = vld [vmem:[%s245_s20 + $0x10] sm:$0xff]  ;;  %s272_s29 = scalar_lea.vmem %s587_s3, %s558_s16 }
  0x12   : > { %v282_v5 = vld [vmem:[%s251_s23] ss:$8 sm:$0x3]  ;;  %v465_v8 = vld [vmem:[%s251_s23 + $0x1] ss:$8 sm:$0x3] }
  0x13   : > { %v287_v7 = vrot.slane %v282_v5, %v286_v2  ;;  %v291_v9 = vrot.slane %v282_v5, %v290_v3  ;;  %v304_v10 = vrot.slane %v465_v8, %v286_v2  ;;  %v308_v11 = vrot.slane %v465_v8, %v290_v3  ;;  %v277_v13 = vld [vmem:[%s245_s20 + $0x18] sm:$0xff]  ;;  %v278_v14 = vld [vmem:[%s261_s26] sm:$0xff]  ;;  %v279_v19 = vld [vmem:[%s261_s26 + $0x8] sm:$0xff] }
  0x14   : > { %v280_v20 = vld [vmem:[%s261_s26 + $0x10] sm:$0xff]  ;;  %v281_v21 = vld [vmem:[%s261_s26 + $0x18] sm:$0xff] }
  0x15   : > { %v294_v15 = vsub.f32 %v274_v4, %v287_v7  ;;  %v295_v16 = vsub.f32 %v275_v6, %v291_v9  ;;  %v296_v17 = vsub.f32 %v276_v12, %v287_v7  ;;  %v297_v18 = vsub.f32 %v277_v13, %v291_v9 }
  0x17   : > { %v311_v22 = vmul.f32 %v304_v10, %v294_v15  ;;  %v312_v23 = vmul.f32 %v308_v11, %v295_v16  ;;  %v313_v24 = vmul.f32 %v304_v10, %v296_v17  ;;  %v314_v25 = vmul.f32 %v308_v11, %v297_v18 }
  0x19   : > { %v315_v26 = vadd.f32 %v311_v22, %v278_v14  ;;  %v316_v27 = vadd.f32 %v312_v23, %v279_v19  ;;  %v317_v28 = vadd.f32 %v313_v24, %v280_v20  ;;  %v318_v29 = vadd.f32 %v314_v25, %v281_v21 }
  0x1b   : > { %319 = vst [vmem:[%s272_s29] sm:$0xff] %v315_v26  ;;  %320 = vst [vmem:[%s272_s29 + $0x8] sm:$0xff] %v316_v27 }
  0x1c   : > { %321 = vst [vmem:[%s272_s29 + $0x10] sm:$0xff] %v317_v28  ;;  %322 = vst [vmem:[%s272_s29 + $0x18] sm:$0xff] %v318_v29 }
  0x1d PF: > { %s13_s14 = sadd.s32 1, %s518_s14   ;;  %s588_s12 = smov %s514_s13 }
  0x1e   : > { %p10_p5 = scmp.ge.s32.totalorder %s13_s14, 4   ;;  %s589_s13 = smov %s591_s15 }
  0x20   :  { %12 = sbr.rel (!%p10_p5) target bundleno = 2 (0x2), region = 69 }

// kernel: generator_forward.85
= control target key start
LH: loop header
LB: loop body
LE: loop exit
PB: predicated region body
PF: predicated region fallthrough
CT: control target
= control target key end

     0   :  { %s1030_s12 = smov 0   ;;  %s1032_s13 = smov 0   ;;  %s1164_s0 = inlined_call_operand.vmem [shape: bf16[32,2304], index: 0, kind: input, shape index: {}]   ;;  %s1165_s1 = inlined_call_operand.vmem [shape: bf16[2304,256], index: 1, kind: input, shape index: {}]   ;;  %s1166_s2 = inlined_call_operand.vmem [shape: f32[1,256], index: 2, kind: input, shape index: {}]   ;;  %s1167_s3 = inlined_call_operand.vmem [shape: f32[32,256], index: 3, kind: output, shape index: {}]  }
   0x1   :  { %s1034_s14 = smov 0   ;;  %s1036_s15 = smov 0  }
   0x2   :  { %s1038_s16 = smov 0  }
   0x3 LB: > { %s25_s17 = sadd.s32 1, %s1003_s15  ;;  %p48_p1 = scmp.ne.s32.totalorder %s995_s13, %s991_s12  ;;  %s1007_s16 = sphi %s1038_s16, %s13_s16   ;;  %s1003_s15 = sphi %s1036_s15, %s1171_s15   ;;  %s999_s14 = sphi %s1034_s14, %s1170_s14   ;;  %s995_s13 = sphi %s1032_s13, %s1169_s13   ;;  %s991_s12 = sphi %s1030_s12, %s1168_s12  }
   0x4   : > { %p26_p0 = scmp.ge.s32.totalorder %s25_s17, 9  ;;  %p49_p2 = scmp.eq.s32.totalorder %s1007_s16, 0 }
   0x5   : > { %s41_s19 = sadd.s32 1, %s995_s13  ;;  %p789_p5 = scmp.ge.s32.totalorder %s1007_s16, 9 }
   0x6   : > { %s1173_s17 = smov (%p26_p0, %s25_s17), 0  ;;  %p50_p3 = por %p49_p2, %p48_p1 }
   0x7   : > { %s37_s18 = ssub.s32 %s1003_s15, %s1173_s17  ;;  %164 = sbr.rel (%p789_p5) target bundleno = 21 (0x15), region = 20 }
   0x8   : > { %p39_p4 = scmp.eq.s32.totalorder %s37_s18, 0 }
   0xa   : > { %s1065_s20 = scalar_select %p39_p4, %s995_s13, %s41_s19  }
   0xe   : > { %167 = sbr.rel (!%p50_p3) target bundleno = 21 (0x15), region = 24  ;;  %s169_s21 = sand.u32 (%p50_p3), 1, %s995_s13  }
   0xf   : > { %s840_s22 = sshll.u32 (%p50_p3), %s1003_s15, 3  ;;  %s790_s23 = sshll.u32 (%p50_p3), %s169_s21, 5 }
  0x10   : > { %s177_s26 = scalar_lea.vmem (%p50_p3), %s1164_s0, %s840_s22  ;;  %s171_s27 = scalar_lea.vmem (%p50_p3), [#allocation3], %s790_s23 }
  0x11   : > { %v211_v0 = vld [vmem:[%s177_s26] sm:$0xff] (%p50_p3)  ;;  %v213_v1 = vld [vmem:[%s177_s26 + $0x48] sm:$0xff] (%p50_p3)  ;;  %v215_v2 = vld [vmem:[%s177_s26 + $0x90] sm:$0xff] (%p50_p3) }
  0x12   : > { %212 = vst [vmem:[%s171_s27] sm:$0xff] (%p50_p3), %v211_v0  ;;  %214 = vst [vmem:[%s171_s27 + $0x8] sm:$0xff] (%p50_p3), %v213_v1  ;;  %v217_v3 = vld [vmem:[%s177_s26 + $0xd8] sm:$0xff] (%p50_p3) }
  0x13   : > { %216 = vst [vmem:[%s171_s27 + $0x10] sm:$0xff] (%p50_p3), %v215_v2  ;;  %218 = vst [vmem:[%s171_s27 + $0x18] sm:$0xff] (%p50_p3), %v217_v3 }
  0x15 PF: > { %p793_p6 = scmp.ge.s32.totalorder %s1007_s16, 1  ;;  %p238_p7 = scmp.lt.s32.totalorder %s1007_s16, 10 }
  0x17   : > { %p239_p8 = pnand %p793_p6, %p238_p7 }
  0x18   : > { %s245_s28 = sand.u32 (!%p239_p8), 1, %s991_s12   ;;  %s795_s29 = sshll.u32 (!%p239_p8), %s999_s14, 5 }
  0x19   : > { %242 = sbr.rel (%p239_p8) target bundleno = 333 (0x14d), region = 66  ;;  %s794_s30 = sshll.u32 (!%p239_p8), %s245_s28, 5 }
  0x1a   : > { %p291_p9 = scmp.lt.s32.totalorder (!%p239_p8), %s795_s29, 287  ;;  %s1082_s8 = scalar_lea.vmem (!%p239_p8), [#allocation3], %s794_s30 }
  0x1b   : > { %p798_p10 = scmp.ne.s32.totalorder (!%p239_p8), %s999_s14, 0 }
  0x20   : > { %s1175_s29 = smov (!%p291_p9, %s795_s29), 287  ;;  %321 = sbr.rel (%p798_p10) target bundleno = 39 (0x27), region = 74 }
  0x21   : > { %s841_s4 = sshll.u32 %s1175_s29, 3  ;;  %v1009_v4 = vmov (!%p798_p10), 0.0  }
  0x22   : > { %s1080_s7 = scalar_lea.vmem %s1165_s1, %s841_s4  ;;  %322 = vst [vmem:[#allocation2] sm:$0xff] (!%p798_p10), %v1009_v4  ;;  %323 = vst [vmem:[#allocation2 + $0x8] sm:$0xff] (!%p798_p10), %v1009_v4 }
  0x23   : > { %324 = vst [vmem:[#allocation2 + $0x10] sm:$0xff] (!%p798_p10), %v1009_v4  ;;  %325 = vst [vmem:[#allocation2 + $0x18] sm:$0xff] (!%p798_p10), %v1009_v4 }
  0x24   : > { %326 = vst [vmem:[#allocation2 + $0x20] sm:$0xff] (!%p798_p10), %v1009_v4  ;;  %327 = vst [vmem:[#allocation2 + $0x28] sm:$0xff] (!%p798_p10), %v1009_v4 }
  0x25   : > { %328 = vst [vmem:[#allocation2 + $0x30] sm:$0xff] (!%p798_p10), %v1009_v4  ;;  %329 = vst [vmem:[#allocation2 + $0x38] sm:$0xff] (!%p798_p10), %v1009_v4 }
  0x27 PF: > { %v915_v5 = vld [vmem:[%s1080_s7 + $0x4] ss:$8 sps:$4 sm:$0xff]   ;;  %v917_v6 = vld [vmem:[%s1080_s7] ss:$8 sps:$4 sm:$0xff]   ;;  %v918_v7 = vld [vmem:[%s1080_s7 + $0x14] ss:$8 sps:$4 sm:$0xff]  }
  0x28   : > { %554 = vmatprep.subr.bf16.mxu0 %v915_v5  ;;  %842 = vmatprep.subr.bf16.mxu1 %v915_v5  ;;  %v920_v8 = vld [vmem:[%s1080_s7 + $0x10] ss:$8 sps:$4 sm:$0xff]   ;;  %v921_v9 = vld [vmem:[%s1080_s7 + $0x24] ss:$8 sps:$4 sm:$0xff]   ;;  %v923_v10 = vld [vmem:[%s1080_s7 + $0x20] ss:$8 sps:$4 sm:$0xff]  }
  0x29   : > { %555 = vmatpush1.bf16.msra.mxu0 %v917_v6  ;;  %858 = vmatpush1.bf16.msra.mxu1 %v917_v6  ;;  %v924_v11 = vld [vmem:[%s1080_s7 + $0x34] ss:$8 sps:$4 sm:$0xff]   ;;  %v926_v12 = vld [vmem:[%s1080_s7 + $0x30] ss:$8 sps:$4 sm:$0xff]   ;;  %v927_v13 = vld [vmem:[%s1080_s7 + $0x44] ss:$8 sps:$4 sm:$0xff]  }
  0x2a   : > { %556 = vmatprep.subr.bf16.mxu0 %v918_v7  ;;  %843 = vmatprep.subr.bf16.mxu1 %v918_v7  ;;  %v929_v14 = vld [vmem:[%s1080_s7 + $0x40] ss:$8 sps:$4 sm:$0xff]   ;;  %v930_v15 = vld [vmem:[%s1080_s7 + $0x54] ss:$8 sps:$4 sm:$0xff]   ;;  %v932_v16 = vld [vmem:[%s1080_s7 + $0x50] ss:$8 sps:$4 sm:$0xff]  }
  0x2b   : > { %v933_v17 = vld [vmem:[%s1080_s7 + $0x64] ss:$8 sps:$4 sm:$0xff]   ;;  %v935_v19 = vld [vmem:[%s1080_s7 + $0x60] ss:$8 sps:$4 sm:$0xff]   ;;  %v968_v20 = vld [vmem:[%s1082_s8 + $0x14] ss:$8 sps:$4 sm:$0xff]  }
  0x2c   : > { %v965_v18 = vld [vmem:[%s1082_s8 + $0x4] ss:$8 sps:$4 sm:$0xff]   ;;  %v936_v21 = vld [vmem:[%s1080_s7 + $0x74] ss:$8 sps:$4 sm:$0xff]   ;;  %596 = vmatprep.mubr.bf16.mxu1 %v968_v20  ;;  %v938_v22 = vld [vmem:[%s1080_s7 + $0x70] ss:$8 sps:$4 sm:$0xff]  }
  0x2d   : > { %557 = vmatpush1.bf16.msra.mxu0 %v920_v8  ;;  %859 = vmatpush1.bf16.msra.mxu1 %v920_v8  ;;  %v939_v23 = vld [vmem:[%s1080_s7 + $0x84] ss:$8 sps:$4 sm:$0xff]   ;;  %v941_v24 = vld [vmem:[%s1080_s7 + $0x80] ss:$8 sps:$4 sm:$0xff]   ;;  %v942_v25 = vld [vmem:[%s1080_s7 + $0x94] ss:$8 sps:$4 sm:$0xff]  }
  0x2e   : > { %558 = vmatprep.subr.bf16.mxu0 %v921_v9  ;;  %844 = vmatprep.subr.bf16.mxu1 %v921_v9  ;;  %v944_v26 = vld [vmem:[%s1080_s7 + $0x90] ss:$8 sps:$4 sm:$0xff]   ;;  %v945_v27 = vld [vmem:[%s1080_s7 + $0xa4] ss:$8 sps:$4 sm:$0xff]   ;;  %v947_v28 = vld [vmem:[%s1080_s7 + $0xa0] ss:$8 sps:$4 sm:$0xff]  }
  0x2f   : > { %586 = vmatprep.mubr.bf16.mxu0 %v965_v18  ;;  %v948_v29 = vld [vmem:[%s1080_s7 + $0xb4] ss:$8 sps:$4 sm:$0xff]   ;;  %v950_v30 = vld [vmem:[%s1080_s7 + $0xb0] ss:$8 sps:$4 sm:$0xff]   ;;  %v951_v31 = vld [vmem:[%s1080_s7 + $0xc4] ss:$8 sps:$4 sm:$0xff]  }
  0x30   : > { %v953_v32 = vld [vmem:[%s1080_s7 + $0xc0] ss:$8 sps:$4 sm:$0xff]   ;;  %v954_v33 = vld [vmem:[%s1080_s7 + $0xd4] ss:$8 sps:$4 sm:$0xff]   ;;  %v956_v34 = vld [vmem:[%s1080_s7 + $0xd0] ss:$8 sps:$4 sm:$0xff]  }
  0x31   : > { %559 = vmatpush1.bf16.msra.mxu0 %v923_v10  ;;  %860 = vmatpush1.bf16.msra.mxu1 %v923_v10  ;;  %v957_v35 = vld [vmem:[%s1080_s7 + $0xe4] ss:$8 sps:$4 sm:$0xff]   ;;  %v959_v36 = vld [vmem:[%s1080_s7 + $0xe0] ss:$8 sps:$4 sm:$0xff]   ;;  %v960_v37 = vld [vmem:[%s1080_s7 + $0xf4] ss:$8 sps:$4 sm:$0xff]  }
  0x32   : > { %560 = vmatprep.subr.bf16.mxu0 %v924_v11  ;;  %845 = vmatprep.subr.bf16.mxu1 %v924_v11  ;;  %v962_v38 = vld [vmem:[%s1080_s7 + $0xf0] ss:$8 sps:$4 sm:$0xff]   ;;  %v963_v39 = vld [vmem:[%s1082_s8] ss:$8 sps:$4 sm:$0xff]   ;;  %p835_p11 = scmp.ne.s32.totalorder %s999_s14, 8 }
  0x33   : > { %v966_v40 = vld [vmem:[%s1082_s8 + $0x10] ss:$8 sps:$4 sm:$0xff]   ;;  %v330_v41 = vld [vmem:[#allocation2] sm:$0xff]  ;;  %v331_v43 = vld [vmem:[#allocation2 + $0x8] sm:$0xff]  ;;  %v637_v1 = vlaneseq (!%p835_p11) }
  0x34   : > { %v334_v42 = vld [vmem:[#allocation2 + $0x20] sm:$0xff]  ;;  %v335_v44 = vld [vmem:[#allocation2 + $0x28] sm:$0xff]  ;;  %v332_v47 = vld [vmem:[#allocation2 + $0x10] sm:$0xff] }
  0x35   : > { %561 = vmatpush1.bf16.msra.mxu0 %v926_v12  ;;  %861 = vmatpush1.bf16.msra.mxu1 %v926_v12  ;;  %v336_v48 = vld [vmem:[#allocation2 + $0x30] sm:$0xff]  ;;  %v333_v53 = vld [vmem:[#allocation2 + $0x18] sm:$0xff]  ;;  %v638_v2 = vshrl.u32 (!%p835_p11), %v637_v1, 7  ;;  %v635_v3 = vld [vmem:[%s1166_s2] sm:$0x3] (!%p835_p11) }
  0x36   : > { %562 = vmatprep.subr.bf16.mxu0 %v927_v13  ;;  %846 = vmatprep.subr.bf16.mxu1 %v927_v13  ;;  %v337_v54 = vld [vmem:[#allocation2 + $0x38] sm:$0xff] }
  0x37   : > { %v639_v5 = vsub.s32 (!%p835_p11), 0, %v638_v2  ;;  %v643_v7 = vsub.s32 (!%p835_p11), 1, %v638_v2 }
  0x39   : > { %563 = vmatpush1.bf16.msra.mxu0 %v929_v14  ;;  %862 = vmatpush1.bf16.msra.mxu1 %v929_v14  ;;  %v640_v11 = vrot.slane (!%p835_p11), %v635_v3, %v639_v5  ;;  %v644_v12 = vrot.slane (!%p835_p11), %v635_v3, %v643_v7 }
  0x3a   : > { %564 = vmatprep.subr.bf16.mxu0 %v930_v15  ;;  %847 = vmatprep.subr.bf16.mxu1 %v930_v15 }
  0x3d   : > { %565 = vmatpush1.bf16.msra.mxu0 %v932_v16  ;;  %863 = vmatpush1.bf16.msra.mxu1 %v932_v16 }
  0x3e   : > { %566 = vmatprep.subr.bf16.mxu0 %v933_v17  ;;  %848 = vmatprep.subr.bf16.mxu1 %v933_v17 }
  0x41   : > { %567 = vmatpush1.bf16.msra.mxu0 %v935_v19  ;;  %864 = vmatpush1.bf16.msra.mxu1 %v935_v19 }
  0x42   : > { %568 = vmatprep.subr.bf16.mxu0 %v936_v21  ;;  %849 = vmatprep.subr.bf16.mxu1 %v936_v21 }
  0x45   : > { %569 = vmatpush1.bf16.msra.mxu0 %v938_v22  ;;  %865 = vmatpush1.bf16.msra.mxu1 %v938_v22 }
  0x46   : > { %570 = vmatprep.subr.bf16.mxu0 %v939_v23  ;;  %850 = vmatprep.subr.bf16.mxu1 %v939_v23 }
  0x49   : > { %571 = vmatpush1.bf16.msra.mxu0 %v941_v24  ;;  %866 = vmatpush1.bf16.msra.mxu1 %v941_v24 }
  0x4a   : > { %572 = vmatprep.subr.bf16.mxu0 %v942_v25  ;;  %851 = vmatprep.subr.bf16.mxu1 %v942_v25 }
  0x4d   : > { %573 = vmatpush1.bf16.msra.mxu0 %v944_v26  ;;  %867 = vmatpush1.bf16.msra.mxu1 %v944_v26 }
  0x4e   : > { %574 = vmatprep.subr.bf16.mxu0 %v945_v27  ;;  %852 = vmatprep.subr.bf16.mxu1 %v945_v27 }
  0x51   : > { %575 = vmatpush1.bf16.msra.mxu0 %v947_v28  ;;  %868 = vmatpush1.bf16.msra.mxu1 %v947_v28 }
  0x52   : > { %576 = vmatprep.subr.bf16.mxu0 %v948_v29  ;;  %853 = vmatprep.subr.bf16.mxu1 %v948_v29 }
  0x55   : > { %577 = vmatpush1.bf16.msra.mxu0 %v950_v30  ;;  %869 = vmatpush1.bf16.msra.mxu1 %v950_v30 }
  0x56   : > { %578 = vmatprep.subr.bf16.mxu0 %v951_v31  ;;  %854 = vmatprep.subr.bf16.mxu1 %v951_v31 }
  0x59   : > { %579 = vmatpush1.bf16.msra.mxu0 %v953_v32  ;;  %870 = vmatpush1.bf16.msra.mxu1 %v953_v32 }
  0x5a   : > { %580 = vmatprep.subr.bf16.mxu0 %v954_v33  ;;  %855 = vmatprep.subr.bf16.mxu1 %v954_v33 }
  0x5d   : > { %581 = vmatpush1.bf16.msra.mxu0 %v956_v34  ;;  %871 = vmatpush1.bf16.msra.mxu1 %v956_v34 }
  0x5e   : > { %582 = vmatprep.subr.bf16.mxu0 %v957_v35  ;;  %856 = vmatprep.subr.bf16.mxu1 %v957_v35 }
  0x61   : > { %583 = vmatpush1.bf16.msra.mxu0 %v959_v36  ;;  %872 = vmatpush1.bf16.msra.mxu1 %v959_v36 }
  0x62   : > { %584 = vmatprep.subr.bf16.mxu0 %v960_v37  ;;  %857 = vmatprep.subr.bf16.mxu1 %v960_v37 }
  0x65   : > { %585 = vmatpush1.bf16.msra.mxu0 %v962_v38  ;;  %873 = vmatpush1.bf16.msra.mxu1 %v962_v38 }
  0x68   : > { %587 = vmatmul.mubr.bf16.vlgmr.msra.gmra.mrb[0].mxu0 %v963_v39  ;;  %597 = vmatmul.mubr.bf16.vlgmr.msra.gmra.mrb[0].mxu1 %v966_v40 }
 0x13b   : > { %v588_v45 = vpop.f32.mrb[0].mxu0  ;;  %v598_v46 = vpop.f32.mrb[0].mxu1  ;;  %626 = sbr.rel (%p835_p11) target bundleno = 333 (0x14d), region = 78 }
 0x13c   : > { %v607_v49 = vadd.f32 %v588_v45, %v330_v41  ;;  %v611_v50 = vadd.f32 %v598_v46, %v334_v42  ;;  %v590_v51 = vpop.f32.mrb[1].mxu0  ;;  %v600_v52 = vpop.f32.mrb[1].mxu1 }
 0x13d   : > { %v608_v55 = vadd.f32 %v590_v51, %v331_v43  ;;  %v612_v56 = vadd.f32 %v600_v52, %v335_v44  ;;  %v592_v57 = vpop.f32.mrb[2].mxu0  ;;  %v602_v58 = vpop.f32.mrb[2].mxu1 }
 0x13e   : > { %615 = vst [vmem:[#allocation2] sm:$0xff] %v607_v49  ;;  %619 = vst [vmem:[#allocation2 + $0x20] sm:$0xff] %v611_v50  ;;  %v609_v59 = vadd.f32 %v592_v57, %v332_v47  ;;  %v613_v60 = vadd.f32 %v602_v58, %v336_v48  ;;  %v594_v61 = vpop.f32.mrb[3].mxu0  ;;  %v604_v62 = vpop.f32.mrb[3].mxu1 }
 0x13f   : > { %616 = vst [vmem:[#allocation2 + $0x8] sm:$0xff] %v608_v55  ;;  %620 = vst [vmem:[#allocation2 + $0x28] sm:$0xff] %v612_v56  ;;  %v610_v63 = vadd.f32 %v594_v61, %v333_v53  ;;  %v614_v0 = vadd.f32 %v604_v62, %v337_v54 }
 0x140   : > { %617 = vst [vmem:[#allocation2 + $0x10] sm:$0xff] %v609_v59  ;;  %621 = vst [vmem:[#allocation2 + $0x30] sm:$0xff] %v613_v60 }
 0x141   : > { %618 = vst [vmem:[#allocation2 + $0x18] sm:$0xff] %v610_v63  ;;  %622 = vst [vmem:[#allocation2 + $0x38] sm:$0xff] %v614_v0 }
 0x145   : > { %v627_v4 = vld [vmem:[#allocation2] sm:$0xff] }
 0x146   : > { %v628_v6 = vld [vmem:[#allocation2 + $0x8] sm:$0xff]  ;;  %v631_v10 = vld [vmem:[#allocation2 + $0x20] sm:$0xff]  ;;  %v647_v16 = vadd.f32 %v640_v11, %v627_v4 }
 0x147   : > { %v629_v8 = vld [vmem:[#allocation2 + $0x10] sm:$0xff]  ;;  %v632_v13 = vld [vmem:[#allocation2 + $0x28] sm:$0xff]  ;;  %v648_v17 = vadd.f32 %v644_v12, %v628_v6  ;;  %v651_v20 = vadd.f32 %v640_v11, %v631_v10 }
 0x148   : > { %v630_v9 = vld [vmem:[#allocation2 + $0x18] sm:$0xff]  ;;  %v633_v14 = vld [vmem:[#allocation2 + $0x30] sm:$0xff]  ;;  %v649_v18 = vadd.f32 %v640_v11, %v629_v8  ;;  %v652_v21 = vadd.f32 %v644_v12, %v632_v13  ;;  %655 = vst [vmem:[%s1167_s3] sm:$0xff] %v647_v16 }
 0x149   : > { %v634_v15 = vld [vmem:[#allocation2 + $0x38] sm:$0xff]  ;;  %v650_v19 = vadd.f32 %v644_v12, %v630_v9  ;;  %v653_v22 = vadd.f32 %v640_v11, %v633_v14  ;;  %656 = vst [vmem:[%s1167_s3 + $0x8] sm:$0xff] %v648_v17  ;;  %659 = vst [vmem:[%s1167_s3 + $0x20] sm:$0xff] %v651_v20 }
 0x14a   : > { %v654_v23 = vadd.f32 %v644_v12, %v634_v15  ;;  %657 = vst [vmem:[%s1167_s3 + $0x10] sm:$0xff] %v649_v18  ;;  %660 = vst [vmem:[%s1167_s3 + $0x28] sm:$0xff] %v652_v21 }
 0x14b   : > { %658 = vst [vmem:[%s1167_s3 + $0x18] sm:$0xff] %v650_v19  ;;  %661 = vst [vmem:[%s1167_s3 + $0x30] sm:$0xff] %v653_v22 }
 0x14c   : > { %662 = vst [vmem:[%s1167_s3 + $0x38] sm:$0xff] %v654_v23 }
 0x14d PF: > { %s13_s16 = sadd.s32 1, %s1007_s16   ;;  %s1168_s12 = smov %s995_s13 }
 0x14e   : > { %p10_p12 = scmp.ge.s32.totalorder %s13_s16, 11   ;;  %s1169_s13 = smov %s1065_s20 }
 0x14f   : > { %s1170_s14 = smov %s1003_s15  ;;  %s1171_s15 = smov %s1173_s17 }
 0x150   :  { %12 = sbr.rel (!%p10_p12) target bundleno = 3 (0x3), region = 119 }

// kernel: generator_forward.140
= control target key start
LH: loop header
LB: loop body
LE: loop exit
PB: predicated region body
PF: predicated region fallthrough
CT: control target
= control target key end

     0   :  { %s759_s1 = inlined_call_operand.vmem [shape: bf16[512,128], index: 1, kind: input, shape index: {}]   ;;  %s760_s0 = inlined_call_operand.vmem [shape: bf16[32,512], index: 0, kind: input, shape index: {}]   ;;  %s761_s2 = inlined_call_operand.vmem [shape: f32[1,128], index: 2, kind: input, shape index: {}]   ;;  %s762_s3 = inlined_call_operand.vmem [shape: f32[32,128], index: 3, kind: output, shape index: {}]  }
   0x1   :  { %v560_v0 = vld [vmem:[%s759_s1 + $0x40] sm:$0xff]   ;;  %v564_v4 = vld [vmem:[%s759_s1 + $0x48] sm:$0xff]   ;;  %v568_v8 = vld [vmem:[%s759_s1 + $0x50] sm:$0xff]  }
   0x2   :  { %v561_v1 = vld [vmem:[%s759_s1 + $0xc0] sm:$0xff]   ;;  %504 = vmatprep.subr.bf16.mxu0 %v560_v0  ;;  %v565_v5 = vld [vmem:[%s759_s1 + $0xc8] sm:$0xff]   ;;  %v569_v9 = vld [vmem:[%s759_s1 + $0xd0] sm:$0xff]  }
   0x3   :  { %v562_v2 = vld [vmem:[%s759_s1] sm:$0xff]   ;;  %532 = vmatprep.subr.bf16.mxu1 %v561_v1  ;;  %v566_v6 = vld [vmem:[%s759_s1 + $0x8] sm:$0xff]   ;;  %v570_v10 = vld [vmem:[%s759_s1 + $0x10] sm:$0xff]  }
   0x4   :  { %v563_v3 = vld [vmem:[%s759_s1 + $0x80] sm:$0xff]   ;;  %505 = vmatpush3.bf16.msra.mxu0 %v562_v2  ;;  %v567_v7 = vld [vmem:[%s759_s1 + $0x88] sm:$0xff]   ;;  %v571_v11 = vld [vmem:[%s759_s1 + $0x90] sm:$0xff]  }
   0x5   :  { %533 = vmatpush3.bf16.msra.mxu1 %v563_v3  ;;  %506 = vmatprep.subr.bf16.mxu0 %v564_v4  ;;  %v572_v12 = vld [vmem:[%s759_s1 + $0x58] sm:$0xff]   ;;  %v576_v16 = vld [vmem:[%s759_s1 + $0x60] sm:$0xff]   ;;  %v580_v20 = vld [vmem:[%s759_s1 + $0x68] sm:$0xff]  }
   0x6   :  { %534 = vmatprep.subr.bf16.mxu1 %v565_v5  ;;  %v573_v13 = vld [vmem:[%s759_s1 + $0xd8] sm:$0xff]   ;;  %v577_v17 = vld [vmem:[%s759_s1 + $0xe0] sm:$0xff]   ;;  %v581_v21 = vld [vmem:[%s759_s1 + $0xe8] sm:$0xff]  }
   0x7   :  { %v574_v14 = vld [vmem:[%s759_s1 + $0x18] sm:$0xff]   ;;  %v578_v18 = vld [vmem:[%s759_s1 + $0x20] sm:$0xff]   ;;  %v582_v22 = vld [vmem:[%s759_s1 + $0x28] sm:$0xff]  }
   0x8   :  { %507 = vmatpush3.bf16.msra.mxu0 %v566_v6  ;;  %v575_v15 = vld [vmem:[%s759_s1 + $0x98] sm:$0xff]   ;;  %v579_v19 = vld [vmem:[%s759_s1 + $0xa0] sm:$0xff]   ;;  %v583_v23 = vld [vmem:[%s759_s1 + $0xa8] sm:$0xff]  }
   0x9   :  { %535 = vmatpush3.bf16.msra.mxu1 %v567_v7  ;;  %508 = vmatprep.subr.bf16.mxu0 %v568_v8  ;;  %v584_v24 = vld [vmem:[%s759_s1 + $0x70] sm:$0xff]   ;;  %v588_v28 = vld [vmem:[%s759_s1 + $0x78] sm:$0xff]   ;;  %v503_v49 = vld [vmem:[%s761_s2] ss:$0 sm:$0xff] }
   0xa   :  { %536 = vmatprep.subr.bf16.mxu1 %v569_v9  ;;  %v585_v25 = vld [vmem:[%s759_s1 + $0xf0] sm:$0xff]   ;;  %v589_v29 = vld [vmem:[%s759_s1 + $0xf8] sm:$0xff]  }
   0xb   :  { %v586_v26 = vld [vmem:[%s759_s1 + $0x30] sm:$0xff]   ;;  %v590_v30 = vld [vmem:[%s759_s1 + $0x38] sm:$0xff]  }
   0xc   :  { %509 = vmatpush3.bf16.msra.mxu0 %v570_v10  ;;  %v587_v27 = vld [vmem:[%s759_s1 + $0xb0] sm:$0xff]   ;;  %v591_v31 = vld [vmem:[%s759_s1 + $0xb8] sm:$0xff]  }
   0xd   :  { %537 = vmatpush3.bf16.msra.mxu1 %v571_v11  ;;  %510 = vmatprep.subr.bf16.mxu0 %v572_v12  ;;  %v592_v32 = vld [vmem:[%s760_s0] ss:$16 sps:$4 sm:$0xff]   ;;  %v594_v33 = vld [vmem:[%s760_s0 + $0x4] ss:$16 sps:$4 sm:$0xff]   ;;  %v595_v34 = vld [vmem:[%s760_s0 + $0x8] ss:$16 sps:$4 sm:$0xff]  }
   0xe   :  { %538 = vmatprep.subr.bf16.mxu1 %v573_v13  ;;  %v597_v35 = vld [vmem:[%s760_s0 + $0xc] ss:$16 sps:$4 sm:$0xff]   ;;  %363 = vmatprep.mubr.bf16.mxu0 %v594_v33  ;;  %v598_v36 = vld [vmem:[%s760_s0 + $0x24] ss:$16 sps:$4 sm:$0xff]   ;;  %v602_v38 = vld [vmem:[%s760_s0 + $0x20] ss:$16 sps:$4 sm:$0xff]  }
   0xf   :  { %412 = vmatprep.mubr.bf16.mxu1 %v597_v35  ;;  %v600_v37 = vld [vmem:[%s760_s0 + $0x2c] ss:$16 sps:$4 sm:$0xff]   ;;  %v603_v39 = vld [vmem:[%s760_s0 + $0x28] ss:$16 sps:$4 sm:$0xff]  }
  0x10   :  { %511 = vmatpush3.bf16.msra.mxu0 %v574_v14 }
  0x11   :  { %539 = vmatpush3.bf16.msra.mxu1 %v575_v15  ;;  %512 = vmatprep.subr.bf16.mxu0 %v576_v16 }
  0x12   :  { %540 = vmatprep.subr.bf16.mxu1 %v577_v17 }
  0x14   :  { %513 = vmatpush3.bf16.msra.mxu0 %v578_v18 }
  0x15   :  { %541 = vmatpush3.bf16.msra.mxu1 %v579_v19  ;;  %514 = vmatprep.subr.bf16.mxu0 %v580_v20 }
  0x16   :  { %542 = vmatprep.subr.bf16.mxu1 %v581_v21 }
  0x18   :  { %515 = vmatpush3.bf16.msra.mxu0 %v582_v22 }
  0x19   :  { %543 = vmatpush3.bf16.msra.mxu1 %v583_v23  ;;  %516 = vmatprep.subr.bf16.mxu0 %v584_v24 }
  0x1a   :  { %544 = vmatprep.subr.bf16.mxu1 %v585_v25 }
  0x1c   :  { %517 = vmatpush3.bf16.msra.mxu0 %v586_v26 }
  0x1d   :  { %545 = vmatpush3.bf16.msra.mxu1 %v587_v27  ;;  %518 = vmatprep.subr.bf16.mxu0 %v588_v28 }
  0x1e   :  { %546 = vmatprep.subr.bf16.mxu1 %v589_v29 }
  0x20   :  { %519 = vmatpush3.bf16.msra.mxu0 %v590_v30 }
  0x21   :  { %547 = vmatpush3.bf16.msra.mxu1 %v591_v31 }
  0x23   :  { %364 = vmatmul.mubr.bf16.vlgmr.msra.gmra.mrb[0].mxu0 %v592_v32 }
  0x24   :  { %413 = vmatmul.mubr.bf16.vlgmr.msra.gmra.mrb[0].mxu1 %v595_v34  ;;  %371 = vmatprep.mubr.bf16.mxu0 %v598_v36 }
  0x25   :  { %420 = vmatprep.mubr.bf16.mxu1 %v600_v37 }
  0x2b   :  { %372 = vmatmul.mubr.bf16.gmra.mrb[4].mxu0 %v602_v38 }
  0x2c   :  { %421 = vmatmul.mubr.bf16.gmra.mrb[4].mxu1 %v603_v39 }
  0xf6   :  { %v520_v40 = vpop.f32.mrb[0].mxu0 }
  0xf7   :  { %v548_v41 = vpop.f32.mrb[0].mxu1  ;;  %v521_v42 = vpop.f32.mrb[1].mxu0 }
  0xf8   :  { %v522_v43 = vadd.f32 %v521_v42, %v520_v40  ;;  %v549_v44 = vpop.f32.mrb[1].mxu1  ;;  %v523_v45 = vpop.f32.mrb[2].mxu0 }
  0xf9   :  { %v550_v46 = vadd.f32 %v549_v44, %v548_v41  ;;  %v551_v47 = vpop.f32.mrb[2].mxu1  ;;  %v524_v48 = vpop.f32.mrb[3].mxu0 }
  0xfa   :  { %v525_v50 = vadd.f32 %v524_v48, %v523_v45  ;;  %v552_v51 = vpop.f32.mrb[3].mxu1 }
  0xfb   :  { %v415_v52 = vadd.f32 %v550_v46, %v522_v43  ;;  %v553_v53 = vadd.f32 %v552_v51, %v551_v47 }
  0xfd   :  { %v451_v54 = vadd.f32 %v503_v49, %v415_v52  ;;  %v418_v55 = vadd.f32 %v553_v53, %v525_v50 }
  0xfe   :  { %v526_v56 = vpop.f32.mrb[4].mxu0 }
  0xff   :  { %455 = vst [vmem:[%s762_s3] sm:$0xff] %v451_v54  ;;  %v452_v57 = vadd.f32 %v503_v49, %v418_v55  ;;  %v554_v58 = vpop.f32.mrb[4].mxu1  ;;  %v527_v59 = vpop.f32.mrb[5].mxu0 }
 0x100   :  { %v528_v60 = vadd.f32 %v527_v59, %v526_v56  ;;  %v555_v61 = vpop.f32.mrb[5].mxu1  ;;  %v529_v62 = vpop.f32.mrb[6].mxu0 }
 0x101   :  { %456 = vst [vmem:[%s762_s3 + $0x8] sm:$0xff] %v452_v57  ;;  %v556_v63 = vadd.f32 %v555_v61, %v554_v58  ;;  %v557_v0 = vpop.f32.mrb[6].mxu1  ;;  %v530_v1 = vpop.f32.mrb[7].mxu0 }
 0x102   :  { %v531_v2 = vadd.f32 %v530_v1, %v529_v62  ;;  %v558_v3 = vpop.f32.mrb[7].mxu1 }
 0x103   :  { %v423_v4 = vadd.f32 %v556_v63, %v528_v60  ;;  %v559_v5 = vadd.f32 %v558_v3, %v557_v0 }
 0x105   :  { %v453_v6 = vadd.f32 %v503_v49, %v423_v4  ;;  %v426_v7 = vadd.f32 %v559_v5, %v531_v2 }
 0x107   :  { %457 = vst [vmem:[%s762_s3 + $0x10] sm:$0xff] %v453_v6  ;;  %v454_v8 = vadd.f32 %v503_v49, %v426_v7 }
 0x109   :  { %458 = vst [vmem:[%s762_s3 + $0x18] sm:$0xff] %v454_v8 }

// kernel: generator_forward.139
= control target key start
LH: loop header
LB: loop body
LE: loop exit
PB: predicated region body
PF: predicated region fallthrough
CT: control target
= control target key end

     0   :  { %s444_s1 = inlined_call_operand.vmem [shape: bf16[256,128], index: 1, kind: input, shape index: {}]   ;;  %s445_s0 = inlined_call_operand.vmem [shape: bf16[32,256], index: 0, kind: input, shape index: {}]   ;;  %s446_s2 = inlined_call_operand.vmem [shape: f32[1,128], index: 2, kind: input, shape index: {}]   ;;  %s447_s3 = inlined_call_operand.vmem [shape: f32[32,128], index: 3, kind: output, shape index: {}]  }
   0x1   :  { %v327_v0 = vld [vmem:[%s444_s1 + $0x40] sm:$0xff]   ;;  %v329_v2 = vld [vmem:[%s444_s1 + $0x48] sm:$0xff]   ;;  %v331_v4 = vld [vmem:[%s444_s1 + $0x50] sm:$0xff]  }
   0x2   :  { %v328_v1 = vld [vmem:[%s444_s1] sm:$0xff]   ;;  %283 = vmatprep.subr.bf16.mxu0 %v327_v0  ;;  %311 = vmatprep.subr.bf16.mxu1 %v327_v0  ;;  %v330_v3 = vld [vmem:[%s444_s1 + $0x8] sm:$0xff]   ;;  %v332_v5 = vld [vmem:[%s444_s1 + $0x10] sm:$0xff]  }
   0x3   :  { %284 = vmatpush3.bf16.msra.mxu0 %v328_v1  ;;  %319 = vmatpush3.bf16.msra.mxu1 %v328_v1  ;;  %v333_v6 = vld [vmem:[%s444_s1 + $0x58] sm:$0xff]   ;;  %v335_v8 = vld [vmem:[%s444_s1 + $0x60] sm:$0xff]   ;;  %v337_v10 = vld [vmem:[%s444_s1 + $0x68] sm:$0xff]  }
   0x4   :  { %285 = vmatprep.subr.bf16.mxu0 %v329_v2  ;;  %312 = vmatprep.subr.bf16.mxu1 %v329_v2  ;;  %v334_v7 = vld [vmem:[%s444_s1 + $0x18] sm:$0xff]   ;;  %v336_v9 = vld [vmem:[%s444_s1 + $0x20] sm:$0xff]   ;;  %v338_v13 = vld [vmem:[%s444_s1 + $0x28] sm:$0xff]  }
   0x5   :  { %v345_v11 = vld [vmem:[%s445_s0 + $0x4] ss:$8 sps:$4 sm:$0xff]   ;;  %v348_v12 = vld [vmem:[%s445_s0 + $0x14] ss:$8 sps:$4 sm:$0xff]   ;;  %v343_v18 = vld [vmem:[%s445_s0] ss:$8 sps:$4 sm:$0xff]  }
   0x6   :  { %v339_v14 = vld [vmem:[%s444_s1 + $0x70] sm:$0xff]   ;;  %211 = vmatprep.mubr.bf16.mxu0 %v345_v11  ;;  %219 = vmatprep.mubr.bf16.mxu1 %v348_v12  ;;  %v341_v16 = vld [vmem:[%s444_s1 + $0x78] sm:$0xff]   ;;  %v282_v23 = vld [vmem:[%s446_s2] ss:$0 sm:$0xff] }
   0x7   :  { %286 = vmatpush3.bf16.msra.mxu0 %v330_v3  ;;  %320 = vmatpush3.bf16.msra.mxu1 %v330_v3  ;;  %v340_v15 = vld [vmem:[%s444_s1 + $0x30] sm:$0xff]   ;;  %v342_v17 = vld [vmem:[%s444_s1 + $0x38] sm:$0xff]  }
   0x8   :  { %287 = vmatprep.subr.bf16.mxu0 %v331_v4  ;;  %313 = vmatprep.subr.bf16.mxu1 %v331_v4  ;;  %v346_v19 = vld [vmem:[%s445_s0 + $0x10] ss:$8 sps:$4 sm:$0xff]  }
   0xb   :  { %288 = vmatpush3.bf16.msra.mxu0 %v332_v5  ;;  %321 = vmatpush3.bf16.msra.mxu1 %v332_v5 }
   0xc   :  { %289 = vmatprep.subr.bf16.mxu0 %v333_v6  ;;  %314 = vmatprep.subr.bf16.mxu1 %v333_v6 }
   0xf   :  { %290 = vmatpush3.bf16.msra.mxu0 %v334_v7  ;;  %322 = vmatpush3.bf16.msra.mxu1 %v334_v7 }
  0x10   :  { %291 = vmatprep.subr.bf16.mxu0 %v335_v8  ;;  %315 = vmatprep.subr.bf16.mxu1 %v335_v8 }
  0x13   :  { %292 = vmatpush3.bf16.msra.mxu0 %v336_v9  ;;  %323 = vmatpush3.bf16.msra.mxu1 %v336_v9 }
  0x14   :  { %293 = vmatprep.subr.bf16.mxu0 %v337_v10  ;;  %316 = vmatprep.subr.bf16.mxu1 %v337_v10 }
  0x17   :  { %294 = vmatpush3.bf16.msra.mxu0 %v338_v13  ;;  %324 = vmatpush3.bf16.msra.mxu1 %v338_v13 }
  0x18   :  { %295 = vmatprep.subr.bf16.mxu0 %v339_v14  ;;  %317 = vmatprep.subr.bf16.mxu1 %v339_v14 }
  0x1b   :  { %296 = vmatpush3.bf16.msra.mxu0 %v340_v15  ;;  %325 = vmatpush3.bf16.msra.mxu1 %v340_v15 }
  0x1c   :  { %297 = vmatprep.subr.bf16.mxu0 %v341_v16  ;;  %318 = vmatprep.subr.bf16.mxu1 %v341_v16 }
  0x1f   :  { %298 = vmatpush3.bf16.msra.mxu0 %v342_v17  ;;  %326 = vmatpush3.bf16.msra.mxu1 %v342_v17 }
  0x22   :  { %212 = vmatmul.mubr.bf16.vlgmr.msra.gmra.mrb[0].mxu0 %v343_v18  ;;  %220 = vmatmul.mubr.bf16.vlgmr.msra.gmra.mrb[0].mxu1 %v346_v19 }
  0xf5   :  { %v299_v20 = vpop.f32.mrb[0].mxu0  ;;  %v305_v21 = vpop.f32.mrb[0].mxu1 }
  0xf6   :  { %v300_v22 = vpop.f32.mrb[1].mxu0  ;;  %v306_v24 = vpop.f32.mrb[1].mxu1 }
  0xf7   :  { %v301_v25 = vadd.f32 %v300_v22, %v299_v20  ;;  %v307_v26 = vadd.f32 %v306_v24, %v305_v21  ;;  %v302_v27 = vpop.f32.mrb[2].mxu0  ;;  %v308_v28 = vpop.f32.mrb[2].mxu1 }
  0xf8   :  { %v303_v29 = vpop.f32.mrb[3].mxu0  ;;  %v309_v30 = vpop.f32.mrb[3].mxu1 }
  0xf9   :  { %v250_v31 = vadd.f32 %v301_v25, %v282_v23  ;;  %v252_v32 = vadd.f32 %v307_v26, %v282_v23  ;;  %v304_v33 = vadd.f32 %v303_v29, %v302_v27  ;;  %v310_v34 = vadd.f32 %v309_v30, %v308_v28 }
  0xfb   :  { %254 = vst [vmem:[%s447_s3] sm:$0xff] %v250_v31  ;;  %256 = vst [vmem:[%s447_s3 + $0x10] sm:$0xff] %v252_v32  ;;  %v251_v35 = vadd.f32 %v304_v33, %v282_v23  ;;  %v253_v36 = vadd.f32 %v310_v34, %v282_v23 }
  0xfd   :  { %255 = vst [vmem:[%s447_s3 + $0x8] sm:$0xff] %v251_v35  ;;  %257 = vst [vmem:[%s447_s3 + $0x18] sm:$0xff] %v253_v36 }

// kernel: generator_forward.142
= control target key start
LH: loop header
LB: loop body
LE: loop exit
PB: predicated region body
PF: predicated region fallthrough
CT: control target
= control target key end

     0   :  { %s1105_s12 = smov 0   ;;  %s1107_s13 = smov 0   ;;  %s1231_s0 = inlined_call_operand.vmem [shape: bf16[32,1024], index: 0, kind: input, shape index: {}]   ;;  %s1232_s1 = inlined_call_operand.vmem [shape: bf16[1024,128], index: 1, kind: input, shape index: {}]   ;;  %s1233_s2 = inlined_call_operand.vmem [shape: f32[1,128], index: 2, kind: input, shape index: {}]   ;;  %s1234_s3 = inlined_call_operand.vmem [shape: f32[32,128], index: 3, kind: output, shape index: {}]  }
   0x1   :  { %s1109_s14 = smov 0   ;;  %s1111_s15 = smov 0  }
   0x2   :  { %s1113_s16 = smov 0  }
   0x3 LB: > { %s25_s17 = sadd.s32 1, %s1078_s15  ;;  %p48_p1 = scmp.ne.s32.totalorder %s1070_s13, %s1066_s12  ;;  %s1082_s16 = sphi %s1113_s16, %s13_s16   ;;  %s1078_s15 = sphi %s1111_s15, %s1238_s15   ;;  %s1074_s14 = sphi %s1109_s14, %s1237_s14   ;;  %s1070_s13 = sphi %s1107_s13, %s1236_s13   ;;  %s1066_s12 = sphi %s1105_s12, %s1235_s12  }
   0x4   : > { %p26_p0 = scmp.ge.s32.totalorder %s25_s17, 2  ;;  %p49_p2 = scmp.eq.s32.totalorder %s1082_s16, 0 }
   0x5   : > { %s41_s19 = sadd.s32 1, %s1070_s13  ;;  %p847_p5 = scmp.ge.s32.totalorder %s1082_s16, 2 }
   0x6   : > { %s1240_s17 = smov (%p26_p0, %s25_s17), 0  ;;  %p50_p3 = por %p49_p2, %p48_p1 }
   0x7   : > { %s37_s18 = ssub.s32 %s1078_s15, %s1240_s17  ;;  %162 = sbr.rel (%p847_p5) target bundleno = 22 (0x16), region = 20 }
   0x8   : > { %p39_p4 = scmp.eq.s32.totalorder %s37_s18, 0 }
   0xa   : > { %s1140_s20 = scalar_select %p39_p4, %s1070_s13, %s41_s19  }
   0xe   : > { %165 = sbr.rel (!%p50_p3) target bundleno = 22 (0x16), region = 24  ;;  %s167_s21 = sand.u32 (%p50_p3), 1, %s1070_s13  }
   0xf   : > { %s902_s22 = sshll.u32 (%p50_p3), %s1078_s15, 4  ;;  %s848_s23 = sshll.u32 (%p50_p3), %s167_s21, 6 }
  0x10   : > { %s175_s26 = scalar_lea.vmem (%p50_p3), %s1231_s0, %s902_s22  ;;  %s169_s27 = scalar_lea.vmem (%p50_p3), [#allocation3], %s848_s23 }
  0x11   : > { %v188_v0 = vld [vmem:[%s175_s26] sm:$0xff] (%p50_p3)  ;;  %v190_v1 = vld [vmem:[%s175_s26 + $0x8] sm:$0xff] (%p50_p3) }
  0x12   : > { %v192_v2 = vld [vmem:[%s175_s26 + $0x20] sm:$0xff] (%p50_p3)  ;;  %189 = vst [vmem:[%s169_s27] sm:$0xff] (%p50_p3), %v188_v0  ;;  %191 = vst [vmem:[%s169_s27 + $0x8] sm:$0xff] (%p50_p3), %v190_v1  ;;  %v194_v3 = vld [vmem:[%s175_s26 + $0x28] sm:$0xff] (%p50_p3) }
  0x13   : > { %193 = vst [vmem:[%s169_s27 + $0x10] sm:$0xff] (%p50_p3), %v192_v2  ;;  %v196_v4 = vld [vmem:[%s175_s26 + $0x40] sm:$0xff] (%p50_p3)  ;;  %v198_v5 = vld [vmem:[%s175_s26 + $0x48] sm:$0xff] (%p50_p3)  ;;  %195 = vst [vmem:[%s169_s27 + $0x18] sm:$0xff] (%p50_p3), %v194_v3 }
  0x14   : > { %197 = vst [vmem:[%s169_s27 + $0x20] sm:$0xff] (%p50_p3), %v196_v4  ;;  %199 = vst [vmem:[%s169_s27 + $0x28] sm:$0xff] (%p50_p3), %v198_v5  ;;  %v200_v6 = vld [vmem:[%s175_s26 + $0x60] sm:$0xff] (%p50_p3)  ;;  %v202_v7 = vld [vmem:[%s175_s26 + $0x68] sm:$0xff] (%p50_p3) }
  0x15   : > { %201 = vst [vmem:[%s169_s27 + $0x30] sm:$0xff] %v200_v6  ;;  %203 = vst [vmem:[%s169_s27 + $0x38] sm:$0xff] %v202_v7 }
  0x16 PF: > { %p851_p6 = scmp.ge.s32.totalorder %s1082_s16, 1  ;;  %p220_p7 = scmp.lt.s32.totalorder %s1082_s16, 3 }
  0x18   : > { %p221_p8 = pnand %p851_p6, %p220_p7 }
  0x19   : > { %s227_s28 = sand.u32 (!%p221_p8), 1, %s1066_s12   ;;  %s853_s29 = sshll.u32 (!%p221_p8), %s1074_s14, 6 }
  0x1a   : > { %224 = sbr.rel (%p221_p8) target bundleno = 315 (0x13b), region = 51  ;;  %s852_s30 = sshll.u32 (!%p221_p8), %s227_s28, 6 }
  0x1b   : > { %p267_p9 = scmp.lt.s32.totalorder (!%p221_p8), %s853_s29, 127  ;;  %s1157_s8 = scalar_lea.vmem (!%p221_p8), [#allocation3], %s852_s30 }
  0x1c   : > { %p855_p10 = scmp.ne.s32.totalorder (!%p221_p8), %s1074_s14, 0 }
  0x21   : > { %s1242_s29 = smov (!%p267_p9, %s853_s29), 127  ;;  %291 = sbr.rel (%p855_p10) target bundleno = 40 (0x28), region = 59 }
  0x22   : > { %s854_s4 = sshll.u32 %s1242_s29, 2  ;;  %v1084_v8 = vmov (!%p855_p10), 0.0  }
  0x23   : > { %s1155_s7 = scalar_lea.vmem %s1232_s1, %s854_s4  ;;  %292 = vst [vmem:[#allocation2] sm:$0xff] (!%p855_p10), %v1084_v8  ;;  %293 = vst [vmem:[#allocation2 + $0x8] sm:$0xff] (!%p855_p10), %v1084_v8 }
  0x24   : > { %294 = vst [vmem:[#allocation2 + $0x10] sm:$0xff] (!%p855_p10), %v1084_v8  ;;  %295 = vst [vmem:[#allocation2 + $0x18] sm:$0xff] (!%p855_p10), %v1084_v8 }
  0x28 PF: > { %v1000_v9 = vld [vmem:[%s1155_s7 + $0x40] sm:$0xff]   ;;  %v1004_v13 = vld [vmem:[%s1155_s7 + $0x48] sm:$0xff]   ;;  %v1008_v17 = vld [vmem:[%s1155_s7 + $0x50] sm:$0xff]   ;;  %p896_p11 = scmp.ne.s32.totalorder %s1074_s14, 1 }
  0x29   : > { %v1001_v10 = vld [vmem:[%s1155_s7 + $0xc0] sm:$0xff]   ;;  %903 = vmatprep.subr.bf16.mxu0 %v1000_v9  ;;  %v1005_v14 = vld [vmem:[%s1155_s7 + $0xc8] sm:$0xff]   ;;  %v1009_v18 = vld [vmem:[%s1155_s7 + $0xd0] sm:$0xff]  }
  0x2a   : > { %v1002_v11 = vld [vmem:[%s1155_s7] sm:$0xff]   ;;  %931 = vmatprep.subr.bf16.mxu1 %v1001_v10  ;;  %v1006_v15 = vld [vmem:[%s1155_s7 + $0x8] sm:$0xff]   ;;  %v1010_v19 = vld [vmem:[%s1155_s7 + $0x10] sm:$0xff]  }
  0x2b   : > { %v1003_v12 = vld [vmem:[%s1155_s7 + $0x80] sm:$0xff]   ;;  %904 = vmatpush3.bf16.msra.mxu0 %v1002_v11  ;;  %v1007_v16 = vld [vmem:[%s1155_s7 + $0x88] sm:$0xff]   ;;  %v1011_v20 = vld [vmem:[%s1155_s7 + $0x90] sm:$0xff]  }
  0x2c   : > { %932 = vmatpush3.bf16.msra.mxu1 %v1003_v12  ;;  %905 = vmatprep.subr.bf16.mxu0 %v1004_v13  ;;  %v1012_v21 = vld [vmem:[%s1155_s7 + $0x58] sm:$0xff]   ;;  %v1016_v25 = vld [vmem:[%s1155_s7 + $0x60] sm:$0xff]   ;;  %v1020_v29 = vld [vmem:[%s1155_s7 + $0x68] sm:$0xff]  }
  0x2d   : > { %933 = vmatprep.subr.bf16.mxu1 %v1005_v14  ;;  %v1013_v22 = vld [vmem:[%s1155_s7 + $0xd8] sm:$0xff]   ;;  %v1017_v26 = vld [vmem:[%s1155_s7 + $0xe0] sm:$0xff]   ;;  %v1021_v30 = vld [vmem:[%s1155_s7 + $0xe8] sm:$0xff]  }
  0x2e   : > { %v1014_v23 = vld [vmem:[%s1155_s7 + $0x18] sm:$0xff]   ;;  %v1018_v27 = vld [vmem:[%s1155_s7 + $0x20] sm:$0xff]   ;;  %v1022_v31 = vld [vmem:[%s1155_s7 + $0x28] sm:$0xff]  }
  0x2f   : > { %906 = vmatpush3.bf16.msra.mxu0 %v1006_v15  ;;  %v1015_v24 = vld [vmem:[%s1155_s7 + $0x98] sm:$0xff]   ;;  %v1019_v28 = vld [vmem:[%s1155_s7 + $0xa0] sm:$0xff]   ;;  %v1023_v32 = vld [vmem:[%s1155_s7 + $0xa8] sm:$0xff]  }
  0x30   : > { %934 = vmatpush3.bf16.msra.mxu1 %v1007_v16  ;;  %907 = vmatprep.subr.bf16.mxu0 %v1008_v17  ;;  %v1024_v33 = vld [vmem:[%s1155_s7 + $0x70] sm:$0xff]   ;;  %v1028_v37 = vld [vmem:[%s1155_s7 + $0x78] sm:$0xff]   ;;  %v296_v58 = vld [vmem:[#allocation2] sm:$0xff] }
  0x31   : > { %935 = vmatprep.subr.bf16.mxu1 %v1009_v18  ;;  %v1025_v34 = vld [vmem:[%s1155_s7 + $0xf0] sm:$0xff]   ;;  %v1029_v38 = vld [vmem:[%s1155_s7 + $0xf8] sm:$0xff]   ;;  %v297_v63 = vld [vmem:[#allocation2 + $0x8] sm:$0xff] }
  0x32   : > { %v1026_v35 = vld [vmem:[%s1155_s7 + $0x30] sm:$0xff]   ;;  %v1030_v39 = vld [vmem:[%s1155_s7 + $0x38] sm:$0xff]  }
  0x33   : > { %908 = vmatpush3.bf16.msra.mxu0 %v1010_v19  ;;  %v1027_v36 = vld [vmem:[%s1155_s7 + $0xb0] sm:$0xff]   ;;  %v1031_v40 = vld [vmem:[%s1155_s7 + $0xb8] sm:$0xff]  }
  0x34   : > { %936 = vmatpush3.bf16.msra.mxu1 %v1011_v20  ;;  %909 = vmatprep.subr.bf16.mxu0 %v1012_v21  ;;  %v1032_v41 = vld [vmem:[%s1157_s8] ss:$16 sps:$4 sm:$0xff]   ;;  %v1034_v42 = vld [vmem:[%s1157_s8 + $0x4] ss:$16 sps:$4 sm:$0xff]   ;;  %v1035_v43 = vld [vmem:[%s1157_s8 + $0x8] ss:$16 sps:$4 sm:$0xff]  }
  0x35   : > { %937 = vmatprep.subr.bf16.mxu1 %v1013_v22  ;;  %v1037_v44 = vld [vmem:[%s1157_s8 + $0xc] ss:$16 sps:$4 sm:$0xff]   ;;  %636 = vmatprep.mubr.bf16.mxu0 %v1034_v42  ;;  %v1038_v45 = vld [vmem:[%s1157_s8 + $0x24] ss:$16 sps:$4 sm:$0xff]   ;;  %v1042_v47 = vld [vmem:[%s1157_s8 + $0x20] ss:$16 sps:$4 sm:$0xff]  }
  0x36   : > { %685 = vmatprep.mubr.bf16.mxu1 %v1037_v44  ;;  %v1040_v46 = vld [vmem:[%s1157_s8 + $0x2c] ss:$16 sps:$4 sm:$0xff]   ;;  %v1043_v48 = vld [vmem:[%s1157_s8 + $0x28] ss:$16 sps:$4 sm:$0xff]   ;;  %v298_v12 = vld [vmem:[#allocation2 + $0x10] sm:$0xff] }
  0x37   : > { %910 = vmatpush3.bf16.msra.mxu0 %v1014_v23  ;;  %v299_v17 = vld [vmem:[#allocation2 + $0x18] sm:$0xff]  ;;  %v897_v22 = vld [vmem:[%s1233_s2] ss:$0 sm:$0xff] (!%p896_p11) }
  0x38   : > { %938 = vmatpush3.bf16.msra.mxu1 %v1015_v24  ;;  %911 = vmatprep.subr.bf16.mxu0 %v1016_v25 }
  0x39   : > { %939 = vmatprep.subr.bf16.mxu1 %v1017_v26 }
  0x3b   : > { %912 = vmatpush3.bf16.msra.mxu0 %v1018_v27 }
  0x3c   : > { %940 = vmatpush3.bf16.msra.mxu1 %v1019_v28  ;;  %913 = vmatprep.subr.bf16.mxu0 %v1020_v29 }
  0x3d   : > { %941 = vmatprep.subr.bf16.mxu1 %v1021_v30 }
  0x3f   : > { %914 = vmatpush3.bf16.msra.mxu0 %v1022_v31 }
  0x40   : > { %942 = vmatpush3.bf16.msra.mxu1 %v1023_v32  ;;  %915 = vmatprep.subr.bf16.mxu0 %v1024_v33 }
  0x41   : > { %943 = vmatprep.subr.bf16.mxu1 %v1025_v34 }
  0x43   : > { %916 = vmatpush3.bf16.msra.mxu0 %v1026_v35 }
  0x44   : > { %944 = vmatpush3.bf16.msra.mxu1 %v1027_v36  ;;  %917 = vmatprep.subr.bf16.mxu0 %v1028_v37 }
  0x45   : > { %945 = vmatprep.subr.bf16.mxu1 %v1029_v38 }
  0x47   : > { %918 = vmatpush3.bf16.msra.mxu0 %v1030_v39 }
  0x48   : > { %946 = vmatpush3.bf16.msra.mxu1 %v1031_v40 }
  0x4a   : > { %637 = vmatmul.mubr.bf16.vlgmr.msra.gmra.mrb[0].mxu0 %v1032_v41 }
  0x4b   : > { %686 = vmatmul.mubr.bf16.vlgmr.msra.gmra.mrb[0].mxu1 %v1035_v43  ;;  %644 = vmatprep.mubr.bf16.mxu0 %v1038_v45 }
  0x4c   : > { %693 = vmatprep.mubr.bf16.mxu1 %v1040_v46 }
  0x52   : > { %645 = vmatmul.mubr.bf16.gmra.mrb[4].mxu0 %v1042_v47 }
  0x53   : > { %694 = vmatmul.mubr.bf16.gmra.mrb[4].mxu1 %v1043_v48 }
 0x11d   : > { %v919_v49 = vpop.f32.mrb[0].mxu0 }
 0x11e   : > { %v947_v50 = vpop.f32.mrb[0].mxu1  ;;  %v920_v51 = vpop.f32.mrb[1].mxu0 }
 0x11f   : > { %v921_v52 = vadd.f32 %v920_v51, %v919_v49  ;;  %v948_v53 = vpop.f32.mrb[1].mxu1  ;;  %v922_v54 = vpop.f32.mrb[2].mxu0 }
 0x120   : > { %v949_v55 = vadd.f32 %v948_v53, %v947_v50  ;;  %v950_v56 = vpop.f32.mrb[2].mxu1  ;;  %v923_v57 = vpop.f32.mrb[3].mxu0 }
 0x121   : > { %v924_v59 = vadd.f32 %v923_v57, %v922_v54  ;;  %v951_v60 = vpop.f32.mrb[3].mxu1 }
 0x122   : > { %v688_v61 = vadd.f32 %v949_v55, %v921_v52  ;;  %v952_v62 = vadd.f32 %v951_v60, %v950_v56 }
 0x124   : > { %v702_v0 = vadd.f32 %v688_v61, %v296_v58  ;;  %v691_v1 = vadd.f32 %v952_v62, %v924_v59 }
 0x125   : > { %v925_v2 = vpop.f32.mrb[4].mxu0 }
 0x126   : > { %706 = vst [vmem:[#allocation2] sm:$0xff] %v702_v0  ;;  %v703_v3 = vadd.f32 %v691_v1, %v297_v63  ;;  %v953_v4 = vpop.f32.mrb[4].mxu1  ;;  %v926_v5 = vpop.f32.mrb[5].mxu0 }
 0x127   : > { %v927_v6 = vadd.f32 %v926_v5, %v925_v2  ;;  %v954_v7 = vpop.f32.mrb[5].mxu1  ;;  %v928_v8 = vpop.f32.mrb[6].mxu0 }
 0x128   : > { %707 = vst [vmem:[#allocation2 + $0x8] sm:$0xff] %v703_v3  ;;  %v955_v9 = vadd.f32 %v954_v7, %v953_v4  ;;  %v956_v10 = vpop.f32.mrb[6].mxu1  ;;  %v929_v11 = vpop.f32.mrb[7].mxu0 }
 0x129   : > { %v930_v13 = vadd.f32 %v929_v11, %v928_v8  ;;  %v957_v14 = vpop.f32.mrb[7].mxu1 }
 0x12a   : > { %v696_v15 = vadd.f32 %v955_v9, %v927_v6  ;;  %v958_v16 = vadd.f32 %v957_v14, %v956_v10  ;;  %713 = sbr.rel (%p896_p11) target bundleno = 315 (0x13b), region = 63 }
 0x12c   : > { %v704_v18 = vadd.f32 %v696_v15, %v298_v12  ;;  %v699_v19 = vadd.f32 %v958_v16, %v930_v13 }
 0x12d   : > { %v714_v21 = vld [vmem:[#allocation2] sm:$0xff] (!%p896_p11) }
 0x12e   : > { %708 = vst [vmem:[#allocation2 + $0x10] sm:$0xff] %v704_v18  ;;  %v705_v20 = vadd.f32 %v699_v19, %v299_v17  ;;  %v725_v24 = vadd.f32 (!%p896_p11), %v897_v22, %v714_v21 }
 0x12f   : > { %v715_v23 = vld [vmem:[#allocation2 + $0x8] sm:$0xff] (!%p896_p11) }
 0x130   : > { %709 = vst [vmem:[#allocation2 + $0x18] sm:$0xff] %v705_v20  ;;  %v726_v25 = vadd.f32 (!%p896_p11), %v897_v22, %v715_v23  ;;  %729 = vst [vmem:[%s1234_s3] sm:$0xff] (!%p896_p11), %v725_v24 }
 0x132   : > { %730 = vst [vmem:[%s1234_s3 + $0x8] sm:$0xff] %v726_v25 }
 0x135   : > { %v716_v26 = vld [vmem:[#allocation2 + $0x10] sm:$0xff] }
 0x136   : > { %v727_v28 = vadd.f32 %v897_v22, %v716_v26 }
 0x137   : > { %v717_v27 = vld [vmem:[#allocation2 + $0x18] sm:$0xff] }
 0x138   : > { %v728_v29 = vadd.f32 %v897_v22, %v717_v27  ;;  %731 = vst [vmem:[%s1234_s3 + $0x10] sm:$0xff] %v727_v28 }
 0x13a   : > { %732 = vst [vmem:[%s1234_s3 + $0x18] sm:$0xff] %v728_v29 }
 0x13b PF: > { %s13_s16 = sadd.s32 1, %s1082_s16   ;;  %s1235_s12 = smov %s1070_s13 }
 0x13c   : > { %p10_p12 = scmp.ge.s32.totalorder %s13_s16, 4   ;;  %s1236_s13 = smov %s1140_s20 }
 0x13d   : > { %s1237_s14 = smov %s1078_s15  ;;  %s1238_s15 = smov %s1240_s17 }
 0x13e   :  { %12 = sbr.rel (!%p10_p12) target bundleno = 3 (0x3), region = 104 }

// kernel: generator_forward.146
= control target key start
LH: loop header
LB: loop body
LE: loop exit
PB: predicated region body
PF: predicated region fallthrough
CT: control target
= control target key end

     0   :  { %s804_s1 = inlined_call_operand.vmem [shape: bf16[256,128], index: 1, kind: input, shape index: {}]   ;;  %s805_s0 = inlined_call_operand.vmem [shape: bf16[128,256], index: 0, kind: input, shape index: {}]   ;;  %s806_s2 = inlined_call_operand.vmem [shape: f32[1,128], index: 2, kind: input, shape index: {}]   ;;  %s807_s3 = inlined_call_operand.vmem [shape: f32[128,128], index: 3, kind: output, shape index: {}]  }
   0x1   :  { %v579_v0 = vld [vmem:[%s804_s1 + $0x40] sm:$0xff]   ;;  %v581_v2 = vld [vmem:[%s804_s1 + $0x48] sm:$0xff]   ;;  %v583_v4 = vld [vmem:[%s804_s1 + $0x50] sm:$0xff]  }
   0x2   :  { %v580_v1 = vld [vmem:[%s804_s1] sm:$0xff]   ;;  %499 = vmatprep.subr.bf16.mxu0 %v579_v0  ;;  %563 = vmatprep.subr.bf16.mxu1 %v579_v0  ;;  %v582_v3 = vld [vmem:[%s804_s1 + $0x8] sm:$0xff]   ;;  %v584_v5 = vld [vmem:[%s804_s1 + $0x10] sm:$0xff]  }
   0x3   :  { %500 = vmatpush3.bf16.msra.mxu0 %v580_v1  ;;  %571 = vmatpush3.bf16.msra.mxu1 %v580_v1  ;;  %v585_v6 = vld [vmem:[%s804_s1 + $0x58] sm:$0xff]   ;;  %v587_v8 = vld [vmem:[%s804_s1 + $0x60] sm:$0xff]   ;;  %v589_v10 = vld [vmem:[%s804_s1 + $0x68] sm:$0xff]  }
   0x4   :  { %501 = vmatprep.subr.bf16.mxu0 %v581_v2  ;;  %564 = vmatprep.subr.bf16.mxu1 %v581_v2  ;;  %v586_v7 = vld [vmem:[%s804_s1 + $0x18] sm:$0xff]   ;;  %v588_v9 = vld [vmem:[%s804_s1 + $0x20] sm:$0xff]   ;;  %v590_v13 = vld [vmem:[%s804_s1 + $0x28] sm:$0xff]  }
   0x5   :  { %v597_v11 = vld [vmem:[%s805_s0 + $0x4] ss:$8 sps:$4 sm:$0xff]   ;;  %v591_v14 = vld [vmem:[%s804_s1 + $0x70] sm:$0xff]   ;;  %v593_v16 = vld [vmem:[%s804_s1 + $0x78] sm:$0xff]  }
   0x6   :  { %v600_v12 = vld [vmem:[%s805_s0 + $0x44] ss:$8 sps:$4 sm:$0xff]   ;;  %307 = vmatprep.mubr.bf16.mxu0 %v597_v11  ;;  %v592_v15 = vld [vmem:[%s804_s1 + $0x30] sm:$0xff]   ;;  %v594_v17 = vld [vmem:[%s804_s1 + $0x38] sm:$0xff]  }
   0x7   :  { %502 = vmatpush3.bf16.msra.mxu0 %v582_v3  ;;  %572 = vmatpush3.bf16.msra.mxu1 %v582_v3  ;;  %v595_v18 = vld [vmem:[%s805_s0] ss:$8 sps:$4 sm:$0xff]   ;;  %v601_v20 = vld [vmem:[%s805_s0 + $0x14] ss:$8 sps:$4 sm:$0xff]   ;;  %v605_v22 = vld [vmem:[%s805_s0 + $0x10] ss:$8 sps:$4 sm:$0xff]  }
   0x8   :  { %503 = vmatprep.subr.bf16.mxu0 %v583_v4  ;;  %565 = vmatprep.subr.bf16.mxu1 %v583_v4  ;;  %v598_v19 = vld [vmem:[%s805_s0 + $0x40] ss:$8 sps:$4 sm:$0xff]   ;;  %v603_v21 = vld [vmem:[%s805_s0 + $0x54] ss:$8 sps:$4 sm:$0xff]   ;;  %v606_v23 = vld [vmem:[%s805_s0 + $0x50] ss:$8 sps:$4 sm:$0xff]  }
   0x9   :  { %339 = vmatprep.mubr.bf16.mxu1 %v600_v12  ;;  %v607_v24 = vld [vmem:[%s805_s0 + $0x24] ss:$8 sps:$4 sm:$0xff]   ;;  %v611_v26 = vld [vmem:[%s805_s0 + $0x20] ss:$8 sps:$4 sm:$0xff]   ;;  %v613_v28 = vld [vmem:[%s805_s0 + $0x34] ss:$8 sps:$4 sm:$0xff]  }
   0xa   :  { %v609_v25 = vld [vmem:[%s805_s0 + $0x64] ss:$8 sps:$4 sm:$0xff]   ;;  %v612_v27 = vld [vmem:[%s805_s0 + $0x60] ss:$8 sps:$4 sm:$0xff]   ;;  %v615_v29 = vld [vmem:[%s805_s0 + $0x74] ss:$8 sps:$4 sm:$0xff]  }
   0xb   :  { %504 = vmatpush3.bf16.msra.mxu0 %v584_v5  ;;  %573 = vmatpush3.bf16.msra.mxu1 %v584_v5  ;;  %v617_v30 = vld [vmem:[%s805_s0 + $0x30] ss:$8 sps:$4 sm:$0xff]   ;;  %v738_v35 = vld [vmem:[%s806_s2] ss:$0 sm:$0xff] }
   0xc   :  { %505 = vmatprep.subr.bf16.mxu0 %v585_v6  ;;  %566 = vmatprep.subr.bf16.mxu1 %v585_v6  ;;  %v618_v31 = vld [vmem:[%s805_s0 + $0x70] ss:$8 sps:$4 sm:$0xff]  }
   0xf   :  { %506 = vmatpush3.bf16.msra.mxu0 %v586_v7  ;;  %574 = vmatpush3.bf16.msra.mxu1 %v586_v7 }
  0x10   :  { %507 = vmatprep.subr.bf16.mxu0 %v587_v8  ;;  %567 = vmatprep.subr.bf16.mxu1 %v587_v8 }
  0x13   :  { %508 = vmatpush3.bf16.msra.mxu0 %v588_v9  ;;  %575 = vmatpush3.bf16.msra.mxu1 %v588_v9 }
  0x14   :  { %509 = vmatprep.subr.bf16.mxu0 %v589_v10  ;;  %568 = vmatprep.subr.bf16.mxu1 %v589_v10 }
  0x17   :  { %510 = vmatpush3.bf16.msra.mxu0 %v590_v13  ;;  %576 = vmatpush3.bf16.msra.mxu1 %v590_v13 }
  0x18   :  { %511 = vmatprep.subr.bf16.mxu0 %v591_v14  ;;  %569 = vmatprep.subr.bf16.mxu1 %v591_v14 }
  0x1b   :  { %512 = vmatpush3.bf16.msra.mxu0 %v592_v15  ;;  %577 = vmatpush3.bf16.msra.mxu1 %v592_v15 }
  0x1c   :  { %513 = vmatprep.subr.bf16.mxu0 %v593_v16  ;;  %570 = vmatprep.subr.bf16.mxu1 %v593_v16 }
  0x1f   :  { %514 = vmatpush3.bf16.msra.mxu0 %v594_v17  ;;  %578 = vmatpush3.bf16.msra.mxu1 %v594_v17 }
  0x22   :  { %308 = vmatmul.mubr.bf16.vlgmr.msra.gmra.mrb[0].mxu0 %v595_v18  ;;  %340 = vmatmul.mubr.bf16.vlgmr.msra.gmra.mrb[0].mxu1 %v598_v19 }
  0x23   :  { %315 = vmatprep.mubr.bf16.mxu0 %v601_v20  ;;  %347 = vmatprep.mubr.bf16.mxu1 %v603_v21 }
  0x2a   :  { %316 = vmatmul.mubr.bf16.gmra.mrb[4].mxu0 %v605_v22  ;;  %348 = vmatmul.mubr.bf16.gmra.mrb[4].mxu1 %v606_v23 }
  0x2b   :  { %323 = vmatprep.mubr.bf16.mxu0 %v607_v24  ;;  %355 = vmatprep.mubr.bf16.mxu1 %v609_v25 }
  0x32   :  { %324 = vmatmul.mubr.bf16.gmra.mrb[8].mxu0 %v611_v26  ;;  %356 = vmatmul.mubr.bf16.gmra.mrb[8].mxu1 %v612_v27 }
  0x33   :  { %331 = vmatprep.mubr.bf16.mxu0 %v613_v28  ;;  %363 = vmatprep.mubr.bf16.mxu1 %v615_v29 }
  0x3a   :  { %332 = vmatmul.mubr.bf16.gmra.mrb[12].mxu0 %v617_v30  ;;  %364 = vmatmul.mubr.bf16.gmra.mrb[12].mxu1 %v618_v31 }
  0xf5   :  { %v515_v32 = vpop.f32.mrb[0].mxu0  ;;  %v539_v33 = vpop.f32.mrb[0].mxu1 }
  0xf6   :  { %v516_v34 = vpop.f32.mrb[1].mxu0  ;;  %v540_v36 = vpop.f32.mrb[1].mxu1 }
  0xf7   :  { %v517_v37 = vadd.f32 %v516_v34, %v515_v32  ;;  %v541_v38 = vadd.f32 %v540_v36, %v539_v33  ;;  %v518_v39 = vpop.f32.mrb[2].mxu0  ;;  %v542_v40 = vpop.f32.mrb[2].mxu1 }
  0xf8   :  { %v519_v41 = vpop.f32.mrb[3].mxu0  ;;  %v543_v42 = vpop.f32.mrb[3].mxu1 }
  0xf9   :  { %v430_v43 = vadd.f32 %v517_v37, %v738_v35  ;;  %v438_v44 = vadd.f32 %v541_v38, %v738_v35  ;;  %v520_v45 = vadd.f32 %v519_v41, %v518_v39  ;;  %v544_v46 = vadd.f32 %v543_v42, %v542_v40 }
  0xfb   :  { %446 = vst [vmem:[%s807_s3] sm:$0xff] %v430_v43  ;;  %454 = vst [vmem:[%s807_s3 + $0x40] sm:$0xff] %v438_v44  ;;  %v431_v47 = vadd.f32 %v520_v45, %v738_v35  ;;  %v439_v48 = vadd.f32 %v544_v46, %v738_v35 }
  0xfd   :  { %447 = vst [vmem:[%s807_s3 + $0x8] sm:$0xff] %v431_v47  ;;  %455 = vst [vmem:[%s807_s3 + $0x48] sm:$0xff] %v439_v48  ;;  %v521_v49 = vpop.f32.mrb[4].mxu0  ;;  %v545_v50 = vpop.f32.mrb[4].mxu1 }
  0xfe   :  { %v522_v51 = vpop.f32.mrb[5].mxu0  ;;  %v546_v52 = vpop.f32.mrb[5].mxu1 }
  0xff   :  { %v523_v53 = vadd.f32 %v522_v51, %v521_v49  ;;  %v547_v54 = vadd.f32 %v546_v52, %v545_v50  ;;  %v524_v55 = vpop.f32.mrb[6].mxu0  ;;  %v548_v56 = vpop.f32.mrb[6].mxu1 }
 0x100   :  { %v525_v57 = vpop.f32.mrb[7].mxu0  ;;  %v549_v58 = vpop.f32.mrb[7].mxu1 }
 0x101   :  { %v432_v59 = vadd.f32 %v523_v53, %v738_v35  ;;  %v440_v60 = vadd.f32 %v547_v54, %v738_v35  ;;  %v526_v61 = vadd.f32 %v525_v57, %v524_v55  ;;  %v550_v62 = vadd.f32 %v549_v58, %v548_v56 }
 0x103   :  { %448 = vst [vmem:[%s807_s3 + $0x10] sm:$0xff] %v432_v59  ;;  %456 = vst [vmem:[%s807_s3 + $0x50] sm:$0xff] %v440_v60  ;;  %v433_v63 = vadd.f32 %v526_v61, %v738_v35  ;;  %v441_v0 = vadd.f32 %v550_v62, %v738_v35 }
 0x105   :  { %449 = vst [vmem:[%s807_s3 + $0x18] sm:$0xff] %v433_v63  ;;  %457 = vst [vmem:[%s807_s3 + $0x58] sm:$0xff] %v441_v0  ;;  %v527_v1 = vpop.f32.mrb[8].mxu0  ;;  %v551_v2 = vpop.f32.mrb[8].mxu1 }
 0x106   :  { %v528_v3 = vpop.f32.mrb[9].mxu0  ;;  %v552_v4 = vpop.f32.mrb[9].mxu1 }
 0x107   :  { %v529_v5 = vadd.f32 %v528_v3, %v527_v1  ;;  %v553_v6 = vadd.f32 %v552_v4, %v551_v2  ;;  %v530_v7 = vpop.f32.mrb[10].mxu0  ;;  %v554_v8 = vpop.f32.mrb[10].mxu1 }
 0x108   :  { %v531_v9 = vpop.f32.mrb[11].mxu0  ;;  %v555_v10 = vpop.f32.mrb[11].mxu1 }
 0x109   :  { %v434_v11 = vadd.f32 %v529_v5, %v738_v35  ;;  %v442_v12 = vadd.f32 %v553_v6, %v738_v35  ;;  %v532_v13 = vadd.f32 %v531_v9, %v530_v7  ;;  %v556_v14 = vadd.f32 %v555_v10, %v554_v8 }
 0x10b   :  { %450 = vst [vmem:[%s807_s3 + $0x20] sm:$0xff] %v434_v11  ;;  %458 = vst [vmem:[%s807_s3 + $0x60] sm:$0xff] %v442_v12  ;;  %v435_v15 = vadd.f32 %v532_v13, %v738_v35  ;;  %v443_v16 = vadd.f32 %v556_v14, %v738_v35 }
 0x10d   :  { %451 = vst [vmem:[%s807_s3 + $0x28] sm:$0xff] %v435_v15  ;;  %459 = vst [vmem:[%s807_s3 + $0x68] sm:$0xff] %v443_v16  ;;  %v533_v17 = vpop.f32.mrb[12].mxu0  ;;  %v557_v18 = vpop.f32.mrb[12].mxu1 }
 0x10e   :  { %v534_v19 = vpop.f32.mrb[13].mxu0  ;;  %v558_v20 = vpop.f32.mrb[13].mxu1 }
 0x10f   :  { %v535_v21 = vadd.f32 %v534_v19, %v533_v17  ;;  %v559_v22 = vadd.f32 %v558_v20, %v557_v18  ;;  %v536_v23 = vpop.f32.mrb[14].mxu0  ;;  %v560_v24 = vpop.f32.mrb[14].mxu1 }
 0x110   :  { %v537_v25 = vpop.f32.mrb[15].mxu0  ;;  %v561_v26 = vpop.f32.mrb[15].mxu1 }
 0x111   :  { %v436_v27 = vadd.f32 %v535_v21, %v738_v35  ;;  %v444_v28 = vadd.f32 %v559_v22, %v738_v35  ;;  %v538_v29 = vadd.f32 %v537_v25, %v536_v23  ;;  %v562_v30 = vadd.f32 %v561_v26, %v560_v24 }
 0x113   :  { %452 = vst [vmem:[%s807_s3 + $0x30] sm:$0xff] %v436_v27  ;;  %460 = vst [vmem:[%s807_s3 + $0x70] sm:$0xff] %v444_v28  ;;  %v437_v31 = vadd.f32 %v538_v29, %v738_v35  ;;  %v445_v32 = vadd.f32 %v562_v30, %v738_v35 }
 0x115   :  { %453 = vst [vmem:[%s807_s3 + $0x38] sm:$0xff] %v437_v31  ;;  %461 = vst [vmem:[%s807_s3 + $0x78] sm:$0xff] %v445_v32 }

// kernel: generator_forward.145
= control target key start
LH: loop header
LB: loop body
LE: loop exit
PB: predicated region body
PF: predicated region fallthrough
CT: control target
= control target key end

     0   :  { %s586_s1 = inlined_call_operand.vmem [shape: bf16[128,128], index: 1, kind: input, shape index: {}]   ;;  %s587_s0 = inlined_call_operand.vmem [shape: bf16[128,128], index: 0, kind: input, shape index: {}]   ;;  %s588_s2 = inlined_call_operand.vmem [shape: f32[1,128], index: 2, kind: input, shape index: {}]   ;;  %s589_s3 = inlined_call_operand.vmem [shape: f32[128,128], index: 3, kind: output, shape index: {}]  }
   0x1   :  { %v451_v0 = vld [vmem:[%s586_s1] sm:$0xff]   ;;  %v452_v1 = vld [vmem:[%s586_s1 + $0x8] sm:$0xff]   ;;  %v453_v2 = vld [vmem:[%s586_s1 + $0x10] sm:$0xff]  }
   0x2   :  { %403 = vmatprep.subr.bf16.mxu0 %v451_v0  ;;  %435 = vmatprep.subr.bf16.mxu1 %v451_v0  ;;  %v454_v3 = vld [vmem:[%s586_s1 + $0x18] sm:$0xff]   ;;  %v459_v4 = vld [vmem:[%s587_s0] sm:$0xff]   ;;  %v456_v7 = vld [vmem:[%s586_s1 + $0x28] sm:$0xff]  }
   0x3   :  { %404 = vmatpush3.bf16.msra.mxu0 %v451_v0  ;;  %443 = vmatpush3.bf16.msra.mxu1 %v451_v0  ;;  %v460_v5 = vld [vmem:[%s587_s0 + $0x20] sm:$0xff]   ;;  %v457_v8 = vld [vmem:[%s586_s1 + $0x30] sm:$0xff]   ;;  %v458_v9 = vld [vmem:[%s586_s1 + $0x38] sm:$0xff]  }
   0x4   :  { %405 = vmatprep.subr.bf16.mxu0 %v452_v1  ;;  %436 = vmatprep.subr.bf16.mxu1 %v452_v1  ;;  %v455_v6 = vld [vmem:[%s586_s1 + $0x20] sm:$0xff]   ;;  %v461_v10 = vld [vmem:[%s587_s0 + $0x8] sm:$0xff]   ;;  %v463_v12 = vld [vmem:[%s587_s0 + $0x10] sm:$0xff]  }
   0x5   :  { %419 = vmatprep.mubr.bf16.mxu0 %v459_v4  ;;  %427 = vmatprep.mubr.bf16.mxu1 %v460_v5  ;;  %v462_v11 = vld [vmem:[%s587_s0 + $0x28] sm:$0xff]   ;;  %v464_v13 = vld [vmem:[%s587_s0 + $0x30] sm:$0xff]   ;;  %v465_v14 = vld [vmem:[%s587_s0 + $0x18] sm:$0xff]  }
   0x6   :  { %v466_v15 = vld [vmem:[%s587_s0 + $0x38] sm:$0xff]   ;;  %v386_v16 = vld [vmem:[%s588_s2] ss:$0 sm:$0xff] }
   0x7   :  { %406 = vmatpush3.bf16.msra.mxu0 %v452_v1  ;;  %444 = vmatpush3.bf16.msra.mxu1 %v452_v1 }
   0x8   :  { %407 = vmatprep.subr.bf16.mxu0 %v453_v2  ;;  %437 = vmatprep.subr.bf16.mxu1 %v453_v2 }
   0xb   :  { %408 = vmatpush3.bf16.msra.mxu0 %v453_v2  ;;  %445 = vmatpush3.bf16.msra.mxu1 %v453_v2 }
   0xc   :  { %409 = vmatprep.subr.bf16.mxu0 %v454_v3  ;;  %438 = vmatprep.subr.bf16.mxu1 %v454_v3 }
   0xf   :  { %410 = vmatpush3.bf16.msra.mxu0 %v454_v3  ;;  %446 = vmatpush3.bf16.msra.mxu1 %v454_v3 }
  0x10   :  { %411 = vmatprep.subr.bf16.mxu0 %v455_v6  ;;  %439 = vmatprep.subr.bf16.mxu1 %v455_v6 }
  0x13   :  { %412 = vmatpush3.bf16.msra.mxu0 %v455_v6  ;;  %447 = vmatpush3.bf16.msra.mxu1 %v455_v6 }
  0x14   :  { %413 = vmatprep.subr.bf16.mxu0 %v456_v7  ;;  %440 = vmatprep.subr.bf16.mxu1 %v456_v7 }
  0x17   :  { %414 = vmatpush3.bf16.msra.mxu0 %v456_v7  ;;  %448 = vmatpush3.bf16.msra.mxu1 %v456_v7 }
  0x18   :  { %415 = vmatprep.subr.bf16.mxu0 %v457_v8  ;;  %441 = vmatprep.subr.bf16.mxu1 %v457_v8 }
  0x1b   :  { %416 = vmatpush3.bf16.msra.mxu0 %v457_v8  ;;  %449 = vmatpush3.bf16.msra.mxu1 %v457_v8 }
  0x1c   :  { %417 = vmatprep.subr.bf16.mxu0 %v458_v9  ;;  %442 = vmatprep.subr.bf16.mxu1 %v458_v9 }
  0x1f   :  { %418 = vmatpush3.bf16.msra.mxu0 %v458_v9  ;;  %450 = vmatpush3.bf16.msra.mxu1 %v458_v9 }
  0x22   :  { %420 = vmatmul.mubr.bf16.vlgmr.msra.gmra.mrb[0].mxu0 %v461_v10  ;;  %428 = vmatmul.mubr.bf16.vlgmr.msra.gmra.mrb[0].mxu1 %v462_v11 }
  0x23   :  { %423 = vmatprep.mubr.bf16.mxu0 %v463_v12  ;;  %431 = vmatprep.mubr.bf16.mxu1 %v464_v13 }
  0x2a   :  { %424 = vmatmul.mubr.bf16.gmra.mrb[4].mxu0 %v465_v14  ;;  %432 = vmatmul.mubr.bf16.gmra.mrb[4].mxu1 %v466_v15 }
  0xf5   :  { %v421_v17 = vpop.f32.mrb[0].mxu0  ;;  %v429_v18 = vpop.f32.mrb[0].mxu1 }
  0xf6   :  { %v336_v19 = vadd.f32 %v421_v17, %v386_v16  ;;  %v344_v20 = vadd.f32 %v429_v18, %v386_v16  ;;  %v213_v21 = vpop.f32.mrb[1].mxu0  ;;  %v245_v22 = vpop.f32.mrb[1].mxu1 }
  0xf7   :  { %v334_v23 = vadd.f32 %v386_v16, %v213_v21  ;;  %v342_v24 = vadd.f32 %v386_v16, %v245_v22  ;;  %v422_v25 = vpop.f32.mrb[2].mxu0  ;;  %v430_v26 = vpop.f32.mrb[2].mxu1 }
  0xf8   :  { %352 = vst [vmem:[%s589_s3 + $0x10] sm:$0xff] %v336_v19  ;;  %360 = vst [vmem:[%s589_s3 + $0x50] sm:$0xff] %v344_v20  ;;  %v337_v27 = vadd.f32 %v422_v25, %v386_v16  ;;  %v345_v28 = vadd.f32 %v430_v26, %v386_v16  ;;  %v216_v29 = vpop.f32.mrb[3].mxu0  ;;  %v248_v30 = vpop.f32.mrb[3].mxu1 }
  0xf9   :  { %350 = vst [vmem:[%s589_s3] sm:$0xff] %v334_v23  ;;  %358 = vst [vmem:[%s589_s3 + $0x40] sm:$0xff] %v342_v24  ;;  %v335_v31 = vadd.f32 %v386_v16, %v216_v29  ;;  %v343_v32 = vadd.f32 %v386_v16, %v248_v30 }
  0xfa   :  { %353 = vst [vmem:[%s589_s3 + $0x18] sm:$0xff] %v337_v27  ;;  %361 = vst [vmem:[%s589_s3 + $0x58] sm:$0xff] %v345_v28 }
  0xfb   :  { %351 = vst [vmem:[%s589_s3 + $0x8] sm:$0xff] %v335_v31  ;;  %359 = vst [vmem:[%s589_s3 + $0x48] sm:$0xff] %v343_v32 }
  0xfd   :  { %v425_v33 = vpop.f32.mrb[4].mxu0  ;;  %v433_v34 = vpop.f32.mrb[4].mxu1 }
  0xfe   :  { %v340_v35 = vadd.f32 %v425_v33, %v386_v16  ;;  %v348_v36 = vadd.f32 %v433_v34, %v386_v16  ;;  %v229_v37 = vpop.f32.mrb[5].mxu0  ;;  %v261_v38 = vpop.f32.mrb[5].mxu1 }
  0xff   :  { %v338_v39 = vadd.f32 %v386_v16, %v229_v37  ;;  %v346_v40 = vadd.f32 %v386_v16, %v261_v38  ;;  %v426_v41 = vpop.f32.mrb[6].mxu0  ;;  %v434_v42 = vpop.f32.mrb[6].mxu1 }
 0x100   :  { %356 = vst [vmem:[%s589_s3 + $0x30] sm:$0xff] %v340_v35  ;;  %364 = vst [vmem:[%s589_s3 + $0x70] sm:$0xff] %v348_v36  ;;  %v341_v43 = vadd.f32 %v426_v41, %v386_v16  ;;  %v349_v44 = vadd.f32 %v434_v42, %v386_v16  ;;  %v232_v45 = vpop.f32.mrb[7].mxu0  ;;  %v264_v46 = vpop.f32.mrb[7].mxu1 }
 0x101   :  { %354 = vst [vmem:[%s589_s3 + $0x20] sm:$0xff] %v338_v39  ;;  %362 = vst [vmem:[%s589_s3 + $0x60] sm:$0xff] %v346_v40  ;;  %v339_v47 = vadd.f32 %v386_v16, %v232_v45  ;;  %v347_v48 = vadd.f32 %v386_v16, %v264_v46 }
 0x102   :  { %357 = vst [vmem:[%s589_s3 + $0x38] sm:$0xff] %v341_v43  ;;  %365 = vst [vmem:[%s589_s3 + $0x78] sm:$0xff] %v349_v44 }
 0x103   :  { %355 = vst [vmem:[%s589_s3 + $0x28] sm:$0xff] %v339_v47  ;;  %363 = vst [vmem:[%s589_s3 + $0x68] sm:$0xff] %v347_v48 }

// kernel: generator_forward.148
= control target key start
LH: loop header
LB: loop body
LE: loop exit
PB: predicated region body
PF: predicated region fallthrough
CT: control target
= control target key end

     0   :  { %s1341_s1 = inlined_call_operand.vmem [shape: bf16[512,128], index: 1, kind: input, shape index: {}]   ;;  %s1342_s0 = inlined_call_operand.vmem [shape: bf16[128,512], index: 0, kind: input, shape index: {}]   ;;  %s1343_s2 = inlined_call_operand.vmem [shape: f32[1,128], index: 2, kind: input, shape index: {}]   ;;  %s1344_s3 = inlined_call_operand.vmem [shape: f32[128,128], index: 3, kind: output, shape index: {}]  }
   0x1   :  { %v980_v0 = vld [vmem:[%s1341_s1 + $0x40] sm:$0xff]   ;;  %v984_v4 = vld [vmem:[%s1341_s1 + $0x48] sm:$0xff]   ;;  %v988_v8 = vld [vmem:[%s1341_s1 + $0x50] sm:$0xff]  }
   0x2   :  { %v981_v1 = vld [vmem:[%s1341_s1 + $0xc0] sm:$0xff]   ;;  %852 = vmatprep.subr.bf16.mxu0 %v980_v0  ;;  %v985_v5 = vld [vmem:[%s1341_s1 + $0xc8] sm:$0xff]   ;;  %v989_v9 = vld [vmem:[%s1341_s1 + $0xd0] sm:$0xff]  }
   0x3   :  { %v982_v2 = vld [vmem:[%s1341_s1] sm:$0xff]   ;;  %916 = vmatprep.subr.bf16.mxu1 %v981_v1  ;;  %v986_v6 = vld [vmem:[%s1341_s1 + $0x8] sm:$0xff]   ;;  %v990_v10 = vld [vmem:[%s1341_s1 + $0x10] sm:$0xff]  }
   0x4   :  { %v983_v3 = vld [vmem:[%s1341_s1 + $0x80] sm:$0xff]   ;;  %853 = vmatpush3.bf16.msra.mxu0 %v982_v2  ;;  %v987_v7 = vld [vmem:[%s1341_s1 + $0x88] sm:$0xff]   ;;  %v991_v11 = vld [vmem:[%s1341_s1 + $0x90] sm:$0xff]  }
   0x5   :  { %917 = vmatpush3.bf16.msra.mxu1 %v983_v3  ;;  %854 = vmatprep.subr.bf16.mxu0 %v984_v4  ;;  %v992_v12 = vld [vmem:[%s1341_s1 + $0x58] sm:$0xff]   ;;  %v996_v16 = vld [vmem:[%s1341_s1 + $0x60] sm:$0xff]   ;;  %v1000_v20 = vld [vmem:[%s1341_s1 + $0x68] sm:$0xff]  }
   0x6   :  { %918 = vmatprep.subr.bf16.mxu1 %v985_v5  ;;  %v993_v13 = vld [vmem:[%s1341_s1 + $0xd8] sm:$0xff]   ;;  %v997_v17 = vld [vmem:[%s1341_s1 + $0xe0] sm:$0xff]   ;;  %v1001_v21 = vld [vmem:[%s1341_s1 + $0xe8] sm:$0xff]  }
   0x7   :  { %v994_v14 = vld [vmem:[%s1341_s1 + $0x18] sm:$0xff]   ;;  %v998_v18 = vld [vmem:[%s1341_s1 + $0x20] sm:$0xff]   ;;  %v1002_v22 = vld [vmem:[%s1341_s1 + $0x28] sm:$0xff]  }
   0x8   :  { %855 = vmatpush3.bf16.msra.mxu0 %v986_v6  ;;  %v995_v15 = vld [vmem:[%s1341_s1 + $0x98] sm:$0xff]   ;;  %v999_v19 = vld [vmem:[%s1341_s1 + $0xa0] sm:$0xff]   ;;  %v1003_v23 = vld [vmem:[%s1341_s1 + $0xa8] sm:$0xff]  }
   0x9   :  { %919 = vmatpush3.bf16.msra.mxu1 %v987_v7  ;;  %856 = vmatprep.subr.bf16.mxu0 %v988_v8  ;;  %v1004_v24 = vld [vmem:[%s1341_s1 + $0x70] sm:$0xff]   ;;  %v1008_v28 = vld [vmem:[%s1341_s1 + $0x78] sm:$0xff]  }
   0xa   :  { %920 = vmatprep.subr.bf16.mxu1 %v989_v9  ;;  %v1005_v25 = vld [vmem:[%s1341_s1 + $0xf0] sm:$0xff]   ;;  %v1009_v29 = vld [vmem:[%s1341_s1 + $0xf8] sm:$0xff]   ;;  %v1275_v9 = vld [vmem:[%s1343_s2] ss:$0 sm:$0xff] }
   0xb   :  { %v1006_v26 = vld [vmem:[%s1341_s1 + $0x30] sm:$0xff]   ;;  %v1010_v30 = vld [vmem:[%s1341_s1 + $0x38] sm:$0xff]  }
   0xc   :  { %857 = vmatpush3.bf16.msra.mxu0 %v990_v10  ;;  %v1007_v27 = vld [vmem:[%s1341_s1 + $0xb0] sm:$0xff]   ;;  %v1011_v31 = vld [vmem:[%s1341_s1 + $0xb8] sm:$0xff]  }
   0xd   :  { %921 = vmatpush3.bf16.msra.mxu1 %v991_v11  ;;  %858 = vmatprep.subr.bf16.mxu0 %v992_v12  ;;  %v1012_v32 = vld [vmem:[%s1342_s0] ss:$16 sps:$4 sm:$0xff]   ;;  %v1014_v33 = vld [vmem:[%s1342_s0 + $0x4] ss:$16 sps:$4 sm:$0xff]   ;;  %v1015_v34 = vld [vmem:[%s1342_s0 + $0x8] ss:$16 sps:$4 sm:$0xff]  }
   0xe   :  { %922 = vmatprep.subr.bf16.mxu1 %v993_v13  ;;  %v1017_v35 = vld [vmem:[%s1342_s0 + $0xc] ss:$16 sps:$4 sm:$0xff]   ;;  %531 = vmatprep.mubr.bf16.mxu0 %v1014_v33  ;;  %v1018_v36 = vld [vmem:[%s1342_s0 + $0x24] ss:$16 sps:$4 sm:$0xff]   ;;  %v1022_v38 = vld [vmem:[%s1342_s0 + $0x20] ss:$16 sps:$4 sm:$0xff]  }
   0xf   :  { %628 = vmatprep.mubr.bf16.mxu1 %v1017_v35  ;;  %v1020_v37 = vld [vmem:[%s1342_s0 + $0x2c] ss:$16 sps:$4 sm:$0xff]   ;;  %v1023_v39 = vld [vmem:[%s1342_s0 + $0x28] ss:$16 sps:$4 sm:$0xff]   ;;  %v1024_v40 = vld [vmem:[%s1342_s0 + $0x44] ss:$16 sps:$4 sm:$0xff]  }
  0x10   :  { %859 = vmatpush3.bf16.msra.mxu0 %v994_v14  ;;  %v1026_v41 = vld [vmem:[%s1342_s0 + $0x4c] ss:$16 sps:$4 sm:$0xff]   ;;  %v1028_v42 = vld [vmem:[%s1342_s0 + $0x40] ss:$16 sps:$4 sm:$0xff]   ;;  %v1029_v43 = vld [vmem:[%s1342_s0 + $0x48] ss:$16 sps:$4 sm:$0xff]  }
  0x11   :  { %923 = vmatpush3.bf16.msra.mxu1 %v995_v15  ;;  %860 = vmatprep.subr.bf16.mxu0 %v996_v16  ;;  %v1030_v44 = vld [vmem:[%s1342_s0 + $0x64] ss:$16 sps:$4 sm:$0xff]   ;;  %v1032_v45 = vld [vmem:[%s1342_s0 + $0x6c] ss:$16 sps:$4 sm:$0xff]   ;;  %v1034_v46 = vld [vmem:[%s1342_s0 + $0x60] ss:$16 sps:$4 sm:$0xff]  }
  0x12   :  { %924 = vmatprep.subr.bf16.mxu1 %v997_v17  ;;  %v1035_v47 = vld [vmem:[%s1342_s0 + $0x68] ss:$16 sps:$4 sm:$0xff]   ;;  %v1036_v48 = vld [vmem:[%s1342_s0 + $0x84] ss:$16 sps:$4 sm:$0xff]   ;;  %v1038_v49 = vld [vmem:[%s1342_s0 + $0x8c] ss:$16 sps:$4 sm:$0xff]  }
  0x13   :  { %v1040_v50 = vld [vmem:[%s1342_s0 + $0x80] ss:$16 sps:$4 sm:$0xff]   ;;  %v1041_v51 = vld [vmem:[%s1342_s0 + $0x88] ss:$16 sps:$4 sm:$0xff]   ;;  %v1042_v52 = vld [vmem:[%s1342_s0 + $0xa4] ss:$16 sps:$4 sm:$0xff]  }
  0x14   :  { %861 = vmatpush3.bf16.msra.mxu0 %v998_v18  ;;  %v1044_v53 = vld [vmem:[%s1342_s0 + $0xac] ss:$16 sps:$4 sm:$0xff]   ;;  %v1046_v54 = vld [vmem:[%s1342_s0 + $0xa0] ss:$16 sps:$4 sm:$0xff]   ;;  %v1047_v55 = vld [vmem:[%s1342_s0 + $0xa8] ss:$16 sps:$4 sm:$0xff]  }
  0x15   :  { %925 = vmatpush3.bf16.msra.mxu1 %v999_v19  ;;  %862 = vmatprep.subr.bf16.mxu0 %v1000_v20  ;;  %v1048_v56 = vld [vmem:[%s1342_s0 + $0xc4] ss:$16 sps:$4 sm:$0xff]   ;;  %v1050_v57 = vld [vmem:[%s1342_s0 + $0xcc] ss:$16 sps:$4 sm:$0xff]   ;;  %v1052_v58 = vld [vmem:[%s1342_s0 + $0xc0] ss:$16 sps:$4 sm:$0xff]  }
  0x16   :  { %926 = vmatprep.subr.bf16.mxu1 %v1001_v21  ;;  %v1053_v59 = vld [vmem:[%s1342_s0 + $0xc8] ss:$16 sps:$4 sm:$0xff]   ;;  %v1054_v60 = vld [vmem:[%s1342_s0 + $0xe4] ss:$16 sps:$4 sm:$0xff]   ;;  %v1056_v61 = vld [vmem:[%s1342_s0 + $0xec] ss:$16 sps:$4 sm:$0xff]  }
  0x17   :  { %v1058_v62 = vld [vmem:[%s1342_s0 + $0xe0] ss:$16 sps:$4 sm:$0xff]   ;;  %v1059_v63 = vld [vmem:[%s1342_s0 + $0xe8] ss:$16 sps:$4 sm:$0xff]  }
  0x18   :  { %863 = vmatpush3.bf16.msra.mxu0 %v1002_v22 }
  0x19   :  { %927 = vmatpush3.bf16.msra.mxu1 %v1003_v23  ;;  %864 = vmatprep.subr.bf16.mxu0 %v1004_v24 }
  0x1a   :  { %928 = vmatprep.subr.bf16.mxu1 %v1005_v25 }
  0x1c   :  { %865 = vmatpush3.bf16.msra.mxu0 %v1006_v26 }
  0x1d   :  { %929 = vmatpush3.bf16.msra.mxu1 %v1007_v27  ;;  %866 = vmatprep.subr.bf16.mxu0 %v1008_v28 }
  0x1e   :  { %930 = vmatprep.subr.bf16.mxu1 %v1009_v29 }
  0x20   :  { %867 = vmatpush3.bf16.msra.mxu0 %v1010_v30 }
  0x21   :  { %931 = vmatpush3.bf16.msra.mxu1 %v1011_v31 }
  0x23   :  { %532 = vmatmul.mubr.bf16.vlgmr.msra.gmra.mrb[0].mxu0 %v1012_v32 }
  0x24   :  { %629 = vmatmul.mubr.bf16.vlgmr.msra.gmra.mrb[0].mxu1 %v1015_v34  ;;  %539 = vmatprep.mubr.bf16.mxu0 %v1018_v36 }
  0x25   :  { %636 = vmatprep.mubr.bf16.mxu1 %v1020_v37 }
  0x2b   :  { %540 = vmatmul.mubr.bf16.gmra.mrb[4].mxu0 %v1022_v38 }
  0x2c   :  { %637 = vmatmul.mubr.bf16.gmra.mrb[4].mxu1 %v1023_v39  ;;  %547 = vmatprep.mubr.bf16.mxu0 %v1024_v40 }
  0x2d   :  { %644 = vmatprep.mubr.bf16.mxu1 %v1026_v41 }
  0x33   :  { %548 = vmatmul.mubr.bf16.gmra.mrb[8].mxu0 %v1028_v42 }
  0x34   :  { %645 = vmatmul.mubr.bf16.gmra.mrb[8].mxu1 %v1029_v43  ;;  %555 = vmatprep.mubr.bf16.mxu0 %v1030_v44 }
  0x35   :  { %652 = vmatprep.mubr.bf16.mxu1 %v1032_v45 }
  0x3b   :  { %556 = vmatmul.mubr.bf16.gmra.mrb[12].mxu0 %v1034_v46 }
  0x3c   :  { %653 = vmatmul.mubr.bf16.gmra.mrb[12].mxu1 %v1035_v47  ;;  %563 = vmatprep.mubr.bf16.mxu0 %v1036_v48 }
  0x3d   :  { %660 = vmatprep.mubr.bf16.mxu1 %v1038_v49 }
  0x43   :  { %564 = vmatmul.mubr.bf16.gmra.mrb[16].mxu0 %v1040_v50 }
  0x44   :  { %661 = vmatmul.mubr.bf16.gmra.mrb[16].mxu1 %v1041_v51  ;;  %571 = vmatprep.mubr.bf16.mxu0 %v1042_v52 }
  0x45   :  { %668 = vmatprep.mubr.bf16.mxu1 %v1044_v53 }
  0x4b   :  { %572 = vmatmul.mubr.bf16.gmra.mrb[20].mxu0 %v1046_v54 }
  0x4c   :  { %669 = vmatmul.mubr.bf16.gmra.mrb[20].mxu1 %v1047_v55  ;;  %579 = vmatprep.mubr.bf16.mxu0 %v1048_v56 }
  0x4d   :  { %676 = vmatprep.mubr.bf16.mxu1 %v1050_v57 }
  0x53   :  { %580 = vmatmul.mubr.bf16.gmra.mrb[24].mxu0 %v1052_v58 }
  0x54   :  { %677 = vmatmul.mubr.bf16.gmra.mrb[24].mxu1 %v1053_v59  ;;  %587 = vmatprep.mubr.bf16.mxu0 %v1054_v60 }
  0x55   :  { %684 = vmatprep.mubr.bf16.mxu1 %v1056_v61 }
  0x5b   :  { %588 = vmatmul.mubr.bf16.gmra.mrb[28].mxu0 %v1058_v62 }
  0x5c   :  { %685 = vmatmul.mubr.bf16.gmra.mrb[28].mxu1 %v1059_v63 }
  0xf6   :  { %v868_v0 = vpop.f32.mrb[0].mxu0 }
  0xf7   :  { %v932_v1 = vpop.f32.mrb[0].mxu1  ;;  %v869_v2 = vpop.f32.mrb[1].mxu0 }
  0xf8   :  { %v870_v3 = vadd.f32 %v869_v2, %v868_v0  ;;  %v933_v4 = vpop.f32.mrb[1].mxu1  ;;  %v871_v5 = vpop.f32.mrb[2].mxu0 }
  0xf9   :  { %v934_v6 = vadd.f32 %v933_v4, %v932_v1  ;;  %v935_v7 = vpop.f32.mrb[2].mxu1  ;;  %v872_v8 = vpop.f32.mrb[3].mxu0 }
  0xfa   :  { %v873_v10 = vadd.f32 %v872_v8, %v871_v5  ;;  %v936_v11 = vpop.f32.mrb[3].mxu1 }
  0xfb   :  { %v631_v12 = vadd.f32 %v934_v6, %v870_v3  ;;  %v937_v13 = vadd.f32 %v936_v11, %v935_v7 }
  0xfd   :  { %v751_v14 = vadd.f32 %v1275_v9, %v631_v12  ;;  %v634_v15 = vadd.f32 %v937_v13, %v873_v10 }
  0xfe   :  { %v874_v16 = vpop.f32.mrb[4].mxu0 }
  0xff   :  { %767 = vst [vmem:[%s1344_s3] sm:$0xff] %v751_v14  ;;  %v752_v17 = vadd.f32 %v1275_v9, %v634_v15  ;;  %v938_v18 = vpop.f32.mrb[4].mxu1  ;;  %v875_v19 = vpop.f32.mrb[5].mxu0 }
 0x100   :  { %v876_v20 = vadd.f32 %v875_v19, %v874_v16  ;;  %v939_v21 = vpop.f32.mrb[5].mxu1  ;;  %v877_v22 = vpop.f32.mrb[6].mxu0 }
 0x101   :  { %768 = vst [vmem:[%s1344_s3 + $0x8] sm:$0xff] %v752_v17  ;;  %v940_v23 = vadd.f32 %v939_v21, %v938_v18  ;;  %v941_v24 = vpop.f32.mrb[6].mxu1  ;;  %v878_v25 = vpop.f32.mrb[7].mxu0 }
 0x102   :  { %v879_v26 = vadd.f32 %v878_v25, %v877_v22  ;;  %v942_v27 = vpop.f32.mrb[7].mxu1 }
 0x103   :  { %v639_v28 = vadd.f32 %v940_v23, %v876_v20  ;;  %v943_v29 = vadd.f32 %v942_v27, %v941_v24 }
 0x105   :  { %v753_v30 = vadd.f32 %v1275_v9, %v639_v28  ;;  %v642_v31 = vadd.f32 %v943_v29, %v879_v26 }
 0x106   :  { %v880_v32 = vpop.f32.mrb[8].mxu0 }
 0x107   :  { %769 = vst [vmem:[%s1344_s3 + $0x10] sm:$0xff] %v753_v30  ;;  %v754_v33 = vadd.f32 %v1275_v9, %v642_v31  ;;  %v944_v34 = vpop.f32.mrb[8].mxu1  ;;  %v881_v35 = vpop.f32.mrb[9].mxu0 }
 0x108   :  { %v882_v36 = vadd.f32 %v881_v35, %v880_v32  ;;  %v945_v37 = vpop.f32.mrb[9].mxu1  ;;  %v883_v38 = vpop.f32.mrb[10].mxu0 }
 0x109   :  { %770 = vst [vmem:[%s1344_s3 + $0x18] sm:$0xff] %v754_v33  ;;  %v946_v39 = vadd.f32 %v945_v37, %v944_v34  ;;  %v947_v40 = vpop.f32.mrb[10].mxu1  ;;  %v884_v41 = vpop.f32.mrb[11].mxu0 }
 0x10a   :  { %v885_v42 = vadd.f32 %v884_v41, %v883_v38  ;;  %v948_v43 = vpop.f32.mrb[11].mxu1 }
 0x10b   :  { %v647_v44 = vadd.f32 %v946_v39, %v882_v36  ;;  %v949_v45 = vadd.f32 %v948_v43, %v947_v40 }
 0x10d   :  { %v755_v46 = vadd.f32 %v1275_v9, %v647_v44  ;;  %v650_v47 = vadd.f32 %v949_v45, %v885_v42 }
 0x10e   :  { %v886_v48 = vpop.f32.mrb[12].mxu0 }
 0x10f   :  { %771 = vst [vmem:[%s1344_s3 + $0x20] sm:$0xff] %v755_v46  ;;  %v756_v49 = vadd.f32 %v1275_v9, %v650_v47  ;;  %v950_v50 = vpop.f32.mrb[12].mxu1  ;;  %v887_v51 = vpop.f32.mrb[13].mxu0 }
 0x110   :  { %v888_v52 = vadd.f32 %v887_v51, %v886_v48  ;;  %v951_v53 = vpop.f32.mrb[13].mxu1  ;;  %v889_v54 = vpop.f32.mrb[14].mxu0 }
 0x111   :  { %772 = vst [vmem:[%s1344_s3 + $0x28] sm:$0xff] %v756_v49  ;;  %v952_v55 = vadd.f32 %v951_v53, %v950_v50  ;;  %v953_v56 = vpop.f32.mrb[14].mxu1  ;;  %v890_v57 = vpop.f32.mrb[15].mxu0 }
 0x112   :  { %v891_v58 = vadd.f32 %v890_v57, %v889_v54  ;;  %v954_v59 = vpop.f32.mrb[15].mxu1 }
 0x113   :  { %v655_v60 = vadd.f32 %v952_v55, %v888_v52  ;;  %v955_v61 = vadd.f32 %v954_v59, %v953_v56 }
 0x115   :  { %v757_v62 = vadd.f32 %v1275_v9, %v655_v60  ;;  %v658_v63 = vadd.f32 %v955_v61, %v891_v58 }
 0x116   :  { %v892_v0 = vpop.f32.mrb[16].mxu0 }
 0x117   :  { %773 = vst [vmem:[%s1344_s3 + $0x30] sm:$0xff] %v757_v62  ;;  %v758_v1 = vadd.f32 %v1275_v9, %v658_v63  ;;  %v956_v2 = vpop.f32.mrb[16].mxu1  ;;  %v893_v3 = vpop.f32.mrb[17].mxu0 }
 0x118   :  { %v894_v4 = vadd.f32 %v893_v3, %v892_v0  ;;  %v957_v5 = vpop.f32.mrb[17].mxu1  ;;  %v895_v6 = vpop.f32.mrb[18].mxu0 }
 0x119   :  { %774 = vst [vmem:[%s1344_s3 + $0x38] sm:$0xff] %v758_v1  ;;  %v958_v7 = vadd.f32 %v957_v5, %v956_v2  ;;  %v959_v8 = vpop.f32.mrb[18].mxu1  ;;  %v896_v10 = vpop.f32.mrb[19].mxu0 }
 0x11a   :  { %v897_v11 = vadd.f32 %v896_v10, %v895_v6  ;;  %v960_v12 = vpop.f32.mrb[19].mxu1 }
 0x11b   :  { %v663_v13 = vadd.f32 %v958_v7, %v894_v4  ;;  %v961_v14 = vadd.f32 %v960_v12, %v959_v8 }
 0x11d   :  { %v759_v15 = vadd.f32 %v1275_v9, %v663_v13  ;;  %v666_v16 = vadd.f32 %v961_v14, %v897_v11 }
 0x11e   :  { %v898_v17 = vpop.f32.mrb[20].mxu0 }
 0x11f   :  { %775 = vst [vmem:[%s1344_s3 + $0x40] sm:$0xff] %v759_v15  ;;  %v760_v18 = vadd.f32 %v1275_v9, %v666_v16  ;;  %v962_v19 = vpop.f32.mrb[20].mxu1  ;;  %v899_v20 = vpop.f32.mrb[21].mxu0 }
 0x120   :  { %v900_v21 = vadd.f32 %v899_v20, %v898_v17  ;;  %v963_v22 = vpop.f32.mrb[21].mxu1  ;;  %v901_v23 = vpop.f32.mrb[22].mxu0 }
 0x121   :  { %776 = vst [vmem:[%s1344_s3 + $0x48] sm:$0xff] %v760_v18  ;;  %v964_v24 = vadd.f32 %v963_v22, %v962_v19  ;;  %v965_v25 = vpop.f32.mrb[22].mxu1  ;;  %v902_v26 = vpop.f32.mrb[23].mxu0 }
 0x122   :  { %v903_v27 = vadd.f32 %v902_v26, %v901_v23  ;;  %v966_v28 = vpop.f32.mrb[23].mxu1 }
 0x123   :  { %v671_v29 = vadd.f32 %v964_v24, %v900_v21  ;;  %v967_v30 = vadd.f32 %v966_v28, %v965_v25 }
 0x125   :  { %v761_v31 = vadd.f32 %v1275_v9, %v671_v29  ;;  %v674_v32 = vadd.f32 %v967_v30, %v903_v27 }
 0x126   :  { %v904_v33 = vpop.f32.mrb[24].mxu0 }
 0x127   :  { %777 = vst [vmem:[%s1344_s3 + $0x50] sm:$0xff] %v761_v31  ;;  %v762_v34 = vadd.f32 %v1275_v9, %v674_v32  ;;  %v968_v35 = vpop.f32.mrb[24].mxu1  ;;  %v905_v36 = vpop.f32.mrb[25].mxu0 }
 0x128   :  { %v906_v37 = vadd.f32 %v905_v36, %v904_v33  ;;  %v969_v38 = vpop.f32.mrb[25].mxu1  ;;  %v907_v39 = vpop.f32.mrb[26].mxu0 }
 0x129   :  { %778 = vst [vmem:[%s1344_s3 + $0x58] sm:$0xff] %v762_v34  ;;  %v970_v40 = vadd.f32 %v969_v38, %v968_v35  ;;  %v971_v41 = vpop.f32.mrb[26].mxu1  ;;  %v908_v42 = vpop.f32.mrb[27].mxu0 }
 0x12a   :  { %v909_v43 = vadd.f32 %v908_v42, %v907_v39  ;;  %v972_v44 = vpop.f32.mrb[27].mxu1 }
 0x12b   :  { %v679_v45 = vadd.f32 %v970_v40, %v906_v37  ;;  %v973_v46 = vadd.f32 %v972_v44, %v971_v41 }
 0x12d   :  { %v763_v47 = vadd.f32 %v1275_v9, %v679_v45  ;;  %v682_v48 = vadd.f32 %v973_v46, %v909_v43 }
 0x12e   :  { %v910_v49 = vpop.f32.mrb[28].mxu0 }
 0x12f   :  { %779 = vst [vmem:[%s1344_s3 + $0x60] sm:$0xff] %v763_v47  ;;  %v764_v50 = vadd.f32 %v1275_v9, %v682_v48  ;;  %v974_v51 = vpop.f32.mrb[28].mxu1  ;;  %v911_v52 = vpop.f32.mrb[29].mxu0 }
 0x130   :  { %v912_v53 = vadd.f32 %v911_v52, %v910_v49  ;;  %v975_v54 = vpop.f32.mrb[29].mxu1  ;;  %v913_v55 = vpop.f32.mrb[30].mxu0 }
 0x131   :  { %780 = vst [vmem:[%s1344_s3 + $0x68] sm:$0xff] %v764_v50  ;;  %v976_v56 = vadd.f32 %v975_v54, %v974_v51  ;;  %v977_v57 = vpop.f32.mrb[30].mxu1  ;;  %v914_v58 = vpop.f32.mrb[31].mxu0 }
 0x132   :  { %v915_v59 = vadd.f32 %v914_v58, %v913_v55  ;;  %v978_v60 = vpop.f32.mrb[31].mxu1 }
 0x133   :  { %v687_v61 = vadd.f32 %v976_v56, %v912_v53  ;;  %v979_v62 = vadd.f32 %v978_v60, %v977_v57 }
 0x135   :  { %v765_v63 = vadd.f32 %v1275_v9, %v687_v61  ;;  %v690_v0 = vadd.f32 %v979_v62, %v915_v59 }
 0x137   :  { %781 = vst [vmem:[%s1344_s3 + $0x70] sm:$0xff] %v765_v63  ;;  %v766_v1 = vadd.f32 %v1275_v9, %v690_v0 }
 0x139   :  { %782 = vst [vmem:[%s1344_s3 + $0x78] sm:$0xff] %v766_v1 }

// kernel: generator_forward.151
= control target key start
LH: loop header
LB: loop body
LE: loop exit
PB: predicated region body
PF: predicated region fallthrough
CT: control target
= control target key end

     0   :  { %s1513_s12 = smov 0   ;;  %s1515_s13 = smov 0   ;;  %s1774_s0 = inlined_call_operand.vmem [shape: bf16[512,3200], index: 0, kind: input, shape index: {}]   ;;  %s1775_s1 = inlined_call_operand.vmem [shape: bf16[3200,128], index: 1, kind: input, shape index: {}]   ;;  %s1776_s2 = inlined_call_operand.vmem [shape: f32[1,128], index: 2, kind: input, shape index: {}]   ;;  %s1777_s3 = inlined_call_operand.vmem [shape: f32[512,128], index: 3, kind: output, shape index: {}]  }
   0x1   :  { %s1517_s14 = smov 0   ;;  %s1519_s15 = smov 0  }
   0x2   :  { %s1521_s16 = smov 0   ;;  %s1523_s17 = smov 0  }
   0x3   :  { %s1525_s18 = smov 0  }
   0x4 LB: > { %s25_s19 = sadd.s32 1, %s1482_s16  ;;  %s32_s20 = sadd.s32 1, %s1486_s17  ;;  %s1490_s18 = sphi %s1525_s18, %s13_s18   ;;  %s1486_s17 = sphi %s1523_s17, %s1783_s17   ;;  %s1482_s16 = sphi %s1521_s16, %s1782_s16   ;;  %s1478_s15 = sphi %s1519_s15, %s1781_s15   ;;  %s1474_s14 = sphi %s1517_s14, %s1780_s14   ;;  %s1470_s13 = sphi %s1515_s13, %s1779_s13   ;;  %s1466_s12 = sphi %s1513_s12, %s1778_s12  }
   0x5   : > { %p26_p0 = scmp.ge.s32.totalorder %s25_s19, 25  ;;  %p48_p1 = scmp.ne.s32.totalorder %s1470_s13, %s1466_s12 }
   0x6   : > { %p49_p2 = scmp.eq.s32.totalorder %s1490_s18, 0  ;;  %s41_s24 = sadd.s32 1, %s1470_s13 }
   0x7   : > { %s1785_s19 = smov (%p26_p0, %s25_s19), 0  ;;  %s1787_s20 = smov (!%p26_p0, %s32_s20), %s1486_s17 }
   0x8   : > { %p50_p3 = por %p49_p2, %p48_p1  ;;  %p34_p4 = scmp.ge.s32.totalorder %s1787_s20, 2 }
   0x9   : > { %s37_s21 = ssub.s32 %s1482_s16, %s1785_s19  ;;  %p1162_p6 = scmp.ge.s32.totalorder %s1490_s18, 50 }
   0xa   : > { %s1789_s20 = smov (%p34_p4, %s1787_s20), 0 }
   0xb   : > { %s36_s22 = ssub.s32 %s1486_s17, %s1789_s20  ;;  %162 = sbr.rel (%p1162_p6) target bundleno = 46 (0x2e), region = 20 }
   0xc   : > { %s38_s23 = sor.u32 %s37_s21, %s36_s22 }
   0xd   : > { %p39_p5 = scmp.eq.s32.totalorder %s38_s23, 0 }
   0xf   : > { %s1564_s25 = scalar_select %p39_p5, %s1470_s13, %s41_s24  }
  0x12   : > { %165 = sbr.rel (!%p50_p3) target bundleno = 46 (0x2e), region = 24  ;;  %s167_s26 = sand.u32 (%p50_p3), 1, %s1470_s13  }
  0x13   : > { %s1290_s27 = smul.u32 (%p50_p3), 800, %s1486_s17  ;;  %s1163_s28 = sshll.u32 (%p50_p3), %s167_s26, 7 }
  0x14   : > { %s1578_s7 = scalar_lea.vmem (%p50_p3), [#allocation3], %s1163_s28 }
  0x15   : > { %s172_s29 = sadd.s32 (%p50_p3), %s1482_s16, %s1290_s27 }
  0x16   : > { %s1166_s30 = sshll.u32 (%p50_p3), %s172_s29, 2 }
  0x17   : > { %s1573_s6 = scalar_lea.vmem (%p50_p3), %s1774_s0, %s1166_s30 }
  0x18   : > { %v190_v0 = vld [vmem:[%s1573_s6] sm:$0xf] (%p50_p3)  ;;  %v192_v1 = vld [vmem:[%s1573_s6 + $0x64] sm:$0xf] (%p50_p3)  ;;  %v194_v2 = vld [vmem:[%s1573_s6 + $0xc8] sm:$0xf] (%p50_p3) }
  0x19   : > { %191 = vst [vmem:[%s1578_s7] sm:$0xf] %v190_v0  ;;  %193 = vst [vmem:[%s1578_s7 + $0x4] sm:$0xf] %v192_v1  ;;  %v196_v3 = vld [vmem:[%s1573_s6 + $0x12c] sm:$0xf] }
  0x1a   : > { %195 = vst [vmem:[%s1578_s7 + $0x8] sm:$0xf] %v194_v2  ;;  %v198_v4 = vld [vmem:[%s1573_s6 + $0x190] sm:$0xf]  ;;  %v200_v5 = vld [vmem:[%s1573_s6 + $0x1f4] sm:$0xf] }
  0x1b   : > { %197 = vst [vmem:[%s1578_s7 + $0xc] sm:$0xf] %v196_v3  ;;  %199 = vst [vmem:[%s1578_s7 + $0x10] sm:$0xf] %v198_v4  ;;  %v202_v6 = vld [vmem:[%s1573_s6 + $0x258] sm:$0xf] }
  0x1c   : > { %201 = vst [vmem:[%s1578_s7 + $0x14] sm:$0xf] %v200_v5  ;;  %v204_v7 = vld [vmem:[%s1573_s6 + $0x2bc] sm:$0xf]  ;;  %v206_v8 = vld [vmem:[%s1573_s6 + $0x320] sm:$0xf] }
  0x1d   : > { %203 = vst [vmem:[%s1578_s7 + $0x18] sm:$0xf] %v202_v6  ;;  %205 = vst [vmem:[%s1578_s7 + $0x1c] sm:$0xf] %v204_v7  ;;  %v208_v9 = vld [vmem:[%s1573_s6 + $0x384] sm:$0xf] }
  0x1e   : > { %207 = vst [vmem:[%s1578_s7 + $0x20] sm:$0xf] %v206_v8  ;;  %v210_v10 = vld [vmem:[%s1573_s6 + $0x3e8] sm:$0xf]  ;;  %v212_v11 = vld [vmem:[%s1573_s6 + $0x44c] sm:$0xf] }
  0x1f   : > { %209 = vst [vmem:[%s1578_s7 + $0x24] sm:$0xf] %v208_v9  ;;  %211 = vst [vmem:[%s1578_s7 + $0x28] sm:$0xf] %v210_v10  ;;  %v214_v12 = vld [vmem:[%s1573_s6 + $0x4b0] sm:$0xf] }
  0x20   : > { %213 = vst [vmem:[%s1578_s7 + $0x2c] sm:$0xf] %v212_v11  ;;  %v216_v13 = vld [vmem:[%s1573_s6 + $0x514] sm:$0xf]  ;;  %v218_v14 = vld [vmem:[%s1573_s6 + $0x578] sm:$0xf] }
  0x21   : > { %215 = vst [vmem:[%s1578_s7 + $0x30] sm:$0xf] %v214_v12  ;;  %217 = vst [vmem:[%s1578_s7 + $0x34] sm:$0xf] %v216_v13  ;;  %v220_v15 = vld [vmem:[%s1573_s6 + $0x5dc] sm:$0xf] }
  0x22   : > { %219 = vst [vmem:[%s1578_s7 + $0x38] sm:$0xf] %v218_v14  ;;  %v222_v16 = vld [vmem:[%s1573_s6 + $0x640] sm:$0xf]  ;;  %v224_v17 = vld [vmem:[%s1573_s6 + $0x6a4] sm:$0xf] }
  0x23   : > { %221 = vst [vmem:[%s1578_s7 + $0x3c] sm:$0xf] %v220_v15  ;;  %223 = vst [vmem:[%s1578_s7 + $0x40] sm:$0xf] %v222_v16  ;;  %v226_v18 = vld [vmem:[%s1573_s6 + $0x708] sm:$0xf] }
  0x24   : > { %225 = vst [vmem:[%s1578_s7 + $0x44] sm:$0xf] %v224_v17  ;;  %v228_v19 = vld [vmem:[%s1573_s6 + $0x76c] sm:$0xf]  ;;  %v230_v20 = vld [vmem:[%s1573_s6 + $0x7d0] sm:$0xf] }
  0x25   : > { %227 = vst [vmem:[%s1578_s7 + $0x48] sm:$0xf] %v226_v18  ;;  %229 = vst [vmem:[%s1578_s7 + $0x4c] sm:$0xf] %v228_v19  ;;  %v232_v21 = vld [vmem:[%s1573_s6 + $0x834] sm:$0xf] }
  0x26   : > { %231 = vst [vmem:[%s1578_s7 + $0x50] sm:$0xf] %v230_v20  ;;  %v234_v22 = vld [vmem:[%s1573_s6 + $0x898] sm:$0xf]  ;;  %v236_v23 = vld [vmem:[%s1573_s6 + $0x8fc] sm:$0xf] }
  0x27   : > { %233 = vst [vmem:[%s1578_s7 + $0x54] sm:$0xf] %v232_v21  ;;  %235 = vst [vmem:[%s1578_s7 + $0x58] sm:$0xf] %v234_v22  ;;  %v238_v24 = vld [vmem:[%s1573_s6 + $0x960] sm:$0xf] }
  0x28   : > { %237 = vst [vmem:[%s1578_s7 + $0x5c] sm:$0xf] %v236_v23  ;;  %v240_v25 = vld [vmem:[%s1573_s6 + $0x9c4] sm:$0xf]  ;;  %v242_v26 = vld [vmem:[%s1573_s6 + $0xa28] sm:$0xf] }
  0x29   : > { %239 = vst [vmem:[%s1578_s7 + $0x60] sm:$0xf] %v238_v24  ;;  %241 = vst [vmem:[%s1578_s7 + $0x64] sm:$0xf] %v240_v25  ;;  %v244_v27 = vld [vmem:[%s1573_s6 + $0xa8c] sm:$0xf] }
  0x2a   : > { %243 = vst [vmem:[%s1578_s7 + $0x68] sm:$0xf] %v242_v26  ;;  %v246_v28 = vld [vmem:[%s1573_s6 + $0xaf0] sm:$0xf]  ;;  %v248_v29 = vld [vmem:[%s1573_s6 + $0xb54] sm:$0xf] }
  0x2b   : > { %245 = vst [vmem:[%s1578_s7 + $0x6c] sm:$0xf] %v244_v27  ;;  %247 = vst [vmem:[%s1578_s7 + $0x70] sm:$0xf] %v246_v28  ;;  %v250_v30 = vld [vmem:[%s1573_s6 + $0xbb8] sm:$0xf] }
  0x2c   : > { %249 = vst [vmem:[%s1578_s7 + $0x74] sm:$0xf] %v248_v29  ;;  %v252_v31 = vld [vmem:[%s1573_s6 + $0xc1c] sm:$0xf]  ;;  %251 = vst [vmem:[%s1578_s7 + $0x78] sm:$0xf] %v250_v30 }
  0x2d   : > { %253 = vst [vmem:[%s1578_s7 + $0x7c] sm:$0xf] %v252_v31 }
  0x2e PF: > { %p1167_p7 = scmp.ge.s32.totalorder %s1490_s18, 1  ;;  %p351_p8 = scmp.lt.s32.totalorder %s1490_s18, 51 }
  0x30   : > { %p352_p9 = pnand %p1167_p7, %p351_p8 }
  0x31   : > { %s358_s8 = sand.u32 (!%p352_p9), 1, %s1466_s12   ;;  %s1169_s9 = sshll.u32 (!%p352_p9), %s1474_s14, 4 }
  0x32   : > { %355 = sbr.rel (%p352_p9) target bundleno = 389 (0x185), region = 69  ;;  %s1168_s10 = sshll.u32 (!%p352_p9), %s358_s8, 7 }
  0x33   : > { %p397_p10 = scmp.lt.s32.totalorder (!%p352_p9), %s1169_s9, 399  ;;  %s1171_s11 = sshll.u32 (!%p352_p9), %s1478_s15, 5 }
  0x34   : > { %p409_p11 = scmp.lt.s32.totalorder (!%p352_p9), %s1171_s11, 63  ;;  %s1656_s12 = scalar_lea.vmem (!%p352_p9), [#allocation3], %s1168_s10 }
  0x35   : > { %p1173_p12 = scmp.ne.s32.totalorder (!%p352_p9), %s1474_s14, 0 }
  0x39   : > { %s1791_s9 = smov (!%p397_p10, %s1169_s9), 399  ;;  %s1793_s11 = smov (!%p409_p11, %s1171_s11), 63 }
  0x3a   : > { %s1170_s21 = sshll.u32 %s1791_s9, 2  ;;  %s1172_s26 = sshll.u32 %s1793_s11, 3  ;;  %v1492_v32 = vmov (!%p1173_p12), 0.0  }
  0x3b   : > { %s1649_s24 = scalar_lea.vmem %s1775_s1, %s1170_s21  ;;  %s1654_s29 = scalar_lea.vmem %s1777_s3, %s1172_s26  ;;  %422 = vst [vmem:[#allocation2] sm:$0xff] (!%p1173_p12), %v1492_v32  ;;  %423 = vst [vmem:[#allocation2 + $0x8] sm:$0xff] (!%p1173_p12), %v1492_v32 }
  0x3c   : > { %421 = sbr.rel (%p1173_p12) target bundleno = 75 (0x4b), region = 77  ;;  %424 = vst [vmem:[#allocation2 + $0x10] sm:$0xff] (!%p1173_p12), %v1492_v32  ;;  %425 = vst [vmem:[#allocation2 + $0x18] sm:$0xff] (!%p1173_p12), %v1492_v32 }
  0x3d   : > { %426 = vst [vmem:[#allocation2 + $0x20] sm:$0xff] (!%p1173_p12), %v1492_v32  ;;  %427 = vst [vmem:[#allocation2 + $0x28] sm:$0xff] (!%p1173_p12), %v1492_v32 }
  0x3e   : > { %428 = vst [vmem:[#allocation2 + $0x30] sm:$0xff] (!%p1173_p12), %v1492_v32  ;;  %429 = vst [vmem:[#allocation2 + $0x38] sm:$0xff] (!%p1173_p12), %v1492_v32 }
  0x3f   : > { %430 = vst [vmem:[#allocation2 + $0x40] sm:$0xff] (!%p1173_p12), %v1492_v32  ;;  %431 = vst [vmem:[#allocation2 + $0x48] sm:$0xff] (!%p1173_p12), %v1492_v32 }
  0x40   : > { %432 = vst [vmem:[#allocation2 + $0x50] sm:$0xff] (!%p1173_p12), %v1492_v32  ;;  %433 = vst [vmem:[#allocation2 + $0x58] sm:$0xff] (!%p1173_p12), %v1492_v32 }
  0x41   : > { %434 = vst [vmem:[#allocation2 + $0x60] sm:$0xff] (!%p1173_p12), %v1492_v32  ;;  %435 = vst [vmem:[#allocation2 + $0x68] sm:$0xff] (!%p1173_p12), %v1492_v32 }
  0x42   : > { %436 = vst [vmem:[#allocation2 + $0x70] sm:$0xff] (!%p1173_p12), %v1492_v32  ;;  %437 = vst [vmem:[#allocation2 + $0x78] sm:$0xff] (!%p1173_p12), %v1492_v32 }
  0x43   : > { %438 = vst [vmem:[#allocation2 + $0x80] sm:$0xff] %v1492_v32  ;;  %439 = vst [vmem:[#allocation2 + $0x88] sm:$0xff] %v1492_v32 }
  0x44   : > { %440 = vst [vmem:[#allocation2 + $0x90] sm:$0xff] %v1492_v32  ;;  %441 = vst [vmem:[#allocation2 + $0x98] sm:$0xff] %v1492_v32 }
  0x45   : > { %442 = vst [vmem:[#allocation2 + $0xa0] sm:$0xff] %v1492_v32  ;;  %443 = vst [vmem:[#allocation2 + $0xa8] sm:$0xff] %v1492_v32 }
  0x46   : > { %444 = vst [vmem:[#allocation2 + $0xb0] sm:$0xff] %v1492_v32  ;;  %445 = vst [vmem:[#allocation2 + $0xb8] sm:$0xff] %v1492_v32 }
  0x47   : > { %446 = vst [vmem:[#allocation2 + $0xc0] sm:$0xff] %v1492_v32  ;;  %447 = vst [vmem:[#allocation2 + $0xc8] sm:$0xff] %v1492_v32 }
  0x48   : > { %448 = vst [vmem:[#allocation2 + $0xd0] sm:$0xff] %v1492_v32  ;;  %449 = vst [vmem:[#allocation2 + $0xd8] sm:$0xff] %v1492_v32 }
  0x49   : > { %450 = vst [vmem:[#allocation2 + $0xe0] sm:$0xff] %v1492_v32  ;;  %451 = vst [vmem:[#allocation2 + $0xe8] sm:$0xff] %v1492_v32 }
  0x4a   : > { %452 = vst [vmem:[#allocation2 + $0xf0] sm:$0xff] %v1492_v32  ;;  %453 = vst [vmem:[#allocation2 + $0xf8] sm:$0xff] %v1492_v32 }
  0x4b PF: > { %v1348_v33 = vld [vmem:[%s1649_s24] sm:$0xff]   ;;  %v1349_v34 = vld [vmem:[%s1649_s24 + $0x8] sm:$0xff]   ;;  %v1350_v35 = vld [vmem:[%s1649_s24 + $0x10] sm:$0xff]   ;;  %p1198_p13 = scmp.ne.s32.totalorder %s1474_s14, 24 }
  0x4c   : > { %1226 = vmatprep.subr.bf16.mxu0 %v1348_v33  ;;  %1274 = vmatprep.subr.bf16.mxu1 %v1348_v33  ;;  %v1351_v36 = vld [vmem:[%s1649_s24 + $0x18] sm:$0xff]   ;;  %v1356_v37 = vld [vmem:[%s1656_s12] sm:$0xff]   ;;  %v1353_v40 = vld [vmem:[%s1649_s24 + $0x28] sm:$0xff]  }
  0x4d   : > { %1227 = vmatpush3.bf16.msra.mxu0 %v1348_v33  ;;  %1282 = vmatpush3.bf16.msra.mxu1 %v1348_v33  ;;  %v1357_v38 = vld [vmem:[%s1656_s12 + $0x40] sm:$0xff]   ;;  %v1354_v41 = vld [vmem:[%s1649_s24 + $0x30] sm:$0xff]   ;;  %v1355_v42 = vld [vmem:[%s1649_s24 + $0x38] sm:$0xff]  }
  0x4e   : > { %1228 = vmatprep.subr.bf16.mxu0 %v1349_v34  ;;  %1275 = vmatprep.subr.bf16.mxu1 %v1349_v34  ;;  %v1352_v39 = vld [vmem:[%s1649_s24 + $0x20] sm:$0xff]   ;;  %v1358_v43 = vld [vmem:[%s1656_s12 + $0x8] sm:$0xff]   ;;  %v1360_v45 = vld [vmem:[%s1656_s12 + $0x10] sm:$0xff]  }
  0x4f   : > { %1242 = vmatprep.mubr.bf16.mxu0 %v1356_v37  ;;  %1258 = vmatprep.mubr.bf16.mxu1 %v1357_v38  ;;  %v1359_v44 = vld [vmem:[%s1656_s12 + $0x48] sm:$0xff]   ;;  %v1361_v46 = vld [vmem:[%s1656_s12 + $0x50] sm:$0xff]   ;;  %v1362_v47 = vld [vmem:[%s1656_s12 + $0x18] sm:$0xff]  }
  0x50   : > { %v1363_v48 = vld [vmem:[%s1656_s12 + $0x58] sm:$0xff]   ;;  %v1364_v49 = vld [vmem:[%s1656_s12 + $0x20] sm:$0xff]   ;;  %v1366_v51 = vld [vmem:[%s1656_s12 + $0x28] sm:$0xff]  }
  0x51   : > { %1229 = vmatpush3.bf16.msra.mxu0 %v1349_v34  ;;  %1283 = vmatpush3.bf16.msra.mxu1 %v1349_v34  ;;  %v1365_v50 = vld [vmem:[%s1656_s12 + $0x60] sm:$0xff]   ;;  %v1367_v52 = vld [vmem:[%s1656_s12 + $0x68] sm:$0xff]   ;;  %v1368_v53 = vld [vmem:[%s1656_s12 + $0x30] sm:$0xff]  }
  0x52   : > { %1230 = vmatprep.subr.bf16.mxu0 %v1350_v35  ;;  %1276 = vmatprep.subr.bf16.mxu1 %v1350_v35  ;;  %v1369_v54 = vld [vmem:[%s1656_s12 + $0x70] sm:$0xff]   ;;  %v1370_v55 = vld [vmem:[%s1656_s12 + $0x38] sm:$0xff]   ;;  %v454_v59 = vld [vmem:[#allocation2] sm:$0xff] }
  0x53   : > { %v1371_v56 = vld [vmem:[%s1656_s12 + $0x78] sm:$0xff]   ;;  %v456_v57 = vld [vmem:[#allocation2 + $0x10] sm:$0xff]  ;;  %v470_v60 = vld [vmem:[#allocation2 + $0x80] sm:$0xff] }
  0x54   : > { %v472_v58 = vld [vmem:[#allocation2 + $0x90] sm:$0xff]  ;;  %v457_v63 = vld [vmem:[#allocation2 + $0x18] sm:$0xff]  ;;  %v455_v5 = vld [vmem:[#allocation2 + $0x8] sm:$0xff] }
  0x55   : > { %1231 = vmatpush3.bf16.msra.mxu0 %v1350_v35  ;;  %1284 = vmatpush3.bf16.msra.mxu1 %v1350_v35  ;;  %v473_v0 = vld [vmem:[#allocation2 + $0x98] sm:$0xff]  ;;  %v471_v6 = vld [vmem:[#allocation2 + $0x88] sm:$0xff]  ;;  %v460_v17 = vld [vmem:[#allocation2 + $0x30] sm:$0xff] }
  0x56   : > { %1232 = vmatprep.subr.bf16.mxu0 %v1351_v36  ;;  %1277 = vmatprep.subr.bf16.mxu1 %v1351_v36  ;;  %v476_v18 = vld [vmem:[#allocation2 + $0xb0] sm:$0xff]  ;;  %v458_v19 = vld [vmem:[#allocation2 + $0x20] sm:$0xff]  ;;  %v461_v23 = vld [vmem:[#allocation2 + $0x38] sm:$0xff] }
  0x57   : > { %v474_v20 = vld [vmem:[#allocation2 + $0xa0] sm:$0xff]  ;;  %v477_v24 = vld [vmem:[#allocation2 + $0xb8] sm:$0xff]  ;;  %v459_v29 = vld [vmem:[#allocation2 + $0x28] sm:$0xff] }
  0x58   : > { %v475_v30 = vld [vmem:[#allocation2 + $0xa8] sm:$0xff] }
  0x59   : > { %1233 = vmatpush3.bf16.msra.mxu0 %v1351_v36  ;;  %1285 = vmatpush3.bf16.msra.mxu1 %v1351_v36 }
  0x5a   : > { %1234 = vmatprep.subr.bf16.mxu0 %v1352_v39  ;;  %1278 = vmatprep.subr.bf16.mxu1 %v1352_v39 }
  0x5d   : > { %1235 = vmatpush3.bf16.msra.mxu0 %v1352_v39  ;;  %1286 = vmatpush3.bf16.msra.mxu1 %v1352_v39 }
  0x5e   : > { %1236 = vmatprep.subr.bf16.mxu0 %v1353_v40  ;;  %1279 = vmatprep.subr.bf16.mxu1 %v1353_v40 }
  0x61   : > { %1237 = vmatpush3.bf16.msra.mxu0 %v1353_v40  ;;  %1287 = vmatpush3.bf16.msra.mxu1 %v1353_v40 }
  0x62   : > { %1238 = vmatprep.subr.bf16.mxu0 %v1354_v41  ;;  %1280 = vmatprep.subr.bf16.mxu1 %v1354_v41 }
  0x65   : > { %1239 = vmatpush3.bf16.msra.mxu0 %v1354_v41  ;;  %1288 = vmatpush3.bf16.msra.mxu1 %v1354_v41  ;;  %v464_v41 = vld [vmem:[#allocation2 + $0x50] sm:$0xff] }
  0x66   : > { %1240 = vmatprep.subr.bf16.mxu0 %v1355_v42  ;;  %1281 = vmatprep.subr.bf16.mxu1 %v1355_v42 }
  0x69   : > { %1241 = vmatpush3.bf16.msra.mxu0 %v1355_v42  ;;  %1289 = vmatpush3.bf16.msra.mxu1 %v1355_v42  ;;  %v480_v42 = vld [vmem:[#allocation2 + $0xd0] sm:$0xff] }
  0x6c   : > { %1243 = vmatmul.mubr.bf16.vlgmr.msra.gmra.mrb[0].mxu0 %v1358_v43  ;;  %1259 = vmatmul.mubr.bf16.vlgmr.msra.gmra.mrb[0].mxu1 %v1359_v44  ;;  %v462_v43 = vld [vmem:[#allocation2 + $0x40] sm:$0xff] }
  0x6d   : > { %1246 = vmatprep.mubr.bf16.mxu0 %v1360_v45  ;;  %1262 = vmatprep.mubr.bf16.mxu1 %v1361_v46  ;;  %v478_v44 = vld [vmem:[#allocation2 + $0xc0] sm:$0xff] }
  0x74   : > { %1247 = vmatmul.mubr.bf16.gmra.mrb[4].mxu0 %v1362_v47  ;;  %1263 = vmatmul.mubr.bf16.gmra.mrb[4].mxu1 %v1363_v48  ;;  %v465_v47 = vld [vmem:[#allocation2 + $0x58] sm:$0xff] }
  0x75   : > { %1250 = vmatprep.mubr.bf16.mxu0 %v1364_v49  ;;  %1266 = vmatprep.mubr.bf16.mxu1 %v1365_v50  ;;  %v481_v48 = vld [vmem:[#allocation2 + $0xd8] sm:$0xff] }
  0x7c   : > { %1251 = vmatmul.mubr.bf16.gmra.mrb[8].mxu0 %v1366_v51  ;;  %1267 = vmatmul.mubr.bf16.gmra.mrb[8].mxu1 %v1367_v52 }
  0x7d   : > { %1254 = vmatprep.mubr.bf16.mxu0 %v1368_v53  ;;  %1270 = vmatprep.mubr.bf16.mxu1 %v1369_v54  ;;  %v463_v53 = vld [vmem:[#allocation2 + $0x48] sm:$0xff] }
  0x7e   : > { %v479_v54 = vld [vmem:[#allocation2 + $0xc8] sm:$0xff] }
  0x84   : > { %1255 = vmatmul.mubr.bf16.gmra.mrb[12].mxu0 %v1370_v55  ;;  %1271 = vmatmul.mubr.bf16.gmra.mrb[12].mxu1 %v1371_v56 }
 0x13f   : > { %v1244_v61 = vpop.f32.mrb[0].mxu0  ;;  %v1260_v62 = vpop.f32.mrb[0].mxu1 }
 0x140   : > { %v841_v1 = vadd.f32 %v1244_v61, %v456_v57  ;;  %v857_v2 = vadd.f32 %v1260_v62, %v472_v58  ;;  %v712_v3 = vpop.f32.mrb[1].mxu0  ;;  %v776_v4 = vpop.f32.mrb[1].mxu1 }
 0x141   : > { %v839_v7 = vadd.f32 %v712_v3, %v454_v59  ;;  %v855_v8 = vadd.f32 %v776_v4, %v470_v60  ;;  %v1245_v9 = vpop.f32.mrb[2].mxu0  ;;  %v1261_v10 = vpop.f32.mrb[2].mxu1  ;;  %v466_v3 = vld [vmem:[#allocation2 + $0x60] sm:$0xff] }
 0x142   : > { %873 = vst [vmem:[#allocation2 + $0x10] sm:$0xff] %v841_v1  ;;  %889 = vst [vmem:[#allocation2 + $0x90] sm:$0xff] %v857_v2  ;;  %v842_v11 = vadd.f32 %v1245_v9, %v457_v63  ;;  %v858_v12 = vadd.f32 %v1261_v10, %v473_v0  ;;  %v715_v13 = vpop.f32.mrb[3].mxu0  ;;  %v779_v14 = vpop.f32.mrb[3].mxu1  ;;  %v468_v1 = vld [vmem:[#allocation2 + $0x70] sm:$0xff]  ;;  %v482_v4 = vld [vmem:[#allocation2 + $0xe0] sm:$0xff] }
 0x143   : > { %871 = vst [vmem:[#allocation2] sm:$0xff] %v839_v7  ;;  %887 = vst [vmem:[#allocation2 + $0x80] sm:$0xff] %v855_v8  ;;  %v840_v15 = vadd.f32 %v715_v13, %v455_v5  ;;  %v856_v16 = vadd.f32 %v779_v14, %v471_v6  ;;  %v484_v2 = vld [vmem:[#allocation2 + $0xf0] sm:$0xff]  ;;  %v469_v7 = vld [vmem:[#allocation2 + $0x78] sm:$0xff] }
 0x144   : > { %874 = vst [vmem:[#allocation2 + $0x18] sm:$0xff] %v842_v11  ;;  %890 = vst [vmem:[#allocation2 + $0x98] sm:$0xff] %v858_v12  ;;  %v485_v8 = vld [vmem:[#allocation2 + $0xf8] sm:$0xff]  ;;  %v467_v13 = vld [vmem:[#allocation2 + $0x68] sm:$0xff] }
 0x145   : > { %872 = vst [vmem:[#allocation2 + $0x8] sm:$0xff] %v840_v15  ;;  %888 = vst [vmem:[#allocation2 + $0x88] sm:$0xff] %v856_v16  ;;  %v483_v14 = vld [vmem:[#allocation2 + $0xe8] sm:$0xff] }
 0x147   : > { %v1248_v21 = vpop.f32.mrb[4].mxu0  ;;  %v1264_v22 = vpop.f32.mrb[4].mxu1 }
 0x148   : > { %v845_v25 = vadd.f32 %v1248_v21, %v460_v17  ;;  %v861_v26 = vadd.f32 %v1264_v22, %v476_v18  ;;  %v728_v27 = vpop.f32.mrb[5].mxu0  ;;  %v792_v28 = vpop.f32.mrb[5].mxu1 }
 0x149   : > { %v843_v31 = vadd.f32 %v728_v27, %v458_v19  ;;  %v859_v32 = vadd.f32 %v792_v28, %v474_v20  ;;  %v1249_v33 = vpop.f32.mrb[6].mxu0  ;;  %v1265_v34 = vpop.f32.mrb[6].mxu1 }
 0x14a   : > { %877 = vst [vmem:[#allocation2 + $0x30] sm:$0xff] %v845_v25  ;;  %893 = vst [vmem:[#allocation2 + $0xb0] sm:$0xff] %v861_v26  ;;  %v846_v35 = vadd.f32 %v1249_v33, %v461_v23  ;;  %v862_v36 = vadd.f32 %v1265_v34, %v477_v24  ;;  %v731_v37 = vpop.f32.mrb[7].mxu0  ;;  %v795_v38 = vpop.f32.mrb[7].mxu1  ;;  %v907_v25 = vld [vmem:[#allocation2] sm:$0xff] (!%p1198_p13) }
 0x14b   : > { %875 = vst [vmem:[#allocation2 + $0x20] sm:$0xff] %v843_v31  ;;  %891 = vst [vmem:[#allocation2 + $0xa0] sm:$0xff] %v859_v32  ;;  %v844_v39 = vadd.f32 %v731_v37, %v459_v29  ;;  %v860_v40 = vadd.f32 %v795_v38, %v475_v30  ;;  %v1687_v26 = vld [vmem:[%s1776_s2] ss:$0 sm:$0xff] (!%p1198_p13)  ;;  %v909_v30 = vld [vmem:[#allocation2 + $0x10] sm:$0xff] (!%p1198_p13) }
 0x14c   : > { %878 = vst [vmem:[#allocation2 + $0x38] sm:$0xff] %v846_v35  ;;  %894 = vst [vmem:[#allocation2 + $0xb8] sm:$0xff] %v862_v36  ;;  %v908_v27 = vld [vmem:[#allocation2 + $0x8] sm:$0xff] (!%p1198_p13)  ;;  %v946_v28 = vadd.f32 (!%p1198_p13), %v1687_v26, %v907_v25  ;;  %v910_v31 = vld [vmem:[#allocation2 + $0x18] sm:$0xff] (!%p1198_p13)  ;;  %v948_v33 = vadd.f32 (!%p1198_p13), %v1687_v26, %v909_v30 }
 0x14d   : > { %876 = vst [vmem:[#allocation2 + $0x28] sm:$0xff] %v844_v39  ;;  %892 = vst [vmem:[#allocation2 + $0xa8] sm:$0xff] %v860_v40  ;;  %v947_v29 = vadd.f32 (!%p1198_p13), %v1687_v26, %v908_v27  ;;  %v949_v34 = vadd.f32 (!%p1198_p13), %v1687_v26, %v910_v31 }
 0x14e   : > { %1372 = vtanh.f32 (!%p1198_p13), %v946_v28 }
 0x14f   : > { %v1252_v45 = vpop.f32.mrb[8].mxu0  ;;  %v1268_v46 = vpop.f32.mrb[8].mxu1  ;;  %1374 = vtanh.f32 (!%p1198_p13), %v947_v29 }
 0x150   : > { %v849_v49 = vadd.f32 %v1252_v45, %v464_v41  ;;  %v865_v50 = vadd.f32 %v1268_v46, %v480_v42  ;;  %v744_v51 = vpop.f32.mrb[9].mxu0  ;;  %v808_v52 = vpop.f32.mrb[9].mxu1  ;;  %1376 = vtanh.f32 (!%p1198_p13), %v948_v33 }
 0x151   : > { %v847_v55 = vadd.f32 %v744_v51, %v462_v43  ;;  %v863_v56 = vadd.f32 %v808_v52, %v478_v44  ;;  %v1253_v57 = vpop.f32.mrb[10].mxu0  ;;  %v1269_v58 = vpop.f32.mrb[10].mxu1  ;;  %v913_v36 = vld [vmem:[#allocation2 + $0x30] sm:$0xff] (!%p1198_p13)  ;;  %1378 = vtanh.f32 (!%p1198_p13), %v949_v34 }
 0x152   : > { %881 = vst [vmem:[#allocation2 + $0x50] sm:$0xff] %v849_v49  ;;  %897 = vst [vmem:[#allocation2 + $0xd0] sm:$0xff] %v865_v50  ;;  %v850_v59 = vadd.f32 %v1253_v57, %v465_v47  ;;  %v866_v60 = vadd.f32 %v1269_v58, %v481_v48  ;;  %v747_v61 = vpop.f32.mrb[11].mxu0  ;;  %v811_v62 = vpop.f32.mrb[11].mxu1  ;;  %v911_v32 = vld [vmem:[#allocation2 + $0x20] sm:$0xff] (!%p1198_p13)  ;;  %v952_v41 = vadd.f32 (!%p1198_p13), %v1687_v26, %v913_v36 }
 0x153   : > { %879 = vst [vmem:[#allocation2 + $0x40] sm:$0xff] %v847_v55  ;;  %895 = vst [vmem:[#allocation2 + $0xc0] sm:$0xff] %v863_v56  ;;  %v848_v63 = vadd.f32 %v747_v61, %v463_v53  ;;  %v864_v0 = vadd.f32 %v811_v62, %v479_v54  ;;  %v950_v37 = vadd.f32 (!%p1198_p13), %v1687_v26, %v911_v32  ;;  %v914_v38 = vld [vmem:[#allocation2 + $0x38] sm:$0xff] (!%p1198_p13)  ;;  %v923_v56 = vld [vmem:[#allocation2 + $0x80] sm:$0xff] (!%p1198_p13) }
 0x154   : > { %882 = vst [vmem:[#allocation2 + $0x58] sm:$0xff] %v850_v59  ;;  %898 = vst [vmem:[#allocation2 + $0xd8] sm:$0xff] %v866_v60  ;;  %v912_v35 = vld [vmem:[#allocation2 + $0x28] sm:$0xff] (!%p1198_p13)  ;;  %v953_v43 = vadd.f32 (!%p1198_p13), %v1687_v26, %v914_v38  ;;  %v925_v62 = vld [vmem:[#allocation2 + $0x90] sm:$0xff] (!%p1198_p13) }
 0x155   : > { %880 = vst [vmem:[#allocation2 + $0x48] sm:$0xff] %v848_v63  ;;  %896 = vst [vmem:[#allocation2 + $0xc8] sm:$0xff] %v864_v0  ;;  %v951_v39 = vadd.f32 (!%p1198_p13), %v1687_v26, %v912_v35  ;;  %1380 = vtanh.f32 (!%p1198_p13), %v950_v37  ;;  %v924_v59 = vld [vmem:[#allocation2 + $0x88] sm:$0xff] (!%p1198_p13)  ;;  %v962_v0 = vadd.f32 (!%p1198_p13), %v1687_v26, %v923_v56 }
 0x157   : > { %v1256_v5 = vpop.f32.mrb[12].mxu0  ;;  %v1272_v6 = vpop.f32.mrb[12].mxu1  ;;  %906 = sbr.rel (%p1198_p13) target bundleno = 389 (0x185), region = 81  ;;  %1382 = vtanh.f32 (!%p1198_p13), %v951_v39 }
 0x158   : > { %v853_v9 = vadd.f32 %v1256_v5, %v468_v1  ;;  %v869_v10 = vadd.f32 %v1272_v6, %v484_v2  ;;  %v760_v11 = vpop.f32.mrb[13].mxu0  ;;  %v824_v12 = vpop.f32.mrb[13].mxu1  ;;  %1384 = vtanh.f32 (!%p1198_p13), %v952_v41  ;;  %v926_v1 = vld [vmem:[#allocation2 + $0x98] sm:$0xff] (!%p1198_p13)  ;;  %v964_v6 = vadd.f32 (!%p1198_p13), %v1687_v26, %v925_v62 }
 0x159   : > { %v851_v15 = vadd.f32 %v760_v11, %v466_v3  ;;  %v867_v16 = vadd.f32 %v824_v12, %v482_v4  ;;  %v1257_v17 = vpop.f32.mrb[14].mxu0  ;;  %v1273_v18 = vpop.f32.mrb[14].mxu1  ;;  %v917_v44 = vld [vmem:[#allocation2 + $0x50] sm:$0xff] (!%p1198_p13)  ;;  %1386 = vtanh.f32 (!%p1198_p13), %v953_v43  ;;  %v963_v3 = vadd.f32 (!%p1198_p13), %v1687_v26, %v924_v59  ;;  %v927_v4 = vld [vmem:[#allocation2 + $0xa0] sm:$0xff] (!%p1198_p13) }
 0x15a   : > { %885 = vst [vmem:[#allocation2 + $0x70] sm:$0xff] %v853_v9  ;;  %901 = vst [vmem:[#allocation2 + $0xf0] sm:$0xff] %v869_v10  ;;  %v854_v19 = vadd.f32 %v1257_v17, %v469_v7  ;;  %v870_v20 = vadd.f32 %v1273_v18, %v485_v8  ;;  %v763_v21 = vpop.f32.mrb[15].mxu0  ;;  %v827_v22 = vpop.f32.mrb[15].mxu1  ;;  %v915_v40 = vld [vmem:[#allocation2 + $0x40] sm:$0xff] (!%p1198_p13)  ;;  %v956_v49 = vadd.f32 (!%p1198_p13), %v1687_v26, %v917_v44  ;;  %v928_v7 = vld [vmem:[#allocation2 + $0xa8] sm:$0xff] (!%p1198_p13) }
 0x15b   : > { %883 = vst [vmem:[#allocation2 + $0x60] sm:$0xff] %v851_v15  ;;  %899 = vst [vmem:[#allocation2 + $0xe0] sm:$0xff] %v867_v16  ;;  %v852_v23 = vadd.f32 %v763_v21, %v467_v13  ;;  %v868_v24 = vadd.f32 %v827_v22, %v483_v14  ;;  %v954_v45 = vadd.f32 (!%p1198_p13), %v1687_v26, %v915_v40  ;;  %v918_v46 = vld [vmem:[#allocation2 + $0x58] sm:$0xff] (!%p1198_p13)  ;;  %v1373_v57 = vpop.eup (!%p1198_p13), %1372  ;;  %v929_v10 = vld [vmem:[#allocation2 + $0xb0] sm:$0xff] (!%p1198_p13) }
 0x15c   : > { %886 = vst [vmem:[#allocation2 + $0x78] sm:$0xff] %v854_v19  ;;  %902 = vst [vmem:[#allocation2 + $0xf8] sm:$0xff] %v870_v20  ;;  %v916_v42 = vld [vmem:[#allocation2 + $0x48] sm:$0xff] (!%p1198_p13)  ;;  %v957_v51 = vadd.f32 (!%p1198_p13), %v1687_v26, %v918_v46  ;;  %v1375_v60 = vpop.eup (!%p1198_p13), %1374  ;;  %v965_v9 = vadd.f32 (!%p1198_p13), %v1687_v26, %v926_v1  ;;  %v966_v12 = vadd.f32 (!%p1198_p13), %v1687_v26, %v927_v4  ;;  %v930_v13 = vld [vmem:[#allocation2 + $0xb8] sm:$0xff] (!%p1198_p13) }
 0x15d   : > { %884 = vst [vmem:[#allocation2 + $0x68] sm:$0xff] %v852_v23  ;;  %900 = vst [vmem:[#allocation2 + $0xe8] sm:$0xff] %v868_v24  ;;  %v955_v47 = vadd.f32 (!%p1198_p13), %v1687_v26, %v916_v42  ;;  %1388 = vtanh.f32 (!%p1198_p13), %v954_v45  ;;  %v1377_v63 = vpop.eup (!%p1198_p13), %1376  ;;  %v967_v15 = vadd.f32 (!%p1198_p13), %v1687_v26, %v928_v7  ;;  %v931_v16 = vld [vmem:[#allocation2 + $0xc0] sm:$0xff] (!%p1198_p13)  ;;  %v968_v18 = vadd.f32 (!%p1198_p13), %v1687_v26, %v929_v10  ;;  %v932_v19 = vld [vmem:[#allocation2 + $0xc8] sm:$0xff] (!%p1198_p13) }
 0x15e   : > { %1010 = vst [vmem:[%s1654_s29] sm:$0xff] %v1373_v57  ;;  %1011 = vst [vmem:[%s1654_s29 + $0x8] sm:$0xff] %v1375_v60  ;;  %v1379_v2 = vpop.eup %1378  ;;  %v969_v21 = vadd.f32 %v1687_v26, %v930_v13  ;;  %v933_v22 = vld [vmem:[#allocation2 + $0xd0] sm:$0xff]  ;;  %v970_v24 = vadd.f32 %v1687_v26, %v931_v16  ;;  %v934_v25 = vld [vmem:[#allocation2 + $0xd8] sm:$0xff]  ;;  %v971_v28 = vadd.f32 %v1687_v26, %v932_v19 }
 0x15f   : > { %1390 = vtanh.f32 %v955_v47  ;;  %1012 = vst [vmem:[%s1654_s29 + $0x10] sm:$0xff] %v1377_v63  ;;  %v1381_v5 = vpop.eup %1380  ;;  %1013 = vst [vmem:[%s1654_s29 + $0x18] sm:$0xff] %v1379_v2  ;;  %v972_v31 = vadd.f32 %v1687_v26, %v933_v22  ;;  %v973_v34 = vadd.f32 %v1687_v26, %v934_v25 }
 0x160   : > { %1392 = vtanh.f32 %v956_v49  ;;  %1014 = vst [vmem:[%s1654_s29 + $0x20] sm:$0xff] %v1381_v5 }
 0x161   : > { %v921_v52 = vld [vmem:[#allocation2 + $0x70] sm:$0xff]  ;;  %1394 = vtanh.f32 %v957_v51  ;;  %v1383_v8 = vpop.eup %1382 }
 0x162   : > { %v919_v48 = vld [vmem:[#allocation2 + $0x60] sm:$0xff]  ;;  %v960_v58 = vadd.f32 %v1687_v26, %v921_v52  ;;  %v1385_v11 = vpop.eup %1384  ;;  %1015 = vst [vmem:[%s1654_s29 + $0x28] sm:$0xff] %v1383_v8  ;;  %v937_v35 = vld [vmem:[#allocation2 + $0xf0] sm:$0xff] }
 0x163   : > { %v958_v53 = vadd.f32 %v1687_v26, %v919_v48  ;;  %v922_v54 = vld [vmem:[#allocation2 + $0x78] sm:$0xff]  ;;  %v1387_v14 = vpop.eup %1386  ;;  %1016 = vst [vmem:[%s1654_s29 + $0x30] sm:$0xff] %v1385_v11  ;;  %v935_v29 = vld [vmem:[#allocation2 + $0xe0] sm:$0xff]  ;;  %v976_v42 = vadd.f32 %v1687_v26, %v937_v35 }
 0x164   : > { %v920_v50 = vld [vmem:[#allocation2 + $0x68] sm:$0xff]  ;;  %v961_v61 = vadd.f32 %v1687_v26, %v922_v54  ;;  %1017 = vst [vmem:[%s1654_s29 + $0x38] sm:$0xff] %v1387_v14  ;;  %v974_v37 = vadd.f32 %v1687_v26, %v935_v29  ;;  %v938_v38 = vld [vmem:[#allocation2 + $0xf8] sm:$0xff] }
 0x165   : > { %v959_v55 = vadd.f32 %v1687_v26, %v920_v50  ;;  %1396 = vtanh.f32 %v958_v53  ;;  %v936_v32 = vld [vmem:[#allocation2 + $0xe8] sm:$0xff]  ;;  %v977_v44 = vadd.f32 %v1687_v26, %v938_v38 }
 0x166   : > { %v975_v40 = vadd.f32 %v1687_v26, %v936_v32 }
 0x167   : > { %1398 = vtanh.f32 %v959_v55  ;;  %v1389_v17 = vpop.eup %1388 }
 0x168   : > { %1400 = vtanh.f32 %v960_v58  ;;  %1018 = vst [vmem:[%s1654_s29 + $0x40] sm:$0xff] %v1389_v17 }
 0x169   : > { %1402 = vtanh.f32 %v961_v61  ;;  %v1391_v20 = vpop.eup %1390 }
 0x16a   : > { %1404 = vtanh.f32 %v962_v0  ;;  %v1393_v23 = vpop.eup %1392  ;;  %1019 = vst [vmem:[%s1654_s29 + $0x48] sm:$0xff] %v1391_v20 }
 0x16b   : > { %1406 = vtanh.f32 %v963_v3  ;;  %v1395_v27 = vpop.eup %1394  ;;  %1020 = vst [vmem:[%s1654_s29 + $0x50] sm:$0xff] %v1393_v23 }
 0x16c   : > { %1408 = vtanh.f32 %v964_v6  ;;  %1021 = vst [vmem:[%s1654_s29 + $0x58] sm:$0xff] %v1395_v27 }
 0x16d   : > { %1410 = vtanh.f32 %v965_v9 }
 0x16e   : > { %1412 = vtanh.f32 %v966_v12 }
 0x16f   : > { %1414 = vtanh.f32 %v967_v15  ;;  %v1397_v30 = vpop.eup %1396 }
 0x170   : > { %1416 = vtanh.f32 %v968_v18  ;;  %1022 = vst [vmem:[%s1654_s29 + $0x60] sm:$0xff] %v1397_v30 }
 0x171   : > { %v1399_v33 = vpop.eup %1398  ;;  %1418 = vtanh.f32 %v969_v21 }
 0x172   : > { %v1401_v36 = vpop.eup %1400  ;;  %1023 = vst [vmem:[%s1654_s29 + $0x68] sm:$0xff] %v1399_v33  ;;  %1420 = vtanh.f32 %v970_v24 }
 0x173   : > { %v1403_v39 = vpop.eup %1402  ;;  %1024 = vst [vmem:[%s1654_s29 + $0x70] sm:$0xff] %v1401_v36  ;;  %1422 = vtanh.f32 %v971_v28 }
 0x174   : > { %v1405_v41 = vpop.eup %1404  ;;  %1025 = vst [vmem:[%s1654_s29 + $0x78] sm:$0xff] %v1403_v39  ;;  %1424 = vtanh.f32 %v972_v31 }
 0x175   : > { %v1407_v43 = vpop.eup %1406  ;;  %1026 = vst [vmem:[%s1654_s29 + $0x80] sm:$0xff] %v1405_v41  ;;  %1426 = vtanh.f32 %v973_v34 }
 0x176   : > { %v1409_v45 = vpop.eup %1408  ;;  %1027 = vst [vmem:[%s1654_s29 + $0x88] sm:$0xff] %v1407_v43  ;;  %1428 = vtanh.f32 %v974_v37 }
 0x177   : > { %v1411_v46 = vpop.eup %1410  ;;  %1028 = vst [vmem:[%s1654_s29 + $0x90] sm:$0xff] %v1409_v45  ;;  %1430 = vtanh.f32 %v975_v40 }
 0x178   : > { %v1413_v47 = vpop.eup %1412  ;;  %1029 = vst [vmem:[%s1654_s29 + $0x98] sm:$0xff] %v1411_v46  ;;  %1432 = vtanh.f32 %v976_v42 }
 0x179   : > { %v1415_v48 = vpop.eup %1414  ;;  %1030 = vst [vmem:[%s1654_s29 + $0xa0] sm:$0xff] %v1413_v47  ;;  %1434 = vtanh.f32 %v977_v44 }
 0x17a   : > { %v1417_v26 = vpop.eup %1416  ;;  %1031 = vst [vmem:[%s1654_s29 + $0xa8] sm:$0xff] %v1415_v48 }
 0x17b   : > { %v1419_v49 = vpop.eup %1418  ;;  %1032 = vst [vmem:[%s1654_s29 + $0xb0] sm:$0xff] %v1417_v26 }
 0x17c   : > { %v1421_v50 = vpop.eup %1420  ;;  %1033 = vst [vmem:[%s1654_s29 + $0xb8] sm:$0xff] %v1419_v49 }
 0x17d   : > { %v1423_v51 = vpop.eup %1422  ;;  %1034 = vst [vmem:[%s1654_s29 + $0xc0] sm:$0xff] %v1421_v50 }
 0x17e   : > { %v1425_v52 = vpop.eup %1424  ;;  %1035 = vst [vmem:[%s1654_s29 + $0xc8] sm:$0xff] %v1423_v51 }
 0x17f   : > { %v1427_v53 = vpop.eup %1426  ;;  %1036 = vst [vmem:[%s1654_s29 + $0xd0] sm:$0xff] %v1425_v52 }
 0x180   : > { %v1429_v54 = vpop.eup %1428  ;;  %1037 = vst [vmem:[%s1654_s29 + $0xd8] sm:$0xff] %v1427_v53 }
 0x181   : > { %v1431_v55 = vpop.eup %1430  ;;  %1038 = vst [vmem:[%s1654_s29 + $0xe0] sm:$0xff] %v1429_v54 }
 0x182   : > { %v1433_v56 = vpop.eup %1432  ;;  %1039 = vst [vmem:[%s1654_s29 + $0xe8] sm:$0xff] %v1431_v55 }
 0x183   : > { %v1435_v57 = vpop.eup %1434  ;;  %1040 = vst [vmem:[%s1654_s29 + $0xf0] sm:$0xff] %v1433_v56 }
 0x184   : > { %1041 = vst [vmem:[%s1654_s29 + $0xf8] sm:$0xff] %v1435_v57 }
 0x185 PF: > { %s13_s18 = sadd.s32 1, %s1490_s18   ;;  %s1778_s12 = smov %s1470_s13 }
 0x186   : > { %p10_p0 = scmp.ge.s32.totalorder %s13_s18, 52   ;;  %s1779_s13 = smov %s1564_s25 }
 0x187   : > { %s1780_s14 = smov %s1482_s16  ;;  %s1781_s15 = smov %s1486_s17 }
 0x188   : > { %s1782_s16 = smov %s1785_s19  ;;  %s1783_s17 = smov %s1789_s20 }
 0x189   :  { %12 = sbr.rel (!%p10_p0) target bundleno = 4 (0x4), region = 122 }

</bundles_post_ra>
